<compile_context>
chip_gen: v5e
topology: v5e:2x2
jax: 0.10.0
libtpu: 0.0.40
codegen_flags: <defaults>
</compile_context>

<pallas_src>
import numpy as np
import jax
import jax.numpy as jnp
from jax.experimental import pallas as pl
from jax.experimental.pallas import tpu as pltpu


# ---------------------------------------------------------------------------
# Weight-slab layout (static Python ints; shared by pack_params and the kernel)
# ---------------------------------------------------------------------------
def _round_up(x, m):
    return ((x + m - 1) // m) * m


def _layouts(units):
    """Row offsets of every weight inside the f32 and bf16 slabs (width 128 lanes)."""
    u2 = units // 2
    vdim = 2 * u2 + 2 * units                       # packed vector-tower width (48)

    f32_entries = [
        # vector towers, block-diagonal packed [state | control | pose | sensors]
        ('wv_in', 36, vdim), ('bv_in', 1, vdim),
        ('wv_r1', vdim, vdim), ('bv_r1', 1, vdim),
        ('wv_r2', vdim, vdim), ('bv_r2', 1, vdim),
        # conv biases (cout, 1)
        ('bc1', 4, 1), ('bcr1', 4, 1), ('bcr2', 4, 1), ('bc2', 1, 1),
        # image tower tail
        ('bim', 1, units),
        ('wim_r1', units, units), ('bim_r1', 1, units),
        ('wim_r2', units, units), ('bim_r2', 1, units),
        # shared head (cat + Linear folded into one (vdim+units, units) weight)
        ('ws_cat', vdim + units, units), ('bs1', 1, units),
        ('wsr1a', units, units), ('bsr1a', 1, units),
        ('wsr1b', units, units), ('bsr1b', 1, units),
        ('wsr2a', units, units), ('bsr2a', 1, units),
        ('wsr2b', units, units), ('bsr2b', 1, units),
        ('wout', units, 2), ('bout', 1, 2),
    ]
    bf16_entries = [
        # im2col conv weights (cout, 9*cin)
        ('wc1', 4, 9), ('wcr1', 4, 36), ('wcr2', 4, 36), ('wc2', 1, 36),
        # flatten Linear(1024, units)
        ('wim', 1024, units),
    ]

    f32_lay, off = {}, 0
    for name, r, c in f32_entries:
        f32_lay[name] = (off, r, c)
        off += _round_up(r, 8)              # sublane-aligned f32 row blocks
    f32_rows = off

    bf16_lay, off = {}, 0
    for name, r, c in bf16_entries:
        bf16_lay[name] = (off, r, c)
        off += _round_up(r, 16)             # bf16 packs 2 rows/sublane -> 16-row blocks
    bf16_rows = off
    return f32_lay, f32_rows, bf16_lay, bf16_rows


# ---------------------------------------------------------------------------
# Fused Pallas kernel (one batch block of block_n samples per grid step)
# ---------------------------------------------------------------------------
def _build_fused_kernel(block_n, units, h=32, w=32):
    hw = h * w
    P = block_n * hw
    relu_cols = 2 * (units // 2)            # state+control columns get the post-Linear ReLU
    f32_lay, _, bf16_lay, _ = _layouts(units)
    f32, bf16 = jnp.float32, jnp.bfloat16

    def kernel(xv_ref, img_ref, masks_ref, wf_ref, wb_ref, out_ref):

        def W(name):                         # static slice view into the f32 slab
            off, r, c = f32_lay[name]
            return wf_ref[off:off + r, :c]

        def relu(x):
            return jnp.maximum(x, 0.0)

        def linear(x, wname, bname):
            return jnp.dot(x, W(wname), preferred_element_type=f32) + W(bname)

        def resblock(x, w1, b1, w2, b2):
            # fannypack resblocks.Linear: relu(block2(relu(block1(x))) + x)
            h1 = relu(linear(x, w1, b1))
            return relu(linear(h1, w2, b2) + x)

        # ----------------------------------------------------------------- #
        # Vector towers, block-diagonal packed: [state | control | pose | sensors]
        # ----------------------------------------------------------------- #
        y = linear(xv_ref[...], 'wv_in', 'bv_in')                 # (bn, 3*units)
        col = jax.lax.broadcasted_iota(jnp.int32, y.shape, 1)
        y = jnp.where(col < relu_cols, relu(y), y)                # ReLU on state/control only
        vec_feat = resblock(y, 'wv_r1', 'bv_r1', 'wv_r2', 'bv_r2')

        # ----------------------------------------------------------------- #
        # Image tower, lane-dense (C, block_n*h*w) layout.
        # 3x3 "same" conv as im2col stack + ONE MXU dot; separable boundary masks
        # (precomputed host-side) also kill cross-sample wraparound of the rolls.
        # ----------------------------------------------------------------- #
        m_up = masks_ref[0:1, :]     # dy = -1 valid (r >= 1)
        m_dn = masks_ref[1:2, :]     # dy = +1 valid (r <= h-2)
        m_lf = masks_ref[2:3, :]     # dx = -1 valid (c >= 1)
        m_rt = masks_ref[3:4, :]     # dx = +1 valid (c <= w-2)

        def conv3x3(x, wname, bname, cin, cout):
            # composed rolls: 2 vertical (+-w) then 6 horizontal (+-1) -> 8 rolls total
            v = [jnp.roll(x, w, axis=1) * m_up,        # dy = -1
                 x,                                     # dy =  0
                 jnp.roll(x, -w, axis=1) * m_dn]        # dy = +1
            pieces = []
            for vi in v:
                pieces.append(jnp.roll(vi, 1, axis=1) * m_lf)     # dx = -1
                pieces.append(vi)                                  # dx =  0
                pieces.append(jnp.roll(vi, -1, axis=1) * m_rt)     # dx = +1
            stack = jnp.concatenate(pieces, axis=0).astype(bf16)   # (9*cin, P)
            woff, _, _ = bf16_lay[wname]
            wmat = wb_ref[woff:woff + cout, :9 * cin]               # (cout, 9*cin) bf16
            return jnp.dot(wmat, stack, preferred_element_type=f32) + W(bname)

        x0 = img_ref[...]                                          # (1, P)
        a = relu(conv3x3(x0, 'wc1', 'bc1', 1, 4))                  # Conv(1->4) + ReLU
        t = relu(conv3x3(a, 'wcr1', 'bcr1', 4, 4))                 # resblocks.Conv2d(4)
        b = relu(conv3x3(t, 'wcr2', 'bcr2', 4, 4) + a)
        cimg = relu(conv3x3(b, 'wc2', 'bc2', 4, 1))                # Conv(4->1) + ReLU, (1, P)

        # Flatten + Linear(1024, units): assemble (bn, 1024) once, single M=bn bf16 dot.
        cmat = jnp.concatenate(
            [cimg[:, i * hw:(i + 1) * hw] for i in range(block_n)], axis=0).astype(bf16)
        woff, _, _ = bf16_lay['wim']
        img_lin = relu(jnp.dot(cmat, wb_ref[woff:woff + hw, :units],
                               preferred_element_type=f32) + W('bim'))
        img_feat = resblock(img_lin, 'wim_r1', 'bim_r1', 'wim_r2', 'bim_r2')

        # ----------------------------------------------------------------- #
        # Shared head: torch.cat + Linear(64, units) as ONE dot against the
        # vertically packed [w_vec ; w_img] weight (rows reordered at pack time).
        # ----------------------------------------------------------------- #
        merged = jnp.concatenate([vec_feat, img_feat], axis=1)     # (bn, 4*units)
        hsh = relu(jnp.dot(merged, W('ws_cat'), preferred_element_type=f32) + W('bs1'))
        hsh = resblock(hsh, 'wsr1a', 'bsr1a', 'wsr1b', 'bsr1b')
        hsh = resblock(hsh, 'wsr2a', 'bsr2a', 'wsr2b', 'bsr2b')
        out_ref[...] = jnp.dot(hsh, W('wout'), preferred_element_type=f32) + W('bout')

    return kernel


# ---------------------------------------------------------------------------
# Wrapper: batch-blocked grid, host-built masks, two weight-slab DMAs
# ---------------------------------------------------------------------------
def panda_baseline_forward(packed, states_prev, observations, controls,
                           use_prev_state=True):
    n = states_prev.shape[0]
    units = packed['units'].shape[0]
    h = w = 32
    hw = h * w
    img = observations['image']
    assert img.shape[1:] == (h, w), "Flatten -> Linear(1024, .) requires 32x32 images"

    sp = states_prev if use_prev_state else jnp.zeros_like(states_prev)
    # Packed vector-tower input: [state(2) | control(20) | pose(7) | sensors(7)]
    xv = jnp.concatenate(
        [sp, controls, observations['gripper_pose'],
         observations['gripper_sensors']], axis=1).astype(jnp.float32)
    img_flat = img.astype(jnp.float32).reshape(1, n * hw)

    # Batch blocking: block_n samples per grid step; "parallel" axis lets v7x's 2 TCs
    # (and megacore) shard batches.  block_n<=32 keeps the im2col working set well under
    # v7x's 64 MiB (32 MiB scoped) VMEM.
    block_n = n if n <= 32 else 32
    n_pad = -(-n // block_n) * block_n
    if n_pad != n:
        xv = jnp.pad(xv, ((0, n_pad - n), (0, 0)))
        img_flat = jnp.pad(img_flat, ((0, 0), (0, (n_pad - n) * hw)))
    P = block_n * hw
    grid = (n_pad // block_n,)

    # Separable boundary-validity masks, built on the host at trace time (constants).
    pos = np.arange(P)
    r_idx = (pos // w) % h
    c_idx = pos % w
    masks = jnp.asarray(np.stack([(r_idx >= 1), (r_idx <= h - 2),
                                  (c_idx >= 1), (c_idx <= w - 2)]).astype(np.float32))

    f32_lay, rf, bf16_lay, rb = _layouts(units)
    vdim = 2 * (units // 2) + 2 * units

    conv_macs = 9 * hw * (1 * 4 + 4 * 4 + 4 * 4 + 4 * 1)
    lin_macs = (hw * units + 36 * vdim + 2 * vdim * vdim
                + (vdim + units) * units + 8 * units * units + units * 2)
    cost = pl.CostEstimate(
        flops=2 * n_pad * (conv_macs + lin_macs),
        transcendentals=0,
        bytes_accessed=int(xv.size * 4 + img_flat.size * 4 + masks.size * 4
                           + rf * 128 * 4 + rb * 128 * 2 + n_pad * 2 * 4))

    out = pl.pallas_call(
        _build_fused_kernel(block_n, units, h, w),
        out_shape=jax.ShapeDtypeStruct((n_pad, 2), jnp.float32),
        grid=grid,
        in_specs=[
            pl.BlockSpec((block_n, xv.shape[1]), lambda b: (b, 0)),   # vector inputs
            pl.BlockSpec((1, P), lambda b: (0, b)),                   # image block
            pl.BlockSpec((4, P), lambda b: (0, 0)),                   # boundary masks
            pl.BlockSpec((rf, 128), lambda b: (0, 0)),                # f32 weight slab
            pl.BlockSpec((rb, 128), lambda b: (0, 0)),                # bf16 weight slab
        ],
        out_specs=pl.BlockSpec((block_n, 2), lambda b: (b, 0)),
        compiler_params=pltpu.CompilerParams(
            dimension_semantics=("parallel",),
            vmem_limit_bytes=32 * 1024 * 1024),
        cost_estimate=cost,
    )(xv, img_flat, masks, packed['wf'], packed['wb'])
    return out[:n]


# ---------------------------------------------------------------------------
# Parameters (deterministic synthetic init; shapes follow the nn.Module.__init__)
# Linear weights are stored as (D_in, D_out) == torch weight.T, biases as (1, D_out).
# Conv weights are (C_out, C_in, 3, 3), biases (C_out,).
# ---------------------------------------------------------------------------
def init_params(key, units=16):
    keys = iter(jax.random.split(key, 64))

    def u(shape):
        return jax.random.uniform(next(keys), shape, jnp.float32, -0.1, 0.1)

    def lin(din, dout):
        return {'w': u((din, dout)), 'b': u((1, dout))}

    def res(d):
        return {'w1': u((d, d)), 'b1': u((1, d)), 'w2': u((d, d)), 'b2': u((1, d))}

    u2 = units // 2
    return {
        'state':   {'lin': lin(2, u2),  'res': res(u2)},
        'control': {'lin': lin(20, u2), 'res': res(u2)},
        'pose':    {'lin': lin(7, units), 'res': res(units)},
        'sensors': {'lin': lin(7, units), 'res': res(units)},
        'image': {
            'conv1': {'w': u((4, 1, 3, 3)), 'b': u((4,))},
            'res_conv': {'w1': u((4, 4, 3, 3)), 'b1': u((4,)),
                         'w2': u((4, 4, 3, 3)), 'b2': u((4,))},
            'conv2': {'w': u((1, 4, 3, 3)), 'b': u((1,))},
            'lin': lin(1024, units), 'res': res(units),
        },
        'shared': {
            'lin1': lin(u2 * 2 + units * 3, units),
            'res1': res(units), 'res2': res(units),
            'lin2': lin(units, 2),
        },
    }


def pack_params(raw):
    """One-time host-side repack of the raw (torch-layout) params into two VMEM slabs."""
    units = raw['shared']['lin1']['b'].shape[1]
    u2 = units // 2
    f32_lay, rf, bf16_lay, rb = _layouts(units)

    def np_(x):
        return np.asarray(x, np.float32)

    def block_diag(mats):
        rows = sum(m.shape[0] for m in mats)
        cols = sum(m.shape[1] for m in mats)
        out = np.zeros((rows, cols), np.float32)
        r = c = 0
        for m in mats:
            out[r:r + m.shape[0], c:c + m.shape[1]] = m
            r += m.shape[0]
            c += m.shape[1]
        return out

    def conv_w(wc):   # (cout, cin, 3, 3) -> (cout, 9*cin), tap-major / channel-minor
        wc = np_(wc)
        co, ci = wc.shape[0], wc.shape[1]
        return np.transpose(wc, (0, 2, 3, 1)).reshape(co, 9 * ci)

    towers = [raw['state'], raw['control'], raw['pose'], raw['sensors']]
    im = raw['image']
    sh = raw['shared']

    # shared-head weight rows follow torch.cat order [state|image|pose|sensors|control];
    # reorder to the packed kernel order [state|control|pose|sensors] + [image].
    w1 = np_(sh['lin1']['w'])
    s0, s1 = 0, u2
    i0, i1 = s1, s1 + units
    p0, p1 = i1, i1 + units
    g0, g1 = p1, p1 + units
    c0, c1 = g1, g1 + u2
    ws_cat = np.concatenate([w1[s0:s1], w1[c0:c1], w1[p0:p1], w1[g0:g1], w1[i0:i1]], axis=0)

    vals_f32 = {
        'wv_in': block_diag([np_(t['lin']['w']) for t in towers]),
        'bv_in': np.concatenate([np_(t['lin']['b']) for t in towers], axis=1),
        'wv_r1': block_diag([np_(t['res']['w1']) for t in towers]),
        'bv_r1': np.concatenate([np_(t['res']['b1']) for t in towers], axis=1),
        'wv_r2': block_diag([np_(t['res']['w2']) for t in towers]),
        'bv_r2': np.concatenate([np_(t['res']['b2']) for t in towers], axis=1),
        'bc1': np_(im['conv1']['b']).reshape(-1, 1),
        'bcr1': np_(im['res_conv']['b1']).reshape(-1, 1),
        'bcr2': np_(im['res_conv']['b2']).reshape(-1, 1),
        'bc2': np_(im['conv2']['b']).reshape(-1, 1),
        'bim': np_(im['lin']['b']),
        'wim_r1': np_(im['res']['w1']), 'bim_r1': np_(im['res']['b1']),
        'wim_r2': np_(im['res']['w2']), 'bim_r2': np_(im['res']['b2']),
        'ws_cat': ws_cat, 'bs1': np_(sh['lin1']['b']),
        'wsr1a': np_(sh['res1']['w1']), 'bsr1a': np_(sh['res1']['b1']),
        'wsr1b': np_(sh['res1']['w2']), 'bsr1b': np_(sh['res1']['b2']),
        'wsr2a': np_(sh['res2']['w1']), 'bsr2a': np_(sh['res2']['b1']),
        'wsr2b': np_(sh['res2']['w2']), 'bsr2b': np_(sh['res2']['b2']),
        'wout': np_(sh['lin2']['w']), 'bout': np_(sh['lin2']['b']),
    }
    vals_bf16 = {
        'wc1': conv_w(im['conv1']['w']),
        'wcr1': conv_w(im['res_conv']['w1']),
        'wcr2': conv_w(im['res_conv']['w2']),
        'wc2': conv_w(im['conv2']['w']),
        'wim': np_(im['lin']['w']),
    }

    wf = np.zeros((rf, 128), np.float32)
    for name, arr in vals_f32.items():
        off, r, c = f32_lay[name]
        wf[off:off + r, :c] = arr
    wb = np.zeros((rb, 128), np.float32)
    for name, arr in vals_bf16.items():
        off, r, c = bf16_lay[name]
        wb[off:off + r, :c] = arr

    return {'wf': jnp.asarray(wf),
            'wb': jnp.asarray(wb).astype(jnp.bfloat16),
            'units': jnp.zeros((units,), jnp.float32)}   # shape tag only


# ---------------------------------------------------------------------------
# Pure-JAX (XLA) reference of the same module, used for an in-script cross-check.
# ---------------------------------------------------------------------------
def panda_baseline_forward_ref(raw, states_prev, observations, controls,
                               use_prev_state=True):
    prec = jax.lax.Precision.HIGHEST
    dot = lambda a, b: jnp.dot(a, b, precision=prec)
    relu = lambda x: jnp.maximum(x, 0.0)

    def lin(x, p):
        return dot(x, p['w']) + p['b']

    def resb(x, p):
        h = relu(dot(x, p['w1']) + p['b1'])
        return relu(dot(h, p['w2']) + p['b2'] + x)

    def conv(x, wc, bc):
        y = jax.lax.conv_general_dilated(
            x, wc, window_strides=(1, 1), padding='SAME',
            dimension_numbers=('NCHW', 'OIHW', 'NCHW'), precision=prec)
        return y + bc.reshape(1, -1, 1, 1)

    n = states_prev.shape[0]
    sp = states_prev if use_prev_state else jnp.zeros_like(states_prev)

    state_f = resb(relu(lin(sp, raw['state']['lin'])), raw['state']['res'])
    control_f = resb(relu(lin(controls, raw['control']['lin'])), raw['control']['res'])

    im = raw['image']
    x = observations['image'][:, None, :, :]
    x = relu(conv(x, im['conv1']['w'], im['conv1']['b']))
    h = relu(conv(x, im['res_conv']['w1'], im['res_conv']['b1']))
    x = relu(conv(h, im['res_conv']['w2'], im['res_conv']['b2']) + x)
    x = relu(conv(x, im['conv2']['w'], im['conv2']['b']))
    x = x.reshape(n, -1)
    x = relu(dot(x, im['lin']['w']) + im['lin']['b'])
    image_f = resb(x, im['res'])

    pose_f = resb(lin(observations['gripper_pose'], raw['pose']['lin']), raw['pose']['res'])
    sensors_f = resb(lin(observations['gripper_sensors'], raw['sensors']['lin']),
                     raw['sensors']['res'])

    obs_f = jnp.concatenate([image_f, pose_f, sensors_f], axis=1)
    merged = jnp.concatenate([state_f, obs_f, control_f], axis=1)

    sh = raw['shared']
    y = relu(dot(merged, sh['lin1']['w']) + sh['lin1']['b'])
    y = resb(y, sh['res1'])
    y = resb(y, sh['res2'])
    return dot(y, sh['lin2']['w']) + sh['lin2']['b']


# ---------------------------------------------------------------------------
if __name__ == "__main__":
    key = jax.random.PRNGKey(0)
    kp, k1, k2, k3, k4, k5 = jax.random.split(key, 6)
    raw = init_params(kp, units=16)
    packed = pack_params(raw)

    N = 2
    states_prev = jax.random.normal(k1, (N, 2), jnp.float32)
    controls = jax.random.normal(k2, (N, 20), jnp.float32)
    observations = {
        'image': jax.random.normal(k3, (N, 32, 32), jnp.float32),
        'gripper_pose': jax.random.normal(k4, (N, 7), jnp.float32),
        'gripper_sensors': jax.random.normal(k5, (N, 7), jnp.float32),
    }

    fwd = jax.jit(panda_baseline_forward)
    out = jax.block_until_ready(fwd(packed, states_prev, observations, controls))
    assert out.shape == (N, 2) and out.dtype == jnp.float32

    ref = jax.block_until_ready(
        jax.jit(panda_baseline_forward_ref)(raw, states_prev, observations, controls))
    # Tolerance documents the bf16-operand MXU path (conv + 1024x16 image Linear) vs the
    # Precision.HIGHEST f32 reference.
    np.testing.assert_allclose(np.asarray(out), np.asarray(ref), rtol=3e-2, atol=1e-2)

    print("KERNEL_OK")
</pallas_src>

<mosaic_0001>
module attributes {stable_mosaic.version = 11 : i64} {
  func.func @kernel(%arg0: i32, %arg1: memref<2x36xf32, #tpu.memory_space<vmem>>, %arg2: memref<1x2048xf32, #tpu.memory_space<vmem>>, %arg3: memref<4x2048xf32, #tpu.memory_space<vmem>>, %arg4: memref<440x128xf32, #tpu.memory_space<vmem>>, %arg5: memref<1088x128xbf16, #tpu.memory_space<vmem>>, %arg6: memref<2x2xf32, #tpu.memory_space<vmem>>) attributes {dimension_semantics = [#tpu.dimension_semantics<parallel>], iteration_bounds = array<i64: 1>, scalar_prefetch = 0 : i64, scratch_operands = 0 : i64, tpu.core_type = #tpu.core_type<tc>, window_params = [{transform_indices = @transform_0, window_bounds = array<i64: 2, 36>}, {transform_indices = @transform_1, window_bounds = array<i64: 1, 2048>}, {pipeline_mode = #tpu.pipeline_mode<synchronous>, transform_indices = @transform_2, window_bounds = array<i64: 4, 2048>}, {pipeline_mode = #tpu.pipeline_mode<synchronous>, transform_indices = @transform_3, window_bounds = array<i64: 440, 128>}, {pipeline_mode = #tpu.pipeline_mode<synchronous>, transform_indices = @transform_4, window_bounds = array<i64: 1088, 128>}, {transform_indices = @transform_5, window_bounds = array<i64: 2, 2>}]} {
    %c0 = arith.constant 0 : index
    %c0_0 = arith.constant 0 : index
    %0 = vector.load %arg1[%c0, %c0_0] : memref<2x36xf32, #tpu.memory_space<vmem>>, vector<2x36xf32>
    %c0_1 = arith.constant 0 : index
    %c0_2 = arith.constant 0 : index
    %1 = vector.load %arg4[%c0_1, %c0_2] : memref<440x128xf32, #tpu.memory_space<vmem>>, vector<36x48xf32>
    %cst = arith.constant dense<0.000000e+00> : vector<2x48xf32>
    %2 = tpu.matmul %0, %1, %cst {dimension_numbers = #tpu.dot_dimension_numbers<[1], [0], [0], [1], [0, 0, 1, 1], [], []>} : vector<2x36xf32>, vector<36x48xf32>, vector<2x48xf32> -> vector<2x48xf32>
    %c40 = arith.constant 40 : index
    %c0_3 = arith.constant 0 : index
    %3 = vector.load %arg4[%c40, %c0_3] : memref<440x128xf32, #tpu.memory_space<vmem>>, vector<1x48xf32>
    %4 = vector.broadcast %3 : vector<1x48xf32> to vector<2x48xf32>
    %5 = arith.addf %2, %4 : vector<2x48xf32>
    %6 = tpu.iota {dimensions = array<i32: 1>} : vector<2x48xi32>
    %c16_i32 = arith.constant 16 : i32
    %7 = vector.broadcast %c16_i32 : i32 to vector<2x48xi32>
    %8 = arith.cmpi slt, %6, %7 : vector<2x48xi32>
    %cst_4 = arith.constant 0.000000e+00 : f32
    %9 = vector.broadcast %cst_4 : f32 to vector<2x48xf32>
    %10 = arith.maximumf %5, %9 : vector<2x48xf32>
    %11 = arith.select %8, %10, %5 : vector<2x48xi1>, vector<2x48xf32>
    %c48 = arith.constant 48 : index
    %c0_5 = arith.constant 0 : index
    %12 = vector.load %arg4[%c48, %c0_5] : memref<440x128xf32, #tpu.memory_space<vmem>>, vector<48x48xf32>
    %cst_6 = arith.constant dense<0.000000e+00> : vector<2x48xf32>
    %13 = tpu.matmul %11, %12, %cst_6 {dimension_numbers = #tpu.dot_dimension_numbers<[1], [0], [0], [1], [0, 0, 1, 1], [], []>} : vector<2x48xf32>, vector<48x48xf32>, vector<2x48xf32> -> vector<2x48xf32>
    %c96 = arith.constant 96 : index
    %c0_7 = arith.constant 0 : index
    %14 = vector.load %arg4[%c96, %c0_7] : memref<440x128xf32, #tpu.memory_space<vmem>>, vector<1x48xf32>
    %15 = vector.broadcast %14 : vector<1x48xf32> to vector<2x48xf32>
    %16 = arith.addf %13, %15 : vector<2x48xf32>
    %cst_8 = arith.constant 0.000000e+00 : f32
    %17 = vector.broadcast %cst_8 : f32 to vector<2x48xf32>
    %18 = arith.maximumf %16, %17 : vector<2x48xf32>
    %c104 = arith.constant 104 : index
    %c0_9 = arith.constant 0 : index
    %19 = vector.load %arg4[%c104, %c0_9] : memref<440x128xf32, #tpu.memory_space<vmem>>, vector<48x48xf32>
    %cst_10 = arith.constant dense<0.000000e+00> : vector<2x48xf32>
    %20 = tpu.matmul %18, %19, %cst_10 {dimension_numbers = #tpu.dot_dimension_numbers<[1], [0], [0], [1], [0, 0, 1, 1], [], []>} : vector<2x48xf32>, vector<48x48xf32>, vector<2x48xf32> -> vector<2x48xf32>
    %c152 = arith.constant 152 : index
    %c0_11 = arith.constant 0 : index
    %21 = vector.load %arg4[%c152, %c0_11] : memref<440x128xf32, #tpu.memory_space<vmem>>, vector<1x48xf32>
    %22 = vector.broadcast %21 : vector<1x48xf32> to vector<2x48xf32>
    %23 = arith.addf %20, %22 : vector<2x48xf32>
    %24 = arith.addf %23, %11 : vector<2x48xf32>
    %cst_12 = arith.constant 0.000000e+00 : f32
    %25 = vector.broadcast %cst_12 : f32 to vector<2x48xf32>
    %26 = arith.maximumf %24, %25 : vector<2x48xf32>
    %c0_13 = arith.constant 0 : index
    %c0_14 = arith.constant 0 : index
    %27 = vector.load %arg3[%c0_13, %c0_14] : memref<4x2048xf32, #tpu.memory_space<vmem>>, vector<1x2048xf32>
    %c1 = arith.constant 1 : index
    %c0_15 = arith.constant 0 : index
    %28 = vector.load %arg3[%c1, %c0_15] : memref<4x2048xf32, #tpu.memory_space<vmem>>, vector<1x2048xf32>
    %c2 = arith.constant 2 : index
    %c0_16 = arith.constant 0 : index
    %29 = vector.load %arg3[%c2, %c0_16] : memref<4x2048xf32, #tpu.memory_space<vmem>>, vector<1x2048xf32>
    %c3 = arith.constant 3 : index
    %c0_17 = arith.constant 0 : index
    %30 = vector.load %arg3[%c3, %c0_17] : memref<4x2048xf32, #tpu.memory_space<vmem>>, vector<1x2048xf32>
    %c0_18 = arith.constant 0 : index
    %c0_19 = arith.constant 0 : index
    %31 = vector.load %arg2[%c0_18, %c0_19] : memref<1x2048xf32, #tpu.memory_space<vmem>>, vector<1x2048xf32>
    %32 = vector.extract_strided_slice %31 {offsets = [0, 2016], sizes = [1, 32], strides = [1, 1]} : vector<1x2048xf32> to vector<1x32xf32>
    %33 = vector.extract_strided_slice %31 {offsets = [0, 0], sizes = [1, 2016], strides = [1, 1]} : vector<1x2048xf32> to vector<1x2016xf32>
    %34 = tpu.concatenate %32, %33 in 1 : vector<1x32xf32>, vector<1x2016xf32> -> vector<1x2048xf32>
    %35 = arith.mulf %34, %27 : vector<1x2048xf32>
    %36 = vector.extract_strided_slice %31 {offsets = [0, 32], sizes = [1, 2016], strides = [1, 1]} : vector<1x2048xf32> to vector<1x2016xf32>
    %37 = vector.extract_strided_slice %31 {offsets = [0, 0], sizes = [1, 32], strides = [1, 1]} : vector<1x2048xf32> to vector<1x32xf32>
    %38 = tpu.concatenate %36, %37 in 1 : vector<1x2016xf32>, vector<1x32xf32> -> vector<1x2048xf32>
    %39 = arith.mulf %38, %28 : vector<1x2048xf32>
    %40 = vector.extract_strided_slice %35 {offsets = [0, 2047], sizes = [1, 1], strides = [1, 1]} : vector<1x2048xf32> to vector<1x1xf32>
    %41 = vector.extract_strided_slice %35 {offsets = [0, 0], sizes = [1, 2047], strides = [1, 1]} : vector<1x2048xf32> to vector<1x2047xf32>
    %42 = tpu.concatenate %40, %41 in 1 : vector<1x1xf32>, vector<1x2047xf32> -> vector<1x2048xf32>
    %43 = arith.mulf %42, %29 : vector<1x2048xf32>
    %44 = vector.extract_strided_slice %35 {offsets = [0, 1], sizes = [1, 2047], strides = [1, 1]} : vector<1x2048xf32> to vector<1x2047xf32>
    %45 = vector.extract_strided_slice %35 {offsets = [0, 0], sizes = [1, 1], strides = [1, 1]} : vector<1x2048xf32> to vector<1x1xf32>
    %46 = tpu.concatenate %44, %45 in 1 : vector<1x2047xf32>, vector<1x1xf32> -> vector<1x2048xf32>
    %47 = arith.mulf %46, %30 : vector<1x2048xf32>
    %48 = vector.extract_strided_slice %31 {offsets = [0, 2047], sizes = [1, 1], strides = [1, 1]} : vector<1x2048xf32> to vector<1x1xf32>
    %49 = vector.extract_strided_slice %31 {offsets = [0, 0], sizes = [1, 2047], strides = [1, 1]} : vector<1x2048xf32> to vector<1x2047xf32>
    %50 = tpu.concatenate %48, %49 in 1 : vector<1x1xf32>, vector<1x2047xf32> -> vector<1x2048xf32>
    %51 = arith.mulf %50, %29 : vector<1x2048xf32>
    %52 = vector.extract_strided_slice %31 {offsets = [0, 1], sizes = [1, 2047], strides = [1, 1]} : vector<1x2048xf32> to vector<1x2047xf32>
    %53 = vector.extract_strided_slice %31 {offsets = [0, 0], sizes = [1, 1], strides = [1, 1]} : vector<1x2048xf32> to vector<1x1xf32>
    %54 = tpu.concatenate %52, %53 in 1 : vector<1x2047xf32>, vector<1x1xf32> -> vector<1x2048xf32>
    %55 = arith.mulf %54, %30 : vector<1x2048xf32>
    %56 = vector.extract_strided_slice %39 {offsets = [0, 2047], sizes = [1, 1], strides = [1, 1]} : vector<1x2048xf32> to vector<1x1xf32>
    %57 = vector.extract_strided_slice %39 {offsets = [0, 0], sizes = [1, 2047], strides = [1, 1]} : vector<1x2048xf32> to vector<1x2047xf32>
    %58 = tpu.concatenate %56, %57 in 1 : vector<1x1xf32>, vector<1x2047xf32> -> vector<1x2048xf32>
    %59 = arith.mulf %58, %29 : vector<1x2048xf32>
    %60 = vector.extract_strided_slice %39 {offsets = [0, 1], sizes = [1, 2047], strides = [1, 1]} : vector<1x2048xf32> to vector<1x2047xf32>
    %61 = vector.extract_strided_slice %39 {offsets = [0, 0], sizes = [1, 1], strides = [1, 1]} : vector<1x2048xf32> to vector<1x1xf32>
    %62 = tpu.concatenate %60, %61 in 1 : vector<1x2047xf32>, vector<1x1xf32> -> vector<1x2048xf32>
    %63 = arith.mulf %62, %30 : vector<1x2048xf32>
    %64 = tpu.concatenate %43, %35, %47, %51, %31, %55, %59, %39, %63 in 0 : vector<1x2048xf32>, vector<1x2048xf32>, vector<1x2048xf32>, vector<1x2048xf32>, vector<1x2048xf32>, vector<1x2048xf32>, vector<1x2048xf32>, vector<1x2048xf32>, vector<1x2048xf32> -> vector<9x2048xf32>
    %65 = arith.truncf %64 : vector<9x2048xf32> to vector<9x2048xbf16>
    %c0_20 = arith.constant 0 : index
    %c0_21 = arith.constant 0 : index
    %66 = vector.load %arg5[%c0_20, %c0_21] : memref<1088x128xbf16, #tpu.memory_space<vmem>>, vector<4x9xbf16>
    %cst_22 = arith.constant dense<0.000000e+00> : vector<4x2048xf32>
    %67 = tpu.matmul %66, %65, %cst_22 {dimension_numbers = #tpu.dot_dimension_numbers<[1], [0], [0], [1], [0, 0, 1, 1], [], []>} : vector<4x9xbf16>, vector<9x2048xbf16>, vector<4x2048xf32> -> vector<4x2048xf32>
    %c160 = arith.constant 160 : index
    %c0_23 = arith.constant 0 : index
    %68 = vector.load %arg4[%c160, %c0_23] : memref<440x128xf32, #tpu.memory_space<vmem>>, vector<4x1xf32>
    %69 = vector.broadcast %68 : vector<4x1xf32> to vector<4x2048xf32>
    %70 = arith.addf %67, %69 : vector<4x2048xf32>
    %cst_24 = arith.constant 0.000000e+00 : f32
    %71 = vector.broadcast %cst_24 : f32 to vector<4x2048xf32>
    %72 = arith.maximumf %70, %71 : vector<4x2048xf32>
    %73 = vector.extract_strided_slice %72 {offsets = [0, 2016], sizes = [4, 32], strides = [1, 1]} : vector<4x2048xf32> to vector<4x32xf32>
    %74 = vector.extract_strided_slice %72 {offsets = [0, 0], sizes = [4, 2016], strides = [1, 1]} : vector<4x2048xf32> to vector<4x2016xf32>
    %75 = tpu.concatenate %73, %74 in 1 : vector<4x32xf32>, vector<4x2016xf32> -> vector<4x2048xf32>
    %76 = vector.broadcast %27 : vector<1x2048xf32> to vector<4x2048xf32>
    %77 = arith.mulf %75, %76 : vector<4x2048xf32>
    %78 = vector.extract_strided_slice %72 {offsets = [0, 32], sizes = [4, 2016], strides = [1, 1]} : vector<4x2048xf32> to vector<4x2016xf32>
    %79 = vector.extract_strided_slice %72 {offsets = [0, 0], sizes = [4, 32], strides = [1, 1]} : vector<4x2048xf32> to vector<4x32xf32>
    %80 = tpu.concatenate %78, %79 in 1 : vector<4x2016xf32>, vector<4x32xf32> -> vector<4x2048xf32>
    %81 = vector.broadcast %28 : vector<1x2048xf32> to vector<4x2048xf32>
    %82 = arith.mulf %80, %81 : vector<4x2048xf32>
    %83 = vector.extract_strided_slice %77 {offsets = [0, 2047], sizes = [4, 1], strides = [1, 1]} : vector<4x2048xf32> to vector<4x1xf32>
    %84 = vector.extract_strided_slice %77 {offsets = [0, 0], sizes = [4, 2047], strides = [1, 1]} : vector<4x2048xf32> to vector<4x2047xf32>
    %85 = tpu.concatenate %83, %84 in 1 : vector<4x1xf32>, vector<4x2047xf32> -> vector<4x2048xf32>
    %86 = vector.broadcast %29 : vector<1x2048xf32> to vector<4x2048xf32>
    %87 = arith.mulf %85, %86 : vector<4x2048xf32>
    %88 = vector.extract_strided_slice %77 {offsets = [0, 1], sizes = [4, 2047], strides = [1, 1]} : vector<4x2048xf32> to vector<4x2047xf32>
    %89 = vector.extract_strided_slice %77 {offsets = [0, 0], sizes = [4, 1], strides = [1, 1]} : vector<4x2048xf32> to vector<4x1xf32>
    %90 = tpu.concatenate %88, %89 in 1 : vector<4x2047xf32>, vector<4x1xf32> -> vector<4x2048xf32>
    %91 = vector.broadcast %30 : vector<1x2048xf32> to vector<4x2048xf32>
    %92 = arith.mulf %90, %91 : vector<4x2048xf32>
    %93 = vector.extract_strided_slice %72 {offsets = [0, 2047], sizes = [4, 1], strides = [1, 1]} : vector<4x2048xf32> to vector<4x1xf32>
    %94 = vector.extract_strided_slice %72 {offsets = [0, 0], sizes = [4, 2047], strides = [1, 1]} : vector<4x2048xf32> to vector<4x2047xf32>
    %95 = tpu.concatenate %93, %94 in 1 : vector<4x1xf32>, vector<4x2047xf32> -> vector<4x2048xf32>
    %96 = vector.broadcast %29 : vector<1x2048xf32> to vector<4x2048xf32>
    %97 = arith.mulf %95, %96 : vector<4x2048xf32>
    %98 = vector.extract_strided_slice %72 {offsets = [0, 1], sizes = [4, 2047], strides = [1, 1]} : vector<4x2048xf32> to vector<4x2047xf32>
    %99 = vector.extract_strided_slice %72 {offsets = [0, 0], sizes = [4, 1], strides = [1, 1]} : vector<4x2048xf32> to vector<4x1xf32>
    %100 = tpu.concatenate %98, %99 in 1 : vector<4x2047xf32>, vector<4x1xf32> -> vector<4x2048xf32>
    %101 = vector.broadcast %30 : vector<1x2048xf32> to vector<4x2048xf32>
    %102 = arith.mulf %100, %101 : vector<4x2048xf32>
    %103 = vector.extract_strided_slice %82 {offsets = [0, 2047], sizes = [4, 1], strides = [1, 1]} : vector<4x2048xf32> to vector<4x1xf32>
    %104 = vector.extract_strided_slice %82 {offsets = [0, 0], sizes = [4, 2047], strides = [1, 1]} : vector<4x2048xf32> to vector<4x2047xf32>
    %105 = tpu.concatenate %103, %104 in 1 : vector<4x1xf32>, vector<4x2047xf32> -> vector<4x2048xf32>
    %106 = vector.broadcast %29 : vector<1x2048xf32> to vector<4x2048xf32>
    %107 = arith.mulf %105, %106 : vector<4x2048xf32>
    %108 = vector.extract_strided_slice %82 {offsets = [0, 1], sizes = [4, 2047], strides = [1, 1]} : vector<4x2048xf32> to vector<4x2047xf32>
    %109 = vector.extract_strided_slice %82 {offsets = [0, 0], sizes = [4, 1], strides = [1, 1]} : vector<4x2048xf32> to vector<4x1xf32>
    %110 = tpu.concatenate %108, %109 in 1 : vector<4x2047xf32>, vector<4x1xf32> -> vector<4x2048xf32>
    %111 = vector.broadcast %30 : vector<1x2048xf32> to vector<4x2048xf32>
    %112 = arith.mulf %110, %111 : vector<4x2048xf32>
    %113 = tpu.concatenate %87, %77, %92, %97, %72, %102, %107, %82, %112 in 0 : vector<4x2048xf32>, vector<4x2048xf32>, vector<4x2048xf32>, vector<4x2048xf32>, vector<4x2048xf32>, vector<4x2048xf32>, vector<4x2048xf32>, vector<4x2048xf32>, vector<4x2048xf32> -> vector<36x2048xf32>
    %114 = arith.truncf %113 : vector<36x2048xf32> to vector<36x2048xbf16>
    %c16 = arith.constant 16 : index
    %c0_25 = arith.constant 0 : index
    %115 = vector.load %arg5[%c16, %c0_25] : memref<1088x128xbf16, #tpu.memory_space<vmem>>, vector<4x36xbf16>
    %cst_26 = arith.constant dense<0.000000e+00> : vector<4x2048xf32>
    %116 = tpu.matmul %115, %114, %cst_26 {dimension_numbers = #tpu.dot_dimension_numbers<[1], [0], [0], [1], [0, 0, 1, 1], [], []>} : vector<4x36xbf16>, vector<36x2048xbf16>, vector<4x2048xf32> -> vector<4x2048xf32>
    %c168 = arith.constant 168 : index
    %c0_27 = arith.constant 0 : index
    %117 = vector.load %arg4[%c168, %c0_27] : memref<440x128xf32, #tpu.memory_space<vmem>>, vector<4x1xf32>
    %118 = vector.broadcast %117 : vector<4x1xf32> to vector<4x2048xf32>
    %119 = arith.addf %116, %118 : vector<4x2048xf32>
    %cst_28 = arith.constant 0.000000e+00 : f32
    %120 = vector.broadcast %cst_28 : f32 to vector<4x2048xf32>
    %121 = arith.maximumf %119, %120 : vector<4x2048xf32>
    %122 = vector.extract_strided_slice %121 {offsets = [0, 2016], sizes = [4, 32], strides = [1, 1]} : vector<4x2048xf32> to vector<4x32xf32>
    %123 = vector.extract_strided_slice %121 {offsets = [0, 0], sizes = [4, 2016], strides = [1, 1]} : vector<4x2048xf32> to vector<4x2016xf32>
    %124 = tpu.concatenate %122, %123 in 1 : vector<4x32xf32>, vector<4x2016xf32> -> vector<4x2048xf32>
    %125 = vector.broadcast %27 : vector<1x2048xf32> to vector<4x2048xf32>
    %126 = arith.mulf %124, %125 : vector<4x2048xf32>
    %127 = vector.extract_strided_slice %121 {offsets = [0, 32], sizes = [4, 2016], strides = [1, 1]} : vector<4x2048xf32> to vector<4x2016xf32>
    %128 = vector.extract_strided_slice %121 {offsets = [0, 0], sizes = [4, 32], strides = [1, 1]} : vector<4x2048xf32> to vector<4x32xf32>
    %129 = tpu.concatenate %127, %128 in 1 : vector<4x2016xf32>, vector<4x32xf32> -> vector<4x2048xf32>
    %130 = vector.broadcast %28 : vector<1x2048xf32> to vector<4x2048xf32>
    %131 = arith.mulf %129, %130 : vector<4x2048xf32>
    %132 = vector.extract_strided_slice %126 {offsets = [0, 2047], sizes = [4, 1], strides = [1, 1]} : vector<4x2048xf32> to vector<4x1xf32>
    %133 = vector.extract_strided_slice %126 {offsets = [0, 0], sizes = [4, 2047], strides = [1, 1]} : vector<4x2048xf32> to vector<4x2047xf32>
    %134 = tpu.concatenate %132, %133 in 1 : vector<4x1xf32>, vector<4x2047xf32> -> vector<4x2048xf32>
    %135 = vector.broadcast %29 : vector<1x2048xf32> to vector<4x2048xf32>
    %136 = arith.mulf %134, %135 : vector<4x2048xf32>
    %137 = vector.extract_strided_slice %126 {offsets = [0, 1], sizes = [4, 2047], strides = [1, 1]} : vector<4x2048xf32> to vector<4x2047xf32>
    %138 = vector.extract_strided_slice %126 {offsets = [0, 0], sizes = [4, 1], strides = [1, 1]} : vector<4x2048xf32> to vector<4x1xf32>
    %139 = tpu.concatenate %137, %138 in 1 : vector<4x2047xf32>, vector<4x1xf32> -> vector<4x2048xf32>
    %140 = vector.broadcast %30 : vector<1x2048xf32> to vector<4x2048xf32>
    %141 = arith.mulf %139, %140 : vector<4x2048xf32>
    %142 = vector.extract_strided_slice %121 {offsets = [0, 2047], sizes = [4, 1], strides = [1, 1]} : vector<4x2048xf32> to vector<4x1xf32>
    %143 = vector.extract_strided_slice %121 {offsets = [0, 0], sizes = [4, 2047], strides = [1, 1]} : vector<4x2048xf32> to vector<4x2047xf32>
    %144 = tpu.concatenate %142, %143 in 1 : vector<4x1xf32>, vector<4x2047xf32> -> vector<4x2048xf32>
    %145 = vector.broadcast %29 : vector<1x2048xf32> to vector<4x2048xf32>
    %146 = arith.mulf %144, %145 : vector<4x2048xf32>
    %147 = vector.extract_strided_slice %121 {offsets = [0, 1], sizes = [4, 2047], strides = [1, 1]} : vector<4x2048xf32> to vector<4x2047xf32>
    %148 = vector.extract_strided_slice %121 {offsets = [0, 0], sizes = [4, 1], strides = [1, 1]} : vector<4x2048xf32> to vector<4x1xf32>
    %149 = tpu.concatenate %147, %148 in 1 : vector<4x2047xf32>, vector<4x1xf32> -> vector<4x2048xf32>
    %150 = vector.broadcast %30 : vector<1x2048xf32> to vector<4x2048xf32>
    %151 = arith.mulf %149, %150 : vector<4x2048xf32>
    %152 = vector.extract_strided_slice %131 {offsets = [0, 2047], sizes = [4, 1], strides = [1, 1]} : vector<4x2048xf32> to vector<4x1xf32>
    %153 = vector.extract_strided_slice %131 {offsets = [0, 0], sizes = [4, 2047], strides = [1, 1]} : vector<4x2048xf32> to vector<4x2047xf32>
    %154 = tpu.concatenate %152, %153 in 1 : vector<4x1xf32>, vector<4x2047xf32> -> vector<4x2048xf32>
    %155 = vector.broadcast %29 : vector<1x2048xf32> to vector<4x2048xf32>
    %156 = arith.mulf %154, %155 : vector<4x2048xf32>
    %157 = vector.extract_strided_slice %131 {offsets = [0, 1], sizes = [4, 2047], strides = [1, 1]} : vector<4x2048xf32> to vector<4x2047xf32>
    %158 = vector.extract_strided_slice %131 {offsets = [0, 0], sizes = [4, 1], strides = [1, 1]} : vector<4x2048xf32> to vector<4x1xf32>
    %159 = tpu.concatenate %157, %158 in 1 : vector<4x2047xf32>, vector<4x1xf32> -> vector<4x2048xf32>
    %160 = vector.broadcast %30 : vector<1x2048xf32> to vector<4x2048xf32>
    %161 = arith.mulf %159, %160 : vector<4x2048xf32>
    %162 = tpu.concatenate %136, %126, %141, %146, %121, %151, %156, %131, %161 in 0 : vector<4x2048xf32>, vector<4x2048xf32>, vector<4x2048xf32>, vector<4x2048xf32>, vector<4x2048xf32>, vector<4x2048xf32>, vector<4x2048xf32>, vector<4x2048xf32>, vector<4x2048xf32> -> vector<36x2048xf32>
    %163 = arith.truncf %162 : vector<36x2048xf32> to vector<36x2048xbf16>
    %c32 = arith.constant 32 : index
    %c0_29 = arith.constant 0 : index
    %164 = vector.load %arg5[%c32, %c0_29] : memref<1088x128xbf16, #tpu.memory_space<vmem>>, vector<4x36xbf16>
    %cst_30 = arith.constant dense<0.000000e+00> : vector<4x2048xf32>
    %165 = tpu.matmul %164, %163, %cst_30 {dimension_numbers = #tpu.dot_dimension_numbers<[1], [0], [0], [1], [0, 0, 1, 1], [], []>} : vector<4x36xbf16>, vector<36x2048xbf16>, vector<4x2048xf32> -> vector<4x2048xf32>
    %c176 = arith.constant 176 : index
    %c0_31 = arith.constant 0 : index
    %166 = vector.load %arg4[%c176, %c0_31] : memref<440x128xf32, #tpu.memory_space<vmem>>, vector<4x1xf32>
    %167 = vector.broadcast %166 : vector<4x1xf32> to vector<4x2048xf32>
    %168 = arith.addf %165, %167 : vector<4x2048xf32>
    %169 = arith.addf %168, %72 : vector<4x2048xf32>
    %cst_32 = arith.constant 0.000000e+00 : f32
    %170 = vector.broadcast %cst_32 : f32 to vector<4x2048xf32>
    %171 = arith.maximumf %169, %170 : vector<4x2048xf32>
    %172 = vector.extract_strided_slice %171 {offsets = [0, 2016], sizes = [4, 32], strides = [1, 1]} : vector<4x2048xf32> to vector<4x32xf32>
    %173 = vector.extract_strided_slice %171 {offsets = [0, 0], sizes = [4, 2016], strides = [1, 1]} : vector<4x2048xf32> to vector<4x2016xf32>
    %174 = tpu.concatenate %172, %173 in 1 : vector<4x32xf32>, vector<4x2016xf32> -> vector<4x2048xf32>
    %175 = vector.broadcast %27 : vector<1x2048xf32> to vector<4x2048xf32>
    %176 = arith.mulf %174, %175 : vector<4x2048xf32>
    %177 = vector.extract_strided_slice %171 {offsets = [0, 32], sizes = [4, 2016], strides = [1, 1]} : vector<4x2048xf32> to vector<4x2016xf32>
    %178 = vector.extract_strided_slice %171 {offsets = [0, 0], sizes = [4, 32], strides = [1, 1]} : vector<4x2048xf32> to vector<4x32xf32>
    %179 = tpu.concatenate %177, %178 in 1 : vector<4x2016xf32>, vector<4x32xf32> -> vector<4x2048xf32>
    %180 = vector.broadcast %28 : vector<1x2048xf32> to vector<4x2048xf32>
    %181 = arith.mulf %179, %180 : vector<4x2048xf32>
    %182 = vector.extract_strided_slice %176 {offsets = [0, 2047], sizes = [4, 1], strides = [1, 1]} : vector<4x2048xf32> to vector<4x1xf32>
    %183 = vector.extract_strided_slice %176 {offsets = [0, 0], sizes = [4, 2047], strides = [1, 1]} : vector<4x2048xf32> to vector<4x2047xf32>
    %184 = tpu.concatenate %182, %183 in 1 : vector<4x1xf32>, vector<4x2047xf32> -> vector<4x2048xf32>
    %185 = vector.broadcast %29 : vector<1x2048xf32> to vector<4x2048xf32>
    %186 = arith.mulf %184, %185 : vector<4x2048xf32>
    %187 = vector.extract_strided_slice %176 {offsets = [0, 1], sizes = [4, 2047], strides = [1, 1]} : vector<4x2048xf32> to vector<4x2047xf32>
    %188 = vector.extract_strided_slice %176 {offsets = [0, 0], sizes = [4, 1], strides = [1, 1]} : vector<4x2048xf32> to vector<4x1xf32>
    %189 = tpu.concatenate %187, %188 in 1 : vector<4x2047xf32>, vector<4x1xf32> -> vector<4x2048xf32>
    %190 = vector.broadcast %30 : vector<1x2048xf32> to vector<4x2048xf32>
    %191 = arith.mulf %189, %190 : vector<4x2048xf32>
    %192 = vector.extract_strided_slice %171 {offsets = [0, 2047], sizes = [4, 1], strides = [1, 1]} : vector<4x2048xf32> to vector<4x1xf32>
    %193 = vector.extract_strided_slice %171 {offsets = [0, 0], sizes = [4, 2047], strides = [1, 1]} : vector<4x2048xf32> to vector<4x2047xf32>
    %194 = tpu.concatenate %192, %193 in 1 : vector<4x1xf32>, vector<4x2047xf32> -> vector<4x2048xf32>
    %195 = vector.broadcast %29 : vector<1x2048xf32> to vector<4x2048xf32>
    %196 = arith.mulf %194, %195 : vector<4x2048xf32>
    %197 = vector.extract_strided_slice %171 {offsets = [0, 1], sizes = [4, 2047], strides = [1, 1]} : vector<4x2048xf32> to vector<4x2047xf32>
    %198 = vector.extract_strided_slice %171 {offsets = [0, 0], sizes = [4, 1], strides = [1, 1]} : vector<4x2048xf32> to vector<4x1xf32>
    %199 = tpu.concatenate %197, %198 in 1 : vector<4x2047xf32>, vector<4x1xf32> -> vector<4x2048xf32>
    %200 = vector.broadcast %30 : vector<1x2048xf32> to vector<4x2048xf32>
    %201 = arith.mulf %199, %200 : vector<4x2048xf32>
    %202 = vector.extract_strided_slice %181 {offsets = [0, 2047], sizes = [4, 1], strides = [1, 1]} : vector<4x2048xf32> to vector<4x1xf32>
    %203 = vector.extract_strided_slice %181 {offsets = [0, 0], sizes = [4, 2047], strides = [1, 1]} : vector<4x2048xf32> to vector<4x2047xf32>
    %204 = tpu.concatenate %202, %203 in 1 : vector<4x1xf32>, vector<4x2047xf32> -> vector<4x2048xf32>
    %205 = vector.broadcast %29 : vector<1x2048xf32> to vector<4x2048xf32>
    %206 = arith.mulf %204, %205 : vector<4x2048xf32>
    %207 = vector.extract_strided_slice %181 {offsets = [0, 1], sizes = [4, 2047], strides = [1, 1]} : vector<4x2048xf32> to vector<4x2047xf32>
    %208 = vector.extract_strided_slice %181 {offsets = [0, 0], sizes = [4, 1], strides = [1, 1]} : vector<4x2048xf32> to vector<4x1xf32>
    %209 = tpu.concatenate %207, %208 in 1 : vector<4x2047xf32>, vector<4x1xf32> -> vector<4x2048xf32>
    %210 = vector.broadcast %30 : vector<1x2048xf32> to vector<4x2048xf32>
    %211 = arith.mulf %209, %210 : vector<4x2048xf32>
    %212 = tpu.concatenate %186, %176, %191, %196, %171, %201, %206, %181, %211 in 0 : vector<4x2048xf32>, vector<4x2048xf32>, vector<4x2048xf32>, vector<4x2048xf32>, vector<4x2048xf32>, vector<4x2048xf32>, vector<4x2048xf32>, vector<4x2048xf32>, vector<4x2048xf32> -> vector<36x2048xf32>
    %213 = arith.truncf %212 : vector<36x2048xf32> to vector<36x2048xbf16>
    %c48_33 = arith.constant 48 : index
    %c0_34 = arith.constant 0 : index
    %214 = vector.load %arg5[%c48_33, %c0_34] : memref<1088x128xbf16, #tpu.memory_space<vmem>>, vector<1x36xbf16>
    %cst_35 = arith.constant dense<0.000000e+00> : vector<1x2048xf32>
    %215 = tpu.matmul %214, %213, %cst_35 {dimension_numbers = #tpu.dot_dimension_numbers<[1], [0], [0], [1], [0, 0, 1, 1], [], []>} : vector<1x36xbf16>, vector<36x2048xbf16>, vector<1x2048xf32> -> vector<1x2048xf32>
    %c184 = arith.constant 184 : index
    %c0_36 = arith.constant 0 : index
    %216 = vector.load %arg4[%c184, %c0_36] : memref<440x128xf32, #tpu.memory_space<vmem>>, vector<1x1xf32>
    %217 = vector.broadcast %216 : vector<1x1xf32> to vector<1x2048xf32>
    %218 = arith.addf %215, %217 : vector<1x2048xf32>
    %cst_37 = arith.constant 0.000000e+00 : f32
    %219 = vector.broadcast %cst_37 : f32 to vector<1x2048xf32>
    %220 = arith.maximumf %218, %219 : vector<1x2048xf32>
    %221 = vector.extract_strided_slice %220 {offsets = [0, 0], sizes = [1, 1024], strides = [1, 1]} : vector<1x2048xf32> to vector<1x1024xf32>
    %222 = vector.extract_strided_slice %220 {offsets = [0, 1024], sizes = [1, 1024], strides = [1, 1]} : vector<1x2048xf32> to vector<1x1024xf32>
    %223 = tpu.concatenate %221, %222 in 0 : vector<1x1024xf32>, vector<1x1024xf32> -> vector<2x1024xf32>
    %224 = arith.truncf %223 : vector<2x1024xf32> to vector<2x1024xbf16>
    %c64 = arith.constant 64 : index
    %c0_38 = arith.constant 0 : index
    %225 = vector.load %arg5[%c64, %c0_38] : memref<1088x128xbf16, #tpu.memory_space<vmem>>, vector<1024x16xbf16>
    %cst_39 = arith.constant dense<0.000000e+00> : vector<2x16xf32>
    %226 = tpu.matmul %224, %225, %cst_39 {dimension_numbers = #tpu.dot_dimension_numbers<[1], [0], [0], [1], [0, 0, 1, 1], [], []>} : vector<2x1024xbf16>, vector<1024x16xbf16>, vector<2x16xf32> -> vector<2x16xf32>
    %c192 = arith.constant 192 : index
    %c0_40 = arith.constant 0 : index
    %227 = vector.load %arg4[%c192, %c0_40] : memref<440x128xf32, #tpu.memory_space<vmem>>, vector<1x16xf32>
    %228 = vector.broadcast %227 : vector<1x16xf32> to vector<2x16xf32>
    %229 = arith.addf %226, %228 : vector<2x16xf32>
    %cst_41 = arith.constant 0.000000e+00 : f32
    %230 = vector.broadcast %cst_41 : f32 to vector<2x16xf32>
    %231 = arith.maximumf %229, %230 : vector<2x16xf32>
    %c200 = arith.constant 200 : index
    %c0_42 = arith.constant 0 : index
    %232 = vector.load %arg4[%c200, %c0_42] : memref<440x128xf32, #tpu.memory_space<vmem>>, vector<16x16xf32>
    %cst_43 = arith.constant dense<0.000000e+00> : vector<2x16xf32>
    %233 = tpu.matmul %231, %232, %cst_43 {dimension_numbers = #tpu.dot_dimension_numbers<[1], [0], [0], [1], [0, 0, 1, 1], [], []>} : vector<2x16xf32>, vector<16x16xf32>, vector<2x16xf32> -> vector<2x16xf32>
    %c216 = arith.constant 216 : index
    %c0_44 = arith.constant 0 : index
    %234 = vector.load %arg4[%c216, %c0_44] : memref<440x128xf32, #tpu.memory_space<vmem>>, vector<1x16xf32>
    %235 = vector.broadcast %234 : vector<1x16xf32> to vector<2x16xf32>
    %236 = arith.addf %233, %235 : vector<2x16xf32>
    %cst_45 = arith.constant 0.000000e+00 : f32
    %237 = vector.broadcast %cst_45 : f32 to vector<2x16xf32>
    %238 = arith.maximumf %236, %237 : vector<2x16xf32>
    %c224 = arith.constant 224 : index
    %c0_46 = arith.constant 0 : index
    %239 = vector.load %arg4[%c224, %c0_46] : memref<440x128xf32, #tpu.memory_space<vmem>>, vector<16x16xf32>
    %cst_47 = arith.constant dense<0.000000e+00> : vector<2x16xf32>
    %240 = tpu.matmul %238, %239, %cst_47 {dimension_numbers = #tpu.dot_dimension_numbers<[1], [0], [0], [1], [0, 0, 1, 1], [], []>} : vector<2x16xf32>, vector<16x16xf32>, vector<2x16xf32> -> vector<2x16xf32>
    %c240 = arith.constant 240 : index
    %c0_48 = arith.constant 0 : index
    %241 = vector.load %arg4[%c240, %c0_48] : memref<440x128xf32, #tpu.memory_space<vmem>>, vector<1x16xf32>
    %242 = vector.broadcast %241 : vector<1x16xf32> to vector<2x16xf32>
    %243 = arith.addf %240, %242 : vector<2x16xf32>
    %244 = arith.addf %243, %231 : vector<2x16xf32>
    %cst_49 = arith.constant 0.000000e+00 : f32
    %245 = vector.broadcast %cst_49 : f32 to vector<2x16xf32>
    %246 = arith.maximumf %244, %245 : vector<2x16xf32>
    %247 = tpu.concatenate %26, %246 in 1 : vector<2x48xf32>, vector<2x16xf32> -> vector<2x64xf32>
    %c248 = arith.constant 248 : index
    %c0_50 = arith.constant 0 : index
    %248 = vector.load %arg4[%c248, %c0_50] : memref<440x128xf32, #tpu.memory_space<vmem>>, vector<64x16xf32>
    %cst_51 = arith.constant dense<0.000000e+00> : vector<2x16xf32>
    %249 = tpu.matmul %247, %248, %cst_51 {dimension_numbers = #tpu.dot_dimension_numbers<[1], [0], [0], [1], [0, 0, 1, 1], [], []>} : vector<2x64xf32>, vector<64x16xf32>, vector<2x16xf32> -> vector<2x16xf32>
    %c312 = arith.constant 312 : index
    %c0_52 = arith.constant 0 : index
    %250 = vector.load %arg4[%c312, %c0_52] : memref<440x128xf32, #tpu.memory_space<vmem>>, vector<1x16xf32>
    %251 = vector.broadcast %250 : vector<1x16xf32> to vector<2x16xf32>
    %252 = arith.addf %249, %251 : vector<2x16xf32>
    %cst_53 = arith.constant 0.000000e+00 : f32
    %253 = vector.broadcast %cst_53 : f32 to vector<2x16xf32>
    %254 = arith.maximumf %252, %253 : vector<2x16xf32>
    %c320 = arith.constant 320 : index
    %c0_54 = arith.constant 0 : index
    %255 = vector.load %arg4[%c320, %c0_54] : memref<440x128xf32, #tpu.memory_space<vmem>>, vector<16x16xf32>
    %cst_55 = arith.constant dense<0.000000e+00> : vector<2x16xf32>
    %256 = tpu.matmul %254, %255, %cst_55 {dimension_numbers = #tpu.dot_dimension_numbers<[1], [0], [0], [1], [0, 0, 1, 1], [], []>} : vector<2x16xf32>, vector<16x16xf32>, vector<2x16xf32> -> vector<2x16xf32>
    %c336 = arith.constant 336 : index
    %c0_56 = arith.constant 0 : index
    %257 = vector.load %arg4[%c336, %c0_56] : memref<440x128xf32, #tpu.memory_space<vmem>>, vector<1x16xf32>
    %258 = vector.broadcast %257 : vector<1x16xf32> to vector<2x16xf32>
    %259 = arith.addf %256, %258 : vector<2x16xf32>
    %cst_57 = arith.constant 0.000000e+00 : f32
    %260 = vector.broadcast %cst_57 : f32 to vector<2x16xf32>
    %261 = arith.maximumf %259, %260 : vector<2x16xf32>
    %c344 = arith.constant 344 : index
    %c0_58 = arith.constant 0 : index
    %262 = vector.load %arg4[%c344, %c0_58] : memref<440x128xf32, #tpu.memory_space<vmem>>, vector<16x16xf32>
    %cst_59 = arith.constant dense<0.000000e+00> : vector<2x16xf32>
    %263 = tpu.matmul %261, %262, %cst_59 {dimension_numbers = #tpu.dot_dimension_numbers<[1], [0], [0], [1], [0, 0, 1, 1], [], []>} : vector<2x16xf32>, vector<16x16xf32>, vector<2x16xf32> -> vector<2x16xf32>
    %c360 = arith.constant 360 : index
    %c0_60 = arith.constant 0 : index
    %264 = vector.load %arg4[%c360, %c0_60] : memref<440x128xf32, #tpu.memory_space<vmem>>, vector<1x16xf32>
    %265 = vector.broadcast %264 : vector<1x16xf32> to vector<2x16xf32>
    %266 = arith.addf %263, %265 : vector<2x16xf32>
    %267 = arith.addf %266, %254 : vector<2x16xf32>
    %cst_61 = arith.constant 0.000000e+00 : f32
    %268 = vector.broadcast %cst_61 : f32 to vector<2x16xf32>
    %269 = arith.maximumf %267, %268 : vector<2x16xf32>
    %c368 = arith.constant 368 : index
    %c0_62 = arith.constant 0 : index
    %270 = vector.load %arg4[%c368, %c0_62] : memref<440x128xf32, #tpu.memory_space<vmem>>, vector<16x16xf32>
    %cst_63 = arith.constant dense<0.000000e+00> : vector<2x16xf32>
    %271 = tpu.matmul %269, %270, %cst_63 {dimension_numbers = #tpu.dot_dimension_numbers<[1], [0], [0], [1], [0, 0, 1, 1], [], []>} : vector<2x16xf32>, vector<16x16xf32>, vector<2x16xf32> -> vector<2x16xf32>
    %c384 = arith.constant 384 : index
    %c0_64 = arith.constant 0 : index
    %272 = vector.load %arg4[%c384, %c0_64] : memref<440x128xf32, #tpu.memory_space<vmem>>, vector<1x16xf32>
    %273 = vector.broadcast %272 : vector<1x16xf32> to vector<2x16xf32>
    %274 = arith.addf %271, %273 : vector<2x16xf32>
    %cst_65 = arith.constant 0.000000e+00 : f32
    %275 = vector.broadcast %cst_65 : f32 to vector<2x16xf32>
    %276 = arith.maximumf %274, %275 : vector<2x16xf32>
    %c392 = arith.constant 392 : index
    %c0_66 = arith.constant 0 : index
    %277 = vector.load %arg4[%c392, %c0_66] : memref<440x128xf32, #tpu.memory_space<vmem>>, vector<16x16xf32>
    %cst_67 = arith.constant dense<0.000000e+00> : vector<2x16xf32>
    %278 = tpu.matmul %276, %277, %cst_67 {dimension_numbers = #tpu.dot_dimension_numbers<[1], [0], [0], [1], [0, 0, 1, 1], [], []>} : vector<2x16xf32>, vector<16x16xf32>, vector<2x16xf32> -> vector<2x16xf32>
    %c408 = arith.constant 408 : index
    %c0_68 = arith.constant 0 : index
    %279 = vector.load %arg4[%c408, %c0_68] : memref<440x128xf32, #tpu.memory_space<vmem>>, vector<1x16xf32>
    %280 = vector.broadcast %279 : vector<1x16xf32> to vector<2x16xf32>
    %281 = arith.addf %278, %280 : vector<2x16xf32>
    %282 = arith.addf %281, %269 : vector<2x16xf32>
    %cst_69 = arith.constant 0.000000e+00 : f32
    %283 = vector.broadcast %cst_69 : f32 to vector<2x16xf32>
    %284 = arith.maximumf %282, %283 : vector<2x16xf32>
    %c416 = arith.constant 416 : index
    %c0_70 = arith.constant 0 : index
    %285 = vector.load %arg4[%c416, %c0_70] : memref<440x128xf32, #tpu.memory_space<vmem>>, vector<16x2xf32>
    %cst_71 = arith.constant dense<0.000000e+00> : vector<2x2xf32>
    %286 = tpu.matmul %284, %285, %cst_71 {dimension_numbers = #tpu.dot_dimension_numbers<[1], [0], [0], [1], [0, 0, 1, 1], [], []>} : vector<2x16xf32>, vector<16x2xf32>, vector<2x2xf32> -> vector<2x2xf32>
    %c432 = arith.constant 432 : index
    %c0_72 = arith.constant 0 : index
    %287 = vector.load %arg4[%c432, %c0_72] : memref<440x128xf32, #tpu.memory_space<vmem>>, vector<1x2xf32>
    %288 = vector.broadcast %287 : vector<1x2xf32> to vector<2x2xf32>
    %289 = arith.addf %286, %288 : vector<2x2xf32>
    %c0_73 = arith.constant 0 : index
    %c0_74 = arith.constant 0 : index
    %290 = vector.load %arg6[%c0_73, %c0_74] : memref<2x2xf32, #tpu.memory_space<vmem>>, vector<2x2xf32>
    tpu.vector_store %arg6[%c0_73, %c0_74], %289 {strides = array<i32>} : memref<2x2xf32, #tpu.memory_space<vmem>>, vector<2x2xf32>,
    return
  }
  func.func @transform_0(%arg0: i32) -> (i32, i32) {
    %c0_i32 = arith.constant 0 : i32
    %c0_i32_0 = arith.constant 0 : i32
    return %arg0, %c0_i32 : i32, i32
  }
  func.func @transform_1(%arg0: i32) -> (i32, i32) {
    %c0_i32 = arith.constant 0 : i32
    %c0_i32_0 = arith.constant 0 : i32
    return %c0_i32, %arg0 : i32, i32
  }
  func.func @transform_2(%arg0: i32) -> (i32, i32) {
    %c0_i32 = arith.constant 0 : i32
    %c0_i32_0 = arith.constant 0 : i32
    %c0_i32_1 = arith.constant 0 : i32
    return %c0_i32, %c0_i32_0 : i32, i32
  }
  func.func @transform_3(%arg0: i32) -> (i32, i32) {
    %c0_i32 = arith.constant 0 : i32
    %c0_i32_0 = arith.constant 0 : i32
    %c0_i32_1 = arith.constant 0 : i32
    return %c0_i32, %c0_i32_0 : i32, i32
  }
  func.func @transform_4(%arg0: i32) -> (i32, i32) {
    %c0_i32 = arith.constant 0 : i32
    %c0_i32_0 = arith.constant 0 : i32
    %c0_i32_1 = arith.constant 0 : i32
    return %c0_i32, %c0_i32_0 : i32, i32
  }
  func.func @transform_5(%arg0: i32) -> (i32, i32) {
    %c0_i32 = arith.constant 0 : i32
    %c0_i32_0 = arith.constant 0 : i32
    return %arg0, %c0_i32 : i32, i32
  }
}

</mosaic_0001>

<bundles_post_ra>
// kernel: panda_baseline_forward.1
= control target key start
LH: loop header
LB: loop body
LE: loop exit
PB: predicated region body
PF: predicated region fallthrough
CT: control target
= control target key end

     0   :  { %10 = vsyncpa [#allocation3], 0  ;;  %s11962_s0 = inlined_call_operand.vmem [shape: f32[2,36], index: 0, kind: input, shape index: {}]   ;;  %s11963_s1 = inlined_call_operand.vmem [shape: f32[1,2048], index: 1, kind: input, shape index: {}]   ;;  %s11964_s2 = inlined_call_operand.vmem [shape: f32[4,2048], index: 2, kind: input, shape index: {}]   ;;  %s11965_s3 = inlined_call_operand.hbm [shape: f32[440,128], index: 3, kind: input, shape index: {}]   ;;  %s11966_s4 = inlined_call_operand.hbm [shape: bf16[1088,128], index: 4, kind: input, shape index: {}]   ;;  %s11967_s5 = inlined_call_operand.hbm [shape: f32[2,2], index: 5, kind: output, shape index: {}]  }
   0x1   :  { %11 = vsyncpa [#allocation6], 0 }
   0x2   :  { %12 = vsyncpa [#allocation4], 0  ;;  %s23_s20 = sshll.u32 %s11965_s3, 4  ;;  %s6900_s21 = smov [#allocation2]   ;;  %s24_s20 = int_to_ptr.hbm [resolvable:$true] %s23_s20 }
   0x3   :  { %s25_s22 = sshll.u32 %s6900_s21, 4  ;;  %s36_s25 = sshll.u32 %s11966_s4, 4  ;;  %s26_s22 = int_to_ptr.vmem [resolvable:$true] %s25_s22  ;;  %s37_s25 = int_to_ptr.hbm [resolvable:$true] %s36_s25 }
   0x4   :  { %s6901_s26 = smov 128   ;;  %s6902_s27 = smov 8  }
   0x5   :  { %31 = dma.hbm_to_vmem [thread:$0]  %s24_s20, 7040, %s26_s22, [#allocation3], %s6901_s26, %s6901_s26, %s6902_s27  }
   0x6   :  { %s6903_s28 = smov [#allocation5]   ;;  %s6904_s30 = smov 64  }
   0x7   :  { %s38_s29 = sshll.u32 %s6903_s28, 4  ;;  %s6905_s6 = smov 4   ;;  %s39_s29 = int_to_ptr.vmem [resolvable:$true] %s38_s29 }
   0x8   :  { %44 = dma.hbm_to_vmem [thread:$0]  %s37_s25, 8704, %s39_s29, [#allocation6], %s6904_s30, %s6904_s30, %s6905_s6  }
   0x9   :  { %6894 = dma.done.wait [#allocation3], 7040  }
   0xa   :  { %6895 = vsyncadd [#allocation3], 4294960256 }
   0xb   :  { %6896 = dma.done.wait [#allocation6], 8704  }
   0xc   :  { %6897 = vsyncadd [#allocation6], 4294958592  ;;  %vm66_vm0 = vcmask 1043456   ;;  %v59_v0 = vld [vmem:[#allocation2 + $0x20] sm:$0xf]  ;;  %v58_v4 = vld [vmem:[#allocation2 + $0x18] sm:$0xff]  ;;  %v90_v49 = vlaneseq }
   0xd   :  { %v176_v1 = vld [vmem:[%s11963_s1] sm:$0xff]  ;;  %6391 = vmatpush.msk.msra.mxu0 %vm66_vm0, %v59_v0  ;;  %s6906_s4 = smov 32   ;;  %v57_v5 = vld [vmem:[#allocation2 + $0x10] sm:$0xff]  ;;  %v56_v6 = vld [vmem:[#allocation2 + $0x8] sm:$0xff]  ;;  %s6907_s8 = smov 96   ;;  %vm62_vm1 = vcmask 293888  }
   0xe   :  { %v6954_v2 = vperm.slane %v176_v1, 4  ;;  %v6956_v3 = vperm.slane %v176_v1, 2  ;;  %v55_v7 = vld [vmem:[#allocation2] sm:$0xff]  ;;  %v6964_v8 = vperm.slane %v176_v1, 3  ;;  %v6969_v10 = vperm.slane %v176_v1, 1  ;;  %v177_v15 = vld [vmem:[%s11963_s1 + $0x8] sm:$0xff] }
   0xf   :  { %82 = vmatpush.msra.mxu0 %v58_v4  ;;  %v54_v9 = vld [vmem:[%s11962_s0] sm:$0x3]  ;;  %v6978_v11 = vperm.slane %v176_v1, 5  ;;  %v6980_v12 = vperm.slane %v176_v1, 0  ;;  %v6988_v13 = vperm.slane %v176_v1, 6  ;;  %v6990_v14 = vperm.slane %v176_v1, 7 }
  0x10   :  { %12399 = vst [vmem:[#allocation11_spill] sm:$0xff] %v6954_v2  ;;  %207 = vrot.lane.b32.xlu1 %v6954_v2, %s6906_s4  ;;  %203 = vrot.lane.b32.xlu0 %v6956_v3, %s6906_s4  ;;  %v7001_v16 = vperm.slane %v177_v15, 0  ;;  %v7009_v17 = vperm.slane %v177_v15, 1  ;;  %v7017_v18 = vperm.slane %v177_v15, 2  ;;  %v7019_v19 = vperm.slane %v177_v15, 3  ;;  %s6908_s1 = smov 127  }
  0x11   :  { %316 = vrot.lane.b32.xlu2 %v6956_v3, %s6907_s8  ;;  %83 = vmatpush.msra.mxu0 %v57_v5  ;;  %12400 = vst [vmem:[#allocation12_spill] sm:$0xff] %v6969_v10  ;;  %v7021_v20 = vperm.slane %v177_v15, 4  ;;  %v7029_v21 = vperm.slane %v177_v15, 7  ;;  %v7031_v22 = vperm.slane %v177_v15, 6  ;;  %v7045_v23 = vperm.slane %v177_v15, 5  ;;  %s6909_s12 = smov 1  }
  0x12   :  { %12401 = vst [vmem:[#allocation13_spill] sm:$0xff] %v6978_v11  ;;  %v100_v24 = vld [vmem:[#allocation2 + $0x58] sm:$0xff]  ;;  %v99_v25 = vld [vmem:[#allocation2 + $0x50] sm:$0xff]  ;;  %v98_v27 = vld [vmem:[#allocation2 + $0x48] sm:$0xff]  ;;  %vm229_vm2 = vcmask 261120   ;;  %vm344_vm3 = vcmask 785408  }
  0x13   :  { %84 = vmatpush.msra.mxu0 %v56_v6  ;;  %12402 = vst [vmem:[#allocation14_spill] sm:$0xff] %v6988_v13  ;;  %117 = vmatpush.msra.mxu1 %v100_v24  ;;  %v97_v28 = vld [vmem:[#allocation2 + $0x40] sm:$0xff]  ;;  %v96_v29 = vld [vmem:[#allocation2 + $0x38] sm:$0xff]  ;;  %v95_v30 = vld [vmem:[#allocation2 + $0x30] sm:$0xff]  ;;  %v91_v56 = vand.u32 127, %v90_v49  ;;  %vm103_vm5 = vcmask 392192  }
  0x14   :  { %12403 = vst [vmem:[#allocation15_spill] sm:$0xff] %v7001_v16  ;;  %v7076_v34 = vld [vmem:[%s11964_s2] ss:$4 sm:$0xff]  ;;  %v7102_v46 = vld [vmem:[%s11964_s2 + $0x1] ss:$4 sm:$0xff]  ;;  %vm477_vm6 = vcmask 7168  }
  0x15   :  { %85 = vmatpush.msra.mxu0 %v55_v7  ;;  %12404 = vst [vmem:[#allocation16_spill] sm:$0xff] %v7009_v17  ;;  %118 = vmatpush.msra.mxu1 %v99_v25  ;;  %v7081_v36 = vperm.slane %v7076_v34, 4  ;;  %v7084_v37 = vperm.slane %v7076_v34, 3  ;;  %v7087_v38 = vperm.slane %v7076_v34, 2  ;;  %v7114_v48 = vperm.slane %v7102_v46, 2  ;;  %s6913_s29 = smov [#allocation7]  }
  0x16   :  { %6392 = vmatmul.msk.f32.vlgmr.msra.gmra.mxu0 %vm62_vm1, %v54_v9  ;;  %12405 = vst [vmem:[#allocation17_spill] sm:$0xff] %v7019_v19  ;;  %v6810_v53 = vld [vmem:[#allocation2 + $0x28] ss:$0 sm:$0xff]  ;;  %v7126_v59 = vperm.slane %v7102_v46, 3  ;;  %vm92_vm4 = vcmp.lt.s32.totalorder %v91_v56, 16  ;;  %v7132_v62 = vperm.slane %v7076_v34, 7 }
  0x17   :  { %12406 = vst [vmem:[#allocation18_spill] sm:$0xff] %v7021_v20  ;;  %119 = vmatpush.msra.mxu1 %v98_v27  ;;  %v7156_v9 = vperm.slane %v7102_v46, 4  ;;  %vm592_vm7 = vcmask 1039360   ;;  %vm1288_vm8 = vcmask 1040384   ;;  %vm1305_vm9 = vcmask 1041408   ;;  %s6378_s30 = sshll.u32 %s6913_s29, 4  ;;  %s6379_s30 = int_to_ptr.vmem [resolvable:$true] %s6378_s30 }
  0x18   :  { %205 = vrot.lane.b32.xlu0 %v6964_v8, %s6906_s4  ;;  %201 = vrot.lane.b32.xlu1 %v6969_v10, %s6906_s4  ;;  %12407 = vst [vmem:[#allocation19_spill] sm:$0xff] %v7029_v21  ;;  %vm1322_vm10 = vcmask 1042432   ;;  %vm1355_vm11 = vcmask 1044480   ;;  %vm1372_vm12 = vcmask 1045504   ;;  %vm1389_vm13 = vcmask 1046528   ;;  %s6380_s7 = sshll.u32 %s11967_s5, 4  ;;  %s6381_s7 = int_to_ptr.hbm [resolvable:$true] %s6380_s7 }
  0x19   :  { %318 = vrot.lane.b32.xlu2 %v6964_v8, %s6907_s8  ;;  %12408 = vst [vmem:[#allocation20_spill] sm:$0xff] %v7031_v22  ;;  %120 = vmatpush.msra.mxu1 %v97_v28  ;;  %v7170_v28 = vld [vmem:[%s11964_s2 + $0x20] ss:$4 sm:$0xff]  ;;  %vm1429_vm14 = vcmask 72704   ;;  %vm6136_vm15 = vcmask 130048  }
  0x1a   :  { %12409 = vst [vmem:[#allocation21_spill] sm:$0xff] %v7045_v23 }
  0x1b   :  { %121 = vmatpush.msra.mxu1 %v96_v29  ;;  %12410 = vst [vmem:[#allocation22_spill] sm:$0xff] %v7081_v36 }
  0x1c   :  { %12411 = vst [vmem:[#allocation23_spill] sm:$0xff] %v7084_v37 }
  0x1d   :  { %122 = vmatpush.msra.mxu1 %v95_v30  ;;  %12412 = vst [vmem:[#allocation24_spill] sm:$0xff] %v7087_v38  ;;  %v7181_v30 = vperm.slane %v7170_v28, 0 }
  0x1e   :  { %12414 = vst [vmem:[#allocation26_spill] sm:$0xff] %v7114_v48 }
  0x1f   :  { %12415 = vst [vmem:[#allocation27_spill] sm:$0xff] %v7126_v59 }
  0x20   :  { %320 = vrot.lane.b32.xlu0 %v6954_v2, %s6907_s8  ;;  %322 = vrot.lane.b32.xlu1 %v6978_v11, %s6907_s8  ;;  %12416 = vst [vmem:[#allocation28_spill] sm:$0xff] %v7132_v62 }
  0x21   :  { %199 = vrot.lane.b32.xlu2 %v6980_v12, %s6906_s4  ;;  %12418 = vst [vmem:[#allocation30_spill] sm:$0xff] %v7156_v9 }
  0x22   :  { %12420 = vst [vmem:[#allocation32_spill] sm:$0xff] %v7181_v30 }
  0x28   :  { %314 = vrot.lane.b32.xlu0 %v6969_v10, %s6907_s8  ;;  %211 = vrot.lane.b32.xlu1 %v6988_v13, %s6906_s4 }
  0x29   :  { %213 = vrot.lane.b32.xlu2 %v6990_v14, %s6906_s4 }
  0x30   :  { %215 = vrot.lane.b32.xlu0 %v7001_v16, %s6906_s4  ;;  %209 = vrot.lane.b32.xlu1 %v6978_v11, %s6906_s4 }
  0x31   :  { %324 = vrot.lane.b32.xlu2 %v6988_v13, %s6907_s8 }
  0x38   :  { %326 = vrot.lane.b32.xlu0 %v6990_v14, %s6907_s8  ;;  %328 = vrot.lane.b32.xlu1 %v7001_v16, %s6907_s8 }
  0x39   :  { %330 = vrot.lane.b32.xlu2 %v7009_v17, %s6907_s8 }
  0x40   :  { %219 = vrot.lane.b32.xlu0 %v7017_v18, %s6906_s4  ;;  %221 = vrot.lane.b32.xlu1 %v7019_v19, %s6906_s4 }
  0x41   :  { %223 = vrot.lane.b32.xlu2 %v7021_v20, %s6906_s4 }
  0x48   :  { %217 = vrot.lane.b32.xlu0 %v7009_v17, %s6906_s4  ;;  %180 = vrot.lane.b32.xlu1 %v7029_v21, %s6906_s4 }
  0x49   :  { %227 = vrot.lane.b32.xlu2 %v7031_v22, %s6906_s4 }
  0x50   :  { %332 = vrot.lane.b32.xlu0 %v7017_v18, %s6907_s8  ;;  %334 = vrot.lane.b32.xlu1 %v7019_v19, %s6907_s8 }
  0x51   :  { %336 = vrot.lane.b32.xlu2 %v7021_v20, %s6907_s8 }
  0x58   :  { %312 = vrot.lane.b32.xlu0 %v6980_v12, %s6907_s8  ;;  %342 = vrot.lane.b32.xlu1 %v7029_v21, %s6907_s8 }
  0x59   :  { %338 = vrot.lane.b32.xlu2 %v7045_v23, %s6907_s8 }
  0x60   :  { %763 = vrot.lane.b32.xlu0 %v6964_v8, %s6908_s1  ;;  %683 = vrot.lane.b32.xlu1 %v6956_v3, %s6909_s12 }
  0x61   :  { %685 = vrot.lane.b32.xlu2 %v6964_v8, %s6909_s12 }
  0x68   :  { %765 = vrot.lane.b32.xlu1 %v6954_v2, %s6908_s1 }
  0x69   :  { %761 = vrot.lane.b32.xlu2 %v6956_v3, %s6908_s1 }
  0x6b   :  { %v7065_v26 = vpop.permute.xlu2 %316 }
  0x70   :  { %225 = vrot.lane.b32.xlu1 %v7045_v23, %s6906_s4 }
  0x73   :  { %v319_v31 = vpop.permute.xlu2 %318 }
  0x74   :  { %v347_v50 = vsel %vm344_vm3, %v7065_v26, %v319_v31 }
  0x75   :  { %v7121_v55 = vmul.f32 %v7114_v48, %v347_v50 }
  0x78   :  { %340 = vrot.lane.b32.xlu1 %v7031_v22, %s6907_s8 }
  0x7b   :  { %v7078_v35 = vpop.permute.xlu2 %199 }
  0x80   :  { %681 = vrot.lane.b32.xlu1 %v6969_v10, %s6909_s12 }
  0x82   :  { %v7071_v32 = vpop.permute.xlu1 %207  ;;  %v204_v33 = vpop.permute.xlu0 %203 }
  0x83   :  { %v214_v51 = vpop.permute.xlu2 %213 }
  0x8a   :  { %v206_v39 = vpop.permute.xlu0 %205  ;;  %v202_v42 = vpop.permute.xlu1 %201 }
  0x8b   :  { %v232_v40 = vsel %vm229_vm2, %v204_v33, %v206_v39  ;;  %v233_v41 = vsel %vm229_vm2, %v206_v39, %v7071_v32  ;;  %v231_v43 = vsel %vm229_vm2, %v202_v42, %v204_v33  ;;  %v7139_v1 = vpop.permute.xlu2 %324  ;;  %v7186_v33 = vperm.slane %v7076_v34, 1 }
  0x8c   :  { %v7094_v44 = vmul.f32 %v7081_v36, %v233_v41  ;;  %v7097_v45 = vmul.f32 %v7084_v37, %v232_v40  ;;  %v7105_v47 = vmul.f32 %v7087_v38, %v231_v43  ;;  %v230_v39 = vsel %vm229_vm2, %v7078_v35, %v202_v42 }
  0x8d   :  { %12421 = vst [vmem:[#allocation33_spill] sm:$0xff] %v7186_v33  ;;  %v7194_v43 = vmul.f32 %v7186_v33, %v230_v39  ;;  %v7205_v42 = vperm.slane %v7102_v46, 6  ;;  %v7306_v37 = vperm.slane %v7076_v34, 5 }
  0x8e   :  { %12413 = vst [vmem:[#allocation25_spill] sm:$0xff] %v7094_v44  ;;  %568 = vrot.lane.b32.xlu1 %v7094_v44, %s6908_s1  ;;  %566 = vrot.lane.b32.xlu0 %v7097_v45, %s6908_s1 }
  0x8f   :  { %451 = vrot.lane.b32.xlu2 %v7105_v47, %s6909_s12  ;;  %12423 = vst [vmem:[#allocation35_spill] sm:$0xff] %v7194_v43 }
  0x90   :  { %12425 = vst [vmem:[#allocation37_spill] sm:$0xff] %v7205_v42 }
  0x91   :  { %12437 = vst [vmem:[#allocation49_spill] sm:$0xff] %v7306_v37 }
  0x92   :  { %v321_v52 = vpop.permute.xlu0 %320  ;;  %v7118_v54 = vpop.permute.xlu1 %322 }
  0x93   :  { %v87_v57 = vpop.f32.mrf.mxu0  ;;  %v348_v60 = vsel %vm344_vm3, %v319_v31, %v321_v52  ;;  %v349_v15 = vsel %vm344_vm3, %v321_v52, %v7118_v54  ;;  %v7162_v25 = vpop.permute.xlu2 %330  ;;  %v7210_v52 = vperm.slane %v7102_v46, 1 }
  0x94   :  { %v88_v58 = vadd.f32 %v6810_v53, %v87_v57  ;;  %v7137_v0 = vmul.f32 %v7126_v59, %v348_v60  ;;  %v7165_v27 = vmul.f32 %v7156_v9, %v349_v15  ;;  %v7224_v60 = vld [vmem:[%s11964_s2 + $0x21] ss:$4 sm:$0xff]  ;;  %v7240_v15 = vperm.slane %v7076_v34, 6 }
  0x95   :  { %12426 = vst [vmem:[#allocation38_spill] sm:$0xff] %v7210_v52  ;;  %v7312_v59 = vperm.slane %v7076_v34, 0  ;;  %v7338_v34 = vperm.slane %v7170_v28, 7 }
  0x96   :  { %453 = vrot.lane.b32.xlu0 %v7097_v45, %s6909_s12  ;;  %v93_v61 = vmax.f32 %v88_v58, 0.0  ;;  %12419 = vst [vmem:[#allocation31_spill] sm:$0xff] %v7165_v27 }
  0x97   :  { %861 = vrot.lane.b32.xlu2 %v7121_v55, %s6909_s12  ;;  %12429 = vst [vmem:[#allocation41_spill] sm:$0xff] %v7240_v15 }
  0x98   :  { %v7134_v63 = vsel %vm92_vm4, %v93_v61, %v88_v58  ;;  %12438 = vst [vmem:[#allocation50_spill] sm:$0xff] %v7312_v59 }
  0x99   :  { %12417 = vst [vmem:[#allocation29_spill] sm:$0xff] %v7134_v63  ;;  %6393 = vmatmul.msk.f32.vlgmr.msra.gmra.mxu1 %vm103_vm5, %v7134_v63  ;;  %v7257_v63 = vperm.slane %v7102_v46, 7 }
  0x9a   :  { %v7141_v4 = vpop.permute.xlu0 %314  ;;  %v212_v5 = vpop.permute.xlu1 %211  ;;  %12442 = vst [vmem:[#allocation54_spill] sm:$0xff] %v7338_v34 }
  0x9b   :  { %v236_v6 = vsel %vm229_vm2, %v212_v5, %v214_v51  ;;  %v7196_v49 = vpop.permute.xlu2 %223  ;;  %v346_v53 = vsel %vm344_vm3, %v7141_v4, %v7065_v26  ;;  %v7233_v26 = vperm.slane %v7224_v60, 0  ;;  %12432 = vst [vmem:[#allocation44_spill] sm:$0xff] %v7257_v63 }
  0x9c   :  { %v7147_v7 = vmul.f32 %v7132_v62, %v236_v6  ;;  %12424 = vst [vmem:[#allocation36_spill] sm:$0xff] %v7196_v49  ;;  %v7219_v58 = vmul.f32 %v7210_v52, %v346_v53 }
  0x9d   :  { %12428 = vst [vmem:[#allocation40_spill] sm:$0xff] %v7233_v26 }
  0x9e   :  { %863 = vrot.lane.b32.xlu0 %v7137_v0, %s6909_s12  ;;  %574 = vrot.lane.b32.xlu1 %v7147_v7, %s6908_s1 }
  0x9f   :  { %941 = vrot.lane.b32.xlu2 %v7137_v0, %s6908_s1 }
  0xa2   :  { %v7160_v24 = vpop.permute.xlu1 %209  ;;  %v7172_v29 = vpop.permute.xlu0 %215 }
  0xa3   :  { %v237_v31 = vsel %vm229_vm2, %v214_v51, %v7172_v29  ;;  %v7235_v61 = vpop.permute.xlu2 %227  ;;  %v234_v48 = vsel %vm229_vm2, %v7071_v32, %v7160_v24 }
  0xa4   :  { %v7191_v41 = vmul.f32 %v7181_v30, %v237_v31  ;;  %v235_v31 = vsel %vm229_vm2, %v7160_v24, %v212_v5  ;;  %v350_v24 = vsel %vm344_vm3, %v7118_v54, %v7139_v1  ;;  %v7365_v54 = vperm.slane %v7170_v28, 2 }
  0xa5   :  { %v7248_v53 = vmul.f32 %v7240_v15, %v235_v31 }
  0xa6   :  { %943 = vrot.lane.b32.xlu0 %v7165_v27, %s6908_s1  ;;  %461 = vrot.lane.b32.xlu1 %v7147_v7, %s6909_s12  ;;  %12422 = vst [vmem:[#allocation34_spill] sm:$0xff] %v7191_v41 }
  0xa7   :  { %564 = vrot.lane.b32.xlu2 %v7105_v47, %s6908_s1  ;;  %12431 = vst [vmem:[#allocation43_spill] sm:$0xff] %v7248_v53 }
  0xa8   :  { %12445 = vst [vmem:[#allocation57_spill] sm:$0xff] %v7365_v54 }
  0xaa   :  { %v329_v40 = vpop.permute.xlu1 %328  ;;  %v327_v50 = vpop.permute.xlu0 %326 }
  0xab   :  { %v351_v51 = vsel %vm344_vm3, %v7139_v1, %v327_v50  ;;  %v353_v6 = vsel %vm344_vm3, %v329_v40, %v7162_v25  ;;  %v352_v5 = vsel %vm344_vm3, %v327_v50, %v329_v40  ;;  %v7260_v30 = vpop.permute.xlu2 %336 }
  0xac   :  { %v7216_v57 = vmul.f32 %v7205_v42, %v351_v51  ;;  %v7245_v51 = vmul.f32 %v7233_v26, %v353_v6  ;;  %v7265_v31 = vmul.f32 %v7257_v63, %v352_v5  ;;  %v7274_v42 = vperm.slane %v7170_v28, 3 }
  0xae   :  { %449 = vrot.lane.b32.xlu0 %v7194_v43, %s6909_s12  ;;  %939 = vrot.lane.b32.xlu1 %v7121_v55, %s6908_s1  ;;  %12427 = vst [vmem:[#allocation39_spill] sm:$0xff] %v7216_v57 }
  0xaf   :  { %576 = vrot.lane.b32.xlu2 %v7191_v41, %s6908_s1  ;;  %12430 = vst [vmem:[#allocation42_spill] sm:$0xff] %v7245_v51  ;;  %v7418_v41 = vperm.slane %v7224_v60, 3 }
  0xb0   :  { %12433 = vst [vmem:[#allocation45_spill] sm:$0xff] %v7274_v42 }
  0xb1   :  { %12449 = vst [vmem:[#allocation61_spill] sm:$0xff] %v7418_v41 }
  0xb2   :  { %v222_v56 = vpop.permute.xlu1 %221  ;;  %v220_v62 = vpop.permute.xlu0 %219 }
  0xb3   :  { %v240_v40 = vsel %vm229_vm2, %v220_v62, %v222_v56  ;;  %v7282_v26 = vpop.permute.xlu2 %338 }
  0xb4   :  { %v7280_v5 = vmul.f32 %v7274_v42, %v240_v40  ;;  %v7301_v40 = vperm.slane %v7170_v28, 4  ;;  %v241_v42 = vsel %vm229_vm2, %v222_v56, %v7196_v49  ;;  %v7324_v56 = vmul.f32 %v7306_v37, %v234_v48  ;;  %v133_v37 = vld [vmem:[#allocation2 + $0x90] sm:$0xff] }
  0xb5   :  { %v7343_v48 = vperm.slane %v7102_v46, 5  ;;  %149 = vmatpush.msra.mxu2 %v133_v37  ;;  %v130_v37 = vld [vmem:[#allocation2 + $0x78] sm:$0xff] }
  0xb6   :  { %859 = vrot.lane.b32.xlu0 %v7219_v58, %s6909_s12  ;;  %869 = vrot.lane.b32.xlu1 %v7216_v57, %s6909_s12  ;;  %12434 = vst [vmem:[#allocation46_spill] sm:$0xff] %v7280_v5  ;;  %v7321_v38 = vmul.f32 %v7301_v40, %v241_v42 }
  0xb7   :  { %691 = vrot.lane.b32.xlu2 %v6988_v13, %s6909_s12  ;;  %12436 = vst [vmem:[#allocation48_spill] sm:$0xff] %v7301_v40  ;;  %v7354_v40 = vmul.f32 %v7343_v48, %v350_v24 }
  0xb8   :  { %12440 = vst [vmem:[#allocation52_spill] sm:$0xff] %v7321_v38 }
  0xb9   :  { %12443 = vst [vmem:[#allocation55_spill] sm:$0xff] %v7343_v48 }
  0xba   :  { %v181_v39 = vpop.permute.xlu1 %180  ;;  %v7314_v15 = vpop.permute.xlu0 %217  ;;  %12444 = vst [vmem:[#allocation56_spill] sm:$0xff] %v7354_v40 }
  0xbb   :  { %v7292_v36 = vpop.permute.xlu2 %685  ;;  %v261_v33 = vsel %vm229_vm2, %v181_v39, %v7078_v35  ;;  %v244_v35 = vsel %vm229_vm2, %v7235_v61, %v181_v39  ;;  %v239_v1 = vsel %vm229_vm2, %v7314_v15, %v220_v62  ;;  %v7385_v62 = vperm.slane %v7224_v60, 2 }
  0xbc   :  { %12435 = vst [vmem:[#allocation47_spill] sm:$0xff] %v7292_v36  ;;  %v7327_v52 = vmul.f32 %v7312_v59, %v261_v33  ;;  %v7349_v33 = vmul.f32 %v7338_v34, %v244_v35  ;;  %v7372_v35 = vmul.f32 %v7365_v54, %v239_v1  ;;  %v132_v54 = vld [vmem:[#allocation2 + $0x88] sm:$0xff] }
  0xbd   :  { %12447 = vst [vmem:[#allocation59_spill] sm:$0xff] %v7385_v62  ;;  %150 = vmatpush.msra.mxu2 %v132_v54 }
  0xbe   :  { %459 = vrot.lane.b32.xlu0 %v7248_v53, %s6909_s12  ;;  %951 = vrot.lane.b32.xlu1 %v7245_v51, %s6908_s1  ;;  %12441 = vst [vmem:[#allocation53_spill] sm:$0xff] %v7327_v52 }
  0xbf   :  { %771 = vrot.lane.b32.xlu2 %v6990_v14, %s6908_s1 }
  0xc2   :  { %v7262_v6 = vpop.permute.xlu1 %334  ;;  %v7351_v42 = vpop.permute.xlu0 %332 }
  0xc3   :  { %v7335_v32 = vpop.permute.xlu2 %761  ;;  %v355_v1 = vsel %vm344_vm3, %v7351_v42, %v7262_v6 }
  0xc6   :  { %693 = vrot.lane.b32.xlu0 %v6990_v14, %s6909_s12  ;;  %689 = vrot.lane.b32.xlu1 %v6978_v11, %s6909_s12 }
  0xc7   :  { %871 = vrot.lane.b32.xlu2 %v7265_v31, %s6909_s12 }
  0xca   :  { %v7277_v50 = vpop.permute.xlu1 %342  ;;  %v313_v34 = vpop.permute.xlu0 %312 }
  0xce   :  { %773 = vrot.lane.b32.xlu0 %v7001_v16, %s6908_s1  ;;  %582 = vrot.lane.b32.xlu1 %v7280_v5, %s6908_s1 }
  0xcf   :  { %572 = vrot.lane.b32.xlu2 %v7248_v53, %s6908_s1 }
  0xd2   :  { %v7290_v63 = vpop.permute.xlu1 %683 }
  0xd3   :  { %v711_v53 = vsel %vm477_vm6, %v7290_v63, %v7292_v36 }
  0xd6   :  { %949 = vrot.lane.b32.xlu0 %v7265_v31, %s6908_s1  ;;  %469 = vrot.lane.b32.xlu1 %v7280_v5, %s6909_s12  ;;  %v7395_v5 = vpop.permute.xlu0 %763 }
  0xd7   :  { %769 = vrot.lane.b32.xlu2 %v6988_v13, %s6908_s1 }
  0xda   :  { %v7318_v9 = vpop.permute.xlu1 %765 }
  0xdb   :  { %12439 = vst [vmem:[#allocation51_spill] sm:$0xff] %v7318_v9 }
  0xde   :  { %457 = vrot.lane.b32.xlu0 %v7324_v56, %s6909_s12  ;;  %560 = vrot.lane.b32.xlu1 %v7327_v52, %s6908_s1 }
  0xdf   :  { %584 = vrot.lane.b32.xlu2 %v7321_v38, %s6908_s1  ;;  %v7391_v38 = vmul.f32 %v7385_v62, %v355_v1  ;;  %v129_v1 = vld [vmem:[#allocation2 + $0x70] sm:$0xff]  ;;  %v128_v62 = vld [vmem:[#allocation2 + $0x68] sm:$0xff] }
  0xe2   :  { %v7356_v59 = vpop.permute.xlu1 %225 }
  0xe6   :  { %867 = vrot.lane.b32.xlu0 %v7354_v40, %s6909_s12  ;;  %429 = vrot.lane.b32.xlu1 %v7349_v33, %s6909_s12  ;;  %v7468_v40 = vperm.slane %v7224_v60, 7 }
  0xe7   :  { %699 = vrot.lane.b32.xlu2 %v7017_v18, %s6909_s12 }
  0xe8   :  { %12456 = vst [vmem:[#allocation68_spill] sm:$0xff] %v7468_v40 }
  0xe9   :  { %v7369_v39 = vpop.permute.xlu2 %451 }
  0xea   :  { %v7374_v24 = vpop.permute.xlu1 %340 }
  0xeb   :  { %12446 = vst [vmem:[#allocation58_spill] sm:$0xff] %v7374_v24  ;;  %v792_v24 = vsel %vm592_vm7, %v7395_v5, %v7318_v9 }
  0xee   :  { %467 = vrot.lane.b32.xlu0 %v7372_v35, %s6909_s12  ;;  %679 = vrot.lane.b32.xlu1 %v6980_v12, %s6909_s12 }
  0xef   :  { %562 = vrot.lane.b32.xlu2 %v7194_v43, %s6908_s1  ;;  %v131_v43 = vld [vmem:[#allocation2 + $0x80] sm:$0xff] }
  0xf0   :  { %151 = vmatpush.msra.mxu2 %v131_v43 }
  0xf1   :  { %v7382_v48 = vpop.permute.xlu2 %861 }
  0xf2   :  { %v7401_v51 = vpop.permute.xlu1 %681  ;;  %152 = vmatpush.msra.mxu2 %v130_v37 }
  0xf4   :  { %153 = vmatpush.msra.mxu2 %v129_v1  ;;  %v7426_v1 = vld [vmem:[%s11964_s2 + $0x2] ss:$4 sm:$0xff] }
  0xf6   :  { %701 = vrot.lane.b32.xlu0 %v7019_v19, %s6909_s12  ;;  %877 = vrot.lane.b32.xlu1 %v7391_v38, %s6909_s12 }
  0xf7   :  { %447 = vrot.lane.b32.xlu2 %v7327_v52, %s6909_s12  ;;  %154 = vmatpush.msra.mxu2 %v128_v62  ;;  %v356_v62 = vsel %vm344_vm3, %v7262_v6, %v7260_v30 }
  0xf8   :  { %v7443_v13 = vmul.f32 %v7418_v41, %v356_v62  ;;  %v7459_v62 = vperm.slane %v7102_v46, 0 }
  0xf9   :  { %v7403_v54 = vpop.permute.xlu2 %941 }
  0xfa   :  { %12452 = vst [vmem:[#allocation64_spill] sm:$0xff] %v7443_v13 }
  0xfb   :  { %12454 = vst [vmem:[#allocation66_spill] sm:$0xff] %v7459_v62 }
  0xfe   :  { %947 = vrot.lane.b32.xlu0 %v7216_v57, %s6908_s1  ;;  %759 = vrot.lane.b32.xlu1 %v6969_v10, %s6908_s1  ;;  %v7431_v10 = vld [vmem:[%s11964_s2 + $0x3] ss:$4 sm:$0xff]  ;;  %v7437_v57 = vperm.slane %v7426_v1, 3 }
  0xff   :  { %779 = vrot.lane.b32.xlu2 %v7019_v19, %s6908_s1  ;;  %v7440_v6 = vperm.slane %v7431_v10, 3 }
 0x100   :  { %v7411_v43 = vpop.permute.xlu0 %566  ;;  %v7413_v52 = vpop.permute.xlu1 %568  ;;  %12450 = vst [vmem:[#allocation62_spill] sm:$0xff] %v7437_v57  ;;  %v744_v41 = vmul.f32 %v711_v53, %v7437_v57 }
 0x101   :  { %12448 = vst [vmem:[#allocation60_spill] sm:$0xff] %v7413_v52  ;;  %v7415_v37 = vpop.permute.xlu2 %564  ;;  %v596_v19 = vsel %vm592_vm7, %v7411_v43, %v7413_v52  ;;  %v1019_v52 = vrot.slane %v7097_v45, 7  ;;  %v345_v45 = vsel %vm344_vm3, %v313_v34, %v7141_v4 }
 0x102   :  { %12451 = vst [vmem:[#allocation63_spill] sm:$0xff] %v7440_v6  ;;  %v663_v49 = vmul.f32 %v7440_v6, %v596_v19  ;;  %v1115_v23 = vrot.slane %v744_v41, 5  ;;  %v7484_v4 = vmul.f32 %v7459_v62, %v345_v45  ;;  %v6811_v62 = vld [vmem:[#allocation2 + $0x60] ss:$0 sm:$0xff] }
 0x104   :  { %v1067_v53 = vrot.slane %v663_v49, 6  ;;  %v825_v49 = vmul.f32 %v792_v24, %v7440_v6  ;;  %v7504_v24 = vperm.slane %v7224_v60, 4 }
 0x106   :  { %676 = vrot.lane.b32.xlu0 %v7029_v21, %s6909_s12  ;;  %957 = vrot.lane.b32.xlu1 %v7443_v13, %s6908_s1  ;;  %12459 = vst [vmem:[#allocation71_spill] sm:$0xff] %v7504_v24 }
 0x107   :  { %879 = vrot.lane.b32.xlu2 %v7443_v13, %s6909_s12  ;;  %v377_v13 = vsel %vm344_vm3, %v7277_v50, %v313_v34 }
 0x108   :  { %v7456_v16 = vpop.permute.xlu0 %453  ;;  %v7481_v44 = vmul.f32 %v7468_v40, %v377_v13 }
 0x109   :  { %12453 = vst [vmem:[#allocation65_spill] sm:$0xff] %v7456_v16  ;;  %v480_v19 = vsel %vm477_vm6, %v7369_v39, %v7456_v16  ;;  %v7465_v36 = vpop.permute.xlu2 %576 }
 0x10a   :  { %12455 = vst [vmem:[#allocation67_spill] sm:$0xff] %v7465_v36  ;;  %v547_v46 = vmul.f32 %v7437_v57, %v480_v19  ;;  %v357_v19 = vsel %vm344_vm3, %v7260_v30, %v7282_v26 }
 0x10b   :  { %12457 = vst [vmem:[#allocation69_spill] sm:$0xff] %v7481_v44  ;;  %v7514_v40 = vmul.f32 %v7504_v24, %v357_v19 }
 0x10c   :  { %v1292_v16 = vsel %vm1288_vm8, %v547_v46, %v1019_v52 }
 0x10d   :  { %v1309_v27 = vsel %vm1305_vm9, %v1292_v16, %v1067_v53  ;;  %v1259_v53 = vrot.slane %v7137_v0, 1  ;;  %12460 = vst [vmem:[#allocation72_spill] sm:$0xff] %v7514_v40 }
 0x10e   :  { %781 = vrot.lane.b32.xlu0 %v7021_v20, %s6908_s1  ;;  %935 = vrot.lane.b32.xlu1 %v7484_v4, %s6908_s1  ;;  %v1326_v41 = vsel %vm1322_vm10, %v1309_v27, %v1115_v23  ;;  %v1179_v27 = vrot.slane %v825_v49, 3 }
 0x10f   :  { %839 = vrot.lane.b32.xlu2 %v7481_v44, %s6909_s12  ;;  %v1342_v23 = vsel %vm66_vm0, %v1326_v41, %v6964_v8  ;;  %v6910_v41 = vmov 65535  }
 0x110   :  { %v7494_v16 = vpop.permute.xlu0 %863  ;;  %v7496_v13 = vpop.permute.xlu1 %574 }
 0x111   :  { %12458 = vst [vmem:[#allocation70_spill] sm:$0xff] %v7494_v16  ;;  %v889_v52 = vsel %vm477_vm6, %v7382_v48, %v7494_v16  ;;  %v7501_v34 = vpop.permute.xlu2 %691  ;;  %v1359_v16 = vsel %vm1355_vm11, %v1342_v23, %v1179_v27 }
 0x112   :  { %v922_v45 = vmul.f32 %v889_v52, %v7437_v57  ;;  %v1433_v52 = vsel %vm66_vm0, 4294967295, %v6910_v41 }
 0x114   :  { %v1227_v46 = vrot.slane %v922_v45, 2 }
 0x116   :  { %757 = vrot.lane.b32.xlu0 %v6980_v12, %s6908_s1  ;;  %v1376_v30 = vsel %vm1372_vm12, %v1359_v16, %v1227_v46  ;;  %697 = vrot.lane.b32.xlu1 %v7009_v17, %s6909_s12  ;;  %v124_v0 = vpop.f32.mrf.mxu1 }
 0x117   :  { %959 = vrot.lane.b32.xlu2 %v7514_v40, %s6908_s1  ;;  %v1393_v8 = vsel %vm1389_vm13, %v1376_v30, %v1259_v53  ;;  %v125_v19 = vadd.f32 %v6811_v62, %v124_v0  ;;  %v7537_v53 = vsel %vm1355_vm11, %v1433_v52, 0  ;;  %v595_v30 = vsel %vm592_vm7, %v7415_v37, %v7411_v43 }
 0x118   :  { %v7525_v49 = vpop.permute.xlu0 %943  ;;  %v7528_v45 = vpop.permute.xlu1 %461  ;;  %v7543_v62 = vperm.slane %v7426_v1, 2  ;;  %v7546_v0 = vperm.slane %v7431_v10, 2 }
 0x119   :  { %12461 = vst [vmem:[#allocation73_spill] sm:$0xff] %v7525_v49  ;;  %v970_v16 = vsel %vm592_vm7, %v7403_v54, %v7525_v49  ;;  %v7533_v23 = vpop.permute.xlu2 %771  ;;  %v127_v46 = vmax.f32 %v125_v19, 0.0  ;;  %v710_v19 = vsel %vm477_vm6, %v7401_v51, %v7290_v63 }
 0x11a   :  { %12462 = vst [vmem:[#allocation74_spill] sm:$0xff] %v7528_v45  ;;  %v1003_v27 = vmul.f32 %v970_v16, %v7440_v6  ;;  %v662_v43 = vmul.f32 %v7546_v0, %v595_v30  ;;  %v743_v16 = vmul.f32 %v710_v19, %v7543_v62  ;;  %v1018_v30 = vrot.slane %v7105_v47, 7 }
 0x11b   :  { %12463 = vst [vmem:[#allocation75_spill] sm:$0xff] %v7543_v62  ;;  %6394 = vmatmul.msk.f32.vlgmr.msra.gmra.mxu2 %vm103_vm5, %v127_v46  ;;  %v791_v6 = vsel %vm592_vm7, %v7335_v32, %v7395_v5  ;;  %v7588_v5 = vperm.slane %v7170_v28, 1 }
 0x11c   :  { %v1409_v41 = vpack.c.bf16 %v1003_v27, %v1393_v8  ;;  %12464 = vst [vmem:[#allocation76_spill] sm:$0xff] %v7546_v0  ;;  %v1066_v57 = vrot.slane %v662_v43, 6  ;;  %v1114_v19 = vrot.slane %v743_v16, 5  ;;  %v824_v49 = vmul.f32 %v791_v6, %v7546_v0 }
 0x11d   :  { %12466 = vst [vmem:[#allocation78_spill] sm:$0xff] %v7588_v5 }
 0x11e   :  { %857 = vrot.lane.b32.xlu0 %v7484_v4, %s6909_s12  ;;  %v1445_v52 = vand.u32 %v7537_v53, %v1409_v41  ;;  %590 = vrot.lane.b32.xlu1 %v7349_v33, %s6908_s1 }
 0x11f   :  { %937 = vrot.lane.b32.xlu2 %v7219_v58, %s6908_s1 }
 0x120   :  { %v7560_v8 = vpop.permute.xlu0 %449  ;;  %1529 = vmatpush.bf16.msrb.mxu2 %v1445_v52  ;;  %v7563_v27 = vpop.permute.xlu1 %939 }
 0x121   :  { %v7565_v63 = vpop.permute.xlu2 %871  ;;  %v479_v46 = vsel %vm477_vm6, %v7560_v8, %v7369_v39 }
 0x122   :  { %12465 = vst [vmem:[#allocation77_spill] sm:$0xff] %v7565_v63  ;;  %v546_v41 = vmul.f32 %v7543_v62, %v479_v46  ;;  %v7601_v46 = vperm.slane %v7170_v28, 6 }
 0x124   :  { %v1291_v52 = vsel %vm1288_vm8, %v546_v41, %v1018_v30  ;;  %12467 = vst [vmem:[#allocation79_spill] sm:$0xff] %v7601_v46  ;;  %v969_v41 = vsel %vm592_vm7, %v7563_v27, %v7403_v54 }
 0x125   :  { %v1308_v24 = vsel %vm1305_vm9, %v1291_v52, %v1066_v57  ;;  %v238_v57 = vsel %vm229_vm2, %v7172_v29, %v7314_v15  ;;  %v1178_v15 = vrot.slane %v824_v49, 3 }
 0x126   :  { %580 = vrot.lane.b32.xlu0 %v7372_v35, %s6908_s1  ;;  %570 = vrot.lane.b32.xlu1 %v7324_v56, %s6908_s1  ;;  %v1325_v47 = vsel %vm1322_vm10, %v1308_v24, %v1114_v19  ;;  %v243_v24 = vsel %vm229_vm2, %v7356_v59, %v7235_v61  ;;  %v1258_v19 = vrot.slane %v7121_v55, 1 }
 0x127   :  { %777 = vrot.lane.b32.xlu2 %v7017_v18, %s6908_s1  ;;  %v1341_v29 = vsel %vm66_vm0, %v1325_v47, %v6956_v3  ;;  %v7617_v9 = vmul.f32 %v7601_v46, %v243_v24  ;;  %v7632_v47 = vperm.slane %v7224_v60, 1 }
 0x128   :  { %v7585_v39 = vpop.permute.xlu0 %859  ;;  %v7593_v43 = vpop.permute.xlu1 %869  ;;  %v1358_v61 = vsel %vm1355_vm11, %v1341_v29, %v1178_v15 }
 0x129   :  { %v7595_v6 = vpop.permute.xlu2 %572  ;;  %v888_v16 = vsel %vm477_vm6, %v7585_v39, %v7382_v48  ;;  %v7613_v48 = vmul.f32 %v7588_v5, %v238_v57  ;;  %12469 = vst [vmem:[#allocation81_spill] sm:$0xff] %v7617_v9  ;;  %v354_v57 = vsel %vm344_vm3, %v7162_v25, %v7351_v42  ;;  %v600_v42 = vsel %vm592_vm7, %v7496_v13, %v7465_v36  ;;  %v12494_v36 = vld [vmem:[#allocation43_spill] sm:$0xff] }
 0x12a   :  { %v921_v30 = vmul.f32 %v888_v16, %v7543_v62  ;;  %v1002_v16 = vmul.f32 %v969_v41, %v7546_v0  ;;  %12470 = vst [vmem:[#allocation82_spill] sm:$0xff] %v7632_v47  ;;  %v7643_v15 = vmul.f32 %v7632_v47, %v354_v57  ;;  %v7648_v41 = vperm.slane %v7431_v10, 7 }
 0x12b   :  { %12468 = vst [vmem:[#allocation80_spill] sm:$0xff] %v7613_v48  ;;  %v893_v46 = vsel %vm477_vm6, %v7593_v43, %v7565_v63 }
 0x12c   :  { %v1226_v52 = vrot.slane %v921_v30, 2  ;;  %12472 = vst [vmem:[#allocation84_spill] sm:$0xff] %v7643_v15  ;;  %v667_v57 = vmul.f32 %v7648_v41, %v600_v42 }
 0x12d   :  { %12473 = vst [vmem:[#allocation85_spill] sm:$0xff] %v7648_v41 }
 0x12e   :  { %465 = vrot.lane.b32.xlu0 %v7613_v48, %s6909_s12  ;;  %v1375_v3 = vsel %vm1372_vm12, %v1358_v61, %v1226_v52  ;;  %687 = vrot.lane.b32.xlu1 %v6954_v2, %s6909_s12  ;;  %v7661_v52 = vperm.slane %v7426_v1, 7  ;;  %v1071_v5 = vrot.slane %v667_v57, 6 }
 0x12f   :  { %475 = vrot.lane.b32.xlu2 %v7617_v9, %s6909_s12  ;;  %v1392_v55 = vsel %vm1389_vm13, %v1375_v3, %v1258_v19 }
 0x130   :  { %v7629_v54 = vpop.permute.xlu0 %459  ;;  %v1408_v49 = vpack.c.bf16 %v1002_v16, %v1392_v55  ;;  %v7637_v24 = vpop.permute.xlu1 %951  ;;  %12474 = vst [vmem:[#allocation86_spill] sm:$0xff] %v7661_v52 }
 0x131   :  { %12471 = vst [vmem:[#allocation83_spill] sm:$0xff] %v7637_v24  ;;  %v7639_v30 = vpop.permute.xlu2 %769  ;;  %v484_v25 = vsel %vm477_vm6, %v7629_v54, %v7528_v45 }
 0x132   :  { %v1442_v29 = vand.u32 %v7537_v53, %v1408_v49  ;;  %v551_v55 = vmul.f32 %v7661_v52, %v484_v25 }
 0x134   :  { %1516 = vmatpush.bf16.msrb.mxu1 %v1442_v29  ;;  %v1023_v29 = vrot.slane %v7147_v7, 7  ;;  %v926_v7 = vmul.f32 %v893_v46, %v7661_v52  ;;  %v1263_v46 = vrot.slane %v7265_v31, 1  ;;  %v12482_v31 = vld [vmem:[#allocation58_spill] sm:$0xff] }
 0x136   :  { %875 = vrot.lane.b32.xlu0 %v7643_v15, %s6909_s12  ;;  %767 = vrot.lane.b32.xlu1 %v6978_v11, %s6908_s1  ;;  %v1296_v62 = vsel %vm1288_vm8, %v551_v55, %v1023_v29  ;;  %v1231_v63 = vrot.slane %v926_v7, 2 }
 0x137   :  { %955 = vrot.lane.b32.xlu2 %v7391_v38, %s6908_s1  ;;  %v1313_v42 = vsel %vm1305_vm9, %v1296_v62, %v1071_v5  ;;  %v12478_v5 = vld [vmem:[#allocation25_spill] sm:$0xff] }
 0x138   :  { %v7663_v19 = vpop.permute.xlu0 %693  ;;  %v7665_v61 = vpop.permute.xlu1 %689 }
 0x139   :  { %12475 = vst [vmem:[#allocation87_spill] sm:$0xff] %v7663_v19  ;;  %v7667_v16 = vpop.permute.xlu2 %584  ;;  %v715_v3 = vsel %vm477_vm6, %v7501_v34, %v7663_v19 }
 0x13a   :  { %12476 = vst [vmem:[#allocation88_spill] sm:$0xff] %v7667_v16  ;;  %v748_v49 = vmul.f32 %v715_v3, %v7661_v52  ;;  %v12479_v52 = vld [vmem:[#allocation31_spill] sm:$0xff] }
 0x13c   :  { %v1119_v0 = vrot.slane %v748_v49, 5 }
 0x13e   :  { %707 = vrot.lane.b32.xlu0 %v7031_v22, %s6909_s12  ;;  %588 = vrot.lane.b32.xlu1 %v7617_v9, %s6908_s1  ;;  %v1330_v57 = vsel %vm1322_vm10, %v1313_v42, %v1119_v0 }
 0x13f   :  { %787 = vrot.lane.b32.xlu2 %v7029_v21, %s6908_s1  ;;  %v1346_v45 = vsel %vm66_vm0, %v1330_v57, %v6990_v14  ;;  %v7714_v14 = vperm.slane %v7224_v60, 6  ;;  %v7918_v21 = vperm.slane %v7431_v10, 1 }
 0x140   :  { %v7686_v25 = vpop.permute.xlu0 %773  ;;  %v7690_v3 = vpop.permute.xlu1 %582 }
 0x141   :  { %12477 = vst [vmem:[#allocation89_spill] sm:$0xff] %v7686_v25  ;;  %v7692_v55 = vpop.permute.xlu2 %699  ;;  %v796_v49 = vsel %vm592_vm7, %v7533_v23, %v7686_v25  ;;  %v12480_v25 = vld [vmem:[#allocation21_spill] sm:$0xff] }
 0x142   :  { %v829_v29 = vmul.f32 %v796_v49, %v7648_v41  ;;  %12481 = vst [vmem:[#allocation25_spill] sm:$0xff] %v7714_v14 }
 0x144   :  { %v1183_v47 = vrot.slane %v829_v29, 3 }
 0x146   :  { %v1363_v62 = vsel %vm1355_vm11, %v1346_v45, %v1183_v47  ;;  %455 = vrot.lane.b32.xlu0 %v12478_v5, %s6909_s12  ;;  %705 = vrot.lane.b32.xlu1 %v12480_v25, %s6909_s12  ;;  %v359_v45 = vsel %vm344_vm3, %v12482_v31, %v7277_v50  ;;  %v12485_v50 = vld [vmem:[#allocation56_spill] sm:$0xff] }
 0x147   :  { %865 = vrot.lane.b32.xlu2 %v12479_v52, %s6909_s12  ;;  %v1380_v0 = vsel %vm1372_vm12, %v1363_v62, %v1231_v63 }
 0x148   :  { %v1397_v7 = vsel %vm1389_vm13, %v1380_v0, %v1263_v46  ;;  %v7711_v42 = vpop.permute.xlu0 %949  ;;  %v7719_v47 = vpop.permute.xlu1 %469  ;;  %v7728_v46 = vmul.f32 %v7714_v14, %v359_v45  ;;  %v12487_v45 = vld [vmem:[#allocation15_spill] sm:$0xff] }
 0x149   :  { %12483 = vst [vmem:[#allocation58_spill] sm:$0xff] %v7719_v47  ;;  %v7721_v49 = vpop.permute.xlu2 %562  ;;  %v974_v57 = vsel %vm592_vm7, %v7711_v42, %v7637_v24 }
 0x14a   :  { %v1007_v63 = vmul.f32 %v974_v57, %v7648_v41  ;;  %12484 = vst [vmem:[#allocation90_spill] sm:$0xff] %v7728_v46 }
 0x14c   :  { %v1413_v29 = vpack.c.bf16 %v1007_v63, %v1397_v7  ;;  %v7752_v63 = vperm.slane %v7170_v28, 5  ;;  %v599_v28 = vsel %vm592_vm7, %v7595_v6, %v7496_v13  ;;  %v714_v13 = vsel %vm477_vm6, %v7665_v61, %v7501_v34 }
 0x14e   :  { %885 = vrot.lane.b32.xlu0 %v7728_v46, %s6909_s12  ;;  %v1457_v62 = vand.u32 %v7537_v53, %v1413_v29  ;;  %578 = vrot.lane.b32.xlu1 %v7613_v48, %s6908_s1  ;;  %12488 = vst [vmem:[#allocation92_spill] sm:$0xff] %v7752_v63  ;;  %v12489_v29 = vld [vmem:[#allocation36_spill] sm:$0xff]  ;;  %v7762_v48 = vperm.slane %v7431_v10, 6 }
 0x14f   :  { %945 = vrot.lane.b32.xlu2 %v12485_v50, %s6908_s1  ;;  %v7921_v50 = vperm.slane %v7426_v1, 1 }
 0x150   :  { %v7737_v0 = vpop.permute.xlu0 %457  ;;  %1581 = vmatpush.bf16.msra.mxu2 %v1457_v62  ;;  %v7741_v7 = vpop.permute.xlu1 %560  ;;  %v242_v62 = vsel %vm229_vm2, %v12489_v29, %v7356_v59  ;;  %12490 = vst [vmem:[#allocation36_spill] sm:$0xff] %v7762_v48  ;;  %v7774_v59 = vperm.slane %v7426_v1, 6 }
 0x151   :  { %12486 = vst [vmem:[#allocation91_spill] sm:$0xff] %v7737_v0  ;;  %v7739_v24 = vpop.permute.xlu2 %447  ;;  %v7768_v19 = vmul.f32 %v7752_v63, %v242_v62  ;;  %v7790_v63 = vperm.slane %v7224_v60, 5  ;;  %v795_v60 = vsel %vm592_vm7, %v7639_v30, %v7533_v23 }
 0x152   :  { %12492 = vst [vmem:[#allocation94_spill] sm:$0xff] %v7774_v59 }
 0x153   :  { %12491 = vst [vmem:[#allocation93_spill] sm:$0xff] %v7768_v19 }
 0x154   :  { %12493 = vst [vmem:[#allocation95_spill] sm:$0xff] %v7790_v63 }
 0x155   :  { %12511 = vst [vmem:[#allocation100_spill] sm:$0xff] %v7921_v50 }
 0x156   :  { %965 = vrot.lane.b32.xlu0 %v7481_v44, %s6908_s1  ;;  %695 = vrot.lane.b32.xlu1 %v12487_v45, %s6909_s12  ;;  %v483_v45 = vsel %vm477_vm6, %v7737_v0, %v7629_v54  ;;  %v666_v54 = vmul.f32 %v7762_v48, %v599_v28  ;;  %v747_v28 = vmul.f32 %v714_v13, %v7774_v59  ;;  %v12498_v13 = vld [vmem:[#allocation14_spill] sm:$0xff] }
 0x157   :  { %785 = vrot.lane.b32.xlu2 %v7031_v22, %s6908_s1  ;;  %v550_v29 = vmul.f32 %v7774_v59, %v483_v45  ;;  %v1022_v22 = vrot.slane %v12494_v36, 7  ;;  %v358_v45 = vsel %vm344_vm3, %v7282_v26, %v12482_v31 }
 0x158   :  { %v7749_v57 = vpop.permute.xlu0 %867  ;;  %v7759_v14 = vpop.permute.xlu1 %429  ;;  %v1070_v34 = vrot.slane %v666_v54, 6  ;;  %v7803_v44 = vmul.f32 %v7790_v63, %v358_v45  ;;  %v1118_v31 = vrot.slane %v747_v28, 5  ;;  %v7829_v63 = vld [vmem:[#allocation5] sm:$0x3] }
 0x159   :  { %v7757_v41 = vpop.permute.xlu2 %779  ;;  %v1295_v9 = vsel %vm1288_vm8, %v550_v29, %v1022_v22  ;;  %v892_v36 = vsel %vm477_vm6, %v7749_v57, %v7593_v43  ;;  %v828_v43 = vmul.f32 %v795_v60, %v7762_v48  ;;  %6405 = vmatmul.msk.bf16.vlgmr.msrb.gmra.mxu2 %vm1429_vm14, %v7829_v63  ;;  %6404 = vmatmul.msk.bf16.vlgmr.msrb.gmra.mxu1 %vm1429_vm14, %v7829_v63 }
 0x15a   :  { %12496 = vst [vmem:[#allocation96_spill] sm:$0xff] %v7803_v44  ;;  %v1312_v26 = vsel %vm1305_vm9, %v1295_v9, %v1070_v34  ;;  %v925_v22 = vmul.f32 %v892_v36, %v7774_v59  ;;  %v12499_v36 = vld [vmem:[#allocation34_spill] sm:$0xff] }
 0x15b   :  { %v1329_v23 = vsel %vm1322_vm10, %v1312_v26, %v1118_v31  ;;  %v1182_v34 = vrot.slane %v828_v43, 3 }
 0x15c   :  { %v1345_v45 = vsel %vm66_vm0, %v1329_v23, %v12498_v13  ;;  %v1230_v28 = vrot.slane %v925_v22, 2  ;;  %v12501_v22 = vld [vmem:[#allocation39_spill] sm:$0xff] }
 0x15d   :  { %v1362_v60 = vsel %vm1355_vm11, %v1345_v45, %v1182_v34  ;;  %v1262_v43 = vrot.slane %v12501_v22, 1  ;;  %v7855_v34 = vld [vmem:[%s11964_s2 + $0x22] ss:$4 sm:$0xff] }
 0x15e   :  { %473 = vrot.lane.b32.xlu0 %v7768_v19, %s6909_s12  ;;  %953 = vrot.lane.b32.xlu1 %v7643_v15, %s6908_s1  ;;  %v1379_v26 = vsel %vm1372_vm12, %v1362_v60, %v1230_v28  ;;  %v7861_v60 = vld [vmem:[%s11964_s2 + $0x23] ss:$4 sm:$0xff]  ;;  %s6912_s2 = smov 48  }
 0x15f   :  { %963 = vrot.lane.b32.xlu2 %v7728_v46, %s6908_s1  ;;  %v1396_v28 = vsel %vm1389_vm13, %v1379_v26, %v1262_v43 }
 0x160   :  { %v7787_v62 = vpop.permute.xlu0 %467  ;;  %v7798_v15 = vpop.permute.xlu1 %679 }
 0x161   :  { %v7796_v46 = vpop.permute.xlu2 %879  ;;  %v488_v26 = vsel %vm477_vm6, %v7787_v62, %v7719_v47 }
 0x162   :  { %12495 = vst [vmem:[#allocation43_spill] sm:$0xff] %v7796_v46 }
 0x166   :  { %883 = vrot.lane.b32.xlu0 %v7803_v44, %s6909_s12  ;;  %703 = vrot.lane.b32.xlu1 %v7021_v20, %s6909_s12 }
 0x167   :  { %775 = vrot.lane.b32.xlu2 %v7009_v17, %s6908_s1  ;;  %v12506_v17 = vld [vmem:[#allocation46_spill] sm:$0xff] }
 0x168   :  { %v7819_v29 = vpop.permute.xlu0 %701  ;;  %v7823_v54 = vpop.permute.xlu1 %877 }
 0x169   :  { %12497 = vst [vmem:[#allocation97_spill] sm:$0xff] %v7819_v29  ;;  %v7825_v9 = vpop.permute.xlu2 %839  ;;  %v719_v43 = vsel %vm477_vm6, %v7692_v55, %v7819_v29  ;;  %v1027_v29 = vrot.slane %v12506_v17, 7  ;;  %6409 = vmatmul.msk.bf16.vlgmr.msra.gmra.mxu2 %vm1429_vm14, %v7829_v63 }
 0x16e   :  { %463 = vrot.lane.b32.xlu0 %v12499_v36, %s6909_s12  ;;  %961 = vrot.lane.b32.xlu1 %v7803_v44, %s6908_s1  ;;  %v7872_v44 = vperm.slane %v7861_v60, 3 }
 0x16f   :  { %586 = vrot.lane.b32.xlu2 %v7768_v19, %s6908_s1 }
 0x170   :  { %v7841_v31 = vpop.permute.xlu0 %947  ;;  %v7849_v13 = vpop.permute.xlu1 %759  ;;  %12505 = vst [vmem:[#allocation99_spill] sm:$0xff] %v7872_v44 }
 0x171   :  { %12500 = vst [vmem:[#allocation14_spill] sm:$0xff] %v7841_v31  ;;  %v973_v23 = vsel %vm592_vm7, %v7841_v31, %v7711_v42  ;;  %v7863_v59 = vpop.permute.xlu2 %959  ;;  %v7866_v42 = vperm.slane %v7855_v34, 3 }
 0x172   :  { %v1006_v45 = vmul.f32 %v973_v23, %v7762_v48  ;;  %12502 = vst [vmem:[#allocation39_spill] sm:$0xff] %v7863_v59  ;;  %v12504_v23 = vld [vmem:[#allocation42_spill] sm:$0xff] }
 0x173   :  { %12503 = vst [vmem:[#allocation98_spill] sm:$0xff] %v7866_v42  ;;  %v555_v20 = vmul.f32 %v7866_v42, %v488_v26  ;;  %v752_v47 = vmul.f32 %v719_v43, %v7866_v42 }
 0x174   :  { %v1412_v22 = vpack.c.bf16 %v1006_v45, %v1396_v28  ;;  %v604_v45 = vsel %vm592_vm7, %v7690_v3, %v7667_v16  ;;  %v897_v16 = vsel %vm477_vm6, %v7823_v54, %v7796_v46 }
 0x175   :  { %v671_v19 = vmul.f32 %v7872_v44, %v604_v45 }
 0x176   :  { %873 = vrot.lane.b32.xlu0 %v12504_v23, %s6909_s12  ;;  %v1454_v48 = vand.u32 %v7537_v53, %v1412_v22  ;;  %v1300_v23 = vsel %vm1288_vm8, %v555_v20, %v1027_v29  ;;  %v930_v20 = vmul.f32 %v897_v16, %v7866_v42  ;;  %v594_v16 = vsel %vm592_vm7, %v7721_v49, %v7415_v37  ;;  %v12513_v42 = vld [vmem:[#allocation17_spill] sm:$0xff] }
 0x177   :  { %783 = vrot.lane.b32.xlu2 %v12480_v25, %s6908_s1  ;;  %v1123_v25 = vrot.slane %v752_v47, 5  ;;  %v1075_v26 = vrot.slane %v671_v19, 6  ;;  %v12509_v19 = vld [vmem:[#allocation64_spill] sm:$0xff] }
 0x178   :  { %v7885_v28 = vpop.permute.xlu0 %676  ;;  %1568 = vmatpush.bf16.msra.mxu1 %v1454_v48  ;;  %v7887_v22 = vpop.permute.xlu1 %957  ;;  %v12507_v48 = vld [vmem:[#allocation52_spill] sm:$0xff]  ;;  %12510 = vst [vmem:[#allocation64_spill] sm:$0xff] %v7918_v21 }
 0x179   :  { %v7897_v36 = vpop.permute.xlu2 %937  ;;  %v1317_v17 = vsel %vm1305_vm9, %v1300_v23, %v1075_v26  ;;  %v7927_v23 = vperm.slane %v7426_v1, 0 }
 0x17a   :  { %v1334_v45 = vsel %vm1322_vm10, %v1317_v17, %v1123_v25  ;;  %v978_v25 = vsel %vm592_vm7, %v7887_v22, %v7863_v59  ;;  %v478_v17 = vsel %vm477_vm6, %v7739_v24, %v7560_v8  ;;  %v509_v59 = vsel %vm477_vm6, %v7759_v14, %v7739_v24 }
 0x17b   :  { %6408 = vmatmul.msk.bf16.vlgmr.msra.gmra.mxu1 %vm1429_vm14, %v7829_v63  ;;  %12512 = vst [vmem:[#allocation101_spill] sm:$0xff] %v7927_v23  ;;  %v1350_v37 = vsel %vm66_vm0, %v1334_v45, %v12513_v42  ;;  %v1011_v42 = vmul.f32 %v978_v25, %v7872_v44  ;;  %v661_v45 = vmul.f32 %v7918_v21, %v594_v16 }
 0x17c   :  { %v545_v24 = vmul.f32 %v7921_v50, %v478_v17  ;;  %v12515_v17 = vld [vmem:[#allocation35_spill] sm:$0xff] }
 0x17d   :  { %v1065_v2 = vrot.slane %v661_v45, 6 }
 0x17e   :  { %471 = vrot.lane.b32.xlu0 %v12507_v48, %s6909_s12  ;;  %v1267_v48 = vrot.slane %v12509_v19, 1  ;;  %v1235_v19 = vrot.slane %v930_v20, 2 }
 0x180   :  { %v7903_v43 = vpop.permute.xlu0 %781  ;;  %v7912_v29 = vpop.permute.xlu1 %935 }
 0x181   :  { %12508 = vst [vmem:[#allocation46_spill] sm:$0xff] %v7903_v43  ;;  %v800_v47 = vsel %vm592_vm7, %v7757_v41, %v7903_v43  ;;  %v7941_v43 = vperm.slane %v7431_v10, 0 }
 0x182   :  { %v833_v46 = vmul.f32 %v800_v47, %v7872_v44  ;;  %v709_v47 = vsel %vm477_vm6, %v7798_v15, %v7401_v51  ;;  %v593_v51 = vsel %vm592_vm7, %v7741_v7, %v7721_v49  ;;  %v790_v49 = vsel %vm592_vm7, %v7849_v13, %v7335_v32 }
 0x183   :  { %12514 = vst [vmem:[#allocation17_spill] sm:$0xff] %v7941_v43  ;;  %v742_v52 = vmul.f32 %v709_v47, %v7921_v50  ;;  %v660_v47 = vmul.f32 %v7941_v43, %v593_v51 }
 0x184   :  { %v1187_v26 = vrot.slane %v833_v46, 3  ;;  %v740_v46 = vsel %vm477_vm6, %v7885_v28, %v7798_v15  ;;  %v7960_v15 = vpop.permute.xlu2 %777 }
 0x185   :  { %v741_v25 = vmul.f32 %v740_v46, %v7927_v23  ;;  %v1113_v32 = vrot.slane %v742_v52, 5  ;;  %v823_v46 = vmul.f32 %v790_v49, %v7918_v21  ;;  %v1064_v51 = vrot.slane %v660_v47, 6  ;;  %v12517_v47 = vld [vmem:[#allocation12_spill] sm:$0xff] }
 0x186   :  { %v1367_v8 = vsel %vm1355_vm11, %v1350_v37, %v1187_v26  ;;  %881 = vrot.lane.b32.xlu0 %v7514_v40, %s6909_s12  ;;  %v544_v40 = vmul.f32 %v7927_v23, %v509_v59  ;;  %v968_v49 = vsel %vm592_vm7, %v7897_v36, %v7563_v27 }
 0x187   :  { %v1384_v20 = vsel %vm1372_vm12, %v1367_v8, %v1235_v19  ;;  %v1017_v8 = vrot.slane %v12515_v17, 7 }
 0x188   :  { %v7962_v26 = vpop.permute.xlu0 %757  ;;  %v1401_v37 = vsel %vm1389_vm13, %v1384_v20, %v1267_v48  ;;  %v7970_v19 = vpop.permute.xlu1 %697  ;;  %v12516_v48 = vld [vmem:[#allocation53_spill] sm:$0xff] }
 0x189   :  { %v1417_v16 = vpack.c.bf16 %v1011_v42, %v1401_v37  ;;  %v789_v44 = vsel %vm592_vm7, %v7962_v26, %v7849_v13  ;;  %v1016_v20 = vrot.slane %v12516_v48, 7  ;;  %v1290_v31 = vsel %vm1288_vm8, %v545_v24, %v1017_v8 }
 0x18a   :  { %v1112_v37 = vrot.slane %v741_v25, 5  ;;  %v822_v17 = vmul.f32 %v789_v44, %v7941_v43  ;;  %v1307_v11 = vsel %vm1305_vm9, %v1290_v31, %v1065_v2  ;;  %v967_v25 = vsel %vm592_vm7, %v7912_v29, %v7897_v36 }
 0x18b   :  { %v1469_v59 = vand.u32 %v7537_v53, %v1417_v16  ;;  %v1289_v42 = vsel %vm1288_vm8, %v544_v40, %v1016_v20  ;;  %v1324_v48 = vsel %vm1322_vm10, %v1307_v11, %v1113_v32  ;;  %v1177_v16 = vrot.slane %v823_v46, 3 }
 0x18c   :  { %v1306_v13 = vsel %vm1305_vm9, %v1289_v42, %v1064_v51  ;;  %v1176_v45 = vrot.slane %v822_v17, 3  ;;  %v7995_v2 = vpop.permute.xlu2 %475  ;;  %v1340_v20 = vsel %vm66_vm0, %v1324_v48, %v12517_v47  ;;  %v1256_v32 = vrot.slane %v7484_v4, 1 }
 0x18d   :  { %1633 = vmatpush.bf16.msrb.mxu2 %v1469_v59  ;;  %v1323_v52 = vsel %vm1322_vm10, %v1306_v13, %v1112_v37  ;;  %v1257_v59 = vrot.slane %v7219_v58, 1  ;;  %v1357_v27 = vsel %vm1355_vm11, %v1340_v20, %v1177_v16  ;;  %v1001_v42 = vmul.f32 %v968_v49, %v7918_v21 }
 0x18e   :  { %v1000_v36 = vmul.f32 %v967_v25, %v7941_v43  ;;  %v6911_v48 = vmov 0   ;;  %v8032_v49 = vperm.slane %v7855_v34, 2  ;;  %v718_v25 = vsel %vm477_vm6, %v7970_v19, %v7692_v55 }
 0x18f   :  { %6808 = vset.pattern.permute.xlu2 %v6911_v48  ;;  %6809 = vset.pattern.permute.xlu0 %v6911_v48  ;;  %v1026_v47 = vrot.slane %v7372_v35, 7 }
 0x190   :  { %v858_v0 = vpop.permute.xlu0 %857  ;;  %6413 = vmatmul.msk.bf16.vlgmr.msrb.gmra.mxu2 %vm1429_vm14, %v7829_v63  ;;  %v7993_v24 = vpop.permute.xlu1 %590  ;;  %12519 = vst [vmem:[#allocation53_spill] sm:$0xff] %v8032_v49 }
 0x191   :  { %v887_v40 = vsel %vm477_vm6, %v858_v0, %v7585_v39  ;;  %v918_v44 = vsel %vm477_vm6, %v7825_v9, %v858_v0  ;;  %v1339_v0 = vsel %vm66_vm0, %v1323_v52, %v6980_v12  ;;  %v1423_v52 = vld [vmem:[#allocation2 + $0xa0] sm:$0xf]  ;;  %v625_v48 = vsel %vm592_vm7, %v7993_v24, %v7741_v7 }
 0x192   :  { %v919_v11 = vmul.f32 %v918_v44, %v7927_v23  ;;  %v920_v31 = vmul.f32 %v887_v40, %v7921_v50  ;;  %v1356_v46 = vsel %vm1355_vm11, %v1339_v0, %v1176_v45  ;;  %1426 = vperm.xlu2 %6808, %v1423_v52  }
 0x194   :  { %v1224_v39 = vrot.slane %v919_v11, 2  ;;  %v1225_v8 = vrot.slane %v920_v31, 2  ;;  %v8022_v40 = vpop.permute.xlu2 %955  ;;  %v8029_v31 = vperm.slane %v7861_v60, 2 }
 0x196   :  { %v1373_v37 = vsel %vm1372_vm12, %v1356_v46, %v1224_v39  ;;  %v1374_v17 = vsel %vm1372_vm12, %v1357_v27, %v1225_v8  ;;  %12518 = vst [vmem:[#allocation35_spill] sm:$0xff] %v8029_v31 }
 0x197   :  { %v1390_v12 = vsel %vm1389_vm13, %v1373_v37, %v1256_v32  ;;  %v1391_v51 = vsel %vm1389_vm13, %v1374_v17, %v1257_v59  ;;  %v799_v59 = vsel %vm592_vm7, %v7960_v15, %v7757_v41  ;;  %v8065_v41 = vperm.slane %v7861_v60, 7 }
 0x198   :  { %v8019_v13 = vpop.permute.xlu0 %580  ;;  %v1406_v58 = vpack.c.bf16 %v1000_v36, %v1390_v12  ;;  %v1407_v4 = vpack.c.bf16 %v1001_v42, %v1391_v51  ;;  %v571_v16 = vpop.permute.xlu1 %570  ;;  %v832_v37 = vmul.f32 %v799_v59, %v8029_v31  ;;  %v8094_v59 = vperm.slane %v7431_v10, 4 }
 0x199   :  { %v603_v44 = vsel %vm592_vm7, %v8019_v13, %v7690_v3  ;;  %v751_v3 = vmul.f32 %v718_v25, %v8032_v49  ;;  %12520 = vst [vmem:[#allocation12_spill] sm:$0xff] %v8065_v41 }
 0x19a   :  { %v1436_v45 = vand.u32 %v7537_v53, %v1406_v58  ;;  %v1439_v11 = vand.u32 %v7537_v53, %v1407_v4  ;;  %v670_v39 = vmul.f32 %v8029_v31, %v603_v44  ;;  %v1186_v58 = vrot.slane %v832_v37, 3  ;;  %12522 = vst [vmem:[#allocation103_spill] sm:$0xff] %v8094_v59 }
 0x19b   :  { %v1122_v46 = vrot.slane %v751_v3, 5  ;;  %v977_v4 = vsel %vm592_vm7, %v8022_v40, %v7887_v22  ;;  %v675_v22 = vmul.f32 %v8065_v41, %v625_v48  ;;  %v598_v37 = vsel %vm592_vm7, %v571_v16, %v7595_v6 }
 0x19c   :  { %1490 = vmatpush.bf16.msra.mxu3 %v1436_v45  ;;  %1503 = vmatpush.bf16.msrb.mxu0 %v1439_v11  ;;  %v1074_v20 = vrot.slane %v670_v39, 6  ;;  %v8055_v36 = vpop.permute.xlu2 %787  ;;  %v8078_v45 = vperm.slane %v7855_v34, 7  ;;  %v1010_v11 = vmul.f32 %v977_v4, %v8029_v31  ;;  %v1021_v4 = vrot.slane %v7324_v56, 7  ;;  %v12529_v56 = vld [vmem:[#allocation70_spill] sm:$0xff] }
 0x19e   :  { %12521 = vst [vmem:[#allocation102_spill] sm:$0xff] %v8078_v45 }
 0x19f   :  { %6402 = vmatmul.msk.bf16.vlgmr.msra.gmra.mxu3 %vm1429_vm14, %v7829_v63  ;;  %6403 = vmatmul.msk.bf16.vlgmr.msrb.gmra.mxu0 %vm1429_vm14, %v7829_v63 }
 0x1a0   :  { %v8038_v8 = vpop.permute.xlu0 %465  ;;  %v688_v42 = vpop.permute.xlu1 %687 }
 0x1a1   :  { %v487_v0 = vsel %vm477_vm6, %v8038_v8, %v7787_v62 }
 0x1a2   :  { %v554_v55 = vmul.f32 %v8032_v49, %v487_v0 }
 0x1a4   :  { %v1299_v32 = vsel %vm1288_vm8, %v554_v55, %v1026_v47  ;;  %v866_v3 = vpop.permute.xlu2 %865  ;;  %v1079_v55 = vrot.slane %v675_v22, 6 }
 0x1a5   :  { %v1316_v27 = vsel %vm1305_vm9, %v1299_v32, %v1074_v20  ;;  %v8097_v32 = vperm.slane %v7431_v10, 5  ;;  %v713_v10 = vsel %vm477_vm6, %v688_v42, %v7665_v61 }
 0x1a6   :  { %v1333_v62 = vsel %vm1322_vm10, %v1316_v27, %v1122_v46  ;;  %v12524_v46 = vld [vmem:[#allocation60_spill] sm:$0xff] }
 0x1a7   :  { %v1349_v51 = vsel %vm66_vm0, %v1333_v62, %v7017_v18  ;;  %v492_v18 = vsel %vm477_vm6, %v7995_v2, %v7759_v14  ;;  %v1031_v14 = vrot.slane %v7349_v33, 7  ;;  %12523 = vst [vmem:[#allocation104_spill] sm:$0xff] %v8097_v32  ;;  %v597_v27 = vsel %vm592_vm7, %v12524_v46, %v571_v16 }
 0x1a8   :  { %v8059_v35 = vpop.permute.xlu0 %875  ;;  %v1366_v44 = vsel %vm1355_vm11, %v1349_v51, %v1186_v58  ;;  %v768_v39 = vpop.permute.xlu1 %767  ;;  %v559_v47 = vmul.f32 %v8078_v45, %v492_v18  ;;  %v8104_v62 = vperm.slane %v7426_v1, 4  ;;  %v1020_v58 = vrot.slane %v12478_v5, 7 }
 0x1a9   :  { %v896_v17 = vsel %vm477_vm6, %v8059_v35, %v7823_v54  ;;  %v1266_v54 = vrot.slane %v7391_v38, 1  ;;  %v664_v16 = vmul.f32 %v8094_v59, %v597_v27  ;;  %v665_v48 = vmul.f32 %v8097_v32, %v598_v37 }
 0x1aa   :  { %v929_v12 = vmul.f32 %v896_v17, %v8032_v49  ;;  %12525 = vst [vmem:[#allocation60_spill] sm:$0xff] %v8104_v62  ;;  %v8107_v17 = vperm.slane %v7426_v1, 5  ;;  %v1304_v33 = vsel %vm1288_vm8, %v559_v47, %v1031_v14  ;;  %v794_v61 = vsel %vm592_vm7, %v768_v39, %v7639_v30 }
 0x1ab   :  { %v1321_v6 = vsel %vm1305_vm9, %v1304_v33, %v1079_v55  ;;  %v890_v5 = vsel %vm477_vm6, %v12529_v56, %v866_v3  ;;  %v827_v47 = vmul.f32 %v794_v61, %v8097_v32  ;;  %v1069_v14 = vrot.slane %v665_v48, 6 }
 0x1ac   :  { %v1234_v52 = vrot.slane %v929_v12, 2  ;;  %12526 = vst [vmem:[#allocation105_spill] sm:$0xff] %v8107_v17  ;;  %v12527_v12 = vld [vmem:[#allocation47_spill] sm:$0xff]  ;;  %v923_v46 = vmul.f32 %v890_v5, %v8104_v62 }
 0x1ad   :  { %v712_v51 = vsel %vm477_vm6, %v12527_v12, %v688_v42  ;;  %v891_v42 = vsel %vm477_vm6, %v866_v3, %v7749_v57  ;;  %v946_v57 = vpop.permute.xlu2 %945 }
 0x1ae   :  { %v1383_v25 = vsel %vm1372_vm12, %v1366_v44, %v1234_v52  ;;  %v12528_v52 = vld [vmem:[#allocation51_spill] sm:$0xff]  ;;  %v746_v44 = vmul.f32 %v713_v10, %v8107_v17  ;;  %v924_v27 = vmul.f32 %v891_v42, %v8107_v17  ;;  %v1228_v5 = vrot.slane %v923_v46, 2  ;;  %v12537_v46 = vld [vmem:[#allocation56_spill] sm:$0xff] }
 0x1af   :  { %v1400_v7 = vsel %vm1389_vm13, %v1383_v25, %v1266_v54  ;;  %v793_v54 = vsel %vm592_vm7, %v12528_v52, %v768_v39  ;;  %v12530_v25 = vld [vmem:[#allocation65_spill] sm:$0xff] }
 0x1b0   :  { %v8088_v38 = vpop.permute.xlu0 %707  ;;  %v1416_v0 = vpack.c.bf16 %v1010_v11, %v1400_v7  ;;  %v821_v11 = vsel %vm592_vm7, %v8055_v36, %v7962_v26  ;;  %v8138_v22 = vpop.permute.xlu1 %588  ;;  %v12531_v7 = vld [vmem:[#allocation91_spill] sm:$0xff]  ;;  %v826_v3 = vmul.f32 %v793_v54, %v8094_v59  ;;  %v1068_v26 = vrot.slane %v664_v16, 6 }
 0x1b1   :  { %v723_v1 = vsel %vm477_vm6, %v8088_v38, %v7885_v28  ;;  %v745_v28 = vmul.f32 %v712_v51, %v8104_v62  ;;  %v1117_v33 = vrot.slane %v746_v44, 5  ;;  %v837_v10 = vmul.f32 %v821_v11, %v8065_v41  ;;  %v12533_v44 = vld [vmem:[#allocation11_spill] sm:$0xff] }
 0x1b2   :  { %v1466_v20 = vand.u32 %v7537_v53, %v1416_v0  ;;  %v756_v30 = vmul.f32 %v723_v1, %v8078_v45  ;;  %v1180_v61 = vrot.slane %v826_v3, 3  ;;  %v1181_v16 = vrot.slane %v827_v47, 3 }
 0x1b3   :  { %v1116_v37 = vrot.slane %v745_v28, 5  ;;  %v1229_v42 = vrot.slane %v924_v27, 2  ;;  %v12532_v28 = vld [vmem:[#allocation13_spill] sm:$0xff]  ;;  %v1261_v27 = vrot.slane %v12537_v46, 1 }
 0x1b4   :  { %1620 = vmatpush.bf16.msrb.mxu1 %v1466_v20  ;;  %v1127_v1 = vrot.slane %v756_v30, 5  ;;  %v12535_v30 = vld [vmem:[#allocation14_spill] sm:$0xff]  ;;  %v12542_v46 = vld [vmem:[#allocation81_spill] sm:$0xff] }
 0x1b6   :  { %v1338_v3 = vsel %vm1322_vm10, %v1321_v6, %v1127_v1  ;;  %v12538_v6 = vld [vmem:[#allocation19_spill] sm:$0xff] }
 0x1b7   :  { %6412 = vmatmul.msk.bf16.vlgmr.msrb.gmra.mxu1 %vm1429_vm14, %v7829_v63 }
 0x1b8   :  { %v456_v18 = vpop.permute.xlu0 %455 }
 0x1b9   :  { %v481_v39 = vsel %vm477_vm6, %v12530_v25, %v456_v18  ;;  %v482_v0 = vsel %vm477_vm6, %v456_v18, %v12531_v7  ;;  %v12534_v18 = vld [vmem:[#allocation73_spill] sm:$0xff]  ;;  %v972_v25 = vsel %vm592_vm7, %v946_v57, %v12535_v30 }
 0x1ba   :  { %v548_v55 = vmul.f32 %v8104_v62, %v481_v39  ;;  %v549_v20 = vmul.f32 %v8107_v17, %v482_v0  ;;  %v971_v11 = vsel %vm592_vm7, %v12534_v18, %v946_v57  ;;  %v12621_v62 = vld [vmem:[#allocation37_spill] sm:$0xff] }
 0x1bc   :  { %v1293_v12 = vsel %vm1288_vm8, %v548_v55, %v1020_v58  ;;  %v1294_v51 = vsel %vm1288_vm8, %v549_v20, %v1021_v4 }
 0x1bd   :  { %v1310_v52 = vsel %vm1305_vm9, %v1293_v12, %v1068_v26  ;;  %v1311_v54 = vsel %vm1305_vm9, %v1294_v51, %v1069_v14  ;;  %v12536_v26 = vld [vmem:[#allocation31_spill] sm:$0xff]  ;;  %v8177_v12 = vpop.permute.xlu1 %705  ;;  %v1354_v51 = vsel %vm66_vm0, %v1338_v3, %v12538_v6 }
 0x1be   :  { %v1328_v48 = vsel %vm1322_vm10, %v1311_v54, %v1117_v33  ;;  %v1327_v56 = vsel %vm1322_vm10, %v1310_v52, %v1116_v37  ;;  %v1260_v14 = vrot.slane %v12536_v26, 1  ;;  %v1004_v37 = vmul.f32 %v971_v11, %v8094_v59 }
 0x1bf   :  { %v1344_v58 = vsel %vm66_vm0, %v1328_v48, %v12532_v28  ;;  %v1343_v4 = vsel %vm66_vm0, %v1327_v56, %v12533_v44  ;;  %v1005_v33 = vmul.f32 %v972_v25, %v8097_v32  ;;  %v12539_v44 = vld [vmem:[#allocation69_spill] sm:$0xff]  ;;  %v8194_v11 = vperm.slane %v7861_v60, 6 }
 0x1c0   :  { %v886_v39 = vpop.permute.xlu0 %885  ;;  %v1360_v7 = vsel %vm1355_vm11, %v1343_v4, %v1180_v61  ;;  %v1361_v0 = vsel %vm1355_vm11, %v1344_v58, %v1181_v16  ;;  %v1191_v61 = vrot.slane %v837_v10, 3  ;;  %v1271_v4 = vrot.slane %v12539_v44, 1 }
 0x1c1   :  { %v901_v47 = vsel %vm477_vm6, %v886_v39, %v7825_v9  ;;  %v1377_v55 = vsel %vm1372_vm12, %v1360_v7, %v1228_v5  ;;  %v1378_v20 = vsel %vm1372_vm12, %v1361_v0, %v1229_v42  ;;  %v8181_v9 = vpop.permute.xlu2 %785  ;;  %12540 = vst [vmem:[#allocation47_spill] sm:$0xff] %v8194_v11  ;;  %v607_v25 = vsel %vm592_vm7, %v8138_v22, %v7993_v24 }
 0x1c2   :  { %v934_v57 = vmul.f32 %v901_v47, %v8078_v45  ;;  %v1394_v52 = vsel %vm1389_vm13, %v1377_v55, %v1260_v14  ;;  %v1395_v54 = vsel %vm1389_vm13, %v1378_v20, %v1261_v27  ;;  %v1371_v56 = vsel %vm1355_vm11, %v1354_v51, %v1191_v61 }
 0x1c3   :  { %v1410_v16 = vpack.c.bf16 %v1004_v37, %v1394_v52  ;;  %v1411_v48 = vpack.c.bf16 %v1005_v33, %v1395_v54  ;;  %v8203_v0 = vperm.slane %v7855_v34, 6  ;;  %v722_v47 = vsel %vm477_vm6, %v8177_v12, %v8088_v38 }
 0x1c4   :  { %v1239_v1 = vrot.slane %v934_v57, 2  ;;  %v674_v24 = vmul.f32 %v8194_v11, %v607_v25  ;;  %v1030_v27 = vrot.slane %v12542_v46, 7  ;;  %v803_v38 = vsel %vm592_vm7, %v8181_v9, %v8055_v36 }
 0x1c5   :  { %v1448_v5 = vand.u32 %v7537_v53, %v1410_v16  ;;  %v1451_v28 = vand.u32 %v7537_v53, %v1411_v48  ;;  %12541 = vst [vmem:[#allocation51_spill] sm:$0xff] %v8203_v0  ;;  %v755_v26 = vmul.f32 %v722_v47, %v8203_v0  ;;  %v8255_v47 = vperm.slane %v7855_v34, 1 }
 0x1c6   :  { %v1388_v42 = vsel %vm1372_vm12, %v1371_v56, %v1239_v1  ;;  %v1078_v37 = vrot.slane %v674_v24, 6  ;;  %v836_v1 = vmul.f32 %v803_v38, %v8194_v11  ;;  %v12543_v56 = vld [vmem:[#allocation20_spill] sm:$0xff] }
 0x1c7   :  { %1542 = vmatpush.bf16.msrb.mxu3 %v1448_v5  ;;  %1555 = vmatpush.bf16.msra.mxu0 %v1451_v28  ;;  %v1405_v30 = vsel %vm1389_vm13, %v1388_v42, %v1271_v4  ;;  %v1126_v6 = vrot.slane %v755_v26, 5  ;;  %v8239_v42 = vperm.slane %v7861_v60, 0  ;;  %v8242_v28 = vperm.slane %v7861_v60, 1  ;;  %v12546_v4 = vld [vmem:[#allocation67_spill] sm:$0xff]  ;;  %12549 = vst [vmem:[#allocation13_spill] sm:$0xff] %v8255_v47 }
 0x1c8   :  { %v966_v58 = vpop.permute.xlu0 %965  ;;  %v1190_v5 = vrot.slane %v836_v1, 3 }
 0x1c9   :  { %v999_v18 = vsel %vm592_vm7, %v966_v58, %v7912_v29  ;;  %v579_v29 = vpop.permute.xlu1 %578  ;;  %v8207_v3 = vpop.permute.xlu2 %963  ;;  %12544 = vst [vmem:[#allocation70_spill] sm:$0xff] %v8239_v42 }
 0x1ca   :  { %v1015_v10 = vmul.f32 %v999_v18, %v8065_v41  ;;  %6406 = vmatmul.msk.bf16.vlgmr.msrb.gmra.mxu3 %vm1429_vm14, %v7829_v63  ;;  %6407 = vmatmul.msk.bf16.vlgmr.msra.gmra.mxu0 %vm1429_vm14, %v7829_v63  ;;  %12545 = vst [vmem:[#allocation65_spill] sm:$0xff] %v8242_v28  ;;  %v981_v44 = vsel %vm592_vm7, %v8207_v3, %v966_v58  ;;  %v12550_v58 = vld [vmem:[#allocation87_spill] sm:$0xff] }
 0x1cb   :  { %v601_v18 = vsel %vm592_vm7, %v12546_v4, %v579_v29  ;;  %v1014_v24 = vmul.f32 %v981_v44, %v8194_v11  ;;  %v12610_v11 = vld [vmem:[#allocation41_spill] sm:$0xff] }
 0x1cc   :  { %v1421_v7 = vpack.c.bf16 %v1015_v10, %v1405_v30  ;;  %v12547_v30 = vld [vmem:[#allocation90_spill] sm:$0xff] }
 0x1cd   :  { %v1270_v25 = vrot.slane %v12547_v30, 1 }
 0x1ce   :  { %v1481_v55 = vand.u32 %v7537_v53, %v1421_v7  ;;  %v8252_v7 = vperm.slane %v7855_v34, 0 }
 0x1d0   :  { %v8214_v20 = vpop.permute.xlu0 %473  ;;  %1685 = vmatpush.bf16.msra.mxu2 %v1481_v55  ;;  %12548 = vst [vmem:[#allocation91_spill] sm:$0xff] %v8252_v7 }
 0x1d1   :  { %v491_v14 = vsel %vm477_vm6, %v8214_v20, %v7995_v2  ;;  %v696_v2 = vpop.permute.xlu1 %695  ;;  %v776_v54 = vpop.permute.xlu2 %775 }
 0x1d2   :  { %v558_v57 = vmul.f32 %v8203_v0, %v491_v14  ;;  %v716_v26 = vsel %vm477_vm6, %v12550_v58, %v696_v2  ;;  %v717_v14 = vsel %vm477_vm6, %v696_v2, %v7970_v19  ;;  %v12552_v2 = vld [vmem:[#allocation34_spill] sm:$0xff]  ;;  %v798_v30 = vsel %vm592_vm7, %v776_v54, %v7960_v15 }
 0x1d3   :  { %6417 = vmatmul.msk.bf16.vlgmr.msra.gmra.mxu2 %vm1429_vm14, %v7829_v63  ;;  %v749_v38 = vmul.f32 %v716_v26, %v8252_v7  ;;  %v12555_v15 = vld [vmem:[#allocation42_spill] sm:$0xff] }
 0x1d4   :  { %v1303_v33 = vsel %vm1288_vm8, %v558_v57, %v1030_v27 }
 0x1d5   :  { %v1320_v51 = vsel %vm1305_vm9, %v1303_v33, %v1078_v37  ;;  %v750_v33 = vmul.f32 %v717_v14, %v8255_v47 }
 0x1d6   :  { %v1337_v52 = vsel %vm1322_vm10, %v1320_v51, %v1126_v6  ;;  %v12551_v51 = vld [vmem:[#allocation74_spill] sm:$0xff] }
 0x1d7   :  { %v1353_v36 = vsel %vm66_vm0, %v1337_v52, %v12543_v56  ;;  %v1024_v52 = vrot.slane %v12552_v2, 7  ;;  %v12560_v2 = vld [vmem:[#allocation77_spill] sm:$0xff] }
 0x1d8   :  { %v8231_v61 = vpop.permute.xlu0 %883  ;;  %v1370_v55 = vsel %vm1355_vm11, %v1353_v36, %v1190_v5 }
 0x1d9   :  { %v900_v16 = vsel %vm477_vm6, %v8231_v61, %v886_v39  ;;  %v602_v39 = vsel %vm592_vm7, %v579_v29, %v8019_v13  ;;  %v668_v29 = vmul.f32 %v8239_v42, %v601_v18  ;;  %v954_v6 = vpop.permute.xlu1 %953  ;;  %v587_v56 = vpop.permute.xlu2 %586 }
 0x1da   :  { %v933_v48 = vmul.f32 %v900_v16, %v8203_v0  ;;  %v669_v46 = vmul.f32 %v8242_v28, %v602_v39  ;;  %v12553_v16 = vld [vmem:[#allocation80_spill] sm:$0xff]  ;;  %v12554_v39 = vld [vmem:[#allocation89_spill] sm:$0xff] }
 0x1db   :  { %v1072_v44 = vrot.slane %v668_v29, 6 }
 0x1dc   :  { %v1238_v10 = vrot.slane %v933_v48, 2  ;;  %v1025_v48 = vrot.slane %v12553_v16, 7  ;;  %v1073_v4 = vrot.slane %v669_v46, 6 }
 0x1de   :  { %v1387_v13 = vsel %vm1372_vm12, %v1370_v55, %v1238_v10  ;;  %v797_v10 = vsel %vm592_vm7, %v12554_v39, %v776_v54  ;;  %v1120_v55 = vrot.slane %v749_v38, 5  ;;  %v1264_v54 = vrot.slane %v12555_v15, 1 }
 0x1df   :  { %v1404_v27 = vsel %vm1389_vm13, %v1387_v13, %v1270_v25  ;;  %v830_v14 = vmul.f32 %v797_v10, %v8239_v42  ;;  %v831_v13 = vmul.f32 %v798_v30, %v8242_v28  ;;  %v8296_v38 = vperm.slane %v7861_v60, 5 }
 0x1e0   :  { %v464_v57 = vpop.permute.xlu0 %463  ;;  %v1420_v37 = vpack.c.bf16 %v1014_v24, %v1404_v27  ;;  %v1121_v24 = vrot.slane %v750_v33, 5  ;;  %v12556_v27 = vld [vmem:[#allocation84_spill] sm:$0xff] }
 0x1e1   :  { %v485_v1 = vsel %vm477_vm6, %v12551_v51, %v464_v57  ;;  %v486_v19 = vsel %vm477_vm6, %v464_v57, %v8038_v8  ;;  %v1265_v57 = vrot.slane %v12556_v27, 1  ;;  %12558 = vst [vmem:[#allocation73_spill] sm:$0xff] %v8296_v38  ;;  %v12559_v51 = vld [vmem:[#allocation83_spill] sm:$0xff]  ;;  %v1185_v39 = vrot.slane %v831_v13, 3  ;;  %v704_v10 = vpop.permute.xlu1 %703 }
 0x1e2   :  { %v552_v36 = vmul.f32 %v8252_v7, %v485_v1  ;;  %v553_v5 = vmul.f32 %v8255_v47, %v486_v19  ;;  %v1478_v18 = vand.u32 %v7537_v53, %v1420_v37  ;;  %v8293_v37 = vperm.slane %v7861_v60, 4 }
 0x1e3   :  { %v975_v1 = vsel %vm592_vm7, %v12559_v51, %v954_v6  ;;  %v976_v19 = vsel %vm592_vm7, %v954_v6, %v8022_v40  ;;  %v8315_v40 = vperm.slane %v7855_v34, 4  ;;  %v8318_v6 = vperm.slane %v7855_v34, 5  ;;  %v12566_v34 = vld [vmem:[#allocation97_spill] sm:$0xff] }
 0x1e4   :  { %v1297_v8 = vsel %vm1288_vm8, %v552_v36, %v1024_v52  ;;  %v1298_v25 = vsel %vm1288_vm8, %v553_v5, %v1025_v48  ;;  %1672 = vmatpush.bf16.msra.mxu1 %v1478_v18  ;;  %12557 = vst [vmem:[#allocation11_spill] sm:$0xff] %v8293_v37  ;;  %v12561_v36 = vld [vmem:[#allocation15_spill] sm:$0xff]  ;;  %v1184_v18 = vrot.slane %v830_v14, 3 }
 0x1e5   :  { %v1314_v58 = vsel %vm1305_vm9, %v1297_v8, %v1072_v44  ;;  %v1315_v26 = vsel %vm1305_vm9, %v1298_v25, %v1073_v4  ;;  %v12562_v44 = vld [vmem:[#allocation16_spill] sm:$0xff]  ;;  %12563 = vst [vmem:[#allocation14_spill] sm:$0xff] %v8315_v40  ;;  %v606_v8 = vsel %vm592_vm7, %v587_v56, %v8138_v22  ;;  %v784_v25 = vpop.permute.xlu2 %783 }
 0x1e6   :  { %v1331_v29 = vsel %vm1322_vm10, %v1314_v58, %v1120_v55  ;;  %v1332_v46 = vsel %vm1322_vm10, %v1315_v26, %v1121_v24  ;;  %12564 = vst [vmem:[#allocation31_spill] sm:$0xff] %v8318_v6  ;;  %v1008_v58 = vmul.f32 %v975_v1, %v8239_v42  ;;  %v1009_v26 = vmul.f32 %v976_v19, %v8242_v28  ;;  %v12567_v1 = vld [vmem:[#allocation52_spill] sm:$0xff] }
 0x1e7   :  { %6416 = vmatmul.msk.bf16.vlgmr.msra.gmra.mxu1 %vm1429_vm14, %v7829_v63  ;;  %v1347_v5 = vsel %vm66_vm0, %v1331_v29, %v12561_v36  ;;  %v1348_v4 = vsel %vm66_vm0, %v1332_v46, %v12562_v44  ;;  %v720_v29 = vsel %vm477_vm6, %v12566_v34, %v704_v10  ;;  %v721_v46 = vsel %vm477_vm6, %v704_v10, %v8177_v12 }
 0x1e8   :  { %v874_v33 = vpop.permute.xlu0 %873  ;;  %v1364_v14 = vsel %vm1355_vm11, %v1347_v5, %v1184_v18  ;;  %v1365_v13 = vsel %vm1355_vm11, %v1348_v4, %v1185_v39  ;;  %v673_v27 = vmul.f32 %v8296_v38, %v606_v8  ;;  %v1028_v19 = vrot.slane %v12567_v1, 7  ;;  %v12569_v5 = vld [vmem:[#allocation58_spill] sm:$0xff]  ;;  %v12573_v1 = vld [vmem:[#allocation43_spill] sm:$0xff] }
 0x1e9   :  { %v894_v52 = vsel %vm477_vm6, %v12560_v2, %v874_v33  ;;  %v895_v16 = vsel %vm477_vm6, %v874_v33, %v8059_v35  ;;  %v12565_v35 = vld [vmem:[#allocation88_spill] sm:$0xff]  ;;  %v12568_v2 = vld [vmem:[#allocation93_spill] sm:$0xff]  ;;  %v753_v12 = vmul.f32 %v720_v29, %v8315_v40  ;;  %v754_v36 = vmul.f32 %v721_v46, %v8318_v6  ;;  %v1518_v46 = vpop.f32.mrf.mxu1 }
 0x1ea   :  { %v927_v48 = vmul.f32 %v894_v52, %v8252_v7  ;;  %v928_v60 = vmul.f32 %v895_v16, %v8255_v47  ;;  %v605_v30 = vsel %vm592_vm7, %v12565_v35, %v587_v56  ;;  %v1029_v52 = vrot.slane %v12568_v2, 7 }
 0x1eb   :  { %v672_v56 = vmul.f32 %v8293_v37, %v605_v30  ;;  %v1077_v35 = vrot.slane %v673_v27, 6  ;;  %v12570_v30 = vld [vmem:[#allocation46_spill] sm:$0xff]  ;;  %v962_v27 = vpop.permute.xlu1 %961 }
 0x1ec   :  { %v1232_v55 = vrot.slane %v927_v48, 2  ;;  %v1233_v24 = vrot.slane %v928_v60, 2  ;;  %v801_v8 = vsel %vm592_vm7, %v12570_v30, %v784_v25 }
 0x1ed   :  { %v1076_v10 = vrot.slane %v672_v56, 6 }
 0x1ee   :  { %v1381_v15 = vsel %vm1372_vm12, %v1364_v14, %v1232_v55  ;;  %v1382_v22 = vsel %vm1372_vm12, %v1365_v13, %v1233_v24  ;;  %v802_v55 = vsel %vm592_vm7, %v784_v25, %v8181_v9  ;;  %v1124_v14 = vrot.slane %v753_v12, 5  ;;  %v12575_v12 = vld [vmem:[#allocation21_spill] sm:$0xff] }
 0x1ef   :  { %v1398_v33 = vsel %vm1389_vm13, %v1381_v15, %v1264_v54  ;;  %v1399_v51 = vsel %vm1389_vm13, %v1382_v22, %v1265_v57  ;;  %v1125_v13 = vrot.slane %v754_v36, 5  ;;  %v834_v15 = vmul.f32 %v801_v8, %v8293_v37 }
 0x1f0   :  { %v472_v16 = vpop.permute.xlu0 %471  ;;  %v1414_v48 = vpack.c.bf16 %v1008_v58, %v1398_v33  ;;  %v1415_v60 = vpack.c.bf16 %v1009_v26, %v1399_v51  ;;  %v8356_v58 = vpop.permute.xlu2 %1426  ;;  %v835_v25 = vmul.f32 %v802_v55, %v8296_v38 }
 0x1f1   :  { %v489_v44 = vsel %vm477_vm6, %v12569_v5, %v472_v16  ;;  %v490_v4 = vsel %vm477_vm6, %v472_v16, %v8214_v20  ;;  %v8358_v26 = vpop.f32.mrf.mxu2  ;;  %v1519_v9 = vadd.f32 %v1518_v46, %v8356_v58  ;;  %v1188_v5 = vrot.slane %v834_v15, 3 }
 0x1f2   :  { %v556_v54 = vmul.f32 %v8315_v40, %v489_v44  ;;  %v557_v57 = vmul.f32 %v8318_v6, %v490_v4  ;;  %v1460_v18 = vand.u32 %v7537_v53, %v1414_v48  ;;  %v1463_v39 = vand.u32 %v7537_v53, %v1415_v60  ;;  %12571 = vst [vmem:[#allocation56_spill] sm:$0xff] %v8358_v26  ;;  %v12574_v48 = vld [vmem:[#allocation18_spill] sm:$0xff]  ;;  %v12576_v4 = vld [vmem:[#allocation39_spill] sm:$0xff] }
 0x1f3   :  { %v8371_v51 = vmax.f32 %v1519_v9, 0.0  ;;  %v1189_v44 = vrot.slane %v835_v25, 3 }
 0x1f4   :  { %v1301_v24 = vsel %vm1288_vm8, %v556_v54, %v1028_v19  ;;  %v1302_v20 = vsel %vm1288_vm8, %v557_v57, %v1029_v52  ;;  %1594 = vmatpush.bf16.msra.mxu3 %v1460_v18  ;;  %1607 = vmatpush.bf16.msrb.mxu0 %v1463_v39  ;;  %v979_v54 = vsel %vm592_vm7, %v12576_v4, %v962_v27  ;;  %v12577_v39 = vld [vmem:[#allocation72_spill] sm:$0xff] }
 0x1f5   :  { %v1318_v34 = vsel %vm1305_vm9, %v1301_v24, %v1076_v10  ;;  %v1319_v29 = vsel %vm1305_vm9, %v1302_v20, %v1077_v35  ;;  %12572 = vst [vmem:[#allocation19_spill] sm:$0xff] %v8371_v51  ;;  %1808 = vrot.lane.b32.xlu2 %v8371_v51, %s6907_s8  ;;  %v1268_v10 = vrot.slane %v12577_v39, 1  ;;  %v12578_v35 = vld [vmem:[#allocation96_spill] sm:$0xff]  ;;  %v1520_v20 = vpop.f32.mrf.mxu1 }
 0x1f6   :  { %v1335_v22 = vsel %vm1322_vm10, %v1318_v34, %v1124_v14  ;;  %v1336_v56 = vsel %vm1322_vm10, %v1319_v29, %v1125_v13  ;;  %v1269_v30 = vrot.slane %v12578_v35, 1  ;;  %v1012_v14 = vmul.f32 %v979_v54, %v8293_v37 }
 0x1f7   :  { %6410 = vmatmul.msk.bf16.vlgmr.msra.gmra.mxu3 %vm1429_vm14, %v7829_v63  ;;  %6411 = vmatmul.msk.bf16.vlgmr.msrb.gmra.mxu0 %vm1429_vm14, %v7829_v63  ;;  %v1351_v60 = vsel %vm66_vm0, %v1335_v22, %v12574_v48  ;;  %v1352_v36 = vsel %vm66_vm0, %v1336_v56, %v12575_v12 }
 0x1f8   :  { %v882_v33 = vpop.permute.xlu0 %881  ;;  %v1368_v8 = vsel %vm1355_vm11, %v1351_v60, %v1188_v5  ;;  %v1369_v55 = vsel %vm1355_vm11, %v1352_v36, %v1189_v44 }
 0x1f9   :  { %v898_v19 = vsel %vm477_vm6, %v12573_v1, %v882_v33  ;;  %v899_v2 = vsel %vm477_vm6, %v882_v33, %v8231_v61  ;;  %v980_v61 = vsel %vm592_vm7, %v962_v27, %v8207_v3  ;;  %v1531_v24 = vpop.f32.mrf.mxu2 }
 0x1fa   :  { %v931_v52 = vmul.f32 %v898_v19, %v8315_v40  ;;  %v932_v16 = vmul.f32 %v899_v2, %v8318_v6  ;;  %v1013_v13 = vmul.f32 %v980_v61, %v8296_v38  ;;  %v12608_v6 = vld [vmem:[#allocation55_spill] sm:$0xff] }
 0x1fc   :  { %v1236_v57 = vrot.slane %v931_v52, 2  ;;  %v1237_v18 = vrot.slane %v932_v16, 2 }
 0x1fd   :  { %1730 = vrot.lane.b32.xlu2 %v8371_v51, %s6906_s4  ;;  %v1570_v27 = vpop.f32.mrf.mxu1 }
 0x1fe   :  { %v1385_v34 = vsel %vm1372_vm12, %v1368_v8, %v1236_v57  ;;  %v1386_v3 = vsel %vm1372_vm12, %v1369_v55, %v1237_v18  ;;  %v1571_v44 = vadd.f32 %v1570_v27, %v8356_v58  ;;  %v1532_v55 = vadd.f32 %v1531_v24, %v8356_v58 }
 0x1ff   :  { %v1402_v29 = vsel %vm1389_vm13, %v1385_v34, %v1268_v10  ;;  %v1403_v46 = vsel %vm1389_vm13, %v1386_v3, %v1269_v30 }
 0x200   :  { %v1418_v15 = vpack.c.bf16 %v1012_v14, %v1402_v29  ;;  %v1419_v9 = vpack.c.bf16 %v1013_v13, %v1403_v46  ;;  %v8434_v54 = vmax.f32 %v1571_v44, 0.0  ;;  %v8457_v13 = vmax.f32 %v1532_v55, 0.0 }
 0x201   :  { %v1533_v56 = vpop.f32.mrf.mxu2 }
 0x202   :  { %v1472_v25 = vand.u32 %v7537_v53, %v1418_v15  ;;  %v1475_v22 = vand.u32 %v7537_v53, %v1419_v9  ;;  %12581 = vst [vmem:[#allocation20_spill] sm:$0xff] %v8434_v54 }
 0x203   :  { %12584 = vst [vmem:[#allocation87_spill] sm:$0xff] %v8457_v13 }
 0x204   :  { %1646 = vmatpush.bf16.msrb.mxu3 %v1472_v25  ;;  %1659 = vmatpush.bf16.msra.mxu0 %v1475_v22 }
 0x205   :  { %v1572_v1 = vpop.f32.mrf.mxu1 }
 0x207   :  { %6414 = vmatmul.msk.bf16.vlgmr.msrb.gmra.mxu3 %vm1429_vm14, %v7829_v63  ;;  %6415 = vmatmul.msk.bf16.vlgmr.msra.gmra.mxu0 %vm1429_vm14, %v7829_v63 }
 0x209   :  { %v8407_v33 = vpop.f32.mrf.mxu2 }
 0x211   :  { %v1585_v19 = vpop.f32.mrf.mxu2 }
 0x212   :  { %v1584_v19 = vadd.f32 %v8407_v33, %v8356_v58 }
 0x219   :  { %v8409_v2 = vpop.f32.mrf.mxu2 }
 0x21c   :  { %v1505_v53 = vpop.f32.mrf.mxu0 }
 0x21d   :  { %v1506_v52 = vadd.f32 %v1505_v53, %v8356_v58 }
 0x21f   :  { %v8412_v16 = vmax.f32 %v1506_v52, 0.0 }
 0x221   :  { %12579 = vst [vmem:[#allocation69_spill] sm:$0xff] %v8412_v16  ;;  %1728 = vrot.lane.b32.xlu0 %v8412_v16, %s6906_s4  ;;  %1806 = vrot.lane.b32.xlu1 %v8412_v16, %s6907_s8  ;;  %v1637_v60 = vpop.f32.mrf.mxu2 }
 0x222   :  { %v1492_v48 = vpop.f32.mrf.mxu3 }
 0x223   :  { %v1493_v63 = vadd.f32 %v1492_v48, %v8356_v58 }
 0x224   :  { %v1507_v36 = vpop.f32.mrf.mxu0 }
 0x225   :  { %v8419_v12 = vmax.f32 %v1493_v63, 0.0  ;;  %v8493_v63 = vmax.f32 %v1584_v19, 0.0  ;;  %v12597_v19 = vld [vmem:[#allocation38_spill] sm:$0xff] }
 0x227   :  { %12580 = vst [vmem:[#allocation81_spill] sm:$0xff] %v8419_v12  ;;  %1726 = vrot.lane.b32.xlu2 %v8419_v12, %s6906_s4 }
 0x228   :  { %12588 = vst [vmem:[#allocation89_spill] sm:$0xff] %v8493_v63 }
 0x229   :  { %2146 = vrot.lane.b32.xlu0 %v8412_v16, %s6908_s1  ;;  %2148 = vrot.lane.b32.xlu1 %v8371_v51, %s6908_s1 }
 0x22a   :  { %v1494_v5 = vpop.f32.mrf.mxu3 }
 0x22f   :  { %2144 = vrot.lane.b32.xlu2 %v8419_v12, %s6908_s1 }
 0x231   :  { %2068 = vrot.lane.b32.xlu1 %v8412_v16, %s6909_s12  ;;  %1804 = vrot.lane.b32.xlu0 %v8419_v12, %s6907_s8 }
 0x234   :  { %v1622_v4 = vpop.f32.mrf.mxu1 }
 0x235   :  { %v1623_v34 = vadd.f32 %v1622_v4, %v8356_v58 }
 0x237   :  { %2066 = vrot.lane.b32.xlu2 %v8419_v12, %s6909_s12  ;;  %v8466_v24 = vmax.f32 %v1623_v34, 0.0 }
 0x239   :  { %1738 = vrot.lane.b32.xlu1 %v8434_v54, %s6906_s4  ;;  %12585 = vst [vmem:[#allocation74_spill] sm:$0xff] %v8466_v24 }
 0x23c   :  { %v1624_v61 = vpop.f32.mrf.mxu1 }
 0x23f   :  { %1816 = vrot.lane.b32.xlu2 %v8434_v54, %s6907_s8 }
 0x247   :  { %v1557_v57 = vpop.f32.mrf.mxu0 }
 0x248   :  { %v1558_v18 = vadd.f32 %v1557_v57, %v8356_v58 }
 0x24a   :  { %v8443_v39 = vmax.f32 %v1558_v18, 0.0 }
 0x24c   :  { %12582 = vst [vmem:[#allocation67_spill] sm:$0xff] %v8443_v39  ;;  %1814 = vrot.lane.b32.xlu0 %v8443_v39, %s6907_s8 }
 0x24d   :  { %v1544_v10 = vpop.f32.mrf.mxu3 }
 0x24e   :  { %v1545_v35 = vadd.f32 %v1544_v10, %v8356_v58  ;;  %v1636_v10 = vadd.f32 %v8409_v2, %v8356_v58 }
 0x24f   :  { %v1559_v8 = vpop.f32.mrf.mxu0  ;;  %v8497_v36 = vpop.permute.xlu2 %1808 }
 0x250   :  { %v8448_v30 = vmax.f32 %v1545_v35, 0.0  ;;  %v8521_v8 = vmax.f32 %v1636_v10, 0.0 }
 0x252   :  { %12583 = vst [vmem:[#allocation90_spill] sm:$0xff] %v8448_v30  ;;  %1734 = vrot.lane.b32.xlu1 %v8448_v30, %s6906_s4  ;;  %1812 = vrot.lane.b32.xlu2 %v8448_v30, %s6907_s8 }
 0x253   :  { %12592 = vst [vmem:[#allocation77_spill] sm:$0xff] %v8521_v8 }
 0x254   :  { %1736 = vrot.lane.b32.xlu0 %v8443_v39, %s6906_s4 }
 0x255   :  { %v1546_v14 = vpop.f32.mrf.mxu3 }
 0x256   :  { %v1687_v20 = vpop.f32.mrf.mxu2 }
 0x257   :  { %v8512_v61 = vpop.permute.xlu2 %1730 }
 0x25a   :  { %2150 = vrot.lane.b32.xlu2 %v8457_v13, %s6908_s1  ;;  %1810 = vrot.lane.b32.xlu1 %v8457_v13, %s6907_s8 }
 0x25c   :  { %2152 = vrot.lane.b32.xlu0 %v8448_v30, %s6908_s1 }
 0x25e   :  { %v1689_v3 = vpop.f32.mrf.mxu2 }
 0x25f   :  { %v1688_v3 = vadd.f32 %v1687_v20, %v8356_v58 }
 0x262   :  { %1824 = vrot.lane.b32.xlu1 %v8466_v24, %s6907_s8 }
 0x264   :  { %v1674_v29 = vpop.f32.mrf.mxu1  ;;  %1732 = vrot.lane.b32.xlu0 %v8457_v13, %s6906_s4 }
 0x265   :  { %v1675_v53 = vadd.f32 %v1674_v29, %v8356_v58  ;;  %v8546_v29 = vmax.f32 %v1688_v3, 0.0 }
 0x267   :  { %v8495_v60 = vmax.f32 %v1675_v53, 0.0  ;;  %12594 = vst [vmem:[#allocation16_spill] sm:$0xff] %v8546_v29 }
 0x269   :  { %12589 = vst [vmem:[#allocation42_spill] sm:$0xff] %v8495_v60 }
 0x26a   :  { %1746 = vrot.lane.b32.xlu1 %v8466_v24, %s6906_s4 }
 0x26c   :  { %v1676_v46 = vpop.f32.mrf.mxu1  ;;  %2072 = vrot.lane.b32.xlu0 %v8457_v13, %s6909_s12 }
 0x274   :  { %v1609_v15 = vpop.f32.mrf.mxu0 }
 0x275   :  { %v1610_v9 = vadd.f32 %v1609_v15, %v8356_v58 }
 0x277   :  { %v8477_v25 = vmax.f32 %v1610_v9, 0.0 }
 0x279   :  { %12586 = vst [vmem:[#allocation34_spill] sm:$0xff] %v8477_v25  ;;  %1822 = vrot.lane.b32.xlu2 %v8477_v25, %s6907_s8 }
 0x27a   :  { %v1596_v22 = vpop.f32.mrf.mxu3 }
 0x27b   :  { %v1597_v56 = vadd.f32 %v1596_v22, %v8356_v58 }
 0x27c   :  { %v1611_v27 = vpop.f32.mrf.mxu0 }
 0x27d   :  { %v8482_v1 = vmax.f32 %v1597_v56, 0.0 }
 0x27f   :  { %12587 = vst [vmem:[#allocation80_spill] sm:$0xff] %v8482_v1  ;;  %1742 = vrot.lane.b32.xlu0 %v8482_v1, %s6906_s4  ;;  %1820 = vrot.lane.b32.xlu1 %v8482_v1, %s6907_s8 }
 0x281   :  { %1744 = vrot.lane.b32.xlu2 %v8477_v25, %s6906_s4  ;;  %v8529_v55 = vpop.permute.xlu2 %1726 }
 0x282   :  { %v1598_v52 = vpop.f32.mrf.mxu3 }
 0x283   :  { %v12598_v52 = vld [vmem:[#allocation24_spill] sm:$0xff] }
 0x284   :  { %v1661_v48 = vpop.f32.mrf.mxu0 }
 0x285   :  { %v1662_v33 = vadd.f32 %v1661_v48, %v8356_v58 }
 0x287   :  { %1818 = vrot.lane.b32.xlu0 %v8493_v63, %s6907_s8  ;;  %1754 = vrot.lane.b32.xlu1 %v8495_v60, %s6906_s4  ;;  %v8506_v4 = vmax.f32 %v1662_v33, 0.0 }
 0x289   :  { %2070 = vrot.lane.b32.xlu2 %v8371_v51, %s6909_s12  ;;  %12590 = vst [vmem:[#allocation84_spill] sm:$0xff] %v8506_v4  ;;  %v8537_v2 = vpop.permute.xlu2 %2144 }
 0x28a   :  { %v1648_v5 = vpop.f32.mrf.mxu3  ;;  %12593 = vst [vmem:[#allocation15_spill] sm:$0xff] %v8537_v2 }
 0x28b   :  { %v1649_v57 = vadd.f32 %v1648_v5, %v8356_v58 }
 0x28c   :  { %v1663_v44 = vpop.f32.mrf.mxu0 }
 0x28d   :  { %v8519_v35 = vmax.f32 %v1649_v57, 0.0 }
 0x28f   :  { %1832 = vrot.lane.b32.xlu0 %v8495_v60, %s6907_s8  ;;  %1830 = vrot.lane.b32.xlu1 %v8506_v4, %s6907_s8  ;;  %12591 = vst [vmem:[#allocation83_spill] sm:$0xff] %v8519_v35 }
 0x291   :  { %1740 = vrot.lane.b32.xlu2 %v8493_v63, %s6906_s4  ;;  %v8548_v46 = vpop.permute.xlu2 %2066 }
 0x292   :  { %v1650_v18 = vpop.f32.mrf.mxu3  ;;  %12595 = vst [vmem:[#allocation88_spill] sm:$0xff] %v8548_v46 }
 0x293   :  { %v1729_v14 = vpop.permute.xlu0 %1728  ;;  %v1807_v34 = vpop.permute.xlu1 %1806  ;;  %v12599_v18 = vld [vmem:[#allocation66_spill] sm:$0xff] }
 0x294   :  { %v1837_v22 = vsel %vm344_vm3, %v1807_v34, %v8497_v36  ;;  %v1757_v27 = vsel %vm229_vm2, %v1729_v14, %v8512_v61 }
 0x295   :  { %v8577_v53 = vmul.f32 %v1837_v22, %v12597_v19  ;;  %v8580_v48 = vmul.f32 %v1757_v27, %v12598_v52  ;;  %v12603_v52 = vld [vmem:[#allocation33_spill] sm:$0xff] }
 0x297   :  { %1828 = vrot.lane.b32.xlu0 %v8519_v35, %s6907_s8  ;;  %1752 = vrot.lane.b32.xlu1 %v8506_v4, %s6906_s4 }
 0x299   :  { %1826 = vrot.lane.b32.xlu2 %v8521_v8, %s6907_s8  ;;  %v8564_v58 = vpop.permute.xlu2 %1816 }
 0x29b   :  { %v8554_v15 = vpop.permute.xlu0 %2146  ;;  %v8556_v9 = vpop.permute.xlu1 %2148 }
 0x29c   :  { %12596 = vst [vmem:[#allocation97_spill] sm:$0xff] %v8554_v15 }
 0x29f   :  { %1750 = vrot.lane.b32.xlu0 %v8519_v35, %s6906_s4  ;;  %2160 = vrot.lane.b32.xlu1 %v8482_v1, %s6908_s1 }
 0x2a1   :  { %1748 = vrot.lane.b32.xlu2 %v8521_v8, %s6906_s4 }
 0x2a3   :  { %v8566_v20 = vpop.permute.xlu0 %1804  ;;  %v8572_v56 = vpop.permute.xlu1 %2068 }
 0x2a4   :  { %v1836_v57 = vsel %vm344_vm3, %v8566_v20, %v1807_v34  ;;  %v1756_v34 = vsel %vm229_vm2, %v8529_v55, %v1729_v14 }
 0x2a5   :  { %v8593_v10 = vmul.f32 %v1836_v57, %v12599_v18  ;;  %v12601_v57 = vld [vmem:[#allocation30_spill] sm:$0xff]  ;;  %v8610_v19 = vmul.f32 %v1756_v34, %v12603_v52 }
 0x2a7   :  { %2154 = vrot.lane.b32.xlu0 %v8443_v39, %s6908_s1  ;;  %2080 = vrot.lane.b32.xlu1 %v8493_v63, %s6909_s12  ;;  %12600 = vst [vmem:[#allocation52_spill] sm:$0xff] %v8593_v10 }
 0x2a8   :  { %12604 = vst [vmem:[#allocation58_spill] sm:$0xff] %v8610_v19 }
 0x2a9   :  { %2074 = vrot.lane.b32.xlu2 %v8448_v30, %s6909_s12  ;;  %v12618_v30 = vld [vmem:[#allocation40_spill] sm:$0xff] }
 0x2ab   :  { %v8588_v44 = vpop.permute.xlu1 %1738 }
 0x2ac   :  { %v1813_v33 = vpop.permute.xlu2 %1812 }
 0x2af   :  { %2158 = vrot.lane.b32.xlu0 %v8493_v63, %s6908_s1  ;;  %1708 = vrot.lane.b32.xlu1 %v8546_v29, %s6906_s4  ;;  %v2532_v63 = vrot.slane %v8577_v53, 4 }
 0x2b1   :  { %2156 = vrot.lane.b32.xlu2 %v8434_v54, %s6908_s1 }
 0x2b4   :  { %v8601_v3 = vpop.permute.xlu2 %2150 }
 0x2b7   :  { %1834 = vrot.lane.b32.xlu0 %v8546_v29, %s6907_s8  ;;  %2063 = vrot.lane.b32.xlu1 %v8546_v29, %s6909_s12 }
 0x2b9   :  { %2076 = vrot.lane.b32.xlu2 %v8443_v39, %s6909_s12 }
 0x2be   :  { %v1815_v5 = vpop.permute.xlu0 %1814 }
 0x2bf   :  { %2078 = vrot.lane.b32.xlu0 %v8434_v54, %s6909_s12  ;;  %2324 = vrot.lane.b32.xlu1 %v8577_v53, %s6908_s1  ;;  %v1840_v22 = vsel %vm344_vm3, %v1813_v33, %v1815_v5  ;;  %v1841_v14 = vsel %vm344_vm3, %v1815_v5, %v8564_v58 }
 0x2c0   :  { %v8607_v18 = vmul.f32 %v1840_v22, %v12601_v57  ;;  %v12605_v22 = vld [vmem:[#allocation49_spill] sm:$0xff]  ;;  %v8629_v41 = vmul.f32 %v1841_v14, %v12608_v6  ;;  %v12612_v14 = vld [vmem:[#allocation27_spill] sm:$0xff] }
 0x2c1   :  { %1986 = vrot.lane.b32.xlu2 %v8580_v48, %s6908_s1 }
 0x2c2   :  { %12602 = vst [vmem:[#allocation93_spill] sm:$0xff] %v8607_v18 }
 0x2c3   :  { %12609 = vst [vmem:[#allocation18_spill] sm:$0xff] %v8629_v41 }
 0x2c4   :  { %v1735_v27 = vpop.permute.xlu1 %1734 }
 0x2c6   :  { %v1737_v26 = vpop.permute.xlu0 %1736 }
 0x2c7   :  { %1908 = vrot.lane.b32.xlu0 %v8580_v48, %s6909_s12  ;;  %2246 = vrot.lane.b32.xlu1 %v8577_v53, %s6909_s12  ;;  %v1760_v45 = vsel %vm229_vm2, %v1735_v27, %v1737_v26  ;;  %v1761_v5 = vsel %vm229_vm2, %v1737_v26, %v8588_v44 }
 0x2c8   :  { %v8624_v57 = vmul.f32 %v1760_v45, %v12605_v22  ;;  %v8643_v38 = vmul.f32 %v1761_v5, %v12610_v11  ;;  %v12614_v11 = vld [vmem:[#allocation23_spill] sm:$0xff] }
 0x2c9   :  { %2244 = vrot.lane.b32.xlu2 %v8593_v10, %s6909_s12 }
 0x2ca   :  { %12606 = vst [vmem:[#allocation46_spill] sm:$0xff] %v8624_v57 }
 0x2cb   :  { %12611 = vst [vmem:[#allocation21_spill] sm:$0xff] %v8643_v38 }
 0x2cc   :  { %v1811_v34 = vpop.permute.xlu1 %1810 }
 0x2cd   :  { %v1839_v45 = vsel %vm344_vm3, %v1811_v34, %v1813_v33  ;;  %v1838_v26 = vsel %vm344_vm3, %v8497_v36, %v1811_v34 }
 0x2ce   :  { %v8626_v52 = vpop.permute.xlu0 %2152  ;;  %v8646_v6 = vmul.f32 %v1839_v45, %v12612_v14  ;;  %v12613_v45 = vld [vmem:[#allocation26_spill] sm:$0xff] }
 0x2cf   :  { %2322 = vrot.lane.b32.xlu0 %v8593_v10, %s6908_s1  ;;  %2252 = vrot.lane.b32.xlu1 %v8607_v18, %s6909_s12  ;;  %12607 = vst [vmem:[#allocation43_spill] sm:$0xff] %v8626_v52  ;;  %v8663_v14 = vmul.f32 %v1838_v26, %v12613_v45  ;;  %v12615_v26 = vld [vmem:[#allocation22_spill] sm:$0xff] }
 0x2d1   :  { %1906 = vrot.lane.b32.xlu2 %v8610_v19, %s6909_s12 }
 0x2d3   :  { %v8619_v0 = vpop.permute.xlu2 %1822 }
 0x2d4   :  { %v8648_v40 = vpop.permute.xlu1 %1824 }
 0x2d6   :  { %v1733_v49 = vpop.permute.xlu0 %1732 }
 0x2d7   :  { %1984 = vrot.lane.b32.xlu0 %v8610_v19, %s6908_s1  ;;  %1992 = vrot.lane.b32.xlu1 %v8624_v57, %s6908_s1  ;;  %v1758_v33 = vsel %vm229_vm2, %v8512_v61, %v1733_v49  ;;  %v1759_v61 = vsel %vm229_vm2, %v1733_v49, %v1735_v27  ;;  %v12631_v19 = vld [vmem:[#allocation61_spill] sm:$0xff] }
 0x2d8   :  { %v8666_v37 = vmul.f32 %v1758_v33, %v12614_v11  ;;  %v8680_v45 = vmul.f32 %v1759_v61, %v12615_v26  ;;  %v12617_v26 = vld [vmem:[#allocation44_spill] sm:$0xff] }
 0x2d9   :  { %2332 = vrot.lane.b32.xlu2 %v8629_v41, %s6908_s1 }
 0x2da   :  { %12616 = vst [vmem:[#allocation39_spill] sm:$0xff] %v8680_v45 }
 0x2db   :  { %v8640_v22 = vpop.permute.xlu2 %1744 }
 0x2dc   :  { %v8672_v47 = vpop.permute.xlu1 %1746 }
 0x2de   :  { %v8674_v36 = vpop.permute.xlu0 %2072 }
 0x2df   :  { %1916 = vrot.lane.b32.xlu0 %v8643_v38, %s6909_s12  ;;  %2328 = vrot.lane.b32.xlu1 %v8646_v6, %s6908_s1 }
 0x2e1   :  { %2254 = vrot.lane.b32.xlu2 %v8629_v41, %s6909_s12  ;;  %v12624_v41 = vld [vmem:[#allocation82_spill] sm:$0xff] }
 0x2e3   :  { %v8660_v5 = vpop.permute.xlu2 %2070 }
 0x2e7   :  { %1910 = vrot.lane.b32.xlu1 %v8666_v37, %s6909_s12  ;;  %2326 = vrot.lane.b32.xlu0 %v8663_v14, %s6908_s1 }
 0x2e9   :  { %2330 = vrot.lane.b32.xlu2 %v8607_v18, %s6908_s1 }
 0x2eb   :  { %v1741_v34 = vpop.permute.xlu2 %1740 }
 0x2ef   :  { %1990 = vrot.lane.b32.xlu1 %v8680_v45, %s6908_s1  ;;  %2250 = vrot.lane.b32.xlu0 %v8646_v6, %s6909_s12 }
 0x2f1   :  { %1914 = vrot.lane.b32.xlu2 %v8624_v57, %s6909_s12  ;;  %v8688_v33 = vpop.permute.xlu0 %1742  ;;  %v1821_v11 = vpop.permute.xlu1 %1820 }
 0x2f2   :  { %v1844_v39 = vsel %vm344_vm3, %v1821_v11, %v8619_v0  ;;  %v1763_v18 = vsel %vm229_vm2, %v1741_v34, %v8688_v33 }
 0x2f3   :  { %v1827_v7 = vpop.permute.xlu2 %1826  ;;  %v8707_v23 = vmul.f32 %v1844_v39, %v12618_v30  ;;  %v1762_v39 = vsel %vm229_vm2, %v8588_v44, %v1741_v34 }
 0x2f4   :  { %v1846_v31 = vsel %vm344_vm3, %v8648_v40, %v1827_v7 }
 0x2f5   :  { %12619 = vst [vmem:[#allocation72_spill] sm:$0xff] %v8707_v23 }
 0x2f7   :  { %1988 = vrot.lane.b32.xlu0 %v8666_v37, %s6908_s1 }
 0x2f9   :  { %v1819_v49 = vpop.permute.xlu0 %1818  ;;  %2248 = vrot.lane.b32.xlu2 %v8663_v14, %s6909_s12  ;;  %v8694_v27 = vpop.permute.xlu1 %1754 }
 0x2fa   :  { %v1843_v61 = vsel %vm344_vm3, %v1819_v49, %v1821_v11 }
 0x2fb   :  { %v8698_v28 = vmul.f32 %v1843_v61, %v12617_v26  ;;  %v8700_v42 = vpop.permute.xlu2 %1748  ;;  %v1842_v26 = vsel %vm344_vm3, %v8564_v58, %v1819_v49  ;;  %v12622_v58 = vld [vmem:[#allocation28_spill] sm:$0xff] }
 0x2fc   :  { %v8722_v57 = vmul.f32 %v1842_v26, %v12621_v62  ;;  %v8735_v49 = vmul.f32 %v1762_v39, %v12622_v58  ;;  %v1845_v62 = vsel %vm344_vm3, %v8619_v0, %v8648_v40  ;;  %v12626_v0 = vld [vmem:[#allocation32_spill] sm:$0xff] }
 0x2fd   :  { %2336 = vrot.lane.b32.xlu1 %v8698_v28, %s6908_s1  ;;  %v8745_v44 = vmul.f32 %v1845_v62, %v12624_v41  ;;  %v8758_v10 = vmul.f32 %v1763_v18, %v12626_v0  ;;  %v12629_v0 = vld [vmem:[#allocation71_spill] sm:$0xff] }
 0x2fe   :  { %12623 = vst [vmem:[#allocation106_spill] sm:$0xff] %v8735_v49 }
 0x2ff   :  { %1912 = vrot.lane.b32.xlu0 %v8680_v45, %s6909_s12  ;;  %12625 = vst [vmem:[#allocation107_spill] sm:$0xff] %v8745_v44 }
 0x300   :  { %12627 = vst [vmem:[#allocation108_spill] sm:$0xff] %v8758_v10 }
 0x301   :  { %v8711_v17 = vpop.permute.xlu0 %1832  ;;  %2338 = vrot.lane.b32.xlu2 %v8707_v23, %s6908_s1  ;;  %v8715_v61 = vpop.permute.xlu1 %1830 }
 0x303   :  { %v8719_v11 = vpop.permute.xlu2 %2074 }
 0x304   :  { %12620 = vst [vmem:[#allocation96_spill] sm:$0xff] %v8719_v11 }
 0x305   :  { %2258 = vrot.lane.b32.xlu1 %v8698_v28, %s6909_s12 }
 0x307   :  { %2334 = vrot.lane.b32.xlu0 %v8722_v57, %s6908_s1 }
 0x309   :  { %v1829_v30 = vpop.permute.xlu0 %1828  ;;  %1994 = vrot.lane.b32.xlu2 %v8643_v38, %s6908_s1  ;;  %v8732_v45 = vpop.permute.xlu1 %1752  ;;  %v12658_v38 = vld [vmem:[#allocation76_spill] sm:$0xff] }
 0x30a   :  { %v1848_v18 = vsel %vm344_vm3, %v1829_v30, %v8715_v61  ;;  %v1847_v12 = vsel %vm344_vm3, %v1827_v7, %v1829_v30  ;;  %v12636_v30 = vld [vmem:[#allocation50_spill] sm:$0xff] }
 0x30b   :  { %v8737_v26 = vpop.permute.xlu2 %2156  ;;  %v8779_v59 = vmul.f32 %v1848_v18, %v12629_v0  ;;  %v12634_v0 = vld [vmem:[#allocation59_spill] sm:$0xff] }
 0x30c   :  { %v8798_v46 = vmul.f32 %v1846_v31, %v12634_v0 }
 0x30d   :  { %1918 = vrot.lane.b32.xlu1 %v8735_v49, %s6909_s12  ;;  %12630 = vst [vmem:[#allocation110_spill] sm:$0xff] %v8779_v59 }
 0x30e   :  { %12635 = vst [vmem:[#allocation113_spill] sm:$0xff] %v8798_v46 }
 0x30f   :  { %2256 = vrot.lane.b32.xlu0 %v8722_v57, %s6909_s12 }
 0x311   :  { %v8751_v39 = vpop.permute.xlu0 %1750  ;;  %2340 = vrot.lane.b32.xlu2 %v8745_v44, %s6908_s1  ;;  %v8755_v58 = vpop.permute.xlu1 %2160 }
 0x313   :  { %v8760_v32 = vpop.permute.xlu2 %2076 }
 0x315   :  { %1998 = vrot.lane.b32.xlu1 %v8758_v10, %s6908_s1 }
 0x317   :  { %1996 = vrot.lane.b32.xlu0 %v8735_v49, %s6908_s1 }
 0x319   :  { %v8766_v62 = vpop.permute.xlu0 %2154  ;;  %2082 = vrot.lane.b32.xlu2 %v8482_v1, %s6909_s12  ;;  %v8770_v34 = vpop.permute.xlu1 %2080 }
 0x31a   :  { %12628 = vst [vmem:[#allocation109_spill] sm:$0xff] %v8766_v62  ;;  %v8791_v62 = vmul.f32 %v1847_v12, %v12631_v19 }
 0x31b   :  { %v8772_v41 = vpop.permute.xlu2 %1986 }
 0x31c   :  { %12632 = vst [vmem:[#allocation111_spill] sm:$0xff] %v8791_v62 }
 0x31d   :  { %2260 = vrot.lane.b32.xlu1 %v8707_v23, %s6909_s12 }
 0x31f   :  { %2162 = vrot.lane.b32.xlu0 %v8477_v25, %s6908_s1 }
 0x321   :  { %v8784_v11 = vpop.permute.xlu0 %2158  ;;  %2346 = vrot.lane.b32.xlu2 %v8779_v59, %s6908_s1  ;;  %v1709_v1 = vpop.permute.xlu1 %1708 }
 0x322   :  { %v1787_v18 = vsel %vm229_vm2, %v1709_v1, %v8529_v55  ;;  %v1770_v31 = vsel %vm229_vm2, %v8694_v27, %v1709_v1  ;;  %v12639_v55 = vld [vmem:[#allocation68_spill] sm:$0xff] }
 0x323   :  { %v8793_v23 = vpop.permute.xlu2 %2244  ;;  %v8803_v2 = vmul.f32 %v1787_v18, %v12636_v30  ;;  %v12641_v30 = vld [vmem:[#allocation54_spill] sm:$0xff] }
 0x324   :  { %12633 = vst [vmem:[#allocation112_spill] sm:$0xff] %v8793_v23  ;;  %v8824_v0 = vmul.f32 %v1770_v31, %v12641_v30  ;;  %v1764_v31 = vsel %vm229_vm2, %v8688_v33, %v8640_v22  ;;  %v12644_v30 = vld [vmem:[#allocation78_spill] sm:$0xff] }
 0x325   :  { %2344 = vrot.lane.b32.xlu1 %v8791_v62, %s6908_s1  ;;  %12637 = vst [vmem:[#allocation114_spill] sm:$0xff] %v8803_v2 }
 0x326   :  { %12642 = vst [vmem:[#allocation117_spill] sm:$0xff] %v8824_v0 }
 0x327   :  { %2342 = vrot.lane.b32.xlu0 %v8798_v46, %s6908_s1 }
 0x329   :  { %v8807_v7 = vpop.permute.xlu0 %1834  ;;  %1982 = vrot.lane.b32.xlu2 %v8803_v2, %s6908_s1  ;;  %v8811_v40 = vpop.permute.xlu1 %2063 }
 0x32a   :  { %12638 = vst [vmem:[#allocation115_spill] sm:$0xff] %v8811_v40  ;;  %v1868_v12 = vsel %vm344_vm3, %v8807_v7, %v8566_v20 }
 0x32b   :  { %v8819_v18 = vmul.f32 %v1868_v12, %v12639_v55  ;;  %v8821_v19 = vpop.permute.xlu2 %1906 }
 0x32d   :  { %12640 = vst [vmem:[#allocation116_spill] sm:$0xff] %v8819_v18  ;;  %2226 = vrot.lane.b32.xlu1 %v8819_v18, %s6909_s12 }
 0x32f   :  { %1886 = vrot.lane.b32.xlu0 %v8824_v0, %s6909_s12  ;;  %v8848_v0 = vmul.f32 %v1764_v31, %v12644_v30 }
 0x331   :  { %v8830_v40 = vpop.permute.xlu0 %2078  ;;  %2164 = vrot.lane.b32.xlu2 %v8466_v24, %s6908_s1  ;;  %v2325_v1 = vpop.permute.xlu1 %2324  ;;  %12645 = vst [vmem:[#allocation119_spill] sm:$0xff] %v8848_v0 }
 0x333   :  { %v8834_v20 = vpop.permute.xlu2 %2332 }
 0x334   :  { %12643 = vst [vmem:[#allocation118_spill] sm:$0xff] %v8834_v20 }
 0x335   :  { %1904 = vrot.lane.b32.xlu1 %v8803_v2, %s6909_s12 }
 0x337   :  { %1920 = vrot.lane.b32.xlu0 %v8758_v10, %s6909_s12 }
 0x339   :  { %v8843_v12 = vpop.permute.xlu0 %1908  ;;  %2262 = vrot.lane.b32.xlu2 %v8745_v44, %s6909_s12  ;;  %v2247_v55 = vpop.permute.xlu1 %2246 }
 0x33b   :  { %v8850_v20 = vpop.permute.xlu2 %2254 }
 0x33d   :  { %2000 = vrot.lane.b32.xlu1 %v8848_v0, %s6908_s1 }
 0x33f   :  { %2166 = vrot.lane.b32.xlu0 %v8521_v8, %s6908_s1 }
 0x341   :  { %v8856_v2 = vpop.permute.xlu0 %2322  ;;  %2084 = vrot.lane.b32.xlu2 %v8477_v25, %s6909_s12  ;;  %v8860_v33 = vpop.permute.xlu1 %2252 }
 0x342   :  { %12646 = vst [vmem:[#allocation120_spill] sm:$0xff] %v8856_v2  ;;  %v2354_v10 = vsel %vm592_vm7, %v8856_v2, %v2325_v1 }
 0x343   :  { %12647 = vst [vmem:[#allocation121_spill] sm:$0xff] %v8860_v33  ;;  %v2387_v31 = vmul.f32 %v2354_v10, %v7941_v43  ;;  %v8865_v30 = vpop.permute.xlu2 %2330 }
 0x344   :  { %12648 = vst [vmem:[#allocation122_spill] sm:$0xff] %v8865_v30 }
 0x345   :  { %v2659_v44 = vpack.c.bf16 %v2387_v31, %v2387_v31  ;;  %2168 = vrot.lane.b32.xlu1 %v8519_v35, %s6908_s1  ;;  %v1765_v31 = vsel %vm229_vm2, %v8640_v22, %v8672_v47 }
 0x347   :  { %2264 = vrot.lane.b32.xlu0 %v8798_v46, %s6909_s12  ;;  %v2686_v49 = vsel %vm1305_vm9, %v2659_v44, 0  ;;  %v12652_v46 = vld [vmem:[#allocation57_spill] sm:$0xff] }
 0x348   :  { %2738 = vmatpush.bf16.msra.mxu3 %v2686_v49  ;;  %v8886_v33 = vmul.f32 %v1765_v31, %v12652_v46  ;;  %v1849_v31 = vsel %vm344_vm3, %v8715_v61, %v8711_v17  ;;  %v2177_v46 = vsel %vm592_vm7, %v8554_v15, %v8556_v9 }
 0x349   :  { %v8872_v25 = vpop.permute.xlu0 %1984  ;;  %1922 = vrot.lane.b32.xlu2 %v8848_v0, %s6909_s12  ;;  %v8876_v2 = vpop.permute.xlu1 %1992  ;;  %v2210_v15 = vmul.f32 %v2177_v46, %v7918_v21 }
 0x34a   :  { %12649 = vst [vmem:[#allocation123_spill] sm:$0xff] %v8872_v25 }
 0x34b   :  { %12650 = vst [vmem:[#allocation124_spill] sm:$0xff] %v8876_v2  ;;  %v8878_v10 = vpop.permute.xlu2 %1914  ;;  %v12655_v2 = vld [vmem:[#allocation63_spill] sm:$0xff] }
 0x34c   :  { %12651 = vst [vmem:[#allocation125_spill] sm:$0xff] %v8878_v10 }
 0x34d   :  { %2266 = vrot.lane.b32.xlu1 %v8791_v62, %s6909_s12  ;;  %12653 = vst [vmem:[#allocation126_spill] sm:$0xff] %v8886_v33  ;;  %v2178_v62 = vsel %vm592_vm7, %v8556_v9, %v8601_v3 }
 0x34e   :  { %v2211_v9 = vmul.f32 %v2178_v62, %v12658_v38 }
 0x34f   :  { %2086 = vrot.lane.b32.xlu0 %v8466_v24, %s6909_s12 }
 0x351   :  { %v8890_v49 = vpop.permute.xlu0 %1916  ;;  %2002 = vrot.lane.b32.xlu2 %v8886_v33, %s6908_s1  ;;  %v2329_v44 = vpop.permute.xlu1 %2328 }
 0x352   :  { %12654 = vst [vmem:[#allocation127_spill] sm:$0xff] %v8890_v49  ;;  %v2357_v0 = vsel %vm592_vm7, %v2329_v44, %v8865_v30  ;;  %v12656_v30 = vld [vmem:[#allocation95_spill] sm:$0xff] }
 0x353   :  { %v2390_v22 = vmul.f32 %v2357_v0, %v12655_v2  ;;  %v2249_v25 = vpop.permute.xlu2 %2248  ;;  %v1766_v0 = vsel %vm229_vm2, %v8672_v47, %v8700_v42  ;;  %v8912_v43 = vmul.f32 %v1849_v31, %v12656_v30  ;;  %v2179_v47 = vsel %vm592_vm7, %v8601_v3, %v8626_v52  ;;  %v12659_v31 = vld [vmem:[#allocation45_spill] sm:$0xff] }
 0x354   :  { %v2500_v3 = vrot.slane %v2210_v15, 4  ;;  %v2501_v52 = vrot.slane %v2211_v9, 4 }
 0x355   :  { %v2662_v24 = vpack.c.bf16 %v2390_v22, %v2390_v22  ;;  %2088 = vrot.lane.b32.xlu1 %v8521_v8, %s6909_s12  ;;  %12657 = vst [vmem:[#allocation128_spill] sm:$0xff] %v8912_v43  ;;  %v2274_v22 = vsel %vm477_vm6, %v8793_v23, %v2247_v55  ;;  %v2275_v8 = vsel %vm477_vm6, %v2247_v55, %v2249_v25 }
 0x356   :  { %v2307_v30 = vmul.f32 %v2274_v22, %v7921_v50 }
 0x357   :  { %1924 = vrot.lane.b32.xlu0 %v8886_v33, %s6909_s12  ;;  %v2695_v61 = vsel %vm1305_vm9, %v2662_v24, 0  ;;  %v8928_v24 = vmul.f32 %v1766_v0, %v12659_v31  ;;  %v12661_v33 = vld [vmem:[#allocation75_spill] sm:$0xff]  ;;  %v2533_v0 = vrot.slane %v8663_v14, 4 }
 0x358   :  { %2777 = vmatpush.bf16.msrb.mxu2 %v2695_v61  ;;  %v2308_v55 = vmul.f32 %v2275_v8, %v12661_v33  ;;  %v2612_v15 = vsel %vm66_vm0, %v2307_v30, %v2532_v63  ;;  %v2597_v63 = vsel %vm66_vm0, %v8371_v51, %v2501_v52  ;;  %v2098_v52 = vsel %vm477_vm6, %v8660_v5, %v8674_v36 }
 0x359   :  { %v2327_v10 = vpop.permute.xlu0 %2326  ;;  %2348 = vrot.lane.b32.xlu2 %v8912_v43, %s6908_s1  ;;  %12660 = vst [vmem:[#allocation129_spill] sm:$0xff] %v8928_v24 }
 0x35a   :  { %v2355_v46 = vsel %vm592_vm7, %v2325_v1, %v2327_v10  ;;  %v2356_v62 = vsel %vm592_vm7, %v2327_v10, %v2329_v44  ;;  %v2212_v1 = vmul.f32 %v2179_v47, %v12655_v2  ;;  %v8941_v44 = vpop.permute.xlu1 %1910  ;;  %v2613_v14 = vsel %vm66_vm0, %v2308_v55, %v2533_v0 }
 0x35b   :  { %v2388_v61 = vmul.f32 %v2355_v46, %v7918_v21  ;;  %v2389_v23 = vmul.f32 %v2356_v62, %v12658_v38  ;;  %v8936_v49 = vpop.permute.xlu2 %2338  ;;  %v2596_v47 = vsel %vm66_vm0, %v8412_v16, %v2500_v3  ;;  %v2645_v46 = vpack.c.bf16 %v2613_v14, %v2597_v63  ;;  %v12662_v62 = vld [vmem:[#allocation48_spill] sm:$0xff] }
 0x35c   :  { %v2502_v9 = vrot.slane %v2212_v1, 4  ;;  %v2097_v3 = vsel %vm477_vm6, %v8572_v56, %v8660_v5  ;;  %v2405_v63 = vrot.slane %v8580_v48, 4  ;;  %v2102_v16 = vsel %vm477_vm6, %v8830_v40, %v8770_v34 }
 0x35d   :  { %v2660_v31 = vpack.c.bf16 %v2388_v61, %v2388_v61  ;;  %v2661_v10 = vpack.c.bf16 %v2389_v23, %v2389_v23  ;;  %1926 = vrot.lane.b32.xlu1 %v8928_v24, %s6909_s12  ;;  %v1767_v23 = vsel %vm229_vm2, %v8700_v42, %v8751_v39  ;;  %v2534_v42 = vrot.slane %v8646_v6, 4  ;;  %v12664_v61 = vld [vmem:[#allocation62_spill] sm:$0xff] }
 0x35e   :  { %v8966_v55 = vmul.f32 %v1767_v23, %v12662_v62  ;;  %v2598_v6 = vsel %vm66_vm0, %v8457_v13, %v2502_v9  ;;  %v2130_v5 = vmul.f32 %v2097_v3, %v12661_v33  ;;  %v1850_v23 = vsel %vm344_vm3, %v8711_v17, %v8807_v7  ;;  %v12675_v13 = vld [vmem:[#allocation94_spill] sm:$0xff] }
 0x35f   :  { %2004 = vrot.lane.b32.xlu0 %v8928_v24, %s6908_s1  ;;  %v2689_v8 = vsel %vm1305_vm9, %v2660_v31, 0  ;;  %v2692_v53 = vsel %vm1305_vm9, %v2661_v10, 0  ;;  %v2644_v31 = vpack.c.bf16 %v2612_v15, %v2596_v47  ;;  %v1935_v10 = vsel %vm477_vm6, %v8821_v19, %v8843_v12 }
 0x360   :  { %2751 = vmatpush.bf16.msrb.mxu0 %v2689_v8  ;;  %2764 = vmatpush.bf16.msrb.mxu1 %v2692_v53  ;;  %12663 = vst [vmem:[#allocation130_spill] sm:$0xff] %v8966_v55  ;;  %v1936_v8 = vsel %vm477_vm6, %v8843_v12, %v8941_v44  ;;  %v2131_v15 = vmul.f32 %v2098_v52, %v12664_v61  ;;  %v12665_v52 = vld [vmem:[#allocation25_spill] sm:$0xff] }
 0x361   :  { %v8954_v22 = vpop.permute.xlu0 %2250  ;;  %2090 = vrot.lane.b32.xlu2 %v8519_v35, %s6909_s12  ;;  %v1968_v9 = vmul.f32 %v1935_v10, %v12661_v33  ;;  %v1969_v47 = vmul.f32 %v1936_v8, %v12664_v61  ;;  %v12678_v33 = vld [vmem:[#allocation127_spill] sm:$0xff] }
 0x362   :  { %v2276_v30 = vsel %vm477_vm6, %v2249_v25, %v8954_v22  ;;  %v8990_v14 = vpop.permute.xlu1 %1990  ;;  %v2454_v17 = vrot.slane %v2131_v15, 4 }
 0x363   :  { %v2309_v0 = vmul.f32 %v2276_v30, %v12664_v61  ;;  %v8969_v1 = vpop.permute.xlu2 %1994  ;;  %v2406_v30 = vrot.slane %v8666_v37, 4  ;;  %v2565_v37 = vsel %vm66_vm0, %v1968_v9, %v2405_v63  ;;  %v12667_v9 = vld [vmem:[#allocation85_spill] sm:$0xff] }
 0x364   :  { %2752 = vmatpush.bf16.msrb.mxu0 %v2644_v31  ;;  %2765 = vmatpush.bf16.msrb.mxu1 %v2645_v46 }
 0x365   :  { %2006 = vrot.lane.b32.xlu1 %v8966_v55, %s6908_s1  ;;  %v2614_v25 = vsel %vm66_vm0, %v2309_v0, %v2534_v42  ;;  %v2453_v42 = vrot.slane %v2130_v5, 4 }
 0x366   :  { %v2646_v53 = vpack.c.bf16 %v2614_v25, %v2598_v6  ;;  %v9012_v6 = vmul.f32 %v1850_v23, %v12665_v52  ;;  %v2566_v25 = vsel %vm66_vm0, %v1969_v47, %v2406_v30  ;;  %v9024_v23 = vld [vmem:[#allocation5 + $0x8] sm:$0x3]  ;;  %v1768_v47 = vsel %vm229_vm2, %v8751_v39, %v8732_v45 }
 0x367   :  { %2170 = vrot.lane.b32.xlu0 %v8506_v4, %s6908_s1 }
 0x368   :  { %2778 = vmatpush.bf16.msrb.mxu2 %v2646_v53  ;;  %12666 = vst [vmem:[#allocation131_spill] sm:$0xff] %v9012_v6 }
 0x369   :  { %v1989_v12 = vpop.permute.xlu0 %1988  ;;  %1928 = vrot.lane.b32.xlu2 %v8966_v55, %s6909_s12  ;;  %v12708_v55 = vld [vmem:[#allocation112_spill] sm:$0xff] }
 0x36a   :  { %v2016_v31 = vsel %vm592_vm7, %v8772_v41, %v1989_v12  ;;  %v2017_v46 = vsel %vm592_vm7, %v1989_v12, %v8990_v14 }
 0x36b   :  { %v2049_v7 = vmul.f32 %v2016_v31, %v12658_v38  ;;  %v2050_v0 = vmul.f32 %v2017_v46, %v12655_v2  ;;  %v9009_v3 = vpop.permute.xlu2 %2340  ;;  %v12668_v46 = vld [vmem:[#allocation92_spill] sm:$0xff]  ;;  %v12679_v2 = vld [vmem:[#allocation125_spill] sm:$0xff] }
 0x36c   :  { %v1939_v61 = vsel %vm477_vm6, %v12679_v2, %v12678_v33 }
 0x36d   :  { %2268 = vrot.lane.b32.xlu1 %v8779_v59, %s6909_s12  ;;  %v2581_v48 = vsel %vm66_vm0, %v2049_v7, %v2453_v42  ;;  %v2582_v10 = vsel %vm66_vm0, %v2050_v0, %v2454_v17  ;;  %v9041_v42 = vmul.f32 %v1768_v47, %v12668_v46  ;;  %v2182_v0 = vsel %vm592_vm7, %v8737_v26, %v8784_v11  ;;  %v2676_v46 = vld [vmem:[#allocation2 + $0xa8] sm:$0xf] }
 0x36e   :  { %v2629_v8 = vpack.c.bf16 %v2581_v48, %v2565_v37  ;;  %v2630_v53 = vpack.c.bf16 %v2582_v10, %v2566_v25  ;;  %v2183_v37 = vsel %vm592_vm7, %v8784_v11, %v8755_v58  ;;  %v12670_v25 = vld [vmem:[#allocation36_spill] sm:$0xff]  ;;  %v12672_v11 = vld [vmem:[#allocation79_spill] sm:$0xff] }
 0x36f   :  { %2350 = vrot.lane.b32.xlu0 %v9012_v6, %s6908_s1  ;;  %v2337_v5 = vpop.permute.xlu1 %2336  ;;  %12669 = vst [vmem:[#allocation132_spill] sm:$0xff] %v9041_v42 }
 0x370   :  { %v2361_v15 = vsel %vm592_vm7, %v2337_v5, %v8936_v49  ;;  %2766 = vmatpush.bf16.msrb.mxu1 %v2629_v8  ;;  %2779 = vmatpush.bf16.msrb.mxu2 %v2630_v53  ;;  %v1769_v53 = vsel %vm229_vm2, %v8732_v45, %v8694_v27 }
 0x371   :  { %v2394_v12 = vmul.f32 %v2361_v15, %v12667_v9  ;;  %v9027_v63 = vpop.permute.xlu0 %1912  ;;  %2174 = vrot.lane.b32.xlu2 %v8546_v29, %s6908_s1  ;;  %v2215_v15 = vmul.f32 %v2182_v0, %v12670_v25 }
 0x373   :  { %v2666_v30 = vpack.c.bf16 %v2394_v12, %v2394_v12  ;;  %v9034_v31 = vpop.permute.xlu2 %2082  ;;  %6420 = vmatmul.msk.bf16.vlgmr.msrb.gmra.mxu1 %vm62_vm1, %v9024_v23  ;;  %6421 = vmatmul.msk.bf16.vlgmr.msrb.gmra.mxu2 %vm62_vm1, %v9024_v23  ;;  %v2216_v12 = vmul.f32 %v2183_v37, %v12667_v9  ;;  %v2505_v45 = vrot.slane %v2215_v15, 4 }
 0x375   :  { %2352 = vrot.lane.b32.xlu1 %v8819_v18, %s6908_s1  ;;  %v2707_v17 = vsel %vm1305_vm9, %v2666_v30, 0  ;;  %v9073_v30 = vmul.f32 %v1769_v53, %v12672_v11  ;;  %v2506_v27 = vrot.slane %v2216_v12, 4  ;;  %v2538_v53 = vrot.slane %v8698_v28, 4  ;;  %v12698_v18 = vld [vmem:[#allocation93_spill] sm:$0xff] }
 0x376   :  { %2829 = vmatpush.bf16.msra.mxu2 %v2707_v17  ;;  %v2101_v12 = vsel %vm477_vm6, %v8760_v32, %v8830_v40  ;;  %v2601_v28 = vsel %vm66_vm0, %v8434_v54, %v2505_v45 }
 0x377   :  { %2008 = vrot.lane.b32.xlu0 %v9041_v42, %s6908_s1  ;;  %v9048_v39 = vpop.permute.xlu1 %2258  ;;  %12673 = vst [vmem:[#allocation134_spill] sm:$0xff] %v9073_v30  ;;  %v2134_v45 = vmul.f32 %v2101_v12, %v12675_v13 }
 0x379   :  { %v9050_v7 = vpop.permute.xlu0 %2334  ;;  %2092 = vrot.lane.b32.xlu2 %v8506_v4, %s6909_s12  ;;  %v12699_v4 = vld [vmem:[#allocation18_spill] sm:$0xff] }
 0x37a   :  { %v2360_v48 = vsel %vm592_vm7, %v9050_v7, %v2337_v5 }
 0x37b   :  { %v2393_v10 = vmul.f32 %v2360_v48, %v12670_v25  ;;  %v9063_v8 = vpop.permute.xlu2 %2346 }
 0x37c   :  { %12671 = vst [vmem:[#allocation133_spill] sm:$0xff] %v9063_v8 }
 0x37d   :  { %v2665_v47 = vpack.c.bf16 %v2393_v10, %v2393_v10  ;;  %2172 = vrot.lane.b32.xlu1 %v8495_v60, %s6908_s1  ;;  %v2537_v10 = vrot.slane %v8722_v57, 4 }
 0x37f   :  { %2270 = vrot.lane.b32.xlu0 %v8912_v43, %s6909_s12  ;;  %v9077_v5 = vpop.permute.xlu1 %1918  ;;  %v2704_v17 = vsel %vm1305_vm9, %v2665_v47, 0  ;;  %v12676_v47 = vld [vmem:[#allocation86_spill] sm:$0xff] }
 0x380   :  { %12674 = vst [vmem:[#allocation135_spill] sm:$0xff] %v9077_v5  ;;  %2816 = vmatpush.bf16.msra.mxu1 %v2704_v17  ;;  %v1940_v40 = vsel %vm477_vm6, %v12678_v33, %v9077_v5  ;;  %v12681_v33 = vld [vmem:[#allocation21_spill] sm:$0xff]  ;;  %v12700_v43 = vld [vmem:[#allocation46_spill] sm:$0xff] }
 0x381   :  { %v2257_v0 = vpop.permute.xlu0 %2256  ;;  %1932 = vrot.lane.b32.xlu2 %v9073_v30, %s6909_s12 }
 0x382   :  { %v2279_v37 = vsel %vm477_vm6, %v8850_v20, %v2257_v0  ;;  %v2280_v48 = vsel %vm477_vm6, %v2257_v0, %v9048_v39  ;;  %v12677_v0 = vld [vmem:[#allocation89_spill] sm:$0xff] }
 0x383   :  { %v2312_v51 = vmul.f32 %v2279_v37, %v12675_v13  ;;  %v2313_v17 = vmul.f32 %v2280_v48, %v12676_v47  ;;  %v9090_v15 = vpop.permute.xlu2 %1982  ;;  %v2602_v37 = vsel %vm66_vm0, %v12677_v0, %v2506_v27 }
 0x385   :  { %2272 = vrot.lane.b32.xlu1 %v9012_v6, %s6909_s12  ;;  %v2617_v57 = vsel %vm66_vm0, %v2312_v51, %v2537_v10  ;;  %v2618_v48 = vsel %vm66_vm0, %v2313_v17, %v2538_v53  ;;  %v2135_v51 = vmul.f32 %v2102_v16, %v12676_v47  ;;  %v1972_v10 = vmul.f32 %v1939_v61, %v12675_v13 }
 0x386   :  { %v2649_v38 = vpack.c.bf16 %v2617_v57, %v2601_v28  ;;  %v2650_v62 = vpack.c.bf16 %v2618_v48, %v2602_v37  ;;  %v1973_v53 = vmul.f32 %v1940_v40, %v12676_v47  ;;  %v2409_v28 = vrot.slane %v12681_v33, 4  ;;  %v12682_v57 = vld [vmem:[#allocation106_spill] sm:$0xff] }
 0x387   :  { %2094 = vrot.lane.b32.xlu0 %v8495_v60, %s6909_s12  ;;  %v9116_v27 = vpop.permute.xlu1 %1998  ;;  %v2410_v37 = vrot.slane %v12682_v57, 4  ;;  %v2457_v48 = vrot.slane %v2134_v45, 4  ;;  %v2458_v0 = vrot.slane %v2135_v51, 4  ;;  %v12697_v60 = vld [vmem:[#allocation52_spill] sm:$0xff] }
 0x388   :  { %12680 = vst [vmem:[#allocation127_spill] sm:$0xff] %v9116_v27  ;;  %2817 = vmatpush.bf16.msra.mxu1 %v2649_v38  ;;  %2830 = vmatpush.bf16.msra.mxu2 %v2650_v62 }
 0x389   :  { %v1997_v17 = vpop.permute.xlu0 %1996  ;;  %2679 = vperm.xlu2 %6808, %v2676_v46   ;;  %v2569_v46 = vsel %vm66_vm0, %v1972_v10, %v2409_v28  ;;  %v2570_v33 = vsel %vm66_vm0, %v1973_v53, %v2410_v37  ;;  %v12686_v37 = vld [vmem:[#allocation88_spill] sm:$0xff] }
 0x38a   :  { %v2020_v16 = vsel %vm592_vm7, %v8969_v1, %v1997_v17  ;;  %v2021_v12 = vsel %vm592_vm7, %v1997_v17, %v9116_v27 }
 0x38b   :  { %v2053_v38 = vmul.f32 %v2020_v16, %v12670_v25  ;;  %v2054_v62 = vmul.f32 %v2021_v12, %v12667_v9  ;;  %v9128_v61 = vpop.permute.xlu2 %2164  ;;  %v12683_v16 = vld [vmem:[#allocation97_spill] sm:$0xff]  ;;  %v12684_v12 = vld [vmem:[#allocation15_spill] sm:$0xff] }
 0x38c   :  { %v2176_v54 = vsel %vm592_vm7, %v12684_v12, %v12683_v16  ;;  %v12690_v16 = vld [vmem:[#allocation43_spill] sm:$0xff] }
 0x38d   :  { %1930 = vrot.lane.b32.xlu1 %v9041_v42, %s6909_s12  ;;  %v2585_v40 = vsel %vm66_vm0, %v2053_v38, %v2457_v48  ;;  %v2586_v57 = vsel %vm66_vm0, %v2054_v62, %v2458_v0  ;;  %v12685_v0 = vld [vmem:[#allocation17_spill] sm:$0xff]  ;;  %v2096_v48 = vsel %vm477_vm6, %v12686_v37, %v8572_v56  ;;  %v12692_v25 = vld [vmem:[#allocation35_spill] sm:$0xff] }
 0x38e   :  { %v2633_v17 = vpack.c.bf16 %v2585_v40, %v2569_v46  ;;  %v2634_v45 = vpack.c.bf16 %v2586_v57, %v2570_v33  ;;  %v2209_v53 = vmul.f32 %v2176_v54, %v12685_v0  ;;  %v12687_v38 = vld [vmem:[#allocation117_spill] sm:$0xff]  ;;  %v9158_v40 = vmul.f32 %v2096_v48, %v7921_v50  ;;  %v12688_v57 = vld [vmem:[#allocation99_spill] sm:$0xff]  ;;  %v12691_v48 = vld [vmem:[#allocation58_spill] sm:$0xff] }
 0x38f   :  { %2010 = vrot.lane.b32.xlu0 %v9073_v30, %s6908_s1  ;;  %v9138_v51 = vpop.permute.xlu1 %2260  ;;  %v12689_v54 = vld [vmem:[#allocation109_spill] sm:$0xff]  ;;  %v12695_v30 = vld [vmem:[#allocation103_spill] sm:$0xff] }
 0x390   :  { %2818 = vmatpush.bf16.msra.mxu1 %v2633_v17  ;;  %2831 = vmatpush.bf16.msra.mxu2 %v2634_v45  ;;  %v2499_v46 = vrot.slane %v2209_v53, 4  ;;  %v2180_v47 = vsel %vm592_vm7, %v12690_v16, %v12689_v54  ;;  %v2181_v56 = vsel %vm592_vm7, %v12689_v54, %v8737_v26  ;;  %v12694_v54 = vld [vmem:[#allocation81_spill] sm:$0xff] }
 0x391   :  { %v9143_v10 = vpop.permute.xlu0 %2162  ;;  %v2213_v9 = vmul.f32 %v2180_v47, %v12695_v30  ;;  %v12702_v47 = vld [vmem:[#allocation121_spill] sm:$0xff] }
 0x393   :  { %v9145_v28 = vpop.permute.xlu2 %2262  ;;  %6424 = vmatmul.msk.bf16.vlgmr.msra.gmra.mxu1 %vm62_vm1, %v9024_v23  ;;  %6425 = vmatmul.msk.bf16.vlgmr.msra.gmra.mxu2 %vm62_vm1, %v9024_v23  ;;  %v2503_v59 = vrot.slane %v2213_v9, 4 }
 0x395   :  { %2012 = vrot.lane.b32.xlu1 %v12687_v38, %s6908_s1  ;;  %v12693_v38 = vld [vmem:[#allocation96_spill] sm:$0xff] }
 0x396   :  { %v2099_v16 = vsel %vm477_vm6, %v8674_v36, %v12693_v38  ;;  %v2100_v26 = vsel %vm477_vm6, %v12693_v38, %v8760_v32  ;;  %v2536_v36 = vrot.slane %v12699_v4, 4  ;;  %v12701_v32 = vld [vmem:[#allocation115_spill] sm:$0xff]  ;;  %v12705_v4 = vld [vmem:[#allocation60_spill] sm:$0xff] }
 0x397   :  { %v2345_v62 = vpop.permute.xlu1 %2344  ;;  %v2127_v38 = vsel %vm477_vm6, %v12701_v32, %v12686_v37  ;;  %v12707_v37 = vld [vmem:[#allocation123_spill] sm:$0xff] }
 0x398   :  { %v2365_v33 = vsel %vm592_vm7, %v2345_v62, %v9063_v8  ;;  %v2015_v32 = vsel %vm592_vm7, %v12707_v37, %v8772_v41  ;;  %v12711_v8 = vld [vmem:[#allocation39_spill] sm:$0xff] }
 0x399   :  { %v2398_v17 = vmul.f32 %v2365_v33, %v12688_v57  ;;  %v9163_v45 = vpop.permute.xlu0 %2342  ;;  %v2452_v33 = vrot.slane %v9158_v40, 4  ;;  %v2531_v40 = vrot.slane %v12697_v60, 4  ;;  %v2048_v27 = vmul.f32 %v2015_v32, %v7918_v21 }
 0x39a   :  { %v2364_v53 = vsel %vm592_vm7, %v9163_v45, %v2345_v62  ;;  %v2595_v62 = vsel %vm66_vm0, %v12694_v54, %v2499_v46  ;;  %v2278_v46 = vsel %vm477_vm6, %v12702_v47, %v8850_v20  ;;  %v9206_v54 = vmul.f32 %v2099_v16, %v12705_v4 }
 0x39b   :  { %v2670_v13 = vpack.c.bf16 %v2398_v17, %v2398_v17  ;;  %v2397_v11 = vmul.f32 %v2364_v53, %v12692_v25  ;;  %v9175_v52 = vpop.permute.xlu2 %2084  ;;  %v12696_v17 = vld [vmem:[#allocation104_spill] sm:$0xff]  ;;  %v2277_v32 = vsel %vm477_vm6, %v8954_v22, %v12702_v47 }
 0x39c   :  { %v2214_v42 = vmul.f32 %v2181_v56, %v12696_v17  ;;  %v12704_v56 = vld [vmem:[#allocation122_spill] sm:$0xff] }
 0x39d   :  { %v2669_v53 = vpack.c.bf16 %v2397_v11, %v2397_v11  ;;  %v2719_v29 = vsel %vm1305_vm9, %v2670_v13, 0  ;;  %v12703_v11 = vld [vmem:[#allocation118_spill] sm:$0xff] }
 0x39e   :  { %2881 = vmatpush.bf16.msrb.mxu2 %v2719_v29  ;;  %v2358_v13 = vsel %vm592_vm7, %v12704_v56, %v12703_v11  ;;  %v12706_v29 = vld [vmem:[#allocation105_spill] sm:$0xff]  ;;  %v12709_v56 = vld [vmem:[#allocation107_spill] sm:$0xff]  ;;  %v2504_v24 = vrot.slane %v2214_v42, 4 }
 0x39f   :  { %v9202_v60 = vpop.permute.xlu1 %2226  ;;  %v2716_v6 = vsel %vm1305_vm9, %v2669_v53, 0  ;;  %v9209_v12 = vmul.f32 %v2100_v26, %v12706_v29  ;;  %v12710_v53 = vld [vmem:[#allocation101_spill] sm:$0xff]  ;;  %v2311_v5 = vmul.f32 %v2278_v46, %v12706_v29  ;;  %v2391_v41 = vmul.f32 %v2358_v13, %v12695_v30 }
 0x3a0   :  { %v2305_v20 = vsel %vm477_vm6, %v9202_v60, %v12708_v55  ;;  %2868 = vmatpush.bf16.msrb.mxu1 %v2716_v6  ;;  %v2128_v25 = vmul.f32 %v2127_v38, %v12710_v53  ;;  %v2359_v55 = vsel %vm592_vm7, %v12703_v11, %v9050_v7  ;;  %v2014_v6 = vsel %vm592_vm7, %v9090_v15, %v12707_v37  ;;  %v12713_v7 = vld [vmem:[#allocation124_spill] sm:$0xff]  ;;  %v12714_v37 = vld [vmem:[#allocation90_spill] sm:$0xff] }
 0x3a1   :  { %v2306_v57 = vmul.f32 %v2305_v20, %v12710_v53  ;;  %v9219_v16 = vpop.permute.xlu0 %1886  ;;  %v12712_v20 = vld [vmem:[#allocation108_spill] sm:$0xff]  ;;  %v2455_v46 = vrot.slane %v9206_v54, 4  ;;  %v2456_v13 = vrot.slane %v9209_v12, 4  ;;  %v2018_v11 = vsel %vm592_vm7, %v8990_v14, %v12713_v7  ;;  %v12716_v54 = vld [vmem:[#allocation114_spill] sm:$0xff] }
 0x3a2   :  { %v9246_v26 = vsel %vm66_vm0, %v12714_v37, %v2503_v59  ;;  %v2403_v38 = vrot.slane %v12716_v54, 4  ;;  %v2362_v12 = vsel %vm592_vm7, %v8936_v49, %v9009_v3  ;;  %v2392_v22 = vmul.f32 %v2359_v55, %v12696_v17 }
 0x3a3   :  { %v9232_v9 = vpop.permute.xlu2 %1922  ;;  %v2611_v42 = vsel %vm66_vm0, %v2306_v57, %v2531_v40  ;;  %v12715_v57 = vld [vmem:[#allocation67_spill] sm:$0xff]  ;;  %v2451_v14 = vrot.slane %v2128_v25, 4  ;;  %v2663_v47 = vpack.c.bf16 %v2391_v41, %v2391_v41  ;;  %v2580_v59 = vsel %vm66_vm0, %v2048_v27, %v2452_v33  ;;  %v12717_v25 = vld [vmem:[#allocation70_spill] sm:$0xff] }
 0x3a4   :  { %v2643_v35 = vpack.c.bf16 %v2611_v42, %v2595_v62  ;;  %v9250_v40 = vsel %vm66_vm0, %v12715_v57, %v2504_v24  ;;  %v2047_v62 = vmul.f32 %v2014_v6, %v12685_v0  ;;  %v2616_v37 = vsel %vm66_vm0, %v2311_v5, %v2536_v36 }
 0x3a5   :  { %v2310_v24 = vmul.f32 %v2277_v32, %v12705_v4  ;;  %v2051_v54 = vmul.f32 %v2018_v11, %v12695_v30  ;;  %v2395_v41 = vmul.f32 %v2362_v12, %v12717_v25  ;;  %v1937_v36 = vsel %vm477_vm6, %v8941_v44, %v9027_v63 }
 0x3a6   :  { %2739 = vmatpush.bf16.msra.mxu3 %v2643_v35  ;;  %v2019_v35 = vsel %vm592_vm7, %v12713_v7, %v8969_v1  ;;  %v2664_v55 = vpack.c.bf16 %v2392_v22, %v2392_v22  ;;  %v2579_v6 = vsel %vm66_vm0, %v2047_v62, %v2451_v14  ;;  %v2184_v1 = vsel %vm592_vm7, %v8755_v58, %v9143_v10 }
 0x3a7   :  { %v1905_v42 = vpop.permute.xlu1 %1904  ;;  %v2185_v32 = vsel %vm592_vm7, %v9143_v10, %v9128_v61  ;;  %v12718_v44 = vrot.slane %v12691_v48, 4  ;;  %v1970_v22 = vmul.f32 %v1937_v36, %v12705_v4  ;;  %v12719_v62 = vrot.slane %v12698_v18, 4 }
 0x3a8   :  { %v1934_v57 = vsel %vm477_vm6, %v1905_v42, %v8821_v19  ;;  %v1965_v49 = vsel %vm477_vm6, %v9219_v16, %v1905_v42  ;;  %v1938_v19 = vsel %vm477_vm6, %v9027_v63, %v12679_v2  ;;  %v2052_v2 = vmul.f32 %v2019_v35, %v12696_v17  ;;  %v12720_v42 = vld [vmem:[#allocation65_spill] sm:$0xff] }
 0x3a9   :  { %v1966_v27 = vmul.f32 %v1965_v49, %v12710_v53  ;;  %v1967_v5 = vmul.f32 %v1934_v57, %v7921_v50  ;;  %v1921_v33 = vpop.permute.xlu0 %1920  ;;  %v2363_v63 = vsel %vm592_vm7, %v9009_v3, %v9163_v45  ;;  %v1971_v10 = vmul.f32 %v1938_v19, %v12706_v29  ;;  %v12808_v29 = vld [vmem:[#allocation41_spill] sm:$0xff] }
 0x3aa   :  { %v2648_v48 = vpack.c.bf16 %v2616_v37, %v9250_v40  ;;  %v2217_v14 = vmul.f32 %v2184_v1, %v12717_v25  ;;  %v2218_v49 = vmul.f32 %v2185_v32, %v12720_v42  ;;  %v2698_v3 = vsel %vm1305_vm9, %v2663_v47, 0  ;;  %v12725_v32 = vld [vmem:[#allocation91_spill] sm:$0xff] }
 0x3ab   :  { %v9285_v7 = vpop.permute.xlu2 %2002  ;;  %v2563_v11 = vsel %vm66_vm0, %v1966_v27, %v2403_v38  ;;  %v2564_v57 = vsel %vm66_vm0, %v1967_v5, %v12718_v44  ;;  %v2615_v38 = vsel %vm66_vm0, %v2310_v24, %v12719_v62  ;;  %v2701_v45 = vsel %vm1305_vm9, %v2664_v55, 0  ;;  %v12726_v44 = vld [vmem:[#allocation13_spill] sm:$0xff] }
 0x3ac   :  { %v2627_v12 = vpack.c.bf16 %v2579_v6, %v2563_v11  ;;  %v2628_v58 = vpack.c.bf16 %v2580_v59, %v2564_v57  ;;  %v12721_v59 = vld [vmem:[#allocation119_spill] sm:$0xff]  ;;  %v2667_v27 = vpack.c.bf16 %v2395_v41, %v2395_v41  ;;  %v2396_v5 = vmul.f32 %v2363_v63, %v12720_v42  ;;  %v12722_v41 = vld [vmem:[#allocation72_spill] sm:$0xff] }
 0x3ad   :  { %v2412_v35 = vrot.slane %v12721_v59, 4  ;;  %v2583_v37 = vsel %vm66_vm0, %v2051_v54, %v2455_v46  ;;  %v2103_v40 = vsel %vm477_vm6, %v8770_v34, %v9034_v31  ;;  %v2282_v47 = vsel %vm477_vm6, %v9138_v51, %v9145_v28 }
 0x3ae   :  { %2740 = vmatpush.bf16.msra.mxu3 %v2627_v12  ;;  %2753 = vmatpush.bf16.msrb.mxu0 %v2628_v58  ;;  %v2647_v24 = vpack.c.bf16 %v2615_v38, %v9246_v26  ;;  %v2584_v36 = vsel %vm66_vm0, %v2052_v2, %v2456_v13  ;;  %v2539_v19 = vrot.slane %v12722_v41, 4  ;;  %v2281_v55 = vsel %vm477_vm6, %v9048_v39, %v9138_v51  ;;  %v12727_v12 = vld [vmem:[#allocation127_spill] sm:$0xff] }
 0x3af   :  { %v2001_v18 = vpop.permute.xlu1 %2000  ;;  %v12723_v34 = vrot.slane %v12711_v8, 4  ;;  %v12724_v26 = vrot.slane %v12700_v43, 4  ;;  %v2507_v54 = vrot.slane %v2217_v14, 4  ;;  %v2508_v1 = vrot.slane %v2218_v49, 4  ;;  %v12729_v38 = vld [vmem:[#allocation35_spill] sm:$0xff] }
 0x3b0   :  { %v2104_v39 = vsel %vm477_vm6, %v9034_v31, %v9175_v52  ;;  %v2136_v11 = vmul.f32 %v2103_v40, %v12725_v32  ;;  %v2315_v57 = vmul.f32 %v2282_v47, %v12726_v44  ;;  %v2668_v8 = vpack.c.bf16 %v2396_v5, %v2396_v5 }
 0x3b1   :  { %v2167_v6 = vpop.permute.xlu0 %2166  ;;  %6418 = vmatmul.msk.bf16.vlgmr.msra.gmra.mxu3 %vm62_vm1, %v9024_v23  ;;  %6419 = vmatmul.msk.bf16.vlgmr.msrb.gmra.mxu0 %vm62_vm1, %v9024_v23  ;;  %v2567_v46 = vsel %vm66_vm0, %v1970_v22, %v12723_v34  ;;  %v2568_v13 = vsel %vm66_vm0, %v1971_v10, %v12724_v26  ;;  %v2710_v43 = vsel %vm1305_vm9, %v2667_v27, 0  ;;  %v2314_v63 = vmul.f32 %v2281_v55, %v12725_v32  ;;  %v12728_v10 = vld [vmem:[#allocation135_spill] sm:$0xff]  ;;  %v12731_v27 = vld [vmem:[#allocation80_spill] sm:$0xff] }
 0x3b2   :  { %2790 = vmatpush.bf16.msrb.mxu3 %v2698_v3  ;;  %2803 = vmatpush.bf16.msra.mxu0 %v2701_v45  ;;  %v2186_v51 = vsel %vm592_vm7, %v9128_v61, %v2167_v6  ;;  %v2022_v58 = vsel %vm592_vm7, %v12727_v12, %v2001_v18  ;;  %v2023_v31 = vsel %vm592_vm7, %v2001_v18, %v9285_v7  ;;  %v12730_v3 = vld [vmem:[#allocation133_spill] sm:$0xff]  ;;  %v12732_v18 = vld [vmem:[#allocation34_spill] sm:$0xff]  ;;  %v2459_v55 = vrot.slane %v2136_v11, 4 }
 0x3b3   :  { %v9337_v2 = vpop.permute.xlu2 %2348  ;;  %v2631_v61 = vpack.c.bf16 %v2583_v37, %v2567_v46  ;;  %v2137_v22 = vmul.f32 %v2104_v39, %v12726_v44  ;;  %v1941_v62 = vsel %vm477_vm6, %v12728_v10, %v1921_v33  ;;  %v2219_v14 = vmul.f32 %v2186_v51, %v12729_v38  ;;  %v12734_v39 = vld [vmem:[#allocation11_spill] sm:$0xff] }
 0x3b4   :  { %v2632_v49 = vpack.c.bf16 %v2584_v36, %v2568_v13  ;;  %v2366_v45 = vsel %vm592_vm7, %v12730_v3, %v9337_v2  ;;  %v2603_v5 = vsel %vm66_vm0, %v12731_v27, %v2507_v54  ;;  %v2604_v37 = vsel %vm66_vm0, %v12732_v18, %v2508_v1 }
 0x3b5   :  { %v2055_v40 = vmul.f32 %v2022_v58, %v12717_v25  ;;  %v2056_v47 = vmul.f32 %v2023_v31, %v12720_v42  ;;  %v12733_v36 = vrot.slane %v12709_v56, 4  ;;  %v1974_v34 = vmul.f32 %v1941_v62, %v12725_v32  ;;  %v12735_v56 = vld [vmem:[#allocation113_spill] sm:$0xff]  ;;  %v12736_v31 = vld [vmem:[#allocation99_spill] sm:$0xff]  ;;  %v12793_v32 = vld [vmem:[#allocation28_spill] sm:$0xff] }
 0x3b6   :  { %2791 = vmatpush.bf16.msrb.mxu3 %v2647_v24  ;;  %2804 = vmatpush.bf16.msra.mxu0 %v2648_v48  ;;  %v1942_v48 = vsel %vm477_vm6, %v1921_v33, %v9232_v9  ;;  %v2713_v33 = vsel %vm1305_vm9, %v2668_v8, 0  ;;  %v2619_v26 = vsel %vm66_vm0, %v2314_v63, %v2539_v19  ;;  %v2460_v13 = vrot.slane %v2137_v22, 4  ;;  %v12799_v42 = vld [vmem:[#allocation24_spill] sm:$0xff] }
 0x3b7   :  { %v9360_v24 = vpop.permute.xlu1 %2168  ;;  %v2620_v41 = vsel %vm66_vm0, %v2315_v57, %v12733_v36  ;;  %v1975_v54 = vmul.f32 %v1942_v48, %v12726_v44  ;;  %v2509_v1 = vrot.slane %v2219_v14, 4  ;;  %v2399_v51 = vmul.f32 %v2366_v45, %v12734_v39  ;;  %v12739_v14 = vld [vmem:[#allocation74_spill] sm:$0xff] }
 0x3b8   :  { %v2187_v46 = vsel %vm592_vm7, %v2167_v6, %v9360_v24  ;;  %v2541_v12 = vrot.slane %v12735_v56, 4  ;;  %v2651_v57 = vpack.c.bf16 %v2619_v26, %v2603_v5  ;;  %v2652_v58 = vpack.c.bf16 %v2620_v41, %v2604_v37  ;;  %v12741_v36 = vld [vmem:[#allocation98_spill] sm:$0xff] }
 0x3b9   :  { %v2265_v8 = vpop.permute.xlu0 %2264  ;;  %v2220_v6 = vmul.f32 %v2187_v46, %v12736_v31  ;;  %v2587_v19 = vsel %vm66_vm0, %v2055_v40, %v2459_v55  ;;  %v2588_v63 = vsel %vm66_vm0, %v2056_v47, %v2460_v13  ;;  %v12738_v22 = vrot.slane %v12712_v20, 4 }
 0x3ba   :  { %2792 = vmatpush.bf16.msrb.mxu3 %v2631_v61  ;;  %2805 = vmatpush.bf16.msra.mxu0 %v2632_v49  ;;  %v2283_v11 = vsel %vm477_vm6, %v9145_v28, %v2265_v8  ;;  %v2671_v62 = vpack.c.bf16 %v2399_v51, %v2399_v51  ;;  %v2572_v28 = vsel %vm66_vm0, %v1975_v54, %v2412_v35 }
 0x3bb   :  { %v2571_v10 = vsel %vm66_vm0, %v1974_v34, %v12738_v22  ;;  %v2605_v49 = vsel %vm66_vm0, %v12739_v14, %v2509_v1  ;;  %v9388_v3 = vpop.permute.xlu2 %2090  ;;  %v2636_v5 = vpack.c.bf16 %v2588_v63, %v2572_v28  ;;  %v2510_v40 = vrot.slane %v2220_v6, 4  ;;  %v12742_v34 = vld [vmem:[#allocation77_spill] sm:$0xff] }
 0x3bc   :  { %v2635_v45 = vpack.c.bf16 %v2587_v19, %v2571_v10  ;;  %v2722_v55 = vsel %vm1305_vm9, %v2671_v62, 0 }
 0x3bd   :  { %v2606_v46 = vsel %vm66_vm0, %v12742_v34, %v2510_v40 }
 0x3be   :  { %2842 = vmatpush.bf16.msra.mxu3 %v2710_v43  ;;  %2855 = vmatpush.bf16.msrb.mxu0 %v2713_v33  ;;  %v12737_v43 = vld [vmem:[#allocation53_spill] sm:$0xff]  ;;  %v12740_v33 = vld [vmem:[#allocation111_spill] sm:$0xff] }
 0x3bf   :  { %v2316_v61 = vmul.f32 %v2283_v11, %v12737_v43  ;;  %v2267_v47 = vpop.permute.xlu1 %2266  ;;  %v2542_v59 = vrot.slane %v12740_v33, 4 }
 0x3c0   :  { %v2284_v20 = vsel %vm477_vm6, %v2265_v8, %v2267_v47 }
 0x3c1   :  { %v2621_v48 = vsel %vm66_vm0, %v2316_v61, %v2541_v12  ;;  %v2317_v35 = vmul.f32 %v2284_v20, %v12741_v36  ;;  %v2087_v41 = vpop.permute.xlu0 %2086  ;;  %6422 = vmatmul.msk.bf16.vlgmr.msrb.gmra.mxu3 %vm62_vm1, %v9024_v23  ;;  %6423 = vmatmul.msk.bf16.vlgmr.msra.gmra.mxu0 %vm62_vm1, %v9024_v23 }
 0x3c2   :  { %2843 = vmatpush.bf16.msra.mxu3 %v2651_v57  ;;  %2856 = vmatpush.bf16.msrb.mxu0 %v2652_v58  ;;  %v2653_v37 = vpack.c.bf16 %v2621_v48, %v2605_v49  ;;  %v2105_v8 = vsel %vm477_vm6, %v9175_v52, %v2087_v41  ;;  %v12743_v52 = vld [vmem:[#allocation126_spill] sm:$0xff] }
 0x3c3   :  { %v2622_v26 = vsel %vm66_vm0, %v2317_v35, %v2542_v59  ;;  %v9401_v1 = vpop.permute.xlu2 %1928  ;;  %v2138_v12 = vmul.f32 %v2105_v8, %v12737_v43 }
 0x3c4   :  { %2869 = vmatpush.bf16.msrb.mxu1 %v2653_v37  ;;  %v2654_v13 = vpack.c.bf16 %v2622_v26, %v2606_v46  ;;  %v12744_v37 = vld [vmem:[#allocation129_spill] sm:$0xff] }
 0x3c5   :  { %v2461_v63 = vrot.slane %v2138_v12, 4  ;;  %v2414_v40 = vrot.slane %v12744_v37, 4  ;;  %v12745_v12 = vld [vmem:[#allocation110_spill] sm:$0xff] }
 0x3c6   :  { %2844 = vmatpush.bf16.msra.mxu3 %v2635_v45  ;;  %2857 = vmatpush.bf16.msrb.mxu0 %v2636_v5 }
 0x3c7   :  { %2882 = vmatpush.bf16.msrb.mxu2 %v2654_v13  ;;  %v2089_v54 = vpop.permute.xlu1 %2088 }
 0x3c8   :  { %v2106_v6 = vsel %vm477_vm6, %v2087_v41, %v2089_v54 }
 0x3c9   :  { %v1925_v51 = vpop.permute.xlu0 %1924  ;;  %v2139_v62 = vmul.f32 %v2106_v6, %v12741_v36 }
 0x3ca   :  { %2894 = vmatpush.bf16.msrb.mxu3 %v2722_v55  ;;  %v1943_v56 = vsel %vm477_vm6, %v9232_v9, %v1925_v51  ;;  %v2413_v9 = vrot.slane %v12743_v52, 4  ;;  %v12747_v52 = vld [vmem:[#allocation73_spill] sm:$0xff] }
 0x3cb   :  { %v1976_v57 = vmul.f32 %v1943_v56, %v12737_v43  ;;  %v9412_v61 = vpop.permute.xlu2 %2174  ;;  %v2462_v20 = vrot.slane %v2139_v62, 4 }
 0x3cd   :  { %v2573_v28 = vsel %vm66_vm0, %v1976_v57, %v2413_v9  ;;  %v2543_v57 = vrot.slane %v12745_v12, 4 }
 0x3cf   :  { %v1927_v11 = vpop.permute.xlu1 %1926 }
 0x3d0   :  { %v1944_v10 = vsel %vm477_vm6, %v1925_v51, %v1927_v11 }
 0x3d1   :  { %v2005_v58 = vpop.permute.xlu0 %2004  ;;  %6426 = vmatmul.msk.bf16.vlgmr.msra.gmra.mxu3 %vm62_vm1, %v9024_v23  ;;  %6427 = vmatmul.msk.bf16.vlgmr.msrb.gmra.mxu0 %vm62_vm1, %v9024_v23  ;;  %v1977_v45 = vmul.f32 %v1944_v10, %v12741_v36  ;;  %v12788_v36 = vld [vmem:[#allocation38_spill] sm:$0xff] }
 0x3d2   :  { %v2024_v19 = vsel %vm592_vm7, %v9285_v7, %v2005_v58 }
 0x3d3   :  { %v2057_v22 = vmul.f32 %v2024_v19, %v12729_v38  ;;  %v2574_v55 = vsel %vm66_vm0, %v1977_v45, %v2414_v40  ;;  %v9435_v26 = vpop.permute.xlu2 %2092  ;;  %v12749_v40 = vld [vmem:[#allocation120_spill] sm:$0xff] }
 0x3d5   :  { %v2589_v49 = vsel %vm66_vm0, %v2057_v22, %v2461_v63  ;;  %v12748_v63 = vld [vmem:[#allocation83_spill] sm:$0xff] }
 0x3d6   :  { %v2637_v48 = vpack.c.bf16 %v2589_v49, %v2573_v28  ;;  %v1945_v49 = vsel %vm477_vm6, %v1927_v11, %v9401_v1 }
 0x3d7   :  { %v2007_v7 = vpop.permute.xlu1 %2006 }
 0x3d8   :  { %v2025_v5 = vsel %vm592_vm7, %v2005_v58, %v2007_v7  ;;  %2870 = vmatpush.bf16.msrb.mxu1 %v2637_v48 }
 0x3d9   :  { %v2058_v33 = vmul.f32 %v2025_v5, %v12736_v31  ;;  %v2171_v59 = vpop.permute.xlu0 %2170 }
 0x3da   :  { %v2188_v35 = vsel %vm592_vm7, %v9360_v24, %v2171_v59  ;;  %v12746_v24 = vld [vmem:[#allocation14_spill] sm:$0xff] }
 0x3db   :  { %v2221_v41 = vmul.f32 %v2188_v35, %v12734_v39  ;;  %6428 = vmatmul.msk.bf16.vlgmr.msrb.gmra.mxu1 %vm62_vm1, %v9024_v23  ;;  %v2590_v46 = vsel %vm66_vm0, %v2058_v33, %v2462_v20  ;;  %v9452_v48 = vpop.permute.xlu2 %1932  ;;  %v12750_v33 = vld [vmem:[#allocation47_spill] sm:$0xff] }
 0x3dc   :  { %v2638_v13 = vpack.c.bf16 %v2590_v46, %v2574_v55  ;;  %v12752_v46 = vld [vmem:[#allocation130_spill] sm:$0xff] }
 0x3dd   :  { %v2511_v51 = vrot.slane %v2221_v41, 4  ;;  %v12751_v41 = vld [vmem:[#allocation12_spill] sm:$0xff] }
 0x3de   :  { %2883 = vmatpush.bf16.msrb.mxu2 %v2638_v13  ;;  %v2415_v13 = vrot.slane %v12752_v46, 4 }
 0x3df   :  { %v2269_v8 = vpop.permute.xlu1 %2268  ;;  %v2607_v22 = vsel %vm66_vm0, %v12748_v63, %v2511_v51  ;;  %v12780_v63 = vld [vmem:[#allocation23_spill] sm:$0xff] }
 0x3e0   :  { %v2285_v56 = vsel %vm477_vm6, %v2267_v47, %v2269_v8  ;;  %v2107_v47 = vsel %vm477_vm6, %v2089_v54, %v9388_v3  ;;  %v1978_v54 = vmul.f32 %v1945_v49, %v12746_v24 }
 0x3e1   :  { %v2318_v58 = vmul.f32 %v2285_v56, %v12746_v24  ;;  %v2351_v6 = vpop.permute.xlu0 %2350  ;;  %6429 = vmatmul.msk.bf16.vlgmr.msrb.gmra.mxu2 %vm62_vm1, %v9024_v23 }
 0x3e2   :  { %v2367_v19 = vsel %vm592_vm7, %v9337_v2, %v2351_v6  ;;  %v2140_v2 = vmul.f32 %v2107_v47, %v12746_v24  ;;  %v12753_v47 = vld [vmem:[#allocation15_spill] sm:$0xff] }
 0x3e3   :  { %v2400_v9 = vmul.f32 %v2367_v19, %v12747_v52  ;;  %v2623_v10 = vsel %vm66_vm0, %v2318_v58, %v2543_v57 }
 0x3e4   :  { %v2655_v62 = vpack.c.bf16 %v2623_v10, %v2607_v22  ;;  %v2463_v56 = vrot.slane %v2140_v2, 4 }
 0x3e5   :  { %v2672_v28 = vpack.c.bf16 %v2400_v9, %v2400_v9  ;;  %v2575_v9 = vsel %vm66_vm0, %v1978_v54, %v2415_v13 }
 0x3e6   :  { %2895 = vmatpush.bf16.msrb.mxu3 %v2655_v62 }
 0x3e7   :  { %v2353_v45 = vpop.permute.xlu1 %2352  ;;  %v2725_v5 = vsel %vm1305_vm9, %v2672_v28, 0  ;;  %v9475_v28 = vpop.permute.xlu2 %2679 }
 0x3e8   :  { %v2368_v37 = vsel %vm592_vm7, %v2351_v6, %v2353_v45  ;;  %v2386_v20 = vsel %vm592_vm7, %v2353_v45, %v12749_v40  ;;  %2907 = vmatpush.bf16.msra.mxu0 %v2725_v5 }
 0x3e9   :  { %v2401_v35 = vmul.f32 %v2368_v37, %v12750_v33  ;;  %v2402_v11 = vmul.f32 %v2386_v20, %v12751_v41  ;;  %v9462_v55 = vpop.permute.xlu0 %2008  ;;  %v12754_v20 = vld [vmem:[#allocation128_spill] sm:$0xff] }
 0x3ea   :  { %v2026_v51 = vsel %vm592_vm7, %v2007_v7, %v9462_v55  ;;  %v2208_v7 = vsel %vm592_vm7, %v9412_v61, %v12753_v47  ;;  %v2544_v54 = vrot.slane %v12754_v20, 4 }
 0x3eb   :  { %v2673_v12 = vpack.c.bf16 %v2401_v35, %v2401_v35  ;;  %v2674_v57 = vpack.c.bf16 %v2402_v11, %v2402_v11  ;;  %v2059_v58 = vmul.f32 %v2026_v51, %v12734_v39  ;;  %v2224_v35 = vmul.f32 %v2208_v7, %v12751_v41  ;;  %v12755_v51 = vld [vmem:[#allocation31_spill] sm:$0xff] }
 0x3ed   :  { %v2728_v6 = vsel %vm1305_vm9, %v2673_v12, 0  ;;  %v2731_v19 = vsel %vm1305_vm9, %v2674_v57, 0  ;;  %v2591_v22 = vsel %vm66_vm0, %v2059_v58, %v2463_v56  ;;  %v12756_v56 = vld [vmem:[#allocation84_spill] sm:$0xff] }
 0x3ee   :  { %2920 = vmatpush.bf16.msra.mxu1 %v2728_v6  ;;  %2933 = vmatpush.bf16.msra.mxu2 %v2731_v19  ;;  %v2639_v10 = vpack.c.bf16 %v2591_v22, %v2575_v9  ;;  %v2514_v6 = vrot.slane %v2224_v35, 4 }
 0x3ef   :  { %v2173_v62 = vpop.permute.xlu1 %2172 }
 0x3f0   :  { %v2189_v49 = vsel %vm592_vm7, %v2171_v59, %v2173_v62  ;;  %v2190_v2 = vsel %vm592_vm7, %v2173_v62, %v9412_v61  ;;  %v2768_v45 = vpop.f32.mrf.mxu1  ;;  %2896 = vmatpush.bf16.msrb.mxu3 %v2639_v10  ;;  %v12757_v10 = vld [vmem:[#allocation131_spill] sm:$0xff] }
 0x3f1   :  { %v2222_v5 = vmul.f32 %v2189_v49, %v12747_v52  ;;  %v2769_v37 = vadd.f32 %v2768_v45, %v9475_v28  ;;  %v2271_v40 = vpop.permute.xlu0 %2270  ;;  %v2223_v46 = vmul.f32 %v2190_v2, %v12750_v33  ;;  %v2545_v47 = vrot.slane %v12757_v10, 4  ;;  %v12758_v2 = vld [vmem:[#allocation116_spill] sm:$0xff] }
 0x3f2   :  { %v2286_v11 = vsel %vm477_vm6, %v2269_v8, %v2271_v40  ;;  %v2546_v45 = vrot.slane %v12758_v2, 4  ;;  %v12764_v2 = vld [vmem:[#allocation132_spill] sm:$0xff] }
 0x3f3   :  { %v2512_v13 = vrot.slane %v2222_v5, 4  ;;  %v9486_v59 = vmax.f32 %v2769_v37, 0.0  ;;  %v2319_v61 = vmul.f32 %v2286_v11, %v12755_v51  ;;  %6430 = vmatmul.msk.bf16.vlgmr.msrb.gmra.mxu3 %vm62_vm1, %v9024_v23  ;;  %v2513_v19 = vrot.slane %v2223_v46, 4  ;;  %v12759_v37 = vld [vmem:[#allocation51_spill] sm:$0xff]  ;;  %v12761_v46 = vld [vmem:[#allocation42_spill] sm:$0xff] }
 0x3f5   :  { %2980 = vrot.lane.b32.xlu2 %v9486_v59, %s6906_s4  ;;  %3058 = vrot.lane.b32.xlu0 %v9486_v59, %s6907_s8  ;;  %v2608_v12 = vsel %vm66_vm0, %v12756_v56, %v2512_v13  ;;  %v2624_v8 = vsel %vm66_vm0, %v2319_v61, %v2544_v54  ;;  %v12760_v54 = vld [vmem:[#allocation102_spill] sm:$0xff] }
 0x3f6   :  { %v2781_v57 = vpop.f32.mrf.mxu2  ;;  %v2656_v58 = vpack.c.bf16 %v2624_v8, %v2608_v12  ;;  %v2108_v8 = vsel %vm477_vm6, %v9388_v3, %v9435_v26 }
 0x3f7   :  { %v2782_v9 = vadd.f32 %v2781_v57, %v9475_v28  ;;  %v2273_v22 = vpop.permute.xlu1 %2272 }
 0x3f8   :  { %v2287_v7 = vsel %vm477_vm6, %v2271_v40, %v2273_v22  ;;  %v2288_v62 = vsel %vm477_vm6, %v2273_v22, %v9202_v60  ;;  %2908 = vmatpush.bf16.msra.mxu0 %v2656_v58  ;;  %v2770_v49 = vpop.f32.mrf.mxu1  ;;  %v2609_v40 = vsel %vm66_vm0, %v12761_v46, %v2513_v19  ;;  %v12762_v60 = vld [vmem:[#allocation16_spill] sm:$0xff] }
 0x3f9   :  { %v9504_v5 = vmax.f32 %v2782_v9, 0.0  ;;  %v2320_v20 = vmul.f32 %v2287_v7, %v12759_v37  ;;  %v2321_v35 = vmul.f32 %v2288_v62, %v12760_v54  ;;  %v2095_v11 = vpop.permute.xlu0 %2094  ;;  %v2610_v61 = vsel %vm66_vm0, %v12762_v60, %v2514_v6  ;;  %v12763_v7 = vld [vmem:[#allocation115_spill] sm:$0xff] }
 0x3fa   :  { %v2141_v9 = vmul.f32 %v2108_v8, %v12755_v51  ;;  %v2109_v3 = vsel %vm477_vm6, %v9435_v26, %v2095_v11  ;;  %v2110_v62 = vsel %vm477_vm6, %v2095_v11, %v12763_v7 }
 0x3fb   :  { %3322 = vrot.lane.b32.xlu1 %v9504_v5, %s6909_s12  ;;  %v2625_v13 = vsel %vm66_vm0, %v2320_v20, %v2545_v47  ;;  %v2626_v12 = vsel %vm66_vm0, %v2321_v35, %v2546_v45  ;;  %v2416_v45 = vrot.slane %v12764_v2, 4  ;;  %v2142_v26 = vmul.f32 %v2109_v3, %v12759_v37 }
 0x3fc   :  { %v2657_v57 = vpack.c.bf16 %v2625_v13, %v2609_v40  ;;  %v2658_v58 = vpack.c.bf16 %v2626_v12, %v2610_v61  ;;  %v2464_v20 = vrot.slane %v2141_v9, 4  ;;  %v2143_v13 = vmul.f32 %v2110_v62, %v12760_v54 }
 0x3fd   :  { %3398 = vrot.lane.b32.xlu2 %v9486_v59, %s6908_s1  ;;  %3320 = vrot.lane.b32.xlu0 %v9486_v59, %s6909_s12 }
 0x3fe   :  { %2921 = vmatpush.bf16.msra.mxu1 %v2657_v57  ;;  %2934 = vmatpush.bf16.msra.mxu2 %v2658_v58  ;;  %v2783_v19 = vpop.f32.mrf.mxu2  ;;  %v12765_v57 = vld [vmem:[#allocation134_spill] sm:$0xff]  ;;  %v12766_v58 = vld [vmem:[#allocation117_spill] sm:$0xff]  ;;  %v2466_v3 = vrot.slane %v2143_v13, 4 }
 0x3ff   :  { %v1931_v6 = vpop.permute.xlu1 %1930  ;;  %v2418_v19 = vrot.slane %v12766_v58, 4 }
 0x400   :  { %v1946_v22 = vsel %vm477_vm6, %v9401_v1, %v1931_v6  ;;  %v1948_v1 = vsel %vm477_vm6, %v9452_v48, %v9219_v16  ;;  %v1947_v40 = vsel %vm477_vm6, %v1931_v6, %v9452_v48  ;;  %v2417_v48 = vrot.slane %v12765_v57, 4 }
 0x401   :  { %v1979_v10 = vmul.f32 %v1946_v22, %v12755_v51  ;;  %v2011_v47 = vpop.permute.xlu0 %2010  ;;  %v1981_v16 = vmul.f32 %v1948_v1, %v12760_v54  ;;  %v1980_v12 = vmul.f32 %v1947_v40, %v12759_v37  ;;  %v2465_v22 = vrot.slane %v2142_v26, 4 }
 0x402   :  { %v2027_v49 = vsel %vm592_vm7, %v9462_v55, %v2011_v47 }
 0x403   :  { %v2060_v35 = vmul.f32 %v2027_v49, %v12747_v52  ;;  %v2576_v55 = vsel %vm66_vm0, %v1979_v10, %v2416_v45  ;;  %v2577_v62 = vsel %vm66_vm0, %v1980_v12, %v2417_v48  ;;  %v2578_v2 = vsel %vm66_vm0, %v1981_v16, %v2418_v19 }
 0x405   :  { %3400 = vrot.lane.b32.xlu2 %v9504_v5, %s6908_s1  ;;  %3060 = vrot.lane.b32.xlu0 %v9504_v5, %s6907_s8  ;;  %v2592_v11 = vsel %vm66_vm0, %v2060_v35, %v2464_v20 }
 0x406   :  { %v2640_v61 = vpack.c.bf16 %v2592_v11, %v2576_v55 }
 0x407   :  { %v2013_v8 = vpop.permute.xlu1 %2012 }
 0x408   :  { %v2028_v9 = vsel %vm592_vm7, %v2011_v47, %v2013_v8  ;;  %v2046_v6 = vsel %vm592_vm7, %v2013_v8, %v9090_v15  ;;  %2909 = vmatpush.bf16.msra.mxu0 %v2640_v61 }
 0x409   :  { %v2061_v10 = vmul.f32 %v2028_v9, %v12750_v33  ;;  %v2062_v7 = vmul.f32 %v2046_v6, %v12751_v41 }
 0x40b   :  { %6431 = vmatmul.msk.bf16.vlgmr.msra.gmra.mxu0 %vm62_vm1, %v9024_v23  ;;  %v2593_v49 = vsel %vm66_vm0, %v2061_v10, %v2465_v22  ;;  %v2594_v47 = vsel %vm66_vm0, %v2062_v7, %v2466_v3 }
 0x40c   :  { %v2641_v45 = vpack.c.bf16 %v2593_v49, %v2577_v62  ;;  %v2642_v15 = vpack.c.bf16 %v2594_v47, %v2578_v2 }
 0x40d   :  { %2982 = vrot.lane.b32.xlu0 %v9504_v5, %s6906_s4 }
 0x40e   :  { %2922 = vmatpush.bf16.msra.mxu1 %v2641_v45  ;;  %2935 = vmatpush.bf16.msra.mxu2 %v2642_v15 }
 0x410   :  { %v2820_v20 = vpop.f32.mrf.mxu1 }
 0x411   :  { %v2821_v35 = vadd.f32 %v2820_v20, %v9475_v28  ;;  %6432 = vmatmul.msk.bf16.vlgmr.msra.gmra.mxu1 %vm62_vm1, %v9024_v23  ;;  %6433 = vmatmul.msk.bf16.vlgmr.msra.gmra.mxu2 %vm62_vm1, %v9024_v23 }
 0x413   :  { %v9570_v1 = vmax.f32 %v2821_v35, 0.0 }
 0x415   :  { %12767 = vst [vmem:[#allocation125_spill] sm:$0xff] %v9570_v1  ;;  %3328 = vrot.lane.b32.xlu2 %v9570_v1, %s6909_s12  ;;  %2988 = vrot.lane.b32.xlu0 %v9570_v1, %s6906_s4 }
 0x416   :  { %3066 = vrot.lane.b32.xlu1 %v9570_v1, %s6907_s8  ;;  %v2833_v26 = vpop.f32.mrf.mxu2 }
 0x417   :  { %v2834_v40 = vadd.f32 %v2833_v26, %v9475_v28 }
 0x418   :  { %v2822_v13 = vpop.f32.mrf.mxu1 }
 0x419   :  { %v9579_v55 = vmax.f32 %v2834_v40, 0.0 }
 0x41b   :  { %12768 = vst [vmem:[#allocation21_spill] sm:$0xff] %v9579_v55 }
 0x41d   :  { %3406 = vrot.lane.b32.xlu0 %v9570_v1, %s6908_s1 }
 0x41e   :  { %2990 = vrot.lane.b32.xlu1 %v9579_v55, %s6906_s4  ;;  %v2835_v23 = vpop.f32.mrf.mxu2 }
 0x425   :  { %3068 = vrot.lane.b32.xlu0 %v9579_v55, %s6907_s8 }
 0x426   :  { %3408 = vrot.lane.b32.xlu1 %v9579_v55, %s6908_s1 }
 0x42d   :  { %3330 = vrot.lane.b32.xlu0 %v9579_v55, %s6909_s12 }
 0x42e   :  { %v2755_v11 = vpop.f32.mrf.mxu0 }
 0x42f   :  { %v2756_v45 = vadd.f32 %v2755_v11, %v9475_v28 }
 0x431   :  { %v9616_v20 = vmax.f32 %v2756_v45, 0.0 }
 0x434   :  { %v2742_v61 = vpop.f32.mrf.mxu3 }
 0x436   :  { %v2757_v16 = vpop.f32.mrf.mxu0 }
 0x43c   :  { %v2744_v12 = vpop.f32.mrf.mxu3 }
 0x43e   :  { %v9591_v8 = vpop.f32.mrf.mxu0 }
 0x444   :  { %v2794_v57 = vpop.f32.mrf.mxu3 }
 0x445   :  { %v2795_v45 = vadd.f32 %v2794_v57, %v9475_v28 }
 0x446   :  { %v2809_v48 = vpop.f32.mrf.mxu0 }
 0x44c   :  { %v2796_v58 = vpop.f32.mrf.mxu3 }
 0x44e   :  { %v9593_v19 = vpop.f32.mrf.mxu0 }
 0x44f   :  { %v2860_v46 = vadd.f32 %v9593_v19, %v9475_v28 }
 0x451   :  { %v9733_v34 = vmax.f32 %v2860_v46, 0.0 }
 0x453   :  { %12779 = vst [vmem:[#allocation93_spill] sm:$0xff] %v9733_v34 }
 0x454   :  { %v2846_v9 = vpop.f32.mrf.mxu3 }
 0x455   :  { %v2847_v57 = vadd.f32 %v2846_v9, %v9475_v28 }
 0x456   :  { %v2861_v6 = vpop.f32.mrf.mxu0 }
 0x458   :  { %v2872_v22 = vpop.f32.mrf.mxu1 }
 0x459   :  { %v2873_v3 = vadd.f32 %v2872_v22, %v9475_v28 }
 0x45b   :  { %v9596_v10 = vmax.f32 %v2873_v3, 0.0  ;;  %v2743_v3 = vadd.f32 %v2742_v61, %v9475_v28  ;;  %v9660_v61 = vmax.f32 %v2795_v45, 0.0 }
 0x45c   :  { %v2848_v7 = vpop.f32.mrf.mxu3 }
 0x45d   :  { %12769 = vst [vmem:[#allocation106_spill] sm:$0xff] %v9596_v10  ;;  %3336 = vrot.lane.b32.xlu0 %v9596_v10, %s6909_s12  ;;  %3074 = vrot.lane.b32.xlu1 %v9596_v10, %s6907_s8 }
 0x45e   :  { %12773 = vst [vmem:[#allocation43_spill] sm:$0xff] %v9660_v61 }
 0x460   :  { %v2874_v62 = vpop.f32.mrf.mxu1 }
 0x464   :  { %v2885_v49 = vpop.f32.mrf.mxu2 }
 0x465   :  { %v2886_v2 = vadd.f32 %v2885_v49, %v9475_v28  ;;  %3414 = vrot.lane.b32.xlu0 %v9596_v10, %s6908_s1  ;;  %2996 = vrot.lane.b32.xlu1 %v9596_v10, %s6906_s4  ;;  %v9649_v49 = vmax.f32 %v2743_v3, 0.0 }
 0x467   :  { %v9607_v47 = vmax.f32 %v2886_v2, 0.0  ;;  %v9628_v40 = vpop.permute.xlu0 %3058 }
 0x469   :  { %12770 = vst [vmem:[#allocation97_spill] sm:$0xff] %v9607_v47  ;;  %2998 = vrot.lane.b32.xlu2 %v9607_v47, %s6906_s4 }
 0x46c   :  { %v2887_v15 = vpop.f32.mrf.mxu2 }
 0x46d   :  { %3416 = vrot.lane.b32.xlu1 %v9607_v47, %s6908_s1  ;;  %3076 = vrot.lane.b32.xlu0 %v9607_v47, %s6907_s8 }
 0x46f   :  { %v9632_v23 = vpop.permute.xlu0 %3320 }
 0x471   :  { %3056 = vrot.lane.b32.xlu2 %v9616_v20, %s6907_s8 }
 0x475   :  { %3338 = vrot.lane.b32.xlu1 %v9607_v47, %s6909_s12  ;;  %3396 = vrot.lane.b32.xlu0 %v9616_v20, %s6908_s1 }
 0x476   :  { %v2898_v35 = vpop.f32.mrf.mxu3 }
 0x477   :  { %v9643_v6 = vpop.permute.xlu0 %3060 }
 0x479   :  { %3318 = vrot.lane.b32.xlu2 %v9616_v20, %s6909_s12 }
 0x47d   :  { %2978 = vrot.lane.b32.xlu1 %v9616_v20, %s6906_s4 }
 0x47e   :  { %v2900_v26 = vpop.f32.mrf.mxu3 }
 0x47f   :  { %v9658_v15 = vpop.permute.xlu0 %2982 }
 0x487   :  { %v9668_v26 = vpop.permute.xlu0 %2988 }
 0x488   :  { %v9630_v13 = vpop.f32.mrf.mxu0 }
 0x48e   :  { %v2924_v11 = vpop.f32.mrf.mxu1 }
 0x48f   :  { %v2925_v16 = vadd.f32 %v2924_v11, %v9475_v28  ;;  %v2808_v11 = vadd.f32 %v9591_v8, %v9475_v28  ;;  %v9687_v3 = vpop.permute.xlu0 %3406  ;;  %v2899_v8 = vadd.f32 %v2898_v35, %v9475_v28  ;;  %v3088_v35 = vsel %vm344_vm3, %v9628_v40, %v9643_v6 }
 0x490   :  { %v2913_v12 = vpop.f32.mrf.mxu0 }
 0x491   :  { %v9635_v48 = vmax.f32 %v2925_v16, 0.0  ;;  %v9679_v16 = vpop.permute.xlu2 %2980  ;;  %v9681_v12 = vmax.f32 %v2847_v57, 0.0  ;;  %v12777_v57 = vld [vmem:[#allocation26_spill] sm:$0xff] }
 0x493   :  { %12771 = vst [vmem:[#allocation88_spill] sm:$0xff] %v9635_v48  ;;  %3344 = vrot.lane.b32.xlu1 %v9635_v48, %s6909_s12  ;;  %3082 = vrot.lane.b32.xlu0 %v9635_v48, %s6907_s8 }
 0x494   :  { %3004 = vrot.lane.b32.xlu2 %v9635_v48, %s6906_s4  ;;  %v2937_v58 = vpop.f32.mrf.mxu2  ;;  %12774 = vst [vmem:[#allocation58_spill] sm:$0xff] %v9681_v12 }
 0x495   :  { %v2938_v22 = vadd.f32 %v2937_v58, %v9475_v28  ;;  %v9683_v58 = vpop.permute.xlu1 %3322 }
 0x496   :  { %v2926_v7 = vpop.f32.mrf.mxu1 }
 0x497   :  { %v9647_v62 = vmax.f32 %v2938_v22, 0.0  ;;  %v9685_v22 = vmax.f32 %v2808_v11, 0.0  ;;  %v9698_v7 = vmax.f32 %v2899_v8, 0.0  ;;  %v9708_v45 = vpop.permute.xlu0 %3068  ;;  %v9714_v11 = vmul.f32 %v3088_v35, %v12777_v57 }
 0x498   :  { %v3008_v35 = vsel %vm229_vm2, %v9679_v16, %v9658_v15 }
 0x499   :  { %12772 = vst [vmem:[#allocation109_spill] sm:$0xff] %v9647_v62  ;;  %v9696_v9 = vpop.permute.xlu2 %3398  ;;  %v9736_v14 = vmul.f32 %v3008_v35, %v12780_v63  ;;  %v2912_v35 = vadd.f32 %v9630_v13, %v9475_v28  ;;  %v12786_v13 = vld [vmem:[#allocation59_spill] sm:$0xff] }
 0x49a   :  { %12775 = vst [vmem:[#allocation96_spill] sm:$0xff] %v9685_v22 }
 0x49b   :  { %2958 = vrot.lane.b32.xlu1 %v9647_v62, %s6906_s4  ;;  %3422 = vrot.lane.b32.xlu0 %v9635_v48, %s6908_s1  ;;  %12776 = vst [vmem:[#allocation103_spill] sm:$0xff] %v9698_v7  ;;  %v9764_v51 = vmax.f32 %v2912_v35, 0.0 }
 0x49c   :  { %3394 = vrot.lane.b32.xlu2 %v9649_v49, %s6908_s1  ;;  %v2939_v2 = vpop.f32.mrf.mxu2  ;;  %12781 = vst [vmem:[#allocation18_spill] sm:$0xff] %v9736_v14 }
 0x49d   :  { %v9700_v2 = vpop.permute.xlu1 %3066  ;;  %12785 = vst [vmem:[#allocation122_spill] sm:$0xff] %v9764_v51 }
 0x49f   :  { %v9731_v57 = vpop.permute.xlu0 %3330 }
 0x4a0   :  { %12778 = vst [vmem:[#allocation52_spill] sm:$0xff] %v9731_v57 }
 0x4a1   :  { %v9716_v8 = vpop.permute.xlu2 %3400 }
 0x4a3   :  { %3062 = vrot.lane.b32.xlu1 %v9660_v61, %s6907_s8  ;;  %2976 = vrot.lane.b32.xlu0 %v9649_v49, %s6906_s4 }
 0x4a4   :  { %3084 = vrot.lane.b32.xlu2 %v9647_v62, %s6907_s8 }
 0x4a5   :  { %v9718_v60 = vpop.permute.xlu1 %2990 }
 0x4a9   :  { %v9738_v56 = vpop.permute.xlu2 %3328 }
 0x4aa   :  { %12782 = vst [vmem:[#allocation46_spill] sm:$0xff] %v9738_v56 }
 0x4ab   :  { %2984 = vrot.lane.b32.xlu1 %v9660_v61, %s6906_s4  ;;  %3054 = vrot.lane.b32.xlu0 %v9649_v49, %s6907_s8 }
 0x4ac   :  { %3313 = vrot.lane.b32.xlu2 %v9647_v62, %s6909_s12 }
 0x4ad   :  { %v9746_v19 = vpop.permute.xlu1 %3408 }
 0x4b3   :  { %3070 = vrot.lane.b32.xlu1 %v9681_v12, %s6907_s8  ;;  %3316 = vrot.lane.b32.xlu0 %v9649_v49, %s6909_s12 }
 0x4b4   :  { %3064 = vrot.lane.b32.xlu2 %v9685_v22, %s6907_s8 }
 0x4bb   :  { %3078 = vrot.lane.b32.xlu1 %v9698_v7, %s6907_s8  ;;  %3424 = vrot.lane.b32.xlu0 %v9647_v62, %s6908_s1 }
 0x4bc   :  { %2986 = vrot.lane.b32.xlu2 %v9685_v22, %s6906_s4 }
 0x4c3   :  { %3498 = vrot.lane.b32.xlu1 %v9714_v11, %s6909_s12  ;;  %3402 = vrot.lane.b32.xlu0 %v9660_v61, %s6908_s1  ;;  %v9750_v46 = vpop.permute.xlu2 %2998 }
 0x4c4   :  { %3326 = vrot.lane.b32.xlu2 %v9685_v22, %s6909_s12 }
 0x4cb   :  { %3238 = vrot.lane.b32.xlu1 %v9736_v14, %s6908_s1  ;;  %2994 = vrot.lane.b32.xlu0 %v9733_v34, %s6906_s4  ;;  %v3057_v24 = vpop.permute.xlu2 %3056 }
 0x4cc   :  { %3404 = vrot.lane.b32.xlu2 %v9685_v22, %s6908_s1  ;;  %v3087_v35 = vsel %vm344_vm3, %v3057_v24, %v9628_v40  ;;  %v3092_v40 = vsel %vm344_vm3, %v9700_v2, %v9708_v45  ;;  %v12807_v22 = vld [vmem:[#allocation50_spill] sm:$0xff] }
 0x4cd   :  { %v9791_v31 = vmul.f32 %v3087_v35, %v12788_v36  ;;  %v12791_v36 = vld [vmem:[#allocation37_spill] sm:$0xff] }
 0x4ce   :  { %v9817_v37 = vmul.f32 %v3092_v40, %v12791_v36 }
 0x4cf   :  { %v9748_v27 = vpop.permute.xlu0 %3336  ;;  %v9760_v63 = vpop.permute.xlu1 %3074 }
 0x4d0   :  { %12783 = vst [vmem:[#allocation121_spill] sm:$0xff] %v9748_v27  ;;  %v12796_v27 = vld [vmem:[#allocation45_spill] sm:$0xff] }
 0x4d1   :  { %12792 = vst [vmem:[#allocation39_spill] sm:$0xff] %v9817_v37 }
 0x4d3   :  { %3576 = vrot.lane.b32.xlu1 %v9714_v11, %s6908_s1  ;;  %3412 = vrot.lane.b32.xlu0 %v9733_v34, %s6908_s1  ;;  %v9788_v39 = vpop.permute.xlu2 %3318 }
 0x4d4   :  { %3324 = vrot.lane.b32.xlu2 %v9660_v61, %s6909_s12 }
 0x4d7   :  { %v9762_v18 = vpop.permute.xlu0 %3414  ;;  %v9770_v62 = vpop.permute.xlu1 %2996 }
 0x4d8   :  { %12784 = vst [vmem:[#allocation118_spill] sm:$0xff] %v9762_v18 }
 0x4db   :  { %3002 = vrot.lane.b32.xlu0 %v9764_v51, %s6906_s4 }
 0x4dc   :  { %3072 = vrot.lane.b32.xlu2 %v9733_v34, %s6907_s8 }
 0x4df   :  { %v9772_v47 = vpop.permute.xlu0 %3076  ;;  %v9793_v48 = vpop.permute.xlu1 %3416 }
 0x4e0   :  { %v3096_v28 = vsel %vm344_vm3, %v9760_v63, %v9772_v47  ;;  %12789 = vst [vmem:[#allocation112_spill] sm:$0xff] %v9793_v48 }
 0x4e1   :  { %v9778_v41 = vmul.f32 %v3096_v28, %v12786_v13 }
 0x4e3   :  { %12787 = vst [vmem:[#allocation123_spill] sm:$0xff] %v9778_v41  ;;  %3420 = vrot.lane.b32.xlu0 %v9764_v51, %s6908_s1  ;;  %3514 = vrot.lane.b32.xlu1 %v9778_v41, %s6909_s12 }
 0x4e4   :  { %3334 = vrot.lane.b32.xlu2 %v9733_v34, %s6909_s12  ;;  %v3012_v34 = vsel %vm229_vm2, %v9668_v26, %v9718_v60 }
 0x4e5   :  { %v9829_v10 = vmul.f32 %v3012_v34, %v12793_v32 }
 0x4e7   :  { %v9803_v13 = vpop.permute.xlu1 %3338  ;;  %12794 = vst [vmem:[#allocation108_spill] sm:$0xff] %v9829_v10 }
 0x4e8   :  { %12790 = vst [vmem:[#allocation107_spill] sm:$0xff] %v9803_v13  ;;  %v9823_v13 = vpop.permute.xlu0 %3396 }
 0x4eb   :  { %3000 = vrot.lane.b32.xlu0 %v9698_v7, %s6906_s4  ;;  %3496 = vrot.lane.b32.xlu1 %v9791_v31, %s6909_s12 }
 0x4ec   :  { %2992 = vrot.lane.b32.xlu2 %v9681_v12, %s6906_s4 }
 0x4ee   :  { %v9801_v28 = vpop.permute.xlu2 %3004 }
 0x4ef   :  { %v2979_v52 = vpop.permute.xlu1 %2978 }
 0x4f3   :  { %3160 = vrot.lane.b32.xlu0 %v9736_v14, %s6909_s12  ;;  %3574 = vrot.lane.b32.xlu1 %v9791_v31, %s6908_s1 }
 0x4f4   :  { %3410 = vrot.lane.b32.xlu2 %v9681_v12, %s6908_s1 }
 0x4f6   :  { %v9814_v35 = vpop.permute.xlu2 %3394 }
 0x4fb   :  { %3506 = vrot.lane.b32.xlu0 %v9817_v37, %s6909_s12 }
 0x4fc   :  { %3332 = vrot.lane.b32.xlu2 %v9681_v12, %s6909_s12  ;;  %v3016_v12 = vsel %vm229_vm2, %v9770_v62, %v9750_v46 }
 0x4fd   :  { %v9845_v43 = vmul.f32 %v3016_v12, %v12796_v27 }
 0x4fe   :  { %v3085_v44 = vpop.permute.xlu2 %3084 }
 0x4ff   :  { %12797 = vst [vmem:[#allocation114_spill] sm:$0xff] %v9845_v43 }
 0x503   :  { %3246 = vrot.lane.b32.xlu0 %v9829_v10, %s6908_s1 }
 0x504   :  { %3080 = vrot.lane.b32.xlu2 %v9764_v51, %s6907_s8 }
 0x505   :  { %v9835_v40 = vpop.permute.xlu0 %3082  ;;  %v9837_v36 = vpop.permute.xlu1 %3344 }
 0x506   :  { %12795 = vst [vmem:[#allocation124_spill] sm:$0xff] %v9837_v36  ;;  %v9842_v33 = vpop.permute.xlu2 %3313  ;;  %v3007_v36 = vsel %vm229_vm2, %v2979_v52, %v9679_v16 }
 0x507   :  { %v9856_v25 = vmul.f32 %v3007_v36, %v12799_v42 }
 0x50b   :  { %3254 = vrot.lane.b32.xlu0 %v9845_v43, %s6908_s1 }
 0x50c   :  { %3342 = vrot.lane.b32.xlu2 %v9764_v51, %s6909_s12 }
 0x50d   :  { %v9851_v34 = vpop.permute.xlu0 %3422  ;;  %v2959_v32 = vpop.permute.xlu1 %2958 }
 0x50e   :  { %12798 = vst [vmem:[#allocation119_spill] sm:$0xff] %v9851_v34  ;;  %v3065_v38 = vpop.permute.xlu2 %3064  ;;  %v12800_v34 = vld [vmem:[#allocation33_spill] sm:$0xff]  ;;  %v3020_v36 = vsel %vm229_vm2, %v9801_v28, %v2959_v32 }
 0x513   :  { %3236 = vrot.lane.b32.xlu0 %v9856_v25, %s6908_s1 }
 0x514   :  { %3418 = vrot.lane.b32.xlu2 %v9698_v7, %s6908_s1 }
 0x515   :  { %v2977_v12 = vpop.permute.xlu0 %2976  ;;  %v3063_v27 = vpop.permute.xlu1 %3062 }
 0x516   :  { %v3006_v51 = vsel %vm229_vm2, %v2977_v12, %v2979_v52  ;;  %v2987_v55 = vpop.permute.xlu2 %2986  ;;  %v12802_v52 = vld [vmem:[#allocation54_spill] sm:$0xff] }
 0x517   :  { %v9864_v18 = vmul.f32 %v3006_v51, %v12800_v34  ;;  %v9876_v54 = vmul.f32 %v3020_v36, %v12802_v52  ;;  %v12804_v51 = vld [vmem:[#allocation66_spill] sm:$0xff]  ;;  %v3011_v36 = vsel %vm229_vm2, %v2987_v55, %v9668_v26 }
 0x519   :  { %3234 = vrot.lane.b32.xlu1 %v9864_v18, %s6908_s1  ;;  %12803 = vst [vmem:[#allocation127_spill] sm:$0xff] %v9876_v54 }
 0x51c   :  { %3168 = vrot.lane.b32.xlu2 %v9829_v10, %s6909_s12 }
 0x51d   :  { %v3055_v16 = vpop.permute.xlu0 %3054  ;;  %v2985_v42 = vpop.permute.xlu1 %2984 }
 0x51e   :  { %v3086_v48 = vsel %vm344_vm3, %v3055_v16, %v3057_v24  ;;  %v9873_v57 = vpop.permute.xlu2 %3326  ;;  %v3118_v26 = vsel %vm344_vm3, %v3085_v44, %v3055_v16 }
 0x51f   :  { %12801 = vst [vmem:[#allocation72_spill] sm:$0xff] %v9873_v57  ;;  %v9879_v34 = vmul.f32 %v3086_v48, %v12804_v51  ;;  %v3037_v48 = vsel %vm229_vm2, %v2959_v32, %v2977_v12  ;;  %v3091_v32 = vsel %vm344_vm3, %v3065_v38, %v9700_v2  ;;  %v3100_v2 = vsel %vm344_vm3, %v9835_v40, %v3085_v44 }
 0x520   :  { %v9907_v1 = vmul.f32 %v3037_v48, %v12807_v22  ;;  %v3090_v44 = vsel %vm344_vm3, %v3063_v27, %v3065_v38  ;;  %v3010_v38 = vsel %vm229_vm2, %v2985_v42, %v2987_v55 }
 0x521   :  { %3572 = vrot.lane.b32.xlu0 %v9879_v34, %s6908_s1  ;;  %3136 = vrot.lane.b32.xlu1 %v9876_v54, %s6909_s12 }
 0x524   :  { %3584 = vrot.lane.b32.xlu2 %v9817_v37, %s6908_s1  ;;  %v9910_v37 = vmul.f32 %v3011_v36, %v12808_v29  ;;  %v12810_v36 = vld [vmem:[#allocation55_spill] sm:$0xff]  ;;  %v12812_v29 = vld [vmem:[#allocation68_spill] sm:$0xff] }
 0x525   :  { %v9887_v10 = vpop.permute.xlu0 %3316  ;;  %v9889_v24 = vpop.permute.xlu1 %3070  ;;  %v9926_v22 = vmul.f32 %v3091_v32, %v12810_v36 }
 0x526   :  { %v9891_v61 = vpop.permute.xlu2 %3404  ;;  %12809 = vst [vmem:[#allocation113_spill] sm:$0xff] %v9910_v37 }
 0x527   :  { %12811 = vst [vmem:[#allocation111_spill] sm:$0xff] %v9926_v22 }
 0x529   :  { %3494 = vrot.lane.b32.xlu0 %v9879_v34, %s6909_s12  ;;  %3262 = vrot.lane.b32.xlu1 %v9876_v54, %s6908_s1 }
 0x52c   :  { %3176 = vrot.lane.b32.xlu2 %v9845_v43, %s6909_s12  ;;  %v9929_v43 = vmul.f32 %v3118_v26, %v12812_v29  ;;  %v12815_v26 = vld [vmem:[#allocation25_spill] sm:$0xff] }
 0x52d   :  { %v9902_v52 = vpop.permute.xlu0 %3424  ;;  %v9912_v4 = vpop.permute.xlu1 %3078  ;;  %v9946_v29 = vmul.f32 %v3100_v2, %v12815_v26  ;;  %v3089_v26 = vsel %vm344_vm3, %v9643_v6, %v3063_v27  ;;  %v3009_v27 = vsel %vm229_vm2, %v9658_v15, %v2985_v42  ;;  %v3093_v42 = vsel %vm344_vm3, %v9708_v45, %v9889_v24 }
 0x52e   :  { %12805 = vst [vmem:[#allocation135_spill] sm:$0xff] %v9902_v52  ;;  %v9904_v51 = vpop.permute.xlu2 %3324 }
 0x52f   :  { %12806 = vst [vmem:[#allocation133_spill] sm:$0xff] %v9904_v51  ;;  %v12835_v51 = vld [vmem:[#allocation32_spill] sm:$0xff] }
 0x530   :  { %12813 = vst [vmem:[#allocation126_spill] sm:$0xff] %v9929_v43 }
 0x531   :  { %3232 = vrot.lane.b32.xlu0 %v9907_v1, %s6908_s1  ;;  %3166 = vrot.lane.b32.xlu1 %v9910_v37, %s6909_s12  ;;  %12816 = vst [vmem:[#allocation110_spill] sm:$0xff] %v9946_v29 }
 0x534   :  { %3592 = vrot.lane.b32.xlu2 %v9778_v41, %s6908_s1 }
 0x535   :  { %v9923_v12 = vpop.permute.xlu0 %3402  ;;  %v9931_v52 = vpop.permute.xlu1 %3498 }
 0x536   :  { %v3073_v48 = vpop.permute.xlu2 %3072 }
 0x539   :  { %3602 = vrot.lane.b32.xlu0 %v9929_v43, %s6908_s1  ;;  %3504 = vrot.lane.b32.xlu1 %v9926_v22, %s6909_s12 }
 0x53c   :  { %3158 = vrot.lane.b32.xlu2 %v9856_v25, %s6909_s12 }
 0x53d   :  { %v9941_v16 = vpop.permute.xlu0 %2994  ;;  %v9952_v36 = vpop.permute.xlu1 %3238 }
 0x53e   :  { %v9943_v32 = vpop.permute.xlu2 %3334  ;;  %v3015_v55 = vsel %vm229_vm2, %v9941_v16, %v9770_v62  ;;  %v3095_v62 = vsel %vm344_vm3, %v3073_v48, %v9760_v63  ;;  %v3094_v63 = vsel %vm344_vm3, %v9889_v24, %v3073_v48 }
 0x53f   :  { %12814 = vst [vmem:[#allocation129_spill] sm:$0xff] %v9943_v32  ;;  %v12818_v32 = vld [vmem:[#allocation30_spill] sm:$0xff] }
 0x540   :  { %v9962_v2 = vmul.f32 %v3090_v44, %v12818_v32  ;;  %v12820_v44 = vld [vmem:[#allocation27_spill] sm:$0xff] }
 0x541   :  { %3522 = vrot.lane.b32.xlu0 %v9946_v29, %s6909_s12  ;;  %3582 = vrot.lane.b32.xlu1 %v9926_v22, %s6908_s1  ;;  %v9978_v32 = vmul.f32 %v3089_v26, %v12820_v44 }
 0x544   :  { %3156 = vrot.lane.b32.xlu2 %v9864_v18, %s6909_s12 }
 0x545   :  { %v9957_v41 = vpop.permute.xlu0 %3412 }
 0x546   :  { %12817 = vst [vmem:[#allocation120_spill] sm:$0xff] %v9957_v41  ;;  %v9959_v54 = vpop.permute.xlu2 %2992  ;;  %v9973_v41 = vpop.permute.xlu1 %3576 }
 0x547   :  { %v3013_v45 = vsel %vm229_vm2, %v9718_v60, %v9959_v54 }
 0x548   :  { %v10048_v24 = vmul.f32 %v3013_v45, %v12835_v51 }
 0x549   :  { %3244 = vrot.lane.b32.xlu0 %v9910_v37, %s6908_s1  ;;  %3580 = vrot.lane.b32.xlu1 %v9962_v2, %s6908_s1  ;;  %v12821_v37 = vld [vmem:[#allocation49_spill] sm:$0xff] }
 0x54a   :  { %v9981_v56 = vmul.f32 %v3010_v38, %v12821_v37  ;;  %v12825_v37 = vld [vmem:[#allocation22_spill] sm:$0xff]  ;;  %12836 = vst [vmem:[#allocation136_spill] sm:$0xff] %v10048_v24 }
 0x54b   :  { %v10001_v44 = vmul.f32 %v3009_v27, %v12825_v37 }
 0x54c   :  { %3476 = vrot.lane.b32.xlu2 %v9929_v43, %s6909_s12  ;;  %v12826_v43 = vld [vmem:[#allocation57_spill] sm:$0xff] }
 0x54d   :  { %v3003_v22 = vpop.permute.xlu0 %3002 }
 0x54e   :  { %v9975_v57 = vpop.permute.xlu2 %3410  ;;  %v3019_v14 = vsel %vm229_vm2, %v3003_v22, %v9801_v28  ;;  %v3097_v28 = vsel %vm344_vm3, %v9772_v47, %v9912_v4  ;;  %v3014_v47 = vsel %vm229_vm2, %v9959_v54, %v9941_v16  ;;  %v12847_v16 = vld [vmem:[#allocation48_spill] sm:$0xff] }
 0x54f   :  { %12819 = vst [vmem:[#allocation130_spill] sm:$0xff] %v9975_v57  ;;  %v10004_v57 = vmul.f32 %v3015_v55, %v12826_v43  ;;  %v12828_v43 = vld [vmem:[#allocation44_spill] sm:$0xff] }
 0x550   :  { %v10022_v37 = vmul.f32 %v3093_v42, %v12828_v43 }
 0x551   :  { %3578 = vrot.lane.b32.xlu0 %v9978_v32, %s6908_s1  ;;  %3242 = vrot.lane.b32.xlu1 %v9981_v56, %s6908_s1  ;;  %12827 = vst [vmem:[#allocation116_spill] sm:$0xff] %v10004_v57 }
 0x552   :  { %12829 = vst [vmem:[#allocation115_spill] sm:$0xff] %v10022_v37 }
 0x554   :  { %3154 = vrot.lane.b32.xlu2 %v9907_v1, %s6909_s12 }
 0x555   :  { %v9994_v6 = vpop.permute.xlu0 %3420  ;;  %v9996_v26 = vpop.permute.xlu1 %3514 }
 0x556   :  { %12822 = vst [vmem:[#allocation15_spill] sm:$0xff] %v9994_v6  ;;  %v9998_v38 = vpop.permute.xlu2 %3332  ;;  %v12830_v6 = vld [vmem:[#allocation82_spill] sm:$0xff] }
 0x557   :  { %12823 = vst [vmem:[#allocation128_spill] sm:$0xff] %v9996_v26 }
 0x558   :  { %12824 = vst [vmem:[#allocation131_spill] sm:$0xff] %v9998_v38  ;;  %v10025_v38 = vmul.f32 %v3095_v62, %v12830_v6 }
 0x559   :  { %3174 = vrot.lane.b32.xlu1 %v10004_v57, %s6909_s12  ;;  %3162 = vrot.lane.b32.xlu0 %v10001_v44, %s6909_s12 }
 0x55a   :  { %12831 = vst [vmem:[#allocation132_spill] sm:$0xff] %v10025_v38 }
 0x55c   :  { %3600 = vrot.lane.b32.xlu2 %v9946_v29, %s6908_s1  ;;  %v12833_v29 = vld [vmem:[#allocation40_spill] sm:$0xff] }
 0x55d   :  { %v3001_v15 = vpop.permute.xlu0 %3000  ;;  %v10017_v27 = vpop.permute.xlu1 %3496  ;;  %v10045_v26 = vmul.f32 %v3094_v63, %v12833_v29 }
 0x55e   :  { %v10019_v55 = vpop.permute.xlu2 %3080  ;;  %v3017_v54 = vsel %vm229_vm2, %v9750_v46, %v3001_v15 }
 0x55f   :  { %12834 = vst [vmem:[#allocation117_spill] sm:$0xff] %v10045_v26 }
 0x561   :  { %3512 = vrot.lane.b32.xlu1 %v10025_v38, %s6909_s12  ;;  %3586 = vrot.lane.b32.xlu0 %v10022_v37, %s6908_s1 }
 0x564   :  { %3500 = vrot.lane.b32.xlu2 %v9978_v32, %s6909_s12 }
 0x565   :  { %v10038_v42 = vpop.permute.xlu0 %3160  ;;  %v3575_v62 = vpop.permute.xlu1 %3574 }
 0x566   :  { %v10040_v6 = vpop.permute.xlu2 %3342  ;;  %v3605_v43 = vsel %vm592_vm7, %v3575_v62, %v9973_v41 }
 0x567   :  { %12832 = vst [vmem:[#allocation134_spill] sm:$0xff] %v10040_v6  ;;  %v3638_v48 = vmul.f32 %v3605_v43, %v7918_v21  ;;  %v12838_v43 = vld [vmem:[#allocation79_spill] sm:$0xff] }
 0x569   :  { %v3910_v60 = vpack.c.bf16 %v3638_v48, %v3638_v48  ;;  %3588 = vrot.lane.b32.xlu1 %v10045_v26, %s6908_s1  ;;  %3170 = vrot.lane.b32.xlu0 %v10048_v24, %s6909_s12  ;;  %v10065_v48 = vmul.f32 %v3019_v14, %v12838_v43  ;;  %v3018_v43 = vsel %vm229_vm2, %v3001_v15, %v3003_v22 }
 0x56b   :  { %v3939_v6 = vsel %vm1305_vm9, %v3910_v60, 0  ;;  %v12840_v60 = vld [vmem:[#allocation61_spill] sm:$0xff] }
 0x56c   :  { %3240 = vrot.lane.b32.xlu2 %v10001_v44, %s6908_s1  ;;  %4001 = vmatpush.bf16.msrb.mxu0 %v3939_v6  ;;  %v10079_v51 = vmul.f32 %v3097_v28, %v12840_v60  ;;  %v12841_v28 = vld [vmem:[#allocation78_spill] sm:$0xff] }
 0x56d   :  { %v10060_v63 = vpop.permute.xlu0 %3506  ;;  %v10096_v60 = vmul.f32 %v3014_v47, %v12841_v28  ;;  %v10114_v47 = vmul.f32 %v3017_v54, %v12847_v16  ;;  %v3427_v16 = vsel %vm592_vm7, %v9823_v13, %v9696_v9  ;;  %v3099_v28 = vsel %vm344_vm3, %v10019_v55, %v9835_v40 }
 0x56e   :  { %v10062_v45 = vpop.permute.xlu2 %3418 }
 0x56f   :  { %12837 = vst [vmem:[#allocation137_spill] sm:$0xff] %v10062_v45  ;;  %v12843_v45 = vld [vmem:[#allocation92_spill] sm:$0xff] }
 0x570   :  { %12842 = vst [vmem:[#allocation139_spill] sm:$0xff] %v10096_v60 }
 0x571   :  { %3508 = vrot.lane.b32.xlu1 %v10022_v37, %s6909_s12  ;;  %3182 = vrot.lane.b32.xlu0 %v10065_v48, %s6909_s12  ;;  %12848 = vst [vmem:[#allocation143_spill] sm:$0xff] %v10114_v47 }
 0x574   :  { %3164 = vrot.lane.b32.xlu2 %v9981_v56, %s6909_s12 }
 0x575   :  { %v10081_v14 = vpop.permute.xlu0 %3246 }
 0x576   :  { %v10076_v6 = vpop.permute.xlu2 %3168 }
 0x577   :  { %12839 = vst [vmem:[#allocation138_spill] sm:$0xff] %v10076_v6  ;;  %v10099_v6 = vmul.f32 %v3018_v43, %v12843_v45 }
 0x579   :  { %3248 = vrot.lane.b32.xlu1 %v10048_v24, %s6908_s1  ;;  %3594 = vrot.lane.b32.xlu0 %v10079_v51, %s6908_s1  ;;  %12844 = vst [vmem:[#allocation140_spill] sm:$0xff] %v10099_v6 }
 0x57c   :  { %3502 = vrot.lane.b32.xlu2 %v9962_v2, %s6909_s12 }
 0x57d   :  { %v10101_v24 = vpop.permute.xlu0 %3254 }
 0x57e   :  { %v10093_v29 = vpop.permute.xlu2 %3584  ;;  %12845 = vst [vmem:[#allocation141_spill] sm:$0xff] %v10101_v24 }
 0x581   :  { %3172 = vrot.lane.b32.xlu1 %v10096_v60, %s6909_s12  ;;  %3180 = vrot.lane.b32.xlu0 %v10099_v6, %s6909_s12 }
 0x584   :  { %3252 = vrot.lane.b32.xlu2 %v10004_v57, %s6908_s1  ;;  %v12851_v57 = vld [vmem:[#allocation95_spill] sm:$0xff] }
 0x585   :  { %v10120_v43 = vpop.permute.xlu0 %3236  ;;  %v10147_v24 = vmul.f32 %v3099_v28, %v12851_v57  ;;  %v3782_v28 = vrot.slane %v9791_v31, 4 }
 0x586   :  { %v10111_v22 = vpop.permute.xlu2 %3176 }
 0x587   :  { %12846 = vst [vmem:[#allocation142_spill] sm:$0xff] %v10111_v22 }
 0x588   :  { %12852 = vst [vmem:[#allocation146_spill] sm:$0xff] %v10147_v24 }
 0x589   :  { %3510 = vrot.lane.b32.xlu1 %v10045_v26, %s6909_s12  ;;  %3178 = vrot.lane.b32.xlu0 %v10114_v47, %s6909_s12  ;;  %v3460_v26 = vmul.f32 %v3427_v16, %v7918_v21 }
 0x58b   :  { %v3235_v45 = vpop.permute.xlu1 %3234 }
 0x58c   :  { %3590 = vrot.lane.b32.xlu2 %v10025_v38, %s6908_s1 }
 0x58e   :  { %v10124_v46 = vpop.permute.xlu2 %3592 }
 0x58f   :  { %12849 = vst [vmem:[#allocation144_spill] sm:$0xff] %v10124_v46 }
 0x591   :  { %3250 = vrot.lane.b32.xlu1 %v10096_v60, %s6908_s1 }
 0x593   :  { %v10128_v15 = vpop.permute.xlu0 %3572  ;;  %v10130_v54 = vpop.permute.xlu1 %3136 }
 0x594   :  { %12850 = vst [vmem:[#allocation145_spill] sm:$0xff] %v10128_v15  ;;  %v3604_v22 = vsel %vm592_vm7, %v10128_v15, %v3575_v62  ;;  %3340 = vrot.lane.b32.xlu2 %v9698_v7, %s6909_s12  ;;  %v3750_v62 = vrot.slane %v3460_v26, 4 }
 0x595   :  { %v3637_v60 = vmul.f32 %v3604_v22, %v12685_v0 }
 0x596   :  { %v10143_v38 = vpop.permute.xlu2 %3158  ;;  %v3846_v26 = vsel %vm66_vm0, %v9616_v20, %v3750_v62 }
 0x597   :  { %v3909_v46 = vpack.c.bf16 %v3637_v60, %v3637_v60 }
 0x599   :  { %3520 = vrot.lane.b32.xlu1 %v10147_v24, %s6909_s12  ;;  %v3936_v40 = vsel %vm1305_vm9, %v3909_v46, 0  ;;  %v3426_v46 = vsel %vm592_vm7, %v9814_v35, %v9823_v13  ;;  %v3098_v13 = vsel %vm344_vm3, %v9912_v4, %v10019_v55  ;;  %v3346_v4 = vsel %vm477_vm6, %v9887_v10, %v9788_v39  ;;  %v3926_v55 = vld [vmem:[#allocation2 + $0xb0] sm:$0xf] }
 0x59a   :  { %3988 = vmatpush.bf16.msra.mxu3 %v3936_v40  ;;  %v3459_v7 = vmul.f32 %v3426_v46, %v12685_v0  ;;  %v3781_v46 = vrot.slane %v9879_v34, 4  ;;  %v3265_v34 = vsel %vm592_vm7, %v3235_v45, %v10120_v43 }
 0x59b   :  { %v3495_v15 = vpop.permute.xlu0 %3494  ;;  %v10152_v37 = vpop.permute.xlu1 %3262 }
 0x59c   :  { %v3524_v22 = vsel %vm477_vm6, %v3495_v15, %v10017_v27  ;;  %3598 = vrot.lane.b32.xlu2 %v10147_v24, %s6908_s1  ;;  %v3749_v20 = vrot.slane %v3459_v7, 4  ;;  %v3377_v7 = vsel %vm477_vm6, %v9842_v33, %v9887_v10 }
 0x59d   :  { %v3557_v60 = vmul.f32 %v3524_v22, %v7921_v50  ;;  %v3378_v24 = vmul.f32 %v3377_v7, %v12710_v53 }
 0x59e   :  { %v10160_v16 = vpop.permute.xlu2 %3156 }
 0x59f   :  { %v3862_v40 = vsel %vm66_vm0, %v3557_v60, %v3782_v28  ;;  %v12855_v28 = vld [vmem:[#allocation71_spill] sm:$0xff]  ;;  %v3701_v7 = vrot.slane %v3378_v24, 4 }
 0x5a0   :  { %v3894_v57 = vpack.c.bf16 %v3862_v40, %v3846_v26  ;;  %v10183_v60 = vmul.f32 %v3098_v13, %v12855_v28  ;;  %v3845_v40 = vsel %vm66_vm0, %v9649_v49, %v3749_v20  ;;  %v3298_v49 = vmul.f32 %v3265_v34, %v7918_v21 }
 0x5a1   :  { %3260 = vrot.lane.b32.xlu1 %v10065_v48, %s6908_s1 }
 0x5a2   :  { %4002 = vmatpush.bf16.msrb.mxu0 %v3894_v57  ;;  %12856 = vst [vmem:[#allocation149_spill] sm:$0xff] %v10183_v60 }
 0x5a3   :  { %v10171_v31 = vpop.permute.xlu0 %3232  ;;  %v10173_v22 = vpop.permute.xlu1 %3166 }
 0x5a4   :  { %12853 = vst [vmem:[#allocation147_spill] sm:$0xff] %v10171_v31  ;;  %3516 = vrot.lane.b32.xlu2 %v10079_v51, %s6909_s12  ;;  %v3264_v13 = vsel %vm592_vm7, %v10171_v31, %v3235_v45  ;;  %v3654_v45 = vrot.slane %v9864_v18, 4 }
 0x5a5   :  { %v3297_v20 = vmul.f32 %v3264_v13, %v12685_v0 }
 0x5a6   :  { %v10180_v62 = vpop.permute.xlu2 %3476 }
 0x5a7   :  { %12854 = vst [vmem:[#allocation148_spill] sm:$0xff] %v10180_v62  ;;  %v3555_v57 = vsel %vm477_vm6, %v10180_v62, %v3495_v15  ;;  %v3379_v62 = vmul.f32 %v3346_v4, %v7921_v50 }
 0x5a8   :  { %v3556_v26 = vmul.f32 %v3555_v57, %v12710_v53 }
 0x5a9   :  { %3596 = vrot.lane.b32.xlu1 %v10183_v60, %s6908_s1 }
 0x5aa   :  { %v3861_v15 = vsel %vm66_vm0, %v3556_v26, %v3781_v46  ;;  %v3653_v26 = vrot.slane %v9907_v1, 4  ;;  %v3829_v1 = vsel %vm66_vm0, %v3297_v20, %v3701_v7 }
 0x5ab   :  { %v10204_v57 = vpop.permute.xlu0 %3602  ;;  %v10206_v28 = vpop.permute.xlu1 %3504  ;;  %v3893_v10 = vpack.c.bf16 %v3861_v15, %v3845_v40  ;;  %v3702_v15 = vrot.slane %v3379_v62, 4 }
 0x5ac   :  { %3929 = vperm.xlu2 %6808, %v3926_v55  }
 0x5ad   :  { %3989 = vmatpush.bf16.msra.mxu3 %v3893_v10  ;;  %v3830_v13 = vsel %vm66_vm0, %v3298_v49, %v3702_v15  ;;  %v3428_v15 = vsel %vm592_vm7, %v9696_v9, %v9716_v8  ;;  %v3525_v9 = vsel %vm477_vm6, %v10017_v27, %v9931_v52 }
 0x5ae   :  { %v3155_v46 = vpop.permute.xlu2 %3154 }
 0x5af   :  { %v3184_v31 = vsel %vm477_vm6, %v3155_v46, %v10160_v16  ;;  %v3215_v40 = vsel %vm477_vm6, %v10130_v54, %v3155_v46 }
 0x5b0   :  { %v3216_v4 = vmul.f32 %v3215_v40, %v12710_v53  ;;  %v3217_v55 = vmul.f32 %v3184_v31, %v7921_v50  ;;  %v10231_v53 = vld [vmem:[#allocation5 + $0x10] sm:$0x3]  ;;  %v3783_v50 = vrot.slane %v9714_v11, 4  ;;  %v3432_v11 = vsel %vm592_vm7, %v9687_v3, %v9746_v19 }
 0x5b1   :  { %3256 = vrot.lane.b32.xlu1 %v10114_v47, %s6908_s1  ;;  %v12861_v47 = vld [vmem:[#allocation36_spill] sm:$0xff] }
 0x5b2   :  { %v3813_v34 = vsel %vm66_vm0, %v3216_v4, %v3653_v26  ;;  %v3814_v18 = vsel %vm66_vm0, %v3217_v55, %v3654_v45 }
 0x5b3   :  { %v10226_v10 = vpop.permute.xlu0 %3522  ;;  %v3583_v46 = vpop.permute.xlu1 %3582  ;;  %v3877_v24 = vpack.c.bf16 %v3829_v1, %v3813_v34  ;;  %v3878_v62 = vpack.c.bf16 %v3830_v13, %v3814_v18  ;;  %v12857_v1 = vld [vmem:[#allocation76_spill] sm:$0xff] }
 0x5b4   :  { %v3609_v40 = vsel %vm592_vm7, %v3583_v46, %v10093_v29  ;;  %v3461_v18 = vmul.f32 %v3428_v15, %v12857_v1  ;;  %v12859_v15 = vld [vmem:[#allocation63_spill] sm:$0xff] }
 0x5b5   :  { %v3642_v31 = vmul.f32 %v3609_v40, %v12696_v17  ;;  %3990 = vmatpush.bf16.msra.mxu3 %v3877_v24  ;;  %4003 = vmatpush.bf16.msrb.mxu0 %v3878_v62  ;;  %v3348_v24 = vsel %vm477_vm6, %v9632_v23, %v9683_v58  ;;  %v3429_v62 = vsel %vm592_vm7, %v9716_v8, %v9923_v12 }
 0x5b6   :  { %v10233_v26 = vpop.permute.xlu2 %3600  ;;  %v3347_v8 = vsel %vm477_vm6, %v9788_v39, %v9632_v23 }
 0x5b7   :  { %v3914_v20 = vpack.c.bf16 %v3642_v31, %v3642_v31  ;;  %v3751_v31 = vrot.slane %v3461_v18, 4 }
 0x5b8   :  { %6434 = vmatmul.msk.bf16.vlgmr.msra.gmra.mxu3 %vm62_vm1, %v10231_v53  ;;  %6435 = vmatmul.msk.bf16.vlgmr.msrb.gmra.mxu0 %vm62_vm1, %v10231_v53 }
 0x5b9   :  { %3518 = vrot.lane.b32.xlu1 %v10183_v60, %s6909_s12  ;;  %v3951_v49 = vsel %vm1305_vm9, %v3914_v20, 0  ;;  %v12858_v20 = vld [vmem:[#allocation62_spill] sm:$0xff]  ;;  %v3465_v60 = vmul.f32 %v3432_v11, %v12861_v47 }
 0x5ba   :  { %4053 = vmatpush.bf16.msra.mxu0 %v3951_v49  ;;  %v3381_v49 = vmul.f32 %v3348_v24, %v12858_v20  ;;  %v3185_v24 = vsel %vm477_vm6, %v10160_v16, %v10143_v38 }
 0x5bb   :  { %v10242_v45 = vpop.permute.xlu0 %3244  ;;  %v3581_v7 = vpop.permute.xlu1 %3580 }
 0x5bc   :  { %v3608_v4 = vsel %vm592_vm7, %v3581_v7, %v3583_v46 }
 0x5bd   :  { %v3641_v55 = vmul.f32 %v3608_v4, %v12695_v30  ;;  %v3462_v4 = vmul.f32 %v3429_v62, %v12859_v15 }
 0x5be   :  { %v10249_v34 = vpop.permute.xlu2 %3500 }
 0x5bf   :  { %v3913_v13 = vpack.c.bf16 %v3641_v55, %v3641_v55  ;;  %v3526_v40 = vsel %vm477_vm6, %v9931_v52, %v10249_v34  ;;  %v3752_v16 = vrot.slane %v3462_v4, 4 }
 0x5c0   :  { %v3559_v39 = vmul.f32 %v3526_v40, %v12858_v20 }
 0x5c1   :  { %3258 = vrot.lane.b32.xlu1 %v10099_v6, %s6908_s1  ;;  %v3948_v46 = vsel %vm1305_vm9, %v3913_v13, 0  ;;  %v12860_v13 = vld [vmem:[#allocation75_spill] sm:$0xff]  ;;  %v3704_v6 = vrot.slane %v3381_v49, 4  ;;  %v12862_v49 = vld [vmem:[#allocation18_spill] sm:$0xff] }
 0x5c2   :  { %4040 = vmatpush.bf16.msrb.mxu3 %v3948_v46  ;;  %v3558_v21 = vmul.f32 %v3525_v9, %v12860_v13  ;;  %v3380_v9 = vmul.f32 %v3347_v8, %v12860_v13  ;;  %v3218_v8 = vmul.f32 %v3185_v24, %v12860_v13 }
 0x5c3   :  { %v3579_v27 = vpop.permute.xlu0 %3578  ;;  %v10272_v55 = vpop.permute.xlu1 %3242 }
 0x5c4   :  { %v3606_v52 = vsel %vm592_vm7, %v9973_v41, %v3579_v27  ;;  %v3607_v18 = vsel %vm592_vm7, %v3579_v27, %v3581_v7  ;;  %v3784_v41 = vrot.slane %v9978_v32, 4  ;;  %v3431_v7 = vsel %vm592_vm7, %v9891_v61, %v9687_v3 }
 0x5c5   :  { %v3639_v23 = vmul.f32 %v3606_v52, %v12857_v1  ;;  %v3640_v62 = vmul.f32 %v3607_v18, %v12859_v15  ;;  %v3266_v18 = vsel %vm592_vm7, %v10120_v43, %v9952_v36  ;;  %v3186_v32 = vsel %vm477_vm6, %v10143_v38, %v10038_v42 }
 0x5c6   :  { %v10293_v46 = vpop.permute.xlu2 %3240  ;;  %v3863_v3 = vsel %vm66_vm0, %v3558_v21, %v3783_v50  ;;  %v3864_v0 = vsel %vm66_vm0, %v3559_v39, %v3784_v41  ;;  %v3655_v38 = vrot.slane %v9856_v25, 4  ;;  %v3299_v21 = vmul.f32 %v3266_v18, %v12857_v1 }
 0x5c7   :  { %v3911_v40 = vpack.c.bf16 %v3639_v23, %v3639_v23  ;;  %v3912_v27 = vpack.c.bf16 %v3640_v62, %v3640_v62  ;;  %v3267_v52 = vsel %vm592_vm7, %v9952_v36, %v10293_v46  ;;  %v3847_v36 = vsel %vm66_vm0, %v9486_v59, %v3751_v31  ;;  %v12863_v59 = vld [vmem:[#allocation133_spill] sm:$0xff] }
 0x5c8   :  { %v3300_v4 = vmul.f32 %v3267_v52, %v12859_v15  ;;  %v3219_v50 = vmul.f32 %v3186_v32, %v12858_v20  ;;  %v3848_v39 = vsel %vm66_vm0, %v9504_v5, %v3752_v16  ;;  %v3656_v41 = vrot.slane %v12862_v49, 4 }
 0x5c9   :  { %v3942_v23 = vsel %vm1305_vm9, %v3911_v40, 0  ;;  %v3945_v62 = vsel %vm1305_vm9, %v3912_v27, 0  ;;  %v3464_v11 = vmul.f32 %v3431_v7, %v12696_v17  ;;  %v3895_v40 = vpack.c.bf16 %v3863_v3, %v3847_v36  ;;  %v12864_v7 = vld [vmem:[#allocation46_spill] sm:$0xff]  ;;  %v12865_v3 = vld [vmem:[#allocation72_spill] sm:$0xff] }
 0x5ca   :  { %4014 = vmatpush.bf16.msrb.mxu1 %v3942_v23  ;;  %4027 = vmatpush.bf16.msrb.mxu2 %v3945_v62  ;;  %v3896_v27 = vpack.c.bf16 %v3864_v0, %v3848_v39  ;;  %v3703_v52 = vrot.slane %v3380_v9, 4  ;;  %v3349_v25 = vsel %vm477_vm6, %v9683_v58, %v12863_v59  ;;  %v3815_v31 = vsel %vm66_vm0, %v3218_v8, %v3655_v38  ;;  %v12866_v8 = vld [vmem:[#allocation60_spill] sm:$0xff]  ;;  %v12867_v23 = vld [vmem:[#allocation39_spill] sm:$0xff] }
 0x5cb   :  { %v3163_v43 = vpop.permute.xlu0 %3162  ;;  %v10316_v24 = vpop.permute.xlu1 %3174  ;;  %v3832_v18 = vsel %vm66_vm0, %v3300_v4, %v3704_v6  ;;  %v3755_v32 = vrot.slane %v3465_v60, 4  ;;  %v3430_v5 = vsel %vm592_vm7, %v9923_v12, %v9891_v61  ;;  %v3351_v0 = vsel %vm477_vm6, %v12865_v3, %v12864_v7  ;;  %v12868_v39 = vld [vmem:[#allocation111_spill] sm:$0xff] }
 0x5cc   :  { %v3350_v58 = vsel %vm477_vm6, %v12863_v59, %v12865_v3  ;;  %v3831_v9 = vsel %vm66_vm0, %v3299_v21, %v3703_v52  ;;  %v3816_v6 = vsel %vm66_vm0, %v3219_v50, %v3656_v41  ;;  %v3754_v60 = vrot.slane %v3464_v11, 4  ;;  %v12871_v41 = vld [vmem:[#allocation125_spill] sm:$0xff]  ;;  %v12872_v59 = vld [vmem:[#allocation94_spill] sm:$0xff] }
 0x5cd   :  { %v10339_v4 = vmul.f32 %v3349_v25, %v12866_v8  ;;  %v3879_v61 = vpack.c.bf16 %v3831_v9, %v3815_v31  ;;  %v3880_v12 = vpack.c.bf16 %v3832_v18, %v3816_v6  ;;  %v3787_v62 = vrot.slane %v12867_v23, 4 }
 0x5ce   :  { %v3165_v16 = vpop.permute.xlu2 %3164  ;;  %4015 = vmatpush.bf16.msrb.mxu1 %v3895_v40  ;;  %4028 = vmatpush.bf16.msrb.mxu2 %v3896_v27  ;;  %v3463_v36 = vmul.f32 %v3430_v5, %v12695_v30  ;;  %v3529_v38 = vsel %vm477_vm6, %v10206_v28, %v10060_v63  ;;  %v3786_v49 = vrot.slane %v12868_v39, 4  ;;  %v12869_v40 = vld [vmem:[#allocation113_spill] sm:$0xff]  ;;  %v3851_v11 = vsel %vm66_vm0, %v12871_v41, %v3755_v32 }
 0x5cf   :  { %v3659_v21 = vrot.slane %v12869_v40, 4  ;;  %v12870_v27 = vld [vmem:[#allocation105_spill] sm:$0xff]  ;;  %v3785_v52 = vrot.slane %v9962_v2, 4  ;;  %v3384_v25 = vmul.f32 %v3351_v0, %v12872_v59  ;;  %v3657_v31 = vrot.slane %v10001_v44, 4 }
 0x5d0   :  { %v10349_v50 = vmul.f32 %v3350_v58, %v12870_v27  ;;  %v3658_v18 = vrot.slane %v9981_v56, 4  ;;  %v3705_v9 = vrot.slane %v10339_v4, 4  ;;  %v3562_v58 = vmul.f32 %v3529_v38, %v12872_v59 }
 0x5d1   :  { %v3753_v2 = vrot.slane %v3463_v36, 4  ;;  %v3187_v0 = vsel %vm477_vm6, %v10038_v42, %v3163_v43  ;;  %v3188_v44 = vsel %vm477_vm6, %v3163_v43, %v3165_v16  ;;  %v3269_v42 = vsel %vm592_vm7, %v10272_v55, %v10242_v45 }
 0x5d2   :  { %4016 = vmatpush.bf16.msrb.mxu1 %v3879_v61  ;;  %4029 = vmatpush.bf16.msrb.mxu2 %v3880_v12  ;;  %v12873_v61 = vld [vmem:[#allocation96_spill] sm:$0xff]  ;;  %v3706_v4 = vrot.slane %v10349_v50, 4  ;;  %v3189_v43 = vsel %vm477_vm6, %v3165_v16, %v10173_v22  ;;  %v3268_v12 = vsel %vm592_vm7, %v10293_v46, %v10272_v55  ;;  %v3220_v39 = vmul.f32 %v3187_v0, %v12866_v8  ;;  %v12874_v55 = vld [vmem:[#allocation43_spill] sm:$0xff] }
 0x5d3   :  { %v3587_v5 = vpop.permute.xlu0 %3586  ;;  %v10357_v3 = vpop.permute.xlu1 %3512  ;;  %v3850_v32 = vsel %vm66_vm0, %v12873_v61, %v3754_v60  ;;  %v3221_v40 = vmul.f32 %v3188_v44, %v12870_v27  ;;  %v3222_v50 = vmul.f32 %v3189_v43, %v12872_v59  ;;  %v3849_v46 = vsel %vm66_vm0, %v12874_v55, %v3753_v2  ;;  %v12875_v44 = vld [vmem:[#allocation130_spill] sm:$0xff] }
 0x5d4   :  { %v3610_v6 = vsel %vm592_vm7, %v10093_v29, %v3587_v5  ;;  %v3270_v29 = vsel %vm592_vm7, %v10242_v45, %v10081_v14 }
 0x5d5   :  { %v3643_v56 = vmul.f32 %v3610_v6, %v12861_v47  ;;  %6436 = vmatmul.msk.bf16.vlgmr.msrb.gmra.mxu1 %vm62_vm1, %v10231_v53  ;;  %6437 = vmatmul.msk.bf16.vlgmr.msrb.gmra.mxu2 %vm62_vm1, %v10231_v53  ;;  %v3302_v6 = vmul.f32 %v3269_v42, %v12696_v17  ;;  %v3303_v43 = vmul.f32 %v3270_v29, %v12861_v47  ;;  %v13003_v47 = vld [vmem:[#allocation40_spill] sm:$0xff] }
 0x5d6   :  { %v3503_v60 = vpop.permute.xlu2 %3502 }
 0x5d7   :  { %v3915_v23 = vpack.c.bf16 %v3643_v56, %v3643_v56  ;;  %v3527_v36 = vsel %vm477_vm6, %v10249_v34, %v3503_v60  ;;  %v3528_v38 = vsel %vm477_vm6, %v3503_v60, %v10206_v28  ;;  %v3867_v34 = vsel %vm66_vm0, %v3562_v58, %v3787_v62 }
 0x5d8   :  { %v3560_v45 = vmul.f32 %v3527_v36, %v12866_v8  ;;  %v3561_v16 = vmul.f32 %v3528_v38, %v12870_v27  ;;  %v3301_v28 = vmul.f32 %v3268_v12, %v12695_v30  ;;  %v3433_v56 = vsel %vm592_vm7, %v9746_v19, %v12875_v44 }
 0x5d9   :  { %v3954_v41 = vsel %vm1305_vm9, %v3915_v23, 0  ;;  %v3899_v42 = vpack.c.bf16 %v3867_v34, %v3851_v11  ;;  %v3817_v12 = vsel %vm66_vm0, %v3220_v39, %v3657_v31  ;;  %v3707_v36 = vrot.slane %v3384_v25, 4 }
 0x5da   :  { %4066 = vmatpush.bf16.msra.mxu1 %v3954_v41  ;;  %v3865_v61 = vsel %vm66_vm0, %v3560_v45, %v3785_v52  ;;  %v3866_v0 = vsel %vm66_vm0, %v3561_v16, %v3786_v49  ;;  %v3818_v52 = vsel %vm66_vm0, %v3221_v40, %v3658_v18  ;;  %v12876_v49 = vld [vmem:[#allocation85_spill] sm:$0xff]  ;;  %v3819_v19 = vsel %vm66_vm0, %v3222_v50, %v3659_v21  ;;  %v12877_v41 = vld [vmem:[#allocation127_spill] sm:$0xff] }
 0x5db   :  { %v10406_v60 = vpop.permute.xlu0 %3170  ;;  %v3589_v2 = vpop.permute.xlu1 %3588  ;;  %v3897_v23 = vpack.c.bf16 %v3865_v61, %v3849_v46  ;;  %v3898_v62 = vpack.c.bf16 %v3866_v0, %v3850_v32  ;;  %v3466_v29 = vmul.f32 %v3433_v56, %v12876_v49  ;;  %v3833_v32 = vsel %vm66_vm0, %v3301_v28, %v3705_v9  ;;  %v12878_v46 = vld [vmem:[#allocation115_spill] sm:$0xff]  ;;  %v12880_v61 = vld [vmem:[#allocation86_spill] sm:$0xff] }
 0x5dc   :  { %v3611_v58 = vsel %vm592_vm7, %v3587_v5, %v3589_v2  ;;  %v3834_v11 = vsel %vm66_vm0, %v3302_v6, %v3706_v4  ;;  %v3881_v31 = vpack.c.bf16 %v3833_v32, %v3817_v12  ;;  %v3835_v25 = vsel %vm66_vm0, %v3303_v43, %v3707_v36  ;;  %v12879_v6 = vld [vmem:[#allocation102_spill] sm:$0xff]  ;;  %v12882_v43 = vld [vmem:[#allocation112_spill] sm:$0xff] }
 0x5dd   :  { %v3644_v38 = vmul.f32 %v3611_v58, %v12876_v49  ;;  %4041 = vmatpush.bf16.msrb.mxu3 %v3897_v23  ;;  %4054 = vmatpush.bf16.msra.mxu0 %v3898_v62  ;;  %v3882_v39 = vpack.c.bf16 %v3834_v11, %v3818_v52  ;;  %v3883_v18 = vpack.c.bf16 %v3835_v25, %v3819_v19  ;;  %v3756_v21 = vrot.slane %v3466_v29, 4  ;;  %v12883_v23 = vld [vmem:[#allocation118_spill] sm:$0xff]  ;;  %v12884_v58 = vld [vmem:[#allocation21_spill] sm:$0xff]  ;;  %v12885_v52 = vld [vmem:[#allocation144_spill] sm:$0xff] }
 0x5de   :  { %v10414_v45 = vpop.permute.xlu2 %3252  ;;  %4067 = vmatpush.bf16.msra.mxu1 %v3899_v42  ;;  %v3668_v55 = vrot.slane %v12877_v41, 4  ;;  %v3788_v34 = vrot.slane %v12878_v46, 4  ;;  %v3436_v62 = vsel %vm592_vm7, %v12883_v23, %v12882_v43  ;;  %v12886_v29 = vld [vmem:[#allocation138_spill] sm:$0xff]  ;;  %v12891_v41 = vld [vmem:[#allocation108_spill] sm:$0xff] }
 0x5df   :  { %v3916_v5 = vpack.c.bf16 %v3644_v38, %v3644_v38  ;;  %v3852_v42 = vsel %vm66_vm0, %v12884_v58, %v3756_v21  ;;  %v12887_v32 = vld [vmem:[#allocation70_spill] sm:$0xff]  ;;  %v12892_v58 = vld [vmem:[#allocation53_spill] sm:$0xff] }
 0x5e1   :  { %4042 = vmatpush.bf16.msrb.mxu3 %v3881_v31  ;;  %4055 = vmatpush.bf16.msra.mxu0 %v3882_v39  ;;  %v3957_v40 = vsel %vm1305_vm9, %v3916_v5, 0  ;;  %v12888_v5 = vld [vmem:[#allocation65_spill] sm:$0xff] }
 0x5e2   :  { %4068 = vmatpush.bf16.msra.mxu1 %v3883_v18  ;;  %4079 = vmatpush.bf16.msra.mxu2 %v3957_v40  ;;  %v12890_v40 = vld [vmem:[#allocation128_spill] sm:$0xff] }
 0x5e3   :  { %v10420_v16 = vpop.permute.xlu0 %3182  ;;  %v10422_v50 = vpop.permute.xlu1 %3508  ;;  %v3533_v21 = vsel %vm477_vm6, %v10357_v3, %v12890_v40 }
 0x5e4   :  { %v3198_v9 = vsel %vm477_vm6, %v10420_v16, %v10130_v54  ;;  %6438 = vmatmul.msk.bf16.vlgmr.msrb.gmra.mxu3 %vm62_vm1, %v10231_v53  ;;  %6439 = vmatmul.msk.bf16.vlgmr.msra.gmra.mxu0 %vm62_vm1, %v10231_v53  ;;  %v3530_v4 = vsel %vm477_vm6, %v10060_v63, %v10422_v50  ;;  %v12881_v54 = vld [vmem:[#allocation52_spill] sm:$0xff] }
 0x5e5   :  { %v3231_v28 = vmul.f32 %v3198_v9, %v12879_v6  ;;  %v3563_v0 = vmul.f32 %v3530_v4, %v12880_v61  ;;  %6440 = vmatmul.msk.bf16.vlgmr.msra.gmra.mxu1 %vm62_vm1, %v10231_v53  ;;  %v3352_v56 = vsel %vm477_vm6, %v12864_v7, %v12881_v54  ;;  %v3190_v7 = vsel %vm477_vm6, %v10173_v22, %v12886_v29 }
 0x5e6   :  { %v3591_v63 = vpop.permute.xlu2 %3590  ;;  %v3385_v25 = vmul.f32 %v3352_v56, %v12880_v61  ;;  %v3223_v22 = vmul.f32 %v3190_v7, %v12880_v61 }
 0x5e7   :  { %v3612_v12 = vsel %vm592_vm7, %v3589_v2, %v3591_v63  ;;  %v3613_v36 = vsel %vm592_vm7, %v3591_v63, %v12885_v52  ;;  %v3868_v38 = vsel %vm66_vm0, %v3563_v0, %v3788_v34  ;;  %v10453_v19 = vsel %vm66_vm0, %v3231_v28, %v3668_v55  ;;  %v12889_v2 = vld [vmem:[#allocation35_spill] sm:$0xff] }
 0x5e8   :  { %v3645_v11 = vmul.f32 %v3612_v12, %v12887_v32  ;;  %v3646_v31 = vmul.f32 %v3613_v36, %v12888_v5  ;;  %v3900_v39 = vpack.c.bf16 %v3868_v38, %v3852_v42  ;;  %v3469_v18 = vmul.f32 %v3436_v62, %v12889_v2  ;;  %v12893_v38 = vld [vmem:[#allocation123_spill] sm:$0xff] }
 0x5e9   :  { %v3660_v55 = vrot.slane %v12891_v41, 4  ;;  %v3708_v63 = vrot.slane %v3385_v25, 4  ;;  %v3566_v42 = vmul.f32 %v3533_v21, %v12892_v58  ;;  %v3791_v7 = vrot.slane %v12893_v38, 4 }
 0x5ea   :  { %v3917_v9 = vpack.c.bf16 %v3645_v11, %v3645_v11  ;;  %v3918_v4 = vpack.c.bf16 %v3646_v31, %v3646_v31  ;;  %4080 = vmatpush.bf16.msra.mxu2 %v3900_v39  ;;  %v12894_v11 = vld [vmem:[#allocation121_spill] sm:$0xff]  ;;  %v3618_v39 = vsel %vm592_vm7, %v10233_v26, %v10204_v57 }
 0x5eb   :  { %v10467_v46 = vpop.permute.xlu0 %3594  ;;  %v10469_v34 = vpop.permute.xlu1 %3248  ;;  %v12895_v31 = vld [vmem:[#allocation129_spill] sm:$0xff]  ;;  %v3820_v21 = vsel %vm66_vm0, %v3223_v22, %v3660_v55  ;;  %v12898_v55 = vld [vmem:[#allocation120_spill] sm:$0xff] }
 0x5ec   :  { %v3614_v28 = vsel %vm592_vm7, %v12885_v52, %v10467_v46  ;;  %v3271_v0 = vsel %vm592_vm7, %v10081_v14, %v10469_v34  ;;  %v3960_v56 = vsel %vm1305_vm9, %v3917_v9, 0  ;;  %v3963_v62 = vsel %vm1305_vm9, %v3918_v4, 0  ;;  %v12896_v4 = vld [vmem:[#allocation141_spill] sm:$0xff] }
 0x5ed   :  { %v3647_v12 = vmul.f32 %v3614_v28, %v12889_v2  ;;  %v3304_v36 = vmul.f32 %v3271_v0, %v12876_v49  ;;  %4092 = vmatpush.bf16.msra.mxu3 %v3960_v56  ;;  %4105 = vmatpush.bf16.msrb.mxu0 %v3963_v62  ;;  %v3759_v52 = vrot.slane %v3469_v18, 4  ;;  %v3355_v14 = vsel %vm477_vm6, %v12895_v31, %v12894_v11  ;;  %v12897_v62 = vld [vmem:[#allocation47_spill] sm:$0xff] }
 0x5ee   :  { %v3274_v41 = vsel %vm592_vm7, %v10414_v45, %v12896_v4  ;;  %v3388_v18 = vmul.f32 %v3355_v14, %v12892_v58  ;;  %v3871_v56 = vsel %vm66_vm0, %v3566_v42, %v3791_v7  ;;  %v3651_v38 = vmul.f32 %v3618_v39, %v12897_v62  ;;  %v10498_v61 = vpop.permute.xlu2 %3340 }
 0x5ef   :  { %v3919_v25 = vpack.c.bf16 %v3647_v12, %v3647_v12  ;;  %v3836_v9 = vsel %vm66_vm0, %v3304_v36, %v3708_v63  ;;  %v3435_v22 = vsel %vm592_vm7, %v12898_v55, %v12883_v23  ;;  %v3307_v63 = vmul.f32 %v3274_v41, %v12889_v2  ;;  %v12899_v36 = vld [vmem:[#allocation106_spill] sm:$0xff] }
 0x5f0   :  { %v3884_v28 = vpack.c.bf16 %v3836_v9, %v3820_v21  ;;  %v3855_v14 = vsel %vm66_vm0, %v12899_v36, %v3759_v52  ;;  %v3434_v42 = vsel %vm592_vm7, %v12875_v44, %v12898_v55  ;;  %v3711_v9 = vrot.slane %v3388_v18, 4 }
 0x5f1   :  { %v3966_v0 = vsel %vm1305_vm9, %v3919_v25, 0  ;;  %v3903_v39 = vpack.c.bf16 %v3871_v56, %v3855_v14  ;;  %v12900_v25 = vld [vmem:[#allocation116_spill] sm:$0xff]  ;;  %v3468_v23 = vmul.f32 %v3435_v22, %v12888_v5  ;;  %v3923_v41 = vpack.c.bf16 %v3651_v38, %v3651_v38 }
 0x5f2   :  { %4081 = vmatpush.bf16.msra.mxu2 %v3884_v28  ;;  %4118 = vmatpush.bf16.msrb.mxu1 %v3966_v0  ;;  %v3663_v21 = vrot.slane %v12900_v25, 4  ;;  %v3467_v52 = vmul.f32 %v3434_v42, %v12887_v32  ;;  %v3839_v0 = vsel %vm66_vm0, %v3307_v63, %v3711_v9  ;;  %v12901_v42 = vld [vmem:[#allocation117_spill] sm:$0xff]  ;;  %v12902_v25 = vld [vmem:[#allocation132_spill] sm:$0xff] }
 0x5f3   :  { %v3173_v12 = vpop.permute.xlu1 %3172  ;;  %v3758_v56 = vrot.slane %v3468_v23, 4  ;;  %v3978_v18 = vsel %vm1305_vm9, %v3923_v41, 0  ;;  %v3790_v63 = vrot.slane %v12902_v25, 4  ;;  %v12905_v41 = vld [vmem:[#allocation131_spill] sm:$0xff]  ;;  %v12908_v25 = vld [vmem:[#allocation73_spill] sm:$0xff] }
 0x5f4   :  { %v3193_v7 = vsel %vm477_vm6, %v3173_v12, %v10316_v24  ;;  %v3757_v36 = vrot.slane %v3467_v52, 4  ;;  %v3353_v52 = vsel %vm477_vm6, %v12881_v54, %v12905_v41  ;;  %v3191_v54 = vsel %vm477_vm6, %v12886_v29, %v10406_v60 }
 0x5f5   :  { %v3226_v28 = vmul.f32 %v3193_v7, %v12892_v58  ;;  %6441 = vmatmul.msk.bf16.vlgmr.msra.gmra.mxu2 %vm62_vm1, %v10231_v53 }
 0x5f6   :  { %4119 = vmatpush.bf16.msrb.mxu1 %v3903_v39  ;;  %v10520_v7 = vpop.permute.xlu2 %3598  ;;  %v3789_v39 = vrot.slane %v12901_v42, 4 }
 0x5f7   :  { %v3823_v44 = vsel %vm66_vm0, %v3226_v28, %v3663_v21  ;;  %v12903_v21 = vld [vmem:[#allocation91_spill] sm:$0xff]  ;;  %v12904_v28 = vld [vmem:[#allocation13_spill] sm:$0xff] }
 0x5f8   :  { %v3887_v55 = vpack.c.bf16 %v3839_v0, %v3823_v44  ;;  %v3617_v0 = vsel %vm592_vm7, %v10520_v7, %v10233_v26  ;;  %v3386_v42 = vmul.f32 %v3353_v52, %v12903_v21 }
 0x5fa   :  { %4120 = vmatpush.bf16.msrb.mxu1 %v3887_v55  ;;  %v12907_v55 = vld [vmem:[#allocation58_spill] sm:$0xff] }
 0x5fb   :  { %v3511_v14 = vpop.permute.xlu1 %3510 }
 0x5fc   :  { %v3531_v38 = vsel %vm477_vm6, %v10422_v50, %v3511_v14  ;;  %v3532_v22 = vsel %vm477_vm6, %v3511_v14, %v10357_v3  ;;  %v3354_v50 = vsel %vm477_vm6, %v12905_v41, %v12895_v31  ;;  %v12906_v3 = vld [vmem:[#allocation93_spill] sm:$0xff]  ;;  %v3192_v31 = vsel %vm477_vm6, %v10406_v60, %v3173_v12  ;;  %v12911_v60 = vld [vmem:[#allocation136_spill] sm:$0xff] }
 0x5fd   :  { %v3564_v9 = vmul.f32 %v3531_v38, %v12903_v21  ;;  %v3565_v23 = vmul.f32 %v3532_v22, %v12904_v28  ;;  %6444 = vmatmul.msk.bf16.vlgmr.msrb.gmra.mxu1 %vm62_vm1, %v10231_v53  ;;  %v3854_v44 = vsel %vm66_vm0, %v12906_v3, %v3758_v56  ;;  %v3387_v26 = vmul.f32 %v3354_v50, %v12904_v28  ;;  %v12912_v3 = vld [vmem:[#allocation139_spill] sm:$0xff] }
 0x5fe   :  { %4170 = vmatpush.bf16.msra.mxu1 %v3978_v18  ;;  %v3853_v18 = vsel %vm66_vm0, %v12907_v55, %v3757_v36  ;;  %v3650_v41 = vmul.f32 %v3617_v0, %v12908_v25  ;;  %v12909_v36 = vld [vmem:[#allocation135_spill] sm:$0xff]  ;;  %v3225_v29 = vmul.f32 %v3192_v31, %v12904_v28  ;;  %v3661_v12 = vrot.slane %v12911_v60, 4  ;;  %v12974_v28 = vld [vmem:[#allocation38_spill] sm:$0xff] }
 0x5ff   :  { %v3869_v14 = vsel %vm66_vm0, %v3564_v9, %v3789_v39  ;;  %v3870_v38 = vsel %vm66_vm0, %v3565_v23, %v3790_v63  ;;  %v12910_v39 = vld [vmem:[#allocation119_spill] sm:$0xff]  ;;  %v3224_v9 = vmul.f32 %v3191_v54, %v12903_v21  ;;  %v3709_v0 = vrot.slane %v3386_v42, 4 }
 0x600   :  { %v3901_v22 = vpack.c.bf16 %v3869_v14, %v3853_v18  ;;  %v3902_v56 = vpack.c.bf16 %v3870_v38, %v3854_v44  ;;  %v3440_v63 = vsel %vm592_vm7, %v12910_v39, %v12909_v36  ;;  %v3662_v44 = vrot.slane %v12912_v3, 4 }
 0x601   :  { %v3710_v55 = vrot.slane %v3387_v26, 4  ;;  %v3473_v38 = vmul.f32 %v3440_v63, %v12897_v62  ;;  %v3922_v54 = vpack.c.bf16 %v3650_v41, %v3650_v41  ;;  %v3821_v31 = vsel %vm66_vm0, %v3224_v9, %v3661_v12  ;;  %v12913_v63 = vld [vmem:[#allocation110_spill] sm:$0xff] }
 0x602   :  { %4093 = vmatpush.bf16.msra.mxu3 %v3901_v22  ;;  %4106 = vmatpush.bf16.msrb.mxu0 %v3902_v56  ;;  %v3822_v56 = vsel %vm66_vm0, %v3225_v29, %v3662_v44  ;;  %v3795_v9 = vrot.slane %v12913_v63, 4  ;;  %v12914_v29 = vld [vmem:[#allocation51_spill] sm:$0xff]  ;;  %v12915_v44 = vld [vmem:[#allocation124_spill] sm:$0xff] }
 0x603   :  { %v3251_v23 = vpop.permute.xlu1 %3250  ;;  %v3763_v42 = vrot.slane %v3473_v38, 4 }
 0x604   :  { %v3272_v52 = vsel %vm592_vm7, %v10469_v34, %v3251_v23  ;;  %v3273_v50 = vsel %vm592_vm7, %v3251_v23, %v10414_v45  ;;  %v3975_v45 = vsel %vm1305_vm9, %v3922_v54, 0  ;;  %v10580_v23 = vpop.permute.xlu0 %3180 }
 0x605   :  { %v3305_v18 = vmul.f32 %v3272_v52, %v12887_v32  ;;  %v3306_v14 = vmul.f32 %v3273_v50, %v12888_v5  ;;  %v12916_v52 = vld [vmem:[#allocation134_spill] sm:$0xff]  ;;  %v12989_v32 = vld [vmem:[#allocation55_spill] sm:$0xff] }
 0x606   :  { %v3359_v50 = vsel %vm477_vm6, %v12916_v52, %v12915_v44 }
 0x607   :  { %v3837_v22 = vsel %vm66_vm0, %v3305_v18, %v3709_v0  ;;  %v3838_v34 = vsel %vm66_vm0, %v3306_v14, %v3710_v55  ;;  %v12917_v0 = vld [vmem:[#allocation88_spill] sm:$0xff]  ;;  %v3197_v14 = vsel %vm477_vm6, %v10580_v23, %v10420_v16  ;;  %v3392_v54 = vmul.f32 %v3359_v50, %v12914_v29 }
 0x608   :  { %v3885_v60 = vpack.c.bf16 %v3837_v22, %v3821_v31  ;;  %v3886_v3 = vpack.c.bf16 %v3838_v34, %v3822_v56  ;;  %v3859_v55 = vsel %vm66_vm0, %v12917_v0, %v3763_v42  ;;  %v3230_v31 = vmul.f32 %v3197_v14, %v12914_v29  ;;  %v12920_v14 = vld [vmem:[#allocation107_spill] sm:$0xff] }
 0x609   :  { %v3667_v34 = vrot.slane %v10065_v48, 4  ;;  %v12919_v48 = vld [vmem:[#allocation99_spill] sm:$0xff] }
 0x60a   :  { %4094 = vmatpush.bf16.msra.mxu3 %v3885_v60  ;;  %4107 = vmatpush.bf16.msrb.mxu0 %v3886_v3  ;;  %v3715_v60 = vrot.slane %v3392_v54, 4 }
 0x60b   :  { %v10574_v26 = vpop.permute.xlu1 %3520  ;;  %v3827_v16 = vsel %vm66_vm0, %v3230_v31, %v3667_v34  ;;  %v3792_v34 = vrot.slane %v10079_v51, 4 }
 0x60c   :  { %v3537_v41 = vsel %vm477_vm6, %v10574_v26, %v10226_v10 }
 0x60d   :  { %v3570_v12 = vmul.f32 %v3537_v41, %v12914_v29  ;;  %6442 = vmatmul.msk.bf16.vlgmr.msra.gmra.mxu3 %vm62_vm1, %v10231_v53  ;;  %6443 = vmatmul.msk.bf16.vlgmr.msrb.gmra.mxu0 %vm62_vm1, %v10231_v53  ;;  %v12918_v41 = vld [vmem:[#allocation137_spill] sm:$0xff] }
 0x60e   :  { %4157 = vmatpush.bf16.msra.mxu0 %v3975_v45  ;;  %v10605_v45 = vpop.permute.xlu2 %3516  ;;  %v3437_v63 = vsel %vm592_vm7, %v12882_v43, %v12918_v41  ;;  %v12921_v43 = vld [vmem:[#allocation98_spill] sm:$0xff] }
 0x60f   :  { %v3875_v18 = vsel %vm66_vm0, %v3570_v12, %v3795_v9  ;;  %v3534_v12 = vsel %vm477_vm6, %v12890_v40, %v10605_v45  ;;  %v3470_v50 = vmul.f32 %v3437_v63, %v12919_v48 }
 0x610   :  { %v3907_v38 = vpack.c.bf16 %v3875_v18, %v3859_v55  ;;  %v3567_v54 = vmul.f32 %v3534_v12, %v12921_v43 }
 0x612   :  { %4171 = vmatpush.bf16.msra.mxu1 %v3907_v38  ;;  %v3356_v38 = vsel %vm477_vm6, %v12894_v11, %v12920_v14 }
 0x613   :  { %v10598_v22 = vpop.permute.xlu1 %3260  ;;  %v3389_v11 = vmul.f32 %v3356_v38, %v12921_v43  ;;  %v12927_v38 = vld [vmem:[#allocation148_spill] sm:$0xff] }
 0x614   :  { %v3278_v56 = vsel %vm592_vm7, %v10598_v22, %v10152_v37 }
 0x615   :  { %v3311_v3 = vmul.f32 %v3278_v56, %v12897_v62  ;;  %v12922_v56 = vld [vmem:[#allocation11_spill] sm:$0xff]  ;;  %v12970_v62 = vld [vmem:[#allocation66_spill] sm:$0xff] }
 0x617   :  { %v3843_v42 = vsel %vm66_vm0, %v3311_v3, %v3715_v60  ;;  %v3760_v60 = vrot.slane %v3470_v50, 4  ;;  %v3872_v50 = vsel %vm66_vm0, %v3567_v54, %v3792_v34  ;;  %v12928_v54 = vld [vmem:[#allocation97_spill] sm:$0xff] }
 0x618   :  { %v3891_v9 = vpack.c.bf16 %v3843_v42, %v3827_v16  ;;  %v12924_v42 = vld [vmem:[#allocation142_spill] sm:$0xff] }
 0x619   :  { %v3194_v63 = vsel %vm477_vm6, %v10316_v24, %v12924_v42  ;;  %v12926_v24 = vld [vmem:[#allocation15_spill] sm:$0xff] }
 0x61a   :  { %4172 = vmatpush.bf16.msra.mxu1 %v3891_v9  ;;  %v3458_v9 = vsel %vm592_vm7, %v12909_v36, %v9814_v35  ;;  %v3538_v35 = vsel %vm477_vm6, %v10226_v10, %v12927_v38  ;;  %v3227_v36 = vmul.f32 %v3194_v63, %v12921_v43  ;;  %v12979_v43 = vld [vmem:[#allocation27_spill] sm:$0xff] }
 0x61b   :  { %v3597_v0 = vpop.permute.xlu1 %3596 }
 0x61c   :  { %v3615_v55 = vsel %vm592_vm7, %v10467_v46, %v3597_v0  ;;  %v3616_v18 = vsel %vm592_vm7, %v3597_v0, %v10520_v7  ;;  %v12923_v46 = vld [vmem:[#allocation145_spill] sm:$0xff]  ;;  %v12925_v0 = vld [vmem:[#allocation12_spill] sm:$0xff] }
 0x61d   :  { %v3648_v31 = vmul.f32 %v3615_v55, %v12919_v48  ;;  %v3649_v40 = vmul.f32 %v3616_v18, %v12922_v56  ;;  %6448 = vmatmul.msk.bf16.vlgmr.msra.gmra.mxu1 %vm62_vm1, %v10231_v53  ;;  %v3636_v7 = vsel %vm592_vm7, %v10204_v57, %v12923_v46  ;;  %v3360_v57 = vsel %vm477_vm6, %v12915_v44, %v9842_v33  ;;  %v12929_v46 = vld [vmem:[#allocation114_spill] sm:$0xff] }
 0x61e   :  { %v3652_v55 = vmul.f32 %v3636_v7, %v12925_v0  ;;  %v3439_v18 = vsel %vm592_vm7, %v12926_v24, %v12910_v39  ;;  %v3474_v33 = vmul.f32 %v3458_v9, %v12925_v0  ;;  %v3438_v44 = vsel %vm592_vm7, %v12918_v41, %v12926_v24 }
 0x61f   :  { %v3920_v3 = vpack.c.bf16 %v3648_v31, %v3648_v31  ;;  %v3921_v16 = vpack.c.bf16 %v3649_v40, %v3649_v40  ;;  %v3856_v40 = vsel %vm66_vm0, %v12928_v54, %v3760_v60  ;;  %v3664_v10 = vrot.slane %v12929_v46, 4  ;;  %v12933_v46 = vld [vmem:[#allocation109_spill] sm:$0xff] }
 0x620   :  { %v3904_v34 = vpack.c.bf16 %v3872_v50, %v3856_v40  ;;  %v3712_v7 = vrot.slane %v3389_v11, 4  ;;  %v3924_v63 = vpack.c.bf16 %v3652_v55, %v3652_v55  ;;  %v3571_v60 = vmul.f32 %v3538_v35, %v12879_v6  ;;  %v12931_v11 = vld [vmem:[#allocation147_spill] sm:$0xff] }
 0x621   :  { %v3969_v12 = vsel %vm1305_vm9, %v3920_v3, 0  ;;  %v3972_v51 = vsel %vm1305_vm9, %v3921_v16, 0  ;;  %v3472_v16 = vmul.f32 %v3439_v18, %v12908_v25  ;;  %v3393_v9 = vmul.f32 %v3360_v57, %v12879_v6  ;;  %v12967_v6 = vld [vmem:[#allocation16_spill] sm:$0xff] }
 0x622   :  { %4131 = vmatpush.bf16.msrb.mxu2 %v3969_v12  ;;  %4144 = vmatpush.bf16.msrb.mxu3 %v3972_v51  ;;  %v3471_v41 = vmul.f32 %v3438_v44, %v12922_v56  ;;  %v3824_v12 = vsel %vm66_vm0, %v3227_v36, %v3664_v10  ;;  %v12930_v51 = vld [vmem:[#allocation126_spill] sm:$0xff]  ;;  %v3764_v24 = vrot.slane %v3474_v33, 4  ;;  %v3296_v38 = vsel %vm592_vm7, %v10152_v37, %v12931_v11 }
 0x623   :  { %v10653_v31 = vpop.permute.xlu1 %3256  ;;  %v3796_v50 = vrot.slane %v12930_v51, 4  ;;  %v3762_v55 = vrot.slane %v3472_v16, 4  ;;  %v3981_v35 = vsel %vm1305_vm9, %v3924_v63, 0  ;;  %v3716_v54 = vrot.slane %v3393_v9, 4  ;;  %v3179_v16 = vpop.permute.xlu0 %3178  ;;  %v12935_v63 = vld [vmem:[#allocation14_spill] sm:$0xff]  ;;  %v12936_v9 = vld [vmem:[#allocation31_spill] sm:$0xff] }
 0x624   :  { %v3275_v39 = vsel %vm592_vm7, %v12896_v4, %v10653_v31  ;;  %v3761_v40 = vrot.slane %v3471_v41, 4  ;;  %v3312_v36 = vmul.f32 %v3296_v38, %v12925_v0  ;;  %v3860_v10 = vsel %vm66_vm0, %v12933_v46, %v3764_v24 }
 0x625   :  { %v3308_v3 = vmul.f32 %v3275_v39, %v12919_v48  ;;  %v3876_v57 = vsel %vm66_vm0, %v3571_v60, %v3796_v50  ;;  %v12932_v39 = vld [vmem:[#allocation149_spill] sm:$0xff]  ;;  %v12938_v50 = vld [vmem:[#allocation103_spill] sm:$0xff] }
 0x626   :  { %4132 = vmatpush.bf16.msrb.mxu2 %v3904_v34  ;;  %v3793_v34 = vrot.slane %v12932_v39, 4  ;;  %v3857_v24 = vsel %vm66_vm0, %v12938_v50, %v3761_v40 }
 0x627   :  { %v3840_v4 = vsel %vm66_vm0, %v3308_v3, %v3712_v7  ;;  %v12934_v7 = vld [vmem:[#allocation146_spill] sm:$0xff] }
 0x628   :  { %v3888_v18 = vpack.c.bf16 %v3840_v4, %v3824_v12  ;;  %v3794_v3 = vrot.slane %v12934_v7, 4  ;;  %v3908_v12 = vpack.c.bf16 %v3876_v57, %v3860_v10  ;;  %v12937_v4 = vld [vmem:[#allocation122_spill] sm:$0xff]  ;;  %v10719_v10 = vpop.permute.xlu2 %3929 }
 0x629   :  { %v3858_v51 = vsel %vm66_vm0, %v12937_v4, %v3762_v55 }
 0x62a   :  { %4133 = vmatpush.bf16.msrb.mxu2 %v3888_v18  ;;  %v3844_v18 = vsel %vm66_vm0, %v3312_v36, %v3716_v54 }
 0x62b   :  { %v3519_v44 = vpop.permute.xlu1 %3518  ;;  %v3892_v40 = vpack.c.bf16 %v3844_v18, %v10453_v19  ;;  %v12942_v18 = vld [vmem:[#allocation81_spill] sm:$0xff] }
 0x62c   :  { %v3535_v33 = vsel %vm477_vm6, %v10605_v45, %v3519_v44  ;;  %v3536_v37 = vsel %vm477_vm6, %v3519_v44, %v10574_v26  ;;  %v3357_v45 = vsel %vm477_vm6, %v12920_v14, %v10498_v61  ;;  %v3358_v26 = vsel %vm477_vm6, %v10498_v61, %v12916_v52 }
 0x62d   :  { %v3568_v60 = vmul.f32 %v3535_v33, %v12935_v63  ;;  %v3569_v41 = vmul.f32 %v3536_v37, %v12936_v9  ;;  %6445 = vmatmul.msk.bf16.vlgmr.msrb.gmra.mxu2 %vm62_vm1, %v10231_v53  ;;  %v3195_v14 = vsel %vm477_vm6, %v12924_v42, %v3179_v16  ;;  %v3390_v55 = vmul.f32 %v3357_v45, %v12935_v63  ;;  %v12939_v42 = vld [vmem:[#allocation143_spill] sm:$0xff] }
 0x62e   :  { %4183 = vmatpush.bf16.msra.mxu2 %v3981_v35  ;;  %v3196_v35 = vsel %vm477_vm6, %v3179_v16, %v10580_v23  ;;  %v3391_v57 = vmul.f32 %v3358_v26, %v12936_v9  ;;  %v3228_v44 = vmul.f32 %v3195_v14, %v12935_v63  ;;  %v3665_v39 = vrot.slane %v12939_v42, 4 }
 0x62f   :  { %v3873_v11 = vsel %vm66_vm0, %v3568_v60, %v3793_v34  ;;  %v3874_v38 = vsel %vm66_vm0, %v3569_v41, %v3794_v3  ;;  %v3229_v54 = vmul.f32 %v3196_v35, %v12936_v9  ;;  %v12940_v34 = vld [vmem:[#allocation140_spill] sm:$0xff]  ;;  %v3713_v46 = vrot.slane %v3390_v55, 4 }
 0x630   :  { %v3905_v61 = vpack.c.bf16 %v3873_v11, %v3857_v24  ;;  %v3906_v52 = vpack.c.bf16 %v3874_v38, %v3858_v51  ;;  %v3666_v23 = vrot.slane %v12940_v34, 4  ;;  %v3714_v19 = vrot.slane %v3391_v57, 4 }
 0x631   :  { %v3825_v41 = vsel %vm66_vm0, %v3228_v44, %v3665_v39 }
 0x632   :  { %4184 = vmatpush.bf16.msra.mxu2 %v3908_v12  ;;  %4145 = vmatpush.bf16.msrb.mxu3 %v3905_v61 }
 0x633   :  { %4158 = vmatpush.bf16.msra.mxu0 %v3906_v52  ;;  %v3259_v36 = vpop.permute.xlu1 %3258 }
 0x634   :  { %v3276_v33 = vsel %vm592_vm7, %v10653_v31, %v3259_v36  ;;  %v3277_v37 = vsel %vm592_vm7, %v3259_v36, %v10598_v22  ;;  %v3826_v31 = vsel %vm66_vm0, %v3229_v54, %v3666_v23  ;;  %v12941_v22 = vld [vmem:[#allocation69_spill] sm:$0xff]  ;;  %v12944_v36 = vld [vmem:[#allocation67_spill] sm:$0xff] }
 0x635   :  { %v3309_v7 = vmul.f32 %v3276_v33, %v12922_v56  ;;  %v3310_v3 = vmul.f32 %v3277_v37, %v12908_v25  ;;  %v4005_v16 = vpop.f32.mrf.mxu0  ;;  %v12946_v37 = vld [vmem:[#allocation19_spill] sm:$0xff] }
 0x636   :  { %4185 = vmatpush.bf16.msra.mxu2 %v3892_v40  ;;  %v4006_v60 = vadd.f32 %v4005_v16, %v10719_v10 }
 0x637   :  { %v3841_v12 = vsel %vm66_vm0, %v3309_v7, %v3713_v46  ;;  %v3842_v45 = vsel %vm66_vm0, %v3310_v3, %v3714_v19 }
 0x638   :  { %v4192_v26 = vadd.f32 %v4006_v60, %v12941_v22  ;;  %v3889_v4 = vpack.c.bf16 %v3841_v12, %v3825_v41  ;;  %v3890_v51 = vpack.c.bf16 %v3842_v45, %v3826_v31  ;;  %v12947_v60 = vld [vmem:[#allocation87_spill] sm:$0xff]  ;;  %v12948_v22 = vld [vmem:[#allocation90_spill] sm:$0xff] }
 0x63a   :  { %v10729_v50 = vmax.f32 %v4192_v26, 0.0  ;;  %4146 = vmatpush.bf16.msrb.mxu3 %v3889_v4  ;;  %4159 = vmatpush.bf16.msra.mxu0 %v3890_v51 }
 0x63b   :  { %v3992_v24 = vpop.f32.mrf.mxu3 }
 0x63c   :  { %v3993_v11 = vadd.f32 %v3992_v24, %v10719_v10  ;;  %4244 = vrot.lane.b32.xlu0 %v10729_v50, %s6906_s4  ;;  %4322 = vrot.lane.b32.xlu1 %v10729_v50, %s6907_s8 }
 0x63d   :  { %6446 = vmatmul.msk.bf16.vlgmr.msrb.gmra.mxu3 %vm62_vm1, %v10231_v53  ;;  %6447 = vmatmul.msk.bf16.vlgmr.msra.gmra.mxu0 %vm62_vm1, %v10231_v53  ;;  %v4007_v38 = vpop.f32.mrf.mxu0 }
 0x63e   :  { %v4191_v14 = vadd.f32 %v3993_v11, %v12942_v18  ;;  %6449 = vmatmul.msk.bf16.vlgmr.msra.gmra.mxu2 %vm62_vm1, %v10231_v53  ;;  %v12949_v18 = vld [vmem:[#allocation20_spill] sm:$0xff] }
 0x640   :  { %v10743_v35 = vmax.f32 %v4191_v14, 0.0 }
 0x642   :  { %12943 = vst [vmem:[#allocation76_spill] sm:$0xff] %v10743_v35  ;;  %4242 = vrot.lane.b32.xlu2 %v10743_v35, %s6906_s4 }
 0x643   :  { %v3994_v61 = vpop.f32.mrf.mxu3 }
 0x644   :  { %4662 = vrot.lane.b32.xlu0 %v10729_v50, %s6908_s1  ;;  %4584 = vrot.lane.b32.xlu1 %v10729_v50, %s6909_s12 }
 0x64a   :  { %4660 = vrot.lane.b32.xlu2 %v10743_v35, %s6908_s1 }
 0x64c   :  { %4320 = vrot.lane.b32.xlu0 %v10743_v35, %s6907_s8 }
 0x652   :  { %4582 = vrot.lane.b32.xlu2 %v10743_v35, %s6909_s12  ;;  %v4018_v53 = vpop.f32.mrf.mxu1 }
 0x653   :  { %v4019_v39 = vadd.f32 %v4018_v53, %v10719_v10 }
 0x655   :  { %v4193_v46 = vadd.f32 %v4019_v39, %v12946_v37 }
 0x657   :  { %v10769_v7 = vmax.f32 %v4193_v46, 0.0 }
 0x658   :  { %v4031_v52 = vpop.f32.mrf.mxu2 }
 0x659   :  { %v4032_v3 = vadd.f32 %v4031_v52, %v10719_v10 }
 0x65a   :  { %v4020_v55 = vpop.f32.mrf.mxu1 }
 0x65b   :  { %v4194_v41 = vadd.f32 %v4032_v3, %v12947_v60 }
 0x65d   :  { %v10779_v12 = vmax.f32 %v4194_v41, 0.0 }
 0x660   :  { %v4033_v57 = vpop.f32.mrf.mxu2 }
 0x661   :  { %v4057_v40 = vpop.f32.mrf.mxu0 }
 0x662   :  { %v4058_v44 = vadd.f32 %v4057_v40, %v10719_v10  ;;  %v4070_v54 = vpop.f32.mrf.mxu1 }
 0x663   :  { %v4071_v38 = vadd.f32 %v4070_v54, %v10719_v10 }
 0x664   :  { %v4196_v42 = vadd.f32 %v4058_v44, %v12944_v36  ;;  %v12951_v44 = vld [vmem:[#allocation34_spill] sm:$0xff] }
 0x665   :  { %v4197_v14 = vadd.f32 %v4071_v38, %v12949_v18  ;;  %v12957_v38 = vld [vmem:[#allocation84_spill] sm:$0xff] }
 0x666   :  { %v10760_v34 = vmax.f32 %v4196_v42, 0.0  ;;  %v12952_v42 = vld [vmem:[#allocation89_spill] sm:$0xff] }
 0x667   :  { %v4044_v23 = vpop.f32.mrf.mxu3  ;;  %v10805_v53 = vmax.f32 %v4197_v14, 0.0 }
 0x668   :  { %12945 = vst [vmem:[#allocation62_spill] sm:$0xff] %v10760_v34  ;;  %4592 = vrot.lane.b32.xlu1 %v10760_v34, %s6909_s12  ;;  %4670 = vrot.lane.b32.xlu2 %v10760_v34, %s6908_s1  ;;  %v4045_v31 = vadd.f32 %v4044_v23, %v10719_v10  ;;  %v12953_v23 = vld [vmem:[#allocation80_spill] sm:$0xff] }
 0x669   :  { %4330 = vrot.lane.b32.xlu0 %v10760_v34, %s6907_s8  ;;  %v4059_v33 = vpop.f32.mrf.mxu0  ;;  %12950 = vst [vmem:[#allocation63_spill] sm:$0xff] %v10805_v53 }
 0x66a   :  { %v4072_v19 = vpop.f32.mrf.mxu1  ;;  %v4195_v26 = vadd.f32 %v4045_v31, %v12948_v22 }
 0x66c   :  { %v10789_v51 = vmax.f32 %v4195_v26, 0.0 }
 0x66f   :  { %v4046_v16 = vpop.f32.mrf.mxu3 }
 0x670   :  { %4586 = vrot.lane.b32.xlu1 %v10769_v7, %s6909_s12  ;;  %4324 = vrot.lane.b32.xlu2 %v10769_v7, %s6907_s8 }
 0x671   :  { %4252 = vrot.lane.b32.xlu0 %v10760_v34, %s6906_s4  ;;  %v13012_v34 = vld [vmem:[#allocation78_spill] sm:$0xff] }
 0x678   :  { %4326 = vrot.lane.b32.xlu1 %v10779_v12, %s6907_s8  ;;  %4246 = vrot.lane.b32.xlu2 %v10769_v7, %s6906_s4  ;;  %v4083_v45 = vpop.f32.mrf.mxu2 }
 0x679   :  { %4664 = vrot.lane.b32.xlu0 %v10769_v7, %s6908_s1  ;;  %v4084_v55 = vadd.f32 %v4083_v45, %v10719_v10 }
 0x67a   :  { %v4122_v4 = vpop.f32.mrf.mxu1 }
 0x67b   :  { %v4198_v39 = vadd.f32 %v4084_v55, %v12952_v42  ;;  %v4123_v14 = vadd.f32 %v4122_v4, %v10719_v10  ;;  %v12960_v42 = vld [vmem:[#allocation83_spill] sm:$0xff] }
 0x67d   :  { %v10823_v19 = vmax.f32 %v4198_v39, 0.0 }
 0x67f   :  { %12955 = vst [vmem:[#allocation18_spill] sm:$0xff] %v10823_v19 }
 0x680   :  { %4250 = vrot.lane.b32.xlu1 %v10789_v51, %s6906_s4  ;;  %4328 = vrot.lane.b32.xlu2 %v10789_v51, %s6907_s8  ;;  %v4085_v24 = vpop.f32.mrf.mxu2 }
 0x681   :  { %4248 = vrot.lane.b32.xlu0 %v10779_v12, %s6906_s4 }
 0x682   :  { %v4124_v11 = vpop.f32.mrf.mxu1 }
 0x688   :  { %4668 = vrot.lane.b32.xlu1 %v10789_v51, %s6908_s1  ;;  %4588 = vrot.lane.b32.xlu2 %v10779_v12, %s6909_s12 }
 0x689   :  { %4666 = vrot.lane.b32.xlu0 %v10779_v12, %s6908_s1 }
 0x68a   :  { %v4109_v61 = vpop.f32.mrf.mxu0 }
 0x68b   :  { %v4110_v52 = vadd.f32 %v4109_v61, %v10719_v10 }
 0x68d   :  { %v4200_v54 = vadd.f32 %v4110_v52, %v12951_v44 }
 0x68f   :  { %v10821_v46 = vmax.f32 %v4200_v54, 0.0  ;;  %v12959_v54 = vld [vmem:[#allocation74_spill] sm:$0xff] }
 0x690   :  { %4254 = vrot.lane.b32.xlu1 %v10805_v53, %s6906_s4  ;;  %4590 = vrot.lane.b32.xlu2 %v10789_v51, %s6909_s12  ;;  %v4096_v57 = vpop.f32.mrf.mxu3 }
 0x691   :  { %4672 = vrot.lane.b32.xlu0 %v10805_v53, %s6908_s1  ;;  %v4097_v40 = vadd.f32 %v4096_v57, %v10719_v10 }
 0x692   :  { %v4111_v36 = vpop.f32.mrf.mxu0 }
 0x693   :  { %v4199_v33 = vadd.f32 %v4097_v40, %v12953_v23  ;;  %v4201_v36 = vadd.f32 %v4123_v14, %v12959_v54 }
 0x695   :  { %v10819_v37 = vmax.f32 %v4199_v33, 0.0  ;;  %v10869_v23 = vmax.f32 %v4201_v36, 0.0 }
 0x697   :  { %12954 = vst [vmem:[#allocation75_spill] sm:$0xff] %v10819_v37 }
 0x698   :  { %4338 = vrot.lane.b32.xlu2 %v10821_v46, %s6907_s8  ;;  %4336 = vrot.lane.b32.xlu1 %v10819_v37, %s6907_s8  ;;  %v4098_v3 = vpop.f32.mrf.mxu3 }
 0x699   :  { %4334 = vrot.lane.b32.xlu0 %v10823_v19, %s6907_s8 }
 0x69a   :  { %v4174_v16 = vpop.f32.mrf.mxu1 }
 0x69b   :  { %v4175_v54 = vadd.f32 %v4174_v16, %v10719_v10 }
 0x69c   :  { %v10837_v41 = vpop.permute.xlu2 %4242 }
 0x6a0   :  { %4260 = vrot.lane.b32.xlu2 %v10821_v46, %s6906_s4  ;;  %4674 = vrot.lane.b32.xlu1 %v10823_v19, %s6908_s1 }
 0x6a1   :  { %4258 = vrot.lane.b32.xlu0 %v10819_v37, %s6906_s4 }
 0x6a2   :  { %v4176_v60 = vpop.f32.mrf.mxu1 }
 0x6a4   :  { %v10843_v31 = vpop.permute.xlu2 %4660 }
 0x6a5   :  { %12956 = vst [vmem:[#allocation133_spill] sm:$0xff] %v10843_v31 }
 0x6a8   :  { %4678 = vrot.lane.b32.xlu2 %v10821_v46, %s6908_s1 }
 0x6a9   :  { %4596 = vrot.lane.b32.xlu0 %v10823_v19, %s6909_s12 }
 0x6ac   :  { %v10849_v26 = vpop.permute.xlu2 %4582 }
 0x6ae   :  { %v10854_v61 = vpop.permute.xlu0 %4244  ;;  %v4323_v3 = vpop.permute.xlu1 %4322 }
 0x6af   :  { %v4272_v56 = vsel %vm229_vm2, %v10837_v41, %v10854_v61 }
 0x6b0   :  { %4332 = vrot.lane.b32.xlu2 %v10805_v53, %s6907_s8  ;;  %v4135_v45 = vpop.f32.mrf.mxu2 }
 0x6b8   :  { %4594 = vrot.lane.b32.xlu2 %v10805_v53, %s6909_s12  ;;  %v4137_v22 = vpop.f32.mrf.mxu2 }
 0x6b9   :  { %v10875_v22 = vpop.permute.xlu0 %4662 }
 0x6ba   :  { %v4161_v24 = vpop.f32.mrf.mxu0  ;;  %12962 = vst [vmem:[#allocation60_spill] sm:$0xff] %v10875_v22 }
 0x6bb   :  { %v4162_v11 = vadd.f32 %v4161_v24, %v10719_v10 }
 0x6bd   :  { %v4204_v18 = vadd.f32 %v4162_v11, %v12957_v38  ;;  %v4136_v38 = vadd.f32 %v4135_v45, %v10719_v10 }
 0x6bf   :  { %v10856_v52 = vmax.f32 %v4204_v18, 0.0  ;;  %v10890_v18 = vpop.permute.xlu1 %4584 }
 0x6c0   :  { %4256 = vrot.lane.b32.xlu2 %v10823_v19, %s6906_s4  ;;  %v4148_v55 = vpop.f32.mrf.mxu3 }
 0x6c1   :  { %12958 = vst [vmem:[#allocation46_spill] sm:$0xff] %v10856_v52  ;;  %v4149_v57 = vadd.f32 %v4148_v55, %v10719_v10  ;;  %v4187_v40 = vpop.f32.mrf.mxu2  ;;  %4268 = vrot.lane.b32.xlu0 %v10856_v52, %s6906_s4  ;;  %4346 = vrot.lane.b32.xlu1 %v10856_v52, %s6907_s8  ;;  %v12963_v55 = vld [vmem:[#allocation77_spill] sm:$0xff] }
 0x6c2   :  { %v10865_v44 = vpop.permute.xlu2 %4670  ;;  %v4163_v4 = vpop.f32.mrf.mxu0 }
 0x6c3   :  { %v4203_v39 = vadd.f32 %v4149_v57, %v12960_v42  ;;  %v4202_v57 = vadd.f32 %v4136_v38, %v12963_v55  ;;  %v10895_v4 = vpop.permute.xlu0 %4320  ;;  %v4188_v38 = vadd.f32 %v4187_v40, %v10719_v10 }
 0x6c5   :  { %v10871_v33 = vmax.f32 %v4203_v39, 0.0  ;;  %v10898_v45 = vmax.f32 %v4202_v57, 0.0  ;;  %v12965_v39 = vld [vmem:[#allocation42_spill] sm:$0xff]  ;;  %v4206_v29 = vadd.f32 %v4188_v38, %v12967_v6 }
 0x6c7   :  { %12961 = vst [vmem:[#allocation72_spill] sm:$0xff] %v10871_v33  ;;  %v10932_v40 = vmax.f32 %v4206_v29, 0.0  ;;  %v4352_v29 = vsel %vm344_vm3, %v10895_v4, %v4323_v3 }
 0x6c8   :  { %4676 = vrot.lane.b32.xlu2 %v10819_v37, %s6908_s1  ;;  %v4150_v60 = vpop.f32.mrf.mxu3  ;;  %12964 = vst [vmem:[#allocation39_spill] sm:$0xff] %v10898_v45  ;;  %v10954_v25 = vmul.f32 %v4352_v29, %v12970_v62  ;;  %v12972_v29 = vld [vmem:[#allocation33_spill] sm:$0xff] }
 0x6c9   :  { %4340 = vrot.lane.b32.xlu1 %v10869_v23, %s6907_s8  ;;  %4344 = vrot.lane.b32.xlu0 %v10871_v33, %s6907_s8  ;;  %v4189_v24 = vpop.f32.mrf.mxu2  ;;  %v4205_v60 = vadd.f32 %v4175_v54, %v12965_v39  ;;  %12968 = vst [vmem:[#allocation113_spill] sm:$0xff] %v10932_v40  ;;  %v10970_v58 = vmul.f32 %v4272_v56, %v12972_v29  ;;  %v12975_v29 = vld [vmem:[#allocation24_spill] sm:$0xff] }
 0x6ca   :  { %v10881_v11 = vpop.permute.xlu2 %4324  ;;  %12971 = vst [vmem:[#allocation96_spill] sm:$0xff] %v10954_v25 }
 0x6cb   :  { %v10913_v16 = vmax.f32 %v4205_v60, 0.0  ;;  %v4353_v62 = vsel %vm344_vm3, %v4323_v3, %v10881_v11  ;;  %12973 = vst [vmem:[#allocation43_spill] sm:$0xff] %v10970_v58 }
 0x6cc   :  { %v10973_v35 = vmul.f32 %v4353_v62, %v12974_v28 }
 0x6cd   :  { %12966 = vst [vmem:[#allocation111_spill] sm:$0xff] %v10913_v16 }
 0x6d0   :  { %4598 = vrot.lane.b32.xlu2 %v10819_v37, %s6909_s12 }
 0x6d1   :  { %4262 = vrot.lane.b32.xlu1 %v10869_v23, %s6906_s4  ;;  %4266 = vrot.lane.b32.xlu0 %v10871_v33, %s6906_s4 }
 0x6d2   :  { %v10892_v14 = vpop.permute.xlu2 %4246 }
 0x6d3   :  { %v4273_v28 = vsel %vm229_vm2, %v10854_v61, %v10892_v14 }
 0x6d8   :  { %4602 = vrot.lane.b32.xlu2 %v10869_v23, %s6909_s12 }
 0x6d9   :  { %4682 = vrot.lane.b32.xlu1 %v10898_v45, %s6908_s1  ;;  %4604 = vrot.lane.b32.xlu0 %v10898_v45, %s6909_s12 }
 0x6da   :  { %v10906_v36 = vpop.permute.xlu2 %4328  ;;  %v10908_v42 = vpop.permute.xlu1 %4592 }
 0x6db   :  { %v10911_v24 = vpop.permute.xlu0 %4330 }
 0x6e0   :  { %4342 = vrot.lane.b32.xlu2 %v10898_v45, %s6907_s8 }
 0x6e1   :  { %4270 = vrot.lane.b32.xlu1 %v10913_v16, %s6906_s4  ;;  %4348 = vrot.lane.b32.xlu0 %v10913_v16, %s6907_s8 }
 0x6e2   :  { %v4589_v55 = vpop.permute.xlu2 %4588  ;;  %v4587_v57 = vpop.permute.xlu1 %4586 }
 0x6e3   :  { %v10923_v54 = vpop.permute.xlu0 %4252  ;;  %v10927_v39 = vsel %vm477_vm6, %v10890_v18, %v4587_v57  ;;  %v10930_v10 = vsel %vm477_vm6, %v4587_v57, %v4589_v55 }
 0x6e8   :  { %4264 = vrot.lane.b32.xlu2 %v10898_v45, %s6906_s4 }
 0x6e9   :  { %4224 = vrot.lane.b32.xlu1 %v10932_v40, %s6906_s4  ;;  %4350 = vrot.lane.b32.xlu0 %v10932_v40, %s6907_s8 }
 0x6ea   :  { %v4591_v6 = vpop.permute.xlu2 %4590  ;;  %v4327_v60 = vpop.permute.xlu1 %4326 }
 0x6eb   :  { %v4665_v38 = vpop.permute.xlu0 %4664  ;;  %v10941_v9 = vsel %vm477_vm6, %v4589_v55, %v4591_v6  ;;  %v10945_v57 = vsel %vm477_vm6, %v4591_v6, %v10908_v42 }
 0x6ec   :  { %12969 = vst [vmem:[#allocation125_spill] sm:$0xff] %v10945_v57  ;;  %v10951_v0 = vsel %vm592_vm7, %v10875_v22, %v4665_v38 }
 0x6f0   :  { %4684 = vrot.lane.b32.xlu2 %v10871_v33, %s6908_s1 }
 0x6f1   :  { %4579 = vrot.lane.b32.xlu1 %v10932_v40, %s6909_s12  ;;  %4838 = vrot.lane.b32.xlu0 %v10954_v25, %s6908_s1 }
 0x6f2   :  { %v10962_v55 = vpop.permute.xlu2 %4338  ;;  %v4251_v6 = vpop.permute.xlu1 %4250 }
 0x6f3   :  { %v4249_v63 = vpop.permute.xlu0 %4248 }
 0x6f8   :  { %4760 = vrot.lane.b32.xlu2 %v10954_v25, %s6909_s12  ;;  %v10997_v25 = vmul.f32 %v4273_v28, %v12975_v29  ;;  %v12978_v29 = vld [vmem:[#allocation26_spill] sm:$0xff] }
 0x6f9   :  { %4840 = vrot.lane.b32.xlu1 %v10973_v35, %s6908_s1  ;;  %4422 = vrot.lane.b32.xlu0 %v10970_v58, %s6909_s12 }
 0x6fa   :  { %v10981_v5 = vpop.permute.xlu2 %4260  ;;  %v4669_v31 = vpop.permute.xlu1 %4668 }
 0x6fb   :  { %v4667_v22 = vpop.permute.xlu0 %4666  ;;  %v10985_v56 = vsel %vm592_vm7, %v4669_v31, %v10865_v44 }
 0x6fc   :  { %v10991_v3 = vsel %vm592_vm7, %v4665_v38, %v4667_v22  ;;  %v10994_v62 = vsel %vm592_vm7, %v4667_v22, %v4669_v31  ;;  %v4354_v38 = vsel %vm344_vm3, %v10881_v11, %v4327_v60  ;;  %v4355_v22 = vsel %vm344_vm3, %v4327_v60, %v10906_v36 }
 0x6fd   :  { %v11019_v48 = vmul.f32 %v4355_v22, %v12979_v43  ;;  %v4356_v43 = vsel %vm344_vm3, %v10906_v36, %v10911_v24 }
 0x700   :  { %4500 = vrot.lane.b32.xlu2 %v10970_v58, %s6908_s1  ;;  %v11016_v58 = vmul.f32 %v4354_v38, %v12978_v29  ;;  %v12980_v38 = vld [vmem:[#allocation23_spill] sm:$0xff]  ;;  %v12981_v29 = vld [vmem:[#allocation30_spill] sm:$0xff] }
 0x701   :  { %4424 = vrot.lane.b32.xlu1 %v10997_v25, %s6909_s12  ;;  %4762 = vrot.lane.b32.xlu0 %v10973_v35, %s6909_s12  ;;  %v11036_v37 = vmul.f32 %v4356_v43, %v12981_v29  ;;  %v4275_v43 = vsel %vm229_vm2, %v4249_v63, %v4251_v6  ;;  %v12984_v29 = vld [vmem:[#allocation22_spill] sm:$0xff] }
 0x702   :  { %v11005_v45 = vpop.permute.xlu2 %4678  ;;  %v4255_v61 = vpop.permute.xlu1 %4254  ;;  %v11053_v53 = vmul.f32 %v4275_v43, %v12984_v29  ;;  %v12987_v29 = vld [vmem:[#allocation49_spill] sm:$0xff] }
 0x703   :  { %12976 = vst [vmem:[#allocation130_spill] sm:$0xff] %v11005_v45  ;;  %v4673_v31 = vpop.permute.xlu0 %4672 }
 0x704   :  { %v11013_v28 = vsel %vm592_vm7, %v10865_v44, %v4673_v31  ;;  %v4274_v44 = vsel %vm229_vm2, %v10892_v14, %v4249_v63 }
 0x705   :  { %12977 = vst [vmem:[#allocation127_spill] sm:$0xff] %v11013_v28  ;;  %v11033_v22 = vmul.f32 %v4274_v44, %v12980_v38  ;;  %v13023_v28 = vld [vmem:[#allocation59_spill] sm:$0xff] }
 0x708   :  { %4764 = vrot.lane.b32.xlu2 %v11016_v58, %s6909_s12 }
 0x709   :  { %4502 = vrot.lane.b32.xlu1 %v10997_v25, %s6908_s1  ;;  %4844 = vrot.lane.b32.xlu0 %v11019_v48, %s6908_s1 }
 0x70a   :  { %v4333_v11 = vpop.permute.xlu2 %4332  ;;  %v4337_v60 = vpop.permute.xlu1 %4336 }
 0x70b   :  { %v4335_v2 = vpop.permute.xlu0 %4334  ;;  %v4357_v63 = vsel %vm344_vm3, %v10911_v24, %v4333_v11 }
 0x710   :  { %4426 = vrot.lane.b32.xlu2 %v11033_v22, %s6909_s12 }
 0x711   :  { %4846 = vrot.lane.b32.xlu1 %v11036_v37, %s6908_s1  ;;  %4766 = vrot.lane.b32.xlu0 %v11019_v48, %s6909_s12 }
 0x712   :  { %v4595_v14 = vpop.permute.xlu2 %4594  ;;  %v4675_v19 = vpop.permute.xlu1 %4674 }
 0x713   :  { %v11046_v36 = vsel %vm477_vm6, %v10908_v42, %v4595_v14  ;;  %v4259_v44 = vpop.permute.xlu0 %4258  ;;  %v11049_v38 = vsel %vm592_vm7, %v4673_v31, %v4675_v19  ;;  %v4276_v31 = vsel %vm229_vm2, %v4251_v6, %v10923_v54 }
 0x714   :  { %12982 = vst [vmem:[#allocation115_spill] sm:$0xff] %v11046_v36  ;;  %v11072_v59 = vmul.f32 %v4276_v31, %v12987_v29  ;;  %v12996_v29 = vld [vmem:[#allocation28_spill] sm:$0xff] }
 0x715   :  { %12983 = vst [vmem:[#allocation52_spill] sm:$0xff] %v11049_v38  ;;  %v11075_v38 = vmul.f32 %v4357_v63, %v12989_v32  ;;  %v12993_v32 = vld [vmem:[#allocation41_spill] sm:$0xff] }
 0x716   :  { %12988 = vst [vmem:[#allocation21_spill] sm:$0xff] %v11072_v59 }
 0x717   :  { %12990 = vst [vmem:[#allocation144_spill] sm:$0xff] %v11075_v38 }
 0x718   :  { %4842 = vrot.lane.b32.xlu2 %v11016_v58, %s6908_s1 }
 0x719   :  { %4504 = vrot.lane.b32.xlu0 %v11033_v22, %s6908_s1  ;;  %4506 = vrot.lane.b32.xlu1 %v11053_v53, %s6908_s1 }
 0x71a   :  { %v4257_v42 = vpop.permute.xlu2 %4256 }
 0x71b   :  { %v11061_v36 = vpop.permute.xlu0 %4596 }
 0x71c   :  { %12985 = vst [vmem:[#allocation112_spill] sm:$0xff] %v11061_v36  ;;  %v11069_v43 = vsel %vm477_vm6, %v4595_v14, %v11061_v36  ;;  %v4277_v14 = vsel %vm229_vm2, %v10923_v54, %v4255_v61 }
 0x71d   :  { %12986 = vst [vmem:[#allocation118_spill] sm:$0xff] %v11069_v43  ;;  %v11092_v31 = vmul.f32 %v4277_v14, %v12993_v32  ;;  %v4358_v14 = vsel %vm344_vm3, %v4333_v11, %v4335_v2 }
 0x71f   :  { %12994 = vst [vmem:[#allocation108_spill] sm:$0xff] %v11092_v31 }
 0x720   :  { %4768 = vrot.lane.b32.xlu2 %v11036_v37, %s6909_s12 }
 0x721   :  { %4508 = vrot.lane.b32.xlu0 %v11072_v59, %s6908_s1  ;;  %4848 = vrot.lane.b32.xlu1 %v11075_v38, %s6908_s1 }
 0x722   :  { %v11083_v24 = vpop.permute.xlu2 %4676 }
 0x723   :  { %12991 = vst [vmem:[#allocation138_spill] sm:$0xff] %v11083_v24  ;;  %v11087_v6 = vsel %vm592_vm7, %v4675_v19, %v11083_v24  ;;  %v4278_v19 = vsel %vm229_vm2, %v4255_v61, %v4257_v42  ;;  %v4359_v61 = vsel %vm344_vm3, %v4335_v2, %v4337_v60  ;;  %v13010_v24 = vld [vmem:[#allocation45_spill] sm:$0xff] }
 0x724   :  { %12992 = vst [vmem:[#allocation128_spill] sm:$0xff] %v11087_v6  ;;  %v11104_v36 = vmul.f32 %v4278_v19, %v12996_v29  ;;  %v4360_v19 = vsel %vm344_vm3, %v4337_v60, %v10962_v55  ;;  %v12999_v29 = vld [vmem:[#allocation37_spill] sm:$0xff]  ;;  %v13001_v6 = vld [vmem:[#allocation44_spill] sm:$0xff] }
 0x725   :  { %v11121_v43 = vmul.f32 %v4358_v14, %v12999_v29  ;;  %v11124_v49 = vmul.f32 %v4359_v61, %v13001_v6  ;;  %v4279_v6 = vsel %vm229_vm2, %v4257_v42, %v4259_v44  ;;  %v13005_v29 = vld [vmem:[#allocation32_spill] sm:$0xff] }
 0x726   :  { %12997 = vst [vmem:[#allocation121_spill] sm:$0xff] %v11104_v36 }
 0x727   :  { %13000 = vst [vmem:[#allocation141_spill] sm:$0xff] %v11121_v43 }
 0x728   :  { %4428 = vrot.lane.b32.xlu2 %v11053_v53, %s6909_s12  ;;  %13002 = vst [vmem:[#allocation120_spill] sm:$0xff] %v11124_v49 }
 0x729   :  { %4430 = vrot.lane.b32.xlu0 %v11072_v59, %s6909_s12  ;;  %4432 = vrot.lane.b32.xlu1 %v11092_v31, %s6909_s12  ;;  %v13031_v59 = vld [vmem:[#allocation50_spill] sm:$0xff] }
 0x72a   :  { %v11100_v63 = vpop.permute.xlu2 %4598 }
 0x72b   :  { %12995 = vst [vmem:[#allocation123_spill] sm:$0xff] %v11100_v63 }
 0x730   :  { %4434 = vrot.lane.b32.xlu2 %v11104_v36, %s6909_s12 }
 0x731   :  { %4770 = vrot.lane.b32.xlu0 %v11075_v38, %s6909_s12  ;;  %4510 = vrot.lane.b32.xlu1 %v11092_v31, %s6908_s1  ;;  %v11127_v31 = vmul.f32 %v4360_v19, %v13003_v47 }
 0x732   :  { %v11112_v54 = vpop.permute.xlu2 %4602 }
 0x733   :  { %12998 = vst [vmem:[#allocation129_spill] sm:$0xff] %v11112_v54  ;;  %v4269_v32 = vpop.permute.xlu0 %4268  ;;  %v11115_v63 = vpop.permute.xlu1 %4346  ;;  %v11146_v54 = vmul.f32 %v4279_v6, %v13005_v29  ;;  %v4280_v6 = vsel %vm229_vm2, %v4259_v44, %v10981_v5 }
 0x734   :  { %13004 = vst [vmem:[#allocation106_spill] sm:$0xff] %v11127_v31  ;;  %v11169_v38 = vmul.f32 %v4280_v6, %v13012_v34  ;;  %v13015_v6 = vld [vmem:[#allocation61_spill] sm:$0xff] }
 0x735   :  { %13006 = vst [vmem:[#allocation116_spill] sm:$0xff] %v11146_v54 }
 0x738   :  { %4850 = vrot.lane.b32.xlu2 %v11121_v43, %s6908_s1 }
 0x739   :  { %4854 = vrot.lane.b32.xlu1 %v11127_v31, %s6908_s1  ;;  %4852 = vrot.lane.b32.xlu0 %v11124_v49, %s6908_s1 }
 0x73a   :  { %v4343_v2 = vpop.permute.xlu2 %4342 }
 0x73b   :  { %v4345_v11 = vpop.permute.xlu0 %4344  ;;  %v4341_v60 = vpop.permute.xlu1 %4340 }
 0x73c   :  { %v4361_v29 = vsel %vm344_vm3, %v10962_v55, %v4341_v60  ;;  %v4363_v34 = vsel %vm344_vm3, %v4343_v2, %v4345_v11 }
 0x740   :  { %4776 = vrot.lane.b32.xlu2 %v11127_v31, %s6909_s12 }
 0x741   :  { %4774 = vrot.lane.b32.xlu1 %v11124_v49, %s6909_s12  ;;  %4772 = vrot.lane.b32.xlu0 %v11121_v43, %s6909_s12 }
 0x742   :  { %v4265_v47 = vpop.permute.xlu2 %4264 }
 0x743   :  { %v4267_v14 = vpop.permute.xlu0 %4266  ;;  %v4263_v61 = vpop.permute.xlu1 %4262 }
 0x744   :  { %v11143_v19 = vsel %vm229_vm2, %v4267_v14, %v4269_v32  ;;  %v4282_v42 = vsel %vm229_vm2, %v4263_v61, %v4265_v47 }
 0x745   :  { %v11166_v45 = vmul.f32 %v4282_v42, %v13010_v24 }
 0x747   :  { %13011 = vst [vmem:[#allocation93_spill] sm:$0xff] %v11166_v45 }
 0x748   :  { %4436 = vrot.lane.b32.xlu2 %v11146_v54, %s6909_s12 }
 0x749   :  { %4514 = vrot.lane.b32.xlu1 %v11146_v54, %s6908_s1  ;;  %4512 = vrot.lane.b32.xlu0 %v11104_v36, %s6908_s1  ;;  %v13013_v36 = vld [vmem:[#allocation82_spill] sm:$0xff] }
 0x74a   :  { %v11154_v49 = vpop.permute.xlu2 %4684 }
 0x74b   :  { %13007 = vst [vmem:[#allocation117_spill] sm:$0xff] %v11154_v49  ;;  %v11157_v43 = vpop.permute.xlu0 %4604  ;;  %v11159_v31 = vpop.permute.xlu1 %4682  ;;  %v11172_v49 = vmul.f32 %v4361_v29, %v13013_v36  ;;  %v4281_v36 = vsel %vm229_vm2, %v10981_v5, %v4263_v61  ;;  %v11191_v29 = vmul.f32 %v4363_v34, %v13015_v6  ;;  %v4362_v61 = vsel %vm344_vm3, %v4341_v60, %v4343_v2  ;;  %v13021_v6 = vld [vmem:[#allocation71_spill] sm:$0xff] }
 0x74c   :  { %13008 = vst [vmem:[#allocation132_spill] sm:$0xff] %v11157_v43  ;;  %v13017_v43 = vld [vmem:[#allocation57_spill] sm:$0xff]  ;;  %v11215_v17 = vmul.f32 %v4362_v61, %v13023_v28  ;;  %v4283_v61 = vsel %vm229_vm2, %v4265_v47, %v4267_v14 }
 0x74d   :  { %13009 = vst [vmem:[#allocation131_spill] sm:$0xff] %v11159_v31  ;;  %v11194_v31 = vmul.f32 %v4281_v36, %v13017_v43  ;;  %v13019_v43 = vld [vmem:[#allocation54_spill] sm:$0xff] }
 0x74e   :  { %13016 = vst [vmem:[#allocation135_spill] sm:$0xff] %v11191_v29 }
 0x74f   :  { %13018 = vst [vmem:[#allocation119_spill] sm:$0xff] %v11194_v31 }
 0x750   :  { %4442 = vrot.lane.b32.xlu2 %v11166_v45, %s6909_s12  ;;  %13024 = vst [vmem:[#allocation110_spill] sm:$0xff] %v11215_v17 }
 0x751   :  { %4516 = vrot.lane.b32.xlu0 %v11169_v38, %s6908_s1  ;;  %4856 = vrot.lane.b32.xlu1 %v11172_v49, %s6908_s1 }
 0x752   :  { %v11180_v44 = vpop.permute.xlu2 %4760 }
 0x753   :  { %13014 = vst [vmem:[#allocation58_spill] sm:$0xff] %v11180_v44  ;;  %v11182_v55 = vpop.permute.xlu0 %4348  ;;  %v4271_v24 = vpop.permute.xlu1 %4270 }
 0x754   :  { %v11188_v42 = vsel %vm229_vm2, %v4269_v32, %v4271_v24  ;;  %v4364_v32 = vsel %vm344_vm3, %v4345_v11, %v11115_v63 }
 0x755   :  { %v11212_v57 = vmul.f32 %v4364_v32, %v13021_v6  ;;  %v13027_v6 = vld [vmem:[#allocation17_spill] sm:$0xff] }
 0x757   :  { %13022 = vst [vmem:[#allocation139_spill] sm:$0xff] %v11212_v57 }
 0x759   :  { %4860 = vrot.lane.b32.xlu0 %v11191_v29, %s6908_s1  ;;  %4440 = vrot.lane.b32.xlu1 %v11194_v31, %s6909_s12 }
 0x75a   :  { %v11200_v21 = vpop.permute.xlu2 %4500 }
 0x75b   :  { %v11202_v54 = vpop.permute.xlu0 %4350  ;;  %v4225_v5 = vpop.permute.xlu1 %4224 }
 0x75c   :  { %v4286_v34 = vsel %vm229_vm2, %v4271_v24, %v4225_v5 }
 0x75d   :  { %v11209_v36 = vmul.f32 %v4286_v34, %v13019_v43  ;;  %v4303_v34 = vsel %vm229_vm2, %v4225_v5, %v10837_v41 }
 0x75e   :  { %v11253_v31 = vmul.f32 %v4303_v34, %v13031_v59 }
 0x75f   :  { %13020 = vst [vmem:[#allocation136_spill] sm:$0xff] %v11209_v36  ;;  %4402 = vrot.lane.b32.xlu2 %v11209_v36, %s6909_s12  ;;  %v13029_v36 = vld [vmem:[#allocation48_spill] sm:$0xff] }
 0x760   :  { %v11250_v27 = vmul.f32 %v4283_v61, %v13029_v36 }
 0x761   :  { %4780 = vrot.lane.b32.xlu0 %v11215_v17, %s6909_s12  ;;  %4862 = vrot.lane.b32.xlu1 %v11212_v57, %s6908_s1 }
 0x762   :  { %v11223_v2 = vpop.permute.xlu2 %4764  ;;  %13030 = vst [vmem:[#allocation88_spill] sm:$0xff] %v11250_v27 }
 0x763   :  { %v11225_v11 = vpop.permute.xlu0 %4838  ;;  %v11227_v60 = vpop.permute.xlu1 %4579 }
 0x764   :  { %13025 = vst [vmem:[#allocation124_spill] sm:$0xff] %v11225_v11 }
 0x765   :  { %13026 = vst [vmem:[#allocation134_spill] sm:$0xff] %v11227_v60  ;;  %v13028_v60 = vld [vmem:[#allocation64_spill] sm:$0xff] }
 0x767   :  { %4858 = vrot.lane.b32.xlu2 %v11215_v17, %s6908_s1 }
 0x769   :  { %4520 = vrot.lane.b32.xlu0 %v11166_v45, %s6908_s1  ;;  %4782 = vrot.lane.b32.xlu1 %v11191_v29, %s6909_s12  ;;  %v4726_v45 = vmul.f32 %v10951_v0, %v13028_v60  ;;  %v4727_v29 = vmul.f32 %v10991_v3, %v12857_v1 }
 0x76a   :  { %v11235_v28 = vpop.permute.xlu2 %4426 }
 0x76b   :  { %v11237_v24 = vpop.permute.xlu0 %4422  ;;  %v4841_v32 = vpop.permute.xlu1 %4840  ;;  %v5016_v41 = vrot.slane %v4726_v45, 4  ;;  %v5017_v14 = vrot.slane %v4727_v29, 4  ;;  %v5049_v29 = vrot.slane %v11016_v58, 4 }
 0x76c   :  { %v4870_v43 = vsel %vm592_vm7, %v11225_v11, %v4841_v32 }
 0x76d   :  { %v4903_v17 = vmul.f32 %v4870_v43, %v13027_v6  ;;  %v5048_v43 = vrot.slane %v10973_v35, 4  ;;  %v5113_v35 = vsel %vm66_vm0, %v10769_v7, %v5017_v14 }
 0x76f   :  { %v5175_v47 = vpack.c.bf16 %v4903_v17, %v4903_v17  ;;  %4686 = vrot.lane.b32.xlu2 %v10856_v52, %s6908_s1  ;;  %v4384_v17 = vsel %vm344_vm3, %v11202_v54, %v10895_v4  ;;  %v4612_v4 = vsel %vm477_vm6, %v10849_v26, %v10890_v18 }
 0x771   :  { %4522 = vrot.lane.b32.xlu1 %v11250_v27, %s6908_s1  ;;  %4420 = vrot.lane.b32.xlu0 %v11253_v31, %s6909_s12  ;;  %v5202_v0 = vsel %vm1305_vm9, %v5175_v47, 0 }
 0x772   :  { %v4843_v3 = vpop.permute.xlu2 %4842  ;;  %5254 = vmatpush.bf16.msra.mxu3 %v5202_v0 }
 0x773   :  { %v4871_v5 = vsel %vm592_vm7, %v4841_v32, %v4843_v3  ;;  %v4763_v59 = vpop.permute.xlu0 %4762  ;;  %v11263_v36 = vpop.permute.xlu1 %4424  ;;  %v13032_v32 = vld [vmem:[#allocation100_spill] sm:$0xff] }
 0x774   :  { %v4904_v61 = vmul.f32 %v4871_v5, %v13028_v60  ;;  %v4790_v34 = vsel %vm477_vm6, %v11180_v44, %v4763_v59  ;;  %v4791_v45 = vsel %vm477_vm6, %v4763_v59, %v11223_v2  ;;  %v5112_v5 = vsel %vm66_vm0, %v10729_v50, %v5016_v41  ;;  %v13033_v44 = vld [vmem:[#allocation68_spill] sm:$0xff] }
 0x775   :  { %v4823_v47 = vmul.f32 %v4790_v34, %v13032_v32  ;;  %v4824_v0 = vmul.f32 %v4791_v45, %v12860_v13  ;;  %v11283_v6 = vmul.f32 %v4384_v17, %v13033_v44  ;;  %v4645_v45 = vmul.f32 %v4612_v4, %v13032_v32 }
 0x776   :  { %v5176_v11 = vpack.c.bf16 %v4904_v61, %v4904_v61 }
 0x777   :  { %13034 = vst [vmem:[#allocation137_spill] sm:$0xff] %v11283_v6  ;;  %4784 = vrot.lane.b32.xlu2 %v11212_v57, %s6909_s12  ;;  %v5128_v58 = vsel %vm66_vm0, %v4823_v47, %v5048_v43  ;;  %v5129_v59 = vsel %vm66_vm0, %v4824_v0, %v5049_v29  ;;  %v4968_v14 = vrot.slane %v4645_v45, 4  ;;  %v4728_v29 = vmul.f32 %v10994_v62, %v12859_v15 }
 0x778   :  { %v5205_v34 = vsel %vm1305_vm9, %v5176_v11, 0  ;;  %v5160_v18 = vpack.c.bf16 %v5128_v58, %v5112_v5  ;;  %v5161_v61 = vpack.c.bf16 %v5129_v59, %v5113_v35  ;;  %v4729_v47 = vmul.f32 %v10985_v56, %v12695_v30 }
 0x779   :  { %5267 = vmatpush.bf16.msrb.mxu0 %v5205_v34  ;;  %4742 = vrot.lane.b32.xlu1 %v11283_v6, %s6909_s12  ;;  %v5018_v5 = vrot.slane %v4728_v29, 4  ;;  %v5050_v56 = vrot.slane %v11019_v48, 4  ;;  %v4923_v35 = vrot.slane %v11053_v53, 4  ;;  %v4365_v59 = vsel %vm344_vm3, %v11115_v63, %v11182_v55 }
 0x77a   :  { %v11295_v50 = vpop.permute.xlu2 %4768  ;;  %4680 = vrot.lane.b32.xlu0 %v10869_v23, %s6908_s1  ;;  %v5019_v58 = vrot.slane %v4729_v47, 4  ;;  %v4646_v29 = vmul.f32 %v10927_v39, %v12860_v13  ;;  %v13037_v47 = vld [vmem:[#allocation95_spill] sm:$0xff] }
 0x77b   :  { %v4845_v44 = vpop.permute.xlu0 %4844  ;;  %v4503_v41 = vpop.permute.xlu1 %4502 }
 0x77c   :  { %v4872_v7 = vsel %vm592_vm7, %v4843_v3, %v4845_v44  ;;  %v4531_v11 = vsel %vm592_vm7, %v11200_v21, %v4503_v41 }
 0x77d   :  { %v4905_v17 = vmul.f32 %v4872_v7, %v12857_v1  ;;  %v4564_v43 = vmul.f32 %v4531_v11, %v13028_v60  ;;  %5268 = vmatpush.bf16.msrb.mxu0 %v5160_v18  ;;  %v5051_v60 = vrot.slane %v11036_v37, 4  ;;  %v13035_v11 = vld [vmem:[#allocation92_spill] sm:$0xff] }
 0x77f   :  { %v5177_v0 = vpack.c.bf16 %v4905_v17, %v4905_v17  ;;  %4606 = vrot.lane.b32.xlu2 %v10871_v33, %s6909_s12  ;;  %v11311_v3 = vsel %vm66_vm0, %v4564_v43, %v4968_v14  ;;  %v11337_v14 = vmul.f32 %v11143_v19, %v13035_v11 }
 0x781   :  { %4498 = vrot.lane.b32.xlu1 %v11253_v31, %s6908_s1  ;;  %v5208_v4 = vsel %vm1305_vm9, %v5177_v0, 0  ;;  %13036 = vst [vmem:[#allocation107_spill] sm:$0xff] %v11337_v14  ;;  %v11354_v0 = vmul.f32 %v4365_v59, %v13037_v47 }
 0x782   :  { %v11317_v62 = vpop.permute.xlu2 %4428  ;;  %4778 = vrot.lane.b32.xlu0 %v11172_v49, %s6909_s12  ;;  %5280 = vmatpush.bf16.msrb.mxu1 %v5208_v4 }
 0x783   :  { %v4453_v37 = vsel %vm477_vm6, %v11235_v28, %v11317_v62  ;;  %v4767_v34 = vpop.permute.xlu0 %4766  ;;  %v4847_v18 = vpop.permute.xlu1 %4846  ;;  %13038 = vst [vmem:[#allocation145_spill] sm:$0xff] %v11354_v0 }
 0x784   :  { %v4486_v45 = vmul.f32 %v4453_v37, %v12866_v8  ;;  %v4792_v7 = vsel %vm477_vm6, %v11223_v2, %v4767_v34  ;;  %v4793_v48 = vsel %vm477_vm6, %v4767_v34, %v11295_v50  ;;  %v4873_v53 = vsel %vm592_vm7, %v4845_v44, %v4847_v18 }
 0x785   :  { %v4825_v63 = vmul.f32 %v4792_v7, %v12858_v20  ;;  %v4826_v17 = vmul.f32 %v4793_v48, %v12866_v8  ;;  %v4906_v43 = vmul.f32 %v4873_v53, %v12859_v15  ;;  %v5114_v2 = vsel %vm66_vm0, %v10779_v12, %v5018_v5 }
 0x786   :  { %5281 = vmatpush.bf16.msrb.mxu1 %v5161_v61  ;;  %v11348_v44 = vsel %vm66_vm0, %v10789_v51, %v5019_v58  ;;  %v11351_v19 = vsel %vm66_vm0, %v4486_v45, %v4923_v35  ;;  %v4451_v12 = vsel %vm477_vm6, %v11237_v24, %v11263_v36  ;;  %v4452_v51 = vsel %vm477_vm6, %v11263_v36, %v11235_v28 }
 0x787   :  { %v5178_v4 = vpack.c.bf16 %v4906_v43, %v4906_v43  ;;  %4524 = vrot.lane.b32.xlu2 %v11337_v14, %s6908_s1  ;;  %v5130_v39 = vsel %vm66_vm0, %v4825_v63, %v5050_v56  ;;  %v11360_v61 = vsel %vm66_vm0, %v4826_v17, %v5051_v60  ;;  %v4647_v35 = vmul.f32 %v10930_v10, %v12858_v20 }
 0x788   :  { %v5162_v5 = vpack.c.bf16 %v5130_v39, %v5114_v2  ;;  %v4484_v28 = vmul.f32 %v4451_v12, %v12860_v13  ;;  %v4485_v36 = vmul.f32 %v4452_v51, %v12858_v20  ;;  %v4921_v34 = vrot.slane %v10997_v25, 4  ;;  %v13041_v51 = vld [vmem:[#allocation79_spill] sm:$0xff] }
 0x789   :  { %4864 = vrot.lane.b32.xlu1 %v11354_v0, %s6908_s1  ;;  %v5211_v60 = vsel %vm1305_vm9, %v5178_v4, 0  ;;  %v4969_v10 = vrot.slane %v4646_v29, 4  ;;  %v4970_v48 = vrot.slane %v4647_v35, 4  ;;  %v4922_v53 = vrot.slane %v11033_v22, 4  ;;  %v11402_v29 = vld [vmem:[#allocation5 + $0x18] sm:$0x1] }
 0x78a   :  { %v11375_v56 = vpop.permute.xlu2 %4434  ;;  %4438 = vrot.lane.b32.xlu0 %v11169_v38, %s6909_s12  ;;  %5293 = vmatpush.bf16.msrb.mxu2 %v5211_v60  ;;  %v5081_v20 = vsel %vm66_vm0, %v4484_v28, %v4921_v34  ;;  %v4648_v22 = vmul.f32 %v10941_v9, %v12866_v8  ;;  %v13043_v60 = vld [vmem:[#allocation119_spill] sm:$0xff]  ;;  %v13060_v35 = vld [vmem:[#allocation70_spill] sm:$0xff] }
 0x78b   :  { %v4505_v59 = vpop.permute.xlu0 %4504  ;;  %v4507_v37 = vpop.permute.xlu1 %4506  ;;  %v5082_v25 = vsel %vm66_vm0, %v4485_v36, %v4922_v53 }
 0x78c   :  { %v4532_v45 = vsel %vm592_vm7, %v4503_v41, %v4505_v59  ;;  %v4533_v7 = vsel %vm592_vm7, %v4505_v59, %v4507_v37  ;;  %v4971_v39 = vrot.slane %v4648_v22, 4 }
 0x78d   :  { %v4565_v11 = vmul.f32 %v4532_v45, %v12857_v1  ;;  %v4566_v63 = vmul.f32 %v4533_v7, %v12859_v15  ;;  %v4366_v1 = vsel %vm344_vm3, %v11182_v55, %v11202_v54  ;;  %v13039_v54 = vld [vmem:[#allocation25_spill] sm:$0xff]  ;;  %v13046_v7 = vld [vmem:[#allocation104_spill] sm:$0xff] }
 0x78e   :  { %5294 = vmatpush.bf16.msrb.mxu2 %v5162_v5  ;;  %v11412_v55 = vmul.f32 %v4366_v1, %v13039_v54  ;;  %v11426_v5 = vmul.f32 %v11188_v42, %v13041_v51  ;;  %v13050_v1 = vld [vmem:[#allocation91_spill] sm:$0xff]  ;;  %v5192_v54 = vld [vmem:[#allocation2 + $0xb8] sm:$0x1]  ;;  %v13051_v51 = vld [vmem:[#allocation144_spill] sm:$0xff] }
 0x78f   :  { %4610 = vrot.lane.b32.xlu2 %v10913_v16, %s6909_s12  ;;  %v5097_v13 = vsel %vm66_vm0, %v4565_v11, %v4969_v10  ;;  %v5098_v41 = vsel %vm66_vm0, %v4566_v63, %v4970_v48  ;;  %v13045_v10 = vld [vmem:[#allocation105_spill] sm:$0xff]  ;;  %v13047_v48 = vld [vmem:[#allocation127_spill] sm:$0xff] }
 0x790   :  { %v5145_v17 = vpack.c.bf16 %v5097_v13, %v5081_v20  ;;  %v5146_v43 = vpack.c.bf16 %v5098_v41, %v5082_v25  ;;  %13040 = vst [vmem:[#allocation142_spill] sm:$0xff] %v11412_v55  ;;  %v4730_v53 = vmul.f32 %v13047_v48, %v13046_v7  ;;  %v13048_v63 = vld [vmem:[#allocation125_spill] sm:$0xff]  ;;  %v13053_v48 = vld [vmem:[#allocation62_spill] sm:$0xff] }
 0x791   :  { %4600 = vrot.lane.b32.xlu1 %v10821_v46, %s6909_s12  ;;  %13042 = vst [vmem:[#allocation15_spill] sm:$0xff] %v11426_v5  ;;  %v4649_v20 = vmul.f32 %v13048_v63, %v13045_v10 }
 0x792   :  { %v4851_v15 = vpop.permute.xlu2 %4850  ;;  %4690 = vrot.lane.b32.xlu0 %v10932_v40, %s6908_s1  ;;  %5282 = vmatpush.bf16.msrb.mxu1 %v5145_v17  ;;  %v5020_v13 = vrot.slane %v4730_v53, 4 }
 0x793   :  { %5295 = vmatpush.bf16.msrb.mxu2 %v5146_v43  ;;  %v4509_v2 = vpop.permute.xlu0 %4508  ;;  %v4849_v47 = vpop.permute.xlu1 %4848  ;;  %v13049_v43 = vld [vmem:[#allocation116_spill] sm:$0xff] }
 0x794   :  { %v4534_v4 = vsel %vm592_vm7, %v4507_v37, %v4509_v2  ;;  %v11406_v8 = vsel %vm592_vm7, %v4847_v18, %v4849_v47  ;;  %v11409_v9 = vsel %vm592_vm7, %v4849_v47, %v4851_v15  ;;  %v13044_v37 = vld [vmem:[#allocation21_spill] sm:$0xff]  ;;  %v4927_v22 = vrot.slane %v13049_v43, 4 }
 0x795   :  { %v4567_v12 = vmul.f32 %v4534_v4, %v12695_v30  ;;  %6452 = vmatmul.msk.bf16.vlgmr.msrb.gmra.mxu1 %vm62_vm1, %v11402_v29  ;;  %v4924_v34 = vrot.slane %v13044_v37, 4  ;;  %v11479_v53 = vsel %vm66_vm0, %v13053_v48, %v5020_v13  ;;  %v13055_v13 = vld [vmem:[#allocation138_spill] sm:$0xff] }
 0x796   :  { %6453 = vmatmul.msk.bf16.vlgmr.msrb.gmra.mxu2 %vm62_vm1, %v11402_v29 }
 0x797   :  { %4866 = vrot.lane.b32.xlu2 %v11412_v55, %s6908_s1  ;;  %v11422_v18 = vsel %vm66_vm0, %v4567_v12, %v4971_v39  ;;  %v4972_v12 = vrot.slane %v4649_v20, 4  ;;  %v13054_v20 = vld [vmem:[#allocation130_spill] sm:$0xff] }
 0x799   :  { %4518 = vrot.lane.b32.xlu1 %v13043_v60, %s6908_s1  ;;  %v13089_v60 = vld [vmem:[#allocation43_spill] sm:$0xff] }
 0x79a   :  { %v11432_v28 = vpop.permute.xlu2 %4776  ;;  %4448 = vrot.lane.b32.xlu0 %v11426_v5, %s6909_s12 }
 0x79b   :  { %v11436_v36 = vpop.permute.xlu0 %4430  ;;  %v11438_v59 = vpop.permute.xlu1 %4432 }
 0x79c   :  { %v4454_v42 = vsel %vm477_vm6, %v11317_v62, %v11436_v36 }
 0x79d   :  { %v4487_v45 = vmul.f32 %v4454_v42, %v13045_v10  ;;  %v5052_v42 = vrot.slane %v13051_v51, 4 }
 0x79f   :  { %4608 = vrot.lane.b32.xlu2 %v10856_v52, %s6909_s12  ;;  %v11450_v11 = vsel %vm66_vm0, %v4487_v45, %v4924_v34  ;;  %v13067_v52 = vld [vmem:[#allocation63_spill] sm:$0xff] }
 0x7a1   :  { %4444 = vrot.lane.b32.xlu1 %v11250_v27, %s6909_s12  ;;  %v13086_v27 = vld [vmem:[#allocation129_spill] sm:$0xff] }
 0x7a2   :  { %v11456_v62 = vpop.permute.xlu2 %4436  ;;  %4868 = vrot.lane.b32.xlu0 %v11283_v6, %s6908_s1 }
 0x7a3   :  { %v4457_v25 = vsel %vm477_vm6, %v11375_v56, %v11456_v62  ;;  %v4771_v41 = vpop.permute.xlu0 %4770  ;;  %v11463_v17 = vpop.permute.xlu1 %4510 }
 0x7a4   :  { %v4490_v47 = vmul.f32 %v4457_v25, %v13050_v1  ;;  %v4794_v4 = vsel %vm477_vm6, %v11295_v50, %v4771_v41  ;;  %v4535_v39 = vsel %vm592_vm7, %v4509_v2, %v11463_v17  ;;  %v4700_v25 = vsel %vm592_vm7, %v13055_v13, %v13054_v20 }
 0x7a5   :  { %v4827_v37 = vmul.f32 %v4794_v4, %v13045_v10  ;;  %v4568_v34 = vmul.f32 %v4535_v39, %v13046_v7  ;;  %v13056_v39 = vld [vmem:[#allocation36_spill] sm:$0xff]  ;;  %v4733_v13 = vmul.f32 %v4700_v25, %v13060_v35 }
 0x7a6   :  { %v11475_v45 = vsel %vm66_vm0, %v4490_v47, %v4927_v22 }
 0x7a7   :  { %13052 = vst [vmem:[#allocation148_spill] sm:$0xff] %v11475_v45  ;;  %5195 = vperm.xlu2 %6808, %v5192_v54   ;;  %v11482_v50 = vsel %vm66_vm0, %v4827_v37, %v5052_v42  ;;  %v11485_v2 = vsel %vm66_vm0, %v4568_v34, %v4972_v12  ;;  %v13057_v12 = vld [vmem:[#allocation85_spill] sm:$0xff]  ;;  %v13058_v42 = vld [vmem:[#allocation52_spill] sm:$0xff] }
 0x7a8   :  { %v4731_v37 = vmul.f32 %v13058_v42, %v13056_v39  ;;  %v13059_v34 = vld [vmem:[#allocation128_spill] sm:$0xff]  ;;  %v13061_v42 = vld [vmem:[#allocation106_spill] sm:$0xff] }
 0x7a9   :  { %4786 = vrot.lane.b32.xlu1 %v11354_v0, %s6909_s12  ;;  %v4732_v48 = vmul.f32 %v13059_v34, %v13057_v12  ;;  %v5055_v34 = vrot.slane %v13061_v42, 4  ;;  %v13069_v0 = vld [vmem:[#allocation75_spill] sm:$0xff] }
 0x7aa   :  { %4688 = vrot.lane.b32.xlu0 %v10913_v16, %s6908_s1 }
 0x7ab   :  { %v4853_v43 = vpop.permute.xlu0 %4852  ;;  %v11498_v22 = vpop.permute.xlu1 %4854  ;;  %v5022_v63 = vrot.slane %v4732_v48, 4 }
 0x7ac   :  { %v4876_v47 = vsel %vm592_vm7, %v4851_v15, %v4853_v43  ;;  %v4877_v4 = vsel %vm592_vm7, %v4853_v43, %v11498_v22 }
 0x7ad   :  { %v4909_v54 = vmul.f32 %v4876_v47, %v13056_v39  ;;  %v4910_v51 = vmul.f32 %v4877_v4, %v13057_v12  ;;  %v5021_v47 = vrot.slane %v4731_v37, 4  ;;  %v5023_v4 = vrot.slane %v4733_v13, 4  ;;  %v13063_v37 = vld [vmem:[#allocation120_spill] sm:$0xff]  ;;  %v13064_v13 = vld [vmem:[#allocation94_spill] sm:$0xff] }
 0x7ae   :  { %v5054_v48 = vrot.slane %v13063_v37, 4 }
 0x7af   :  { %v5181_v58 = vpack.c.bf16 %v4909_v54, %v4909_v54  ;;  %v5182_v10 = vpack.c.bf16 %v4910_v51, %v4910_v51  ;;  %v13062_v51 = vld [vmem:[#allocation141_spill] sm:$0xff] }
 0x7b0   :  { %v5053_v40 = vrot.slane %v13062_v51, 4  ;;  %v5117_v51 = vsel %vm66_vm0, %v13067_v52, %v5021_v47  ;;  %v4456_v52 = vsel %vm477_vm6, %v11438_v59, %v11375_v56 }
 0x7b1   :  { %4788 = vrot.lane.b32.xlu1 %v11412_v55, %s6909_s12  ;;  %v5220_v15 = vsel %vm1305_vm9, %v5181_v58, 0  ;;  %v5223_v43 = vsel %vm1305_vm9, %v5182_v10, 0 }
 0x7b2   :  { %4446 = vrot.lane.b32.xlu0 %v11337_v14, %s6909_s12  ;;  %5332 = vmatpush.bf16.msra.mxu1 %v5220_v15  ;;  %v13065_v14 = vld [vmem:[#allocation86_spill] sm:$0xff] }
 0x7b3   :  { %5345 = vmatpush.bf16.msra.mxu2 %v5223_v43  ;;  %v4773_v25 = vpop.permute.xlu0 %4772  ;;  %v4775_v54 = vpop.permute.xlu1 %4774  ;;  %v13066_v43 = vld [vmem:[#allocation115_spill] sm:$0xff] }
 0x7b4   :  { %v4795_v16 = vsel %vm477_vm6, %v4771_v41, %v4773_v25  ;;  %v4796_v58 = vsel %vm477_vm6, %v4773_v25, %v4775_v54  ;;  %v4797_v10 = vsel %vm477_vm6, %v4775_v54, %v11432_v28  ;;  %v4650_v55 = vmul.f32 %v13066_v43, %v13064_v13  ;;  %v13068_v41 = vld [vmem:[#allocation18_spill] sm:$0xff] }
 0x7b5   :  { %v4828_v6 = vmul.f32 %v4795_v16, %v13064_v13  ;;  %v4829_v15 = vmul.f32 %v4796_v58, %v13065_v14  ;;  %v4830_v42 = vmul.f32 %v4797_v10, %v13050_v1  ;;  %v5118_v25 = vsel %vm66_vm0, %v13068_v41, %v5022_v63  ;;  %v11547_v63 = vpop.permute.xlu2 %4442 }
 0x7b6   :  { %v11534_v54 = vsel %vm66_vm0, %v13069_v0, %v5023_v4  ;;  %v4455_v16 = vsel %vm477_vm6, %v11436_v36, %v11438_v59  ;;  %13070 = vst [vmem:[#allocation97_spill] sm:$0xff] %v11547_v63  ;;  %v13071_v36 = vld [vmem:[#allocation118_spill] sm:$0xff]  ;;  %v13083_v4 = vld [vmem:[#allocation135_spill] sm:$0xff] }
 0x7b7   :  { %v5133_v58 = vsel %vm66_vm0, %v4828_v6, %v5053_v40  ;;  %v5134_v10 = vsel %vm66_vm0, %v4829_v15, %v5054_v48  ;;  %v11542_v37 = vsel %vm66_vm0, %v4830_v42, %v5055_v34  ;;  %v4651_v43 = vmul.f32 %v13071_v36, %v13065_v14  ;;  %v13072_v40 = vld [vmem:[#allocation136_spill] sm:$0xff] }
 0x7b8   :  { %v5165_v47 = vpack.c.bf16 %v5133_v58, %v5117_v51  ;;  %v5166_v0 = vpack.c.bf16 %v5134_v10, %v5118_v25  ;;  %v4488_v6 = vmul.f32 %v4455_v16, %v13064_v13  ;;  %v4489_v34 = vmul.f32 %v4456_v52, %v13065_v14  ;;  %v13073_v48 = vld [vmem:[#allocation108_spill] sm:$0xff]  ;;  %v13074_v25 = vld [vmem:[#allocation121_spill] sm:$0xff]  ;;  %v13075_v13 = vld [vmem:[#allocation123_spill] sm:$0xff] }
 0x7b9   :  { %4528 = vrot.lane.b32.xlu1 %v13072_v40, %s6908_s1  ;;  %v4925_v15 = vrot.slane %v13073_v48, 4  ;;  %v4973_v42 = vrot.slane %v4650_v55, 4  ;;  %v4926_v58 = vrot.slane %v13074_v25, 4  ;;  %v4974_v10 = vrot.slane %v4651_v43, 4  ;;  %v13076_v16 = vld [vmem:[#allocation112_spill] sm:$0xff] }
 0x7ba   :  { %5333 = vmatpush.bf16.msra.mxu1 %v5165_v47  ;;  %5346 = vmatpush.bf16.msra.mxu2 %v5166_v0  ;;  %v4619_v14 = vsel %vm477_vm6, %v13076_v16, %v13075_v13 }
 0x7bb   :  { %v4513_v56 = vpop.permute.xlu0 %4512  ;;  %v4515_v59 = vpop.permute.xlu1 %4514  ;;  %v5085_v52 = vsel %vm66_vm0, %v4488_v6, %v4925_v15  ;;  %v5086_v36 = vsel %vm66_vm0, %v4489_v34, %v4926_v58 }
 0x7bc   :  { %v4536_v51 = vsel %vm592_vm7, %v11463_v17, %v4513_v56  ;;  %v4537_v41 = vsel %vm592_vm7, %v4513_v56, %v4515_v59 }
 0x7bd   :  { %v4569_v47 = vmul.f32 %v4536_v51, %v13056_v39  ;;  %v4570_v0 = vmul.f32 %v4537_v41, %v13057_v12  ;;  %v11571_v56 = vpop.permute.xlu2 %4402  ;;  %v4652_v39 = vmul.f32 %v4619_v14, %v13050_v1 }
 0x7bf   :  { %v5101_v55 = vsel %vm66_vm0, %v4569_v47, %v4973_v42  ;;  %v5102_v17 = vsel %vm66_vm0, %v4570_v0, %v4974_v10  ;;  %v4975_v15 = vrot.slane %v4652_v39, 4  ;;  %v13079_v10 = vld [vmem:[#allocation35_spill] sm:$0xff] }
 0x7c0   :  { %v5149_v48 = vpack.c.bf16 %v5101_v55, %v5085_v52  ;;  %v5150_v43 = vpack.c.bf16 %v5102_v17, %v5086_v36  ;;  %v13080_v55 = vld [vmem:[#allocation117_spill] sm:$0xff]  ;;  %v13081_v36 = vld [vmem:[#allocation131_spill] sm:$0xff] }
 0x7c1   :  { %4526 = vrot.lane.b32.xlu1 %v11426_v5, %s6908_s1  ;;  %v4703_v17 = vsel %vm592_vm7, %v13081_v36, %v13080_v55  ;;  %v13082_v39 = vld [vmem:[#allocation99_spill] sm:$0xff]  ;;  %v5058_v5 = vrot.slane %v13083_v4, 4 }
 0x7c2   :  { %5334 = vmatpush.bf16.msra.mxu1 %v5149_v48  ;;  %5347 = vmatpush.bf16.msra.mxu2 %v5150_v43 }
 0x7c3   :  { %v11576_v12 = vpop.permute.xlu0 %4516  ;;  %v11578_v6 = vpop.permute.xlu1 %4856 }
 0x7c4   :  { %13077 = vst [vmem:[#allocation114_spill] sm:$0xff] %v11576_v12  ;;  %v4538_v34 = vsel %vm592_vm7, %v4515_v59, %v11576_v12 }
 0x7c5   :  { %v4571_v42 = vmul.f32 %v4538_v34, %v13060_v35  ;;  %6456 = vmatmul.msk.bf16.vlgmr.msra.gmra.mxu1 %vm62_vm1, %v11402_v29  ;;  %6457 = vmatmul.msk.bf16.vlgmr.msra.gmra.mxu2 %vm62_vm1, %v11402_v29  ;;  %v4859_v41 = vpop.permute.xlu2 %4858 }
 0x7c7   :  { %v11588_v1 = vsel %vm66_vm0, %v4571_v42, %v4975_v15  ;;  %v4736_v15 = vmul.f32 %v4703_v17, %v13082_v39 }
 0x7c8   :  { %13078 = vst [vmem:[#allocation126_spill] sm:$0xff] %v11588_v1 }
 0x7cb   :  { %v4861_v25 = vpop.permute.xlu0 %4860  ;;  %v11592_v58 = vpop.permute.xlu1 %4440 }
 0x7cc   :  { %v4880_v59 = vsel %vm592_vm7, %v4859_v41, %v4861_v25  ;;  %v4460_v33 = vsel %vm477_vm6, %v11592_v58, %v11547_v63 }
 0x7cd   :  { %v4913_v47 = vmul.f32 %v4880_v59, %v13079_v10  ;;  %v11604_v48 = vpop.permute.xlu2 %4686 }
 0x7cf   :  { %v5185_v0 = vpack.c.bf16 %v4913_v47, %v4913_v47  ;;  %v5026_v47 = vrot.slane %v4736_v15, 4 }
 0x7d1   :  { %v5232_v16 = vsel %vm1305_vm9, %v5185_v0, 0 }
 0x7d2   :  { %5384 = vmatpush.bf16.msrb.mxu1 %v5232_v16 }
 0x7d3   :  { %v11597_v14 = vpop.permute.xlu0 %4780  ;;  %v11599_v52 = vpop.permute.xlu1 %4862 }
 0x7d4   :  { %v4881_v43 = vsel %vm592_vm7, %v4861_v25, %v11599_v52  ;;  %v13084_v25 = vld [vmem:[#allocation98_spill] sm:$0xff] }
 0x7d5   :  { %v4914_v34 = vmul.f32 %v4881_v43, %v13082_v39  ;;  %v13085_v43 = vld [vmem:[#allocation132_spill] sm:$0xff] }
 0x7d6   :  { %v4622_v17 = vsel %vm477_vm6, %v13086_v27, %v13085_v43  ;;  %v4493_v43 = vmul.f32 %v4460_v33, %v13084_v25 }
 0x7d7   :  { %v5186_v42 = vpack.c.bf16 %v4914_v34, %v4914_v34  ;;  %v11623_v34 = vpop.permute.xlu2 %4784  ;;  %v4655_v4 = vmul.f32 %v4622_v17, %v13084_v25 }
 0x7d9   :  { %v5235_v59 = vsel %vm1305_vm9, %v5186_v42, 0  ;;  %v13087_v42 = vld [vmem:[#allocation39_spill] sm:$0xff] }
 0x7da   :  { %5397 = vmatpush.bf16.msrb.mxu2 %v5235_v59  ;;  %v5122_v15 = vsel %vm66_vm0, %v13087_v42, %v5026_v47  ;;  %v4920_v47 = vrot.slane %v13089_v60, 4  ;;  %v13090_v42 = vld [vmem:[#allocation60_spill] sm:$0xff]  ;;  %v13093_v60 = vld [vmem:[#allocation17_spill] sm:$0xff] }
 0x7db   :  { %v11611_v0 = vpop.permute.xlu0 %4520  ;;  %v11613_v16 = vpop.permute.xlu1 %4782 }
 0x7dc   :  { %v4800_v51 = vsel %vm477_vm6, %v11597_v14, %v11613_v16 }
 0x7dd   :  { %v4833_v40 = vmul.f32 %v4800_v51, %v13084_v25  ;;  %v4908_v51 = vmul.f32 %v11409_v9, %v13046_v7  ;;  %v13092_v9 = vld [vmem:[#allocation93_spill] sm:$0xff] }
 0x7de   :  { %v4930_v7 = vrot.slane %v13092_v9, 4 }
 0x7df   :  { %v5138_v59 = vsel %vm66_vm0, %v4833_v40, %v5058_v5  ;;  %v13091_v5 = vld [vmem:[#allocation133_spill] sm:$0xff] }
 0x7e0   :  { %v5170_v45 = vpack.c.bf16 %v5138_v59, %v5122_v15  ;;  %v4692_v40 = vsel %vm592_vm7, %v13091_v5, %v13090_v42  ;;  %v5180_v59 = vpack.c.bf16 %v4908_v51, %v4908_v51  ;;  %v5090_v42 = vsel %vm66_vm0, %v4493_v43, %v4930_v7  ;;  %v13094_v51 = vld [vmem:[#allocation65_spill] sm:$0xff] }
 0x7e1   :  { %v4725_v63 = vmul.f32 %v4692_v40, %v13093_v60  ;;  %v4879_v5 = vsel %vm592_vm7, %v11578_v6, %v4859_v41 }
 0x7e2   :  { %5398 = vmatpush.bf16.msrb.mxu2 %v5170_v45  ;;  %v4978_v45 = vrot.slane %v4655_v4, 4  ;;  %v4912_v40 = vmul.f32 %v4879_v5, %v13094_v51  ;;  %v13098_v5 = vld [vmem:[#allocation134_spill] sm:$0xff] }
 0x7e3   :  { %v4421_v1 = vpop.permute.xlu0 %4420  ;;  %v11635_v12 = vpop.permute.xlu1 %4522 }
 0x7e4   :  { %13088 = vst [vmem:[#allocation147_spill] sm:$0xff] %v11635_v12  ;;  %v4450_v15 = vsel %vm477_vm6, %v4421_v1, %v11237_v24  ;;  %v4541_v17 = vsel %vm592_vm7, %v11611_v0, %v11635_v12  ;;  %v11655_v12 = vpop.permute.xlu2 %4606 }
 0x7e5   :  { %v4483_v33 = vmul.f32 %v4450_v15, %v13032_v32  ;;  %v4574_v25 = vmul.f32 %v4541_v17, %v13082_v39  ;;  %v5217_v32 = vsel %vm1305_vm9, %v5180_v59, 0  ;;  %v5015_v39 = vrot.slane %v4725_v63, 4  ;;  %v13095_v15 = vld [vmem:[#allocation58_spill] sm:$0xff]  ;;  %v13096_v17 = vld [vmem:[#allocation96_spill] sm:$0xff] }
 0x7e6   :  { %v5047_v7 = vrot.slane %v13096_v17, 4 }
 0x7e7   :  { %v5080_v57 = vsel %vm66_vm0, %v4483_v33, %v4920_v47  ;;  %v5106_v24 = vsel %vm66_vm0, %v4574_v25, %v4978_v45  ;;  %v13097_v45 = vld [vmem:[#allocation101_spill] sm:$0xff]  ;;  %v4643_v33 = vsel %vm477_vm6, %v13098_v5, %v10849_v26  ;;  %v5184_v25 = vpack.c.bf16 %v4912_v40, %v4912_v40 }
 0x7e8   :  { %v5144_v4 = vpack.c.bf16 %v11311_v3, %v5080_v57  ;;  %v5154_v9 = vpack.c.bf16 %v5106_v24, %v5090_v42  ;;  %v4644_v26 = vmul.f32 %v4643_v33, %v13097_v45 }
 0x7ea   :  { %5269 = vmatpush.bf16.msrb.mxu0 %v5144_v4  ;;  %5399 = vmatpush.bf16.msrb.mxu2 %v5154_v9  ;;  %v4481_v4 = vsel %vm477_vm6, %v11571_v56, %v4421_v1  ;;  %v5229_v1 = vsel %vm1305_vm9, %v5184_v25, 0  ;;  %v13104_v25 = vld [vmem:[#allocation53_spill] sm:$0xff] }
 0x7eb   :  { %v11660_v47 = vpop.permute.xlu1 %4742 }
 0x7ec   :  { %v4681_v43 = vpop.permute.xlu0 %4680  ;;  %v4821_v41 = vsel %vm477_vm6, %v11660_v47, %v13095_v15  ;;  %v11689_v40 = vpop.permute.xlu2 %4524 }
 0x7ed   :  { %v4701_v57 = vsel %vm592_vm7, %v13054_v20, %v4681_v43  ;;  %v4702_v3 = vsel %vm592_vm7, %v4681_v43, %v13081_v36  ;;  %v4822_v63 = vmul.f32 %v4821_v41, %v13097_v45  ;;  %6451 = vmatmul.msk.bf16.vlgmr.msrb.gmra.mxu0 %vm62_vm1, %v11402_v29  ;;  %6461 = vmatmul.msk.bf16.vlgmr.msrb.gmra.mxu2 %vm62_vm1, %v11402_v29  ;;  %v13100_v36 = vld [vmem:[#allocation76_spill] sm:$0xff]  ;;  %v4919_v41 = vrot.slane %v11253_v31, 4 }
 0x7ee   :  { %5319 = vmatpush.bf16.msra.mxu0 %v5217_v32  ;;  %v4734_v59 = vmul.f32 %v4701_v57, %v13094_v51  ;;  %v13099_v20 = vpack.c.bf16 %v11482_v50, %v11479_v53  ;;  %v5111_v42 = vsel %vm66_vm0, %v13100_v36, %v5015_v39  ;;  %v4735_v9 = vmul.f32 %v4702_v3, %v13079_v10 }
 0x7ef   :  { %v5127_v24 = vsel %vm66_vm0, %v4822_v63, %v5047_v7  ;;  %v4907_v53 = vmul.f32 %v11406_v8, %v12695_v30  ;;  %v4482_v50 = vmul.f32 %v4481_v4, %v13097_v45  ;;  %v13101_v39 = vpack.c.bf16 %v11485_v2, %v11450_v11  ;;  %v13102_v45 = vld [vmem:[#allocation110_spill] sm:$0xff]  ;;  %v13103_v63 = vld [vmem:[#allocation13_spill] sm:$0xff] }
 0x7f0   :  { %v5159_v32 = vpack.c.bf16 %v5127_v24, %v5111_v42  ;;  %v5024_v43 = vrot.slane %v4734_v59, 4  ;;  %v5025_v17 = vrot.slane %v4735_v9, 4  ;;  %v4967_v30 = vrot.slane %v4644_v26, 4 }
 0x7f1   :  { %v5056_v3 = vrot.slane %v11172_v49, 4  ;;  %v5057_v31 = vrot.slane %v13102_v45, 4  ;;  %v4878_v24 = vsel %vm592_vm7, %v11498_v22, %v11578_v6  ;;  %v13105_v22 = vpack.c.bf16 %v11360_v61, %v11348_v44  ;;  %v13107_v44 = vld [vmem:[#allocation11_spill] sm:$0xff] }
 0x7f2   :  { %5320 = vmatpush.bf16.msra.mxu0 %v13099_v20  ;;  %5255 = vmatpush.bf16.msra.mxu3 %v5159_v32  ;;  %v5179_v20 = vpack.c.bf16 %v4907_v53, %v4907_v53  ;;  %v5121_v49 = vsel %vm66_vm0, %v10869_v23, %v5025_v17  ;;  %v4911_v26 = vmul.f32 %v4878_v24, %v13060_v35  ;;  %v13114_v24 = vld [vmem:[#allocation126_spill] sm:$0xff] }
 0x7f3   :  { %v11697_v15 = vpop.permute.xlu1 %4498 }
 0x7f4   :  { %v4779_v7 = vpop.permute.xlu0 %4778  ;;  %v4530_v57 = vsel %vm592_vm7, %v11697_v15, %v11200_v21  ;;  %v5079_v21 = vsel %vm66_vm0, %v4482_v50, %v4919_v41  ;;  %v5214_v32 = vsel %vm1305_vm9, %v5179_v20, 0  ;;  %v11726_v53 = vpop.permute.xlu2 %4610  ;;  %v5183_v23 = vpack.c.bf16 %v4911_v26, %v4911_v26 }
 0x7f5   :  { %v4798_v8 = vsel %vm477_vm6, %v11432_v28, %v4779_v7  ;;  %v4799_v11 = vsel %vm477_vm6, %v4779_v7, %v11597_v14  ;;  %v4563_v2 = vmul.f32 %v4530_v57, %v13093_v60  ;;  %v5120_v28 = vsel %vm66_vm0, %v10821_v46, %v5024_v43 }
 0x7f6   :  { %5321 = vmatpush.bf16.msra.mxu0 %v13101_v39  ;;  %v4831_v33 = vmul.f32 %v4798_v8, %v13103_v63  ;;  %v4832_v59 = vmul.f32 %v4799_v11, %v13104_v25  ;;  %v13106_v39 = vpack.c.bf16 %v11422_v18, %v11351_v19  ;;  %v4704_v41 = vsel %vm592_vm7, %v13080_v55, %v11604_v48  ;;  %v13109_v11 = vld [vmem:[#allocation14_spill] sm:$0xff] }
 0x7f7   :  { %v5095_v36 = vsel %vm66_vm0, %v4563_v2, %v4967_v30  ;;  %v4801_v19 = vsel %vm477_vm6, %v11613_v16, %v11623_v34  ;;  %v4737_v57 = vmul.f32 %v4704_v41, %v13107_v44  ;;  %v13110_v2 = vld [vmem:[#allocation73_spill] sm:$0xff] }
 0x7f8   :  { %v5143_v42 = vpack.c.bf16 %v5095_v36, %v5079_v21  ;;  %v5136_v14 = vsel %vm66_vm0, %v4831_v33, %v5056_v3  ;;  %v5137_v60 = vsel %vm66_vm0, %v4832_v59, %v5057_v31  ;;  %v4834_v16 = vmul.f32 %v4801_v19, %v13109_v11  ;;  %v13111_v33 = vld [vmem:[#allocation139_spill] sm:$0xff] }
 0x7f9   :  { %v5168_v4 = vpack.c.bf16 %v5136_v14, %v5120_v28  ;;  %v5169_v9 = vpack.c.bf16 %v5137_v60, %v5121_v49  ;;  %v4928_v31 = vrot.slane %v11169_v38, 4  ;;  %v13112_v21 = vld [vmem:[#allocation119_spill] sm:$0xff]  ;;  %v5027_v28 = vrot.slane %v4737_v57, 4 }
 0x7fa   :  { %5371 = vmatpush.bf16.msrb.mxu0 %v5229_v1  ;;  %5256 = vmatpush.bf16.msra.mxu3 %v5143_v42  ;;  %v5226_v1 = vsel %vm1305_vm9, %v5183_v23, 0  ;;  %v4929_v36 = vrot.slane %v13112_v21, 4 }
 0x7fb   :  { %5385 = vmatpush.bf16.msrb.mxu1 %v5169_v9  ;;  %v4865_v46 = vpop.permute.xlu1 %4864  ;;  %v13117_v9 = vld [vmem:[#allocation132_spill] sm:$0xff] }
 0x7fc   :  { %v4439_v50 = vpop.permute.xlu0 %4438  ;;  %v4882_v6 = vsel %vm592_vm7, %v11599_v52, %v4865_v46  ;;  %v4867_v17 = vpop.permute.xlu2 %4866 }
 0x7fd   :  { %6450 = vmatmul.msk.bf16.vlgmr.msra.gmra.mxu3 %vm62_vm1, %v11402_v29  ;;  %6455 = vmatmul.msk.bf16.vlgmr.msra.gmra.mxu0 %vm62_vm1, %v11402_v29  ;;  %v4915_v61 = vmul.f32 %v4882_v6, %v13107_v44  ;;  %v4883_v18 = vsel %vm592_vm7, %v4865_v46, %v4867_v17  ;;  %v4458_v55 = vsel %vm477_vm6, %v11456_v62, %v4439_v50  ;;  %v5059_v62 = vrot.slane %v13111_v33, 4 }
 0x7fe   :  { %5372 = vmatpush.bf16.msrb.mxu0 %v5168_v4  ;;  %5306 = vmatpush.bf16.msrb.mxu3 %v5214_v32  ;;  %v4459_v30 = vsel %vm477_vm6, %v4439_v50, %v11592_v58  ;;  %v4916_v3 = vmul.f32 %v4883_v18, %v13110_v2  ;;  %v4491_v59 = vmul.f32 %v4458_v55, %v13103_v63  ;;  %v13120_v55 = vld [vmem:[#allocation88_spill] sm:$0xff] }
 0x7ff   :  { %v5187_v45 = vpack.c.bf16 %v4915_v61, %v4915_v61  ;;  %v4492_v58 = vmul.f32 %v4459_v30, %v13104_v25  ;;  %v4623_v32 = vsel %vm477_vm6, %v13117_v9, %v11655_v12  ;;  %v5139_v26 = vsel %vm66_vm0, %v4834_v16, %v5059_v62 }
 0x800   :  { %v5188_v46 = vpack.c.bf16 %v4916_v3, %v4916_v3  ;;  %v4656_v61 = vmul.f32 %v4623_v32, %v13109_v11  ;;  %v4931_v30 = vrot.slane %v13120_v55, 4  ;;  %v13126_v32 = vld [vmem:[#allocation31_spill] sm:$0xff] }
 0x801   :  { %v5089_v50 = vsel %vm66_vm0, %v4492_v58, %v4929_v36  ;;  %v13131_v55 = vld [vmem:[#allocation51_spill] sm:$0xff] }
 0x802   :  { %5307 = vmatpush.bf16.msrb.mxu3 %v13105_v22  ;;  %v13118_v22 = vld [vmem:[#allocation147_spill] sm:$0xff]  ;;  %v5241_v19 = vsel %vm1305_vm9, %v5188_v46, 0  ;;  %v4979_v16 = vrot.slane %v4656_v61, 4  ;;  %v13129_v61 = vld [vmem:[#allocation142_spill] sm:$0xff] }
 0x803   :  { %v4601_v43 = vpop.permute.xlu1 %4600  ;;  %v4542_v6 = vsel %vm592_vm7, %v13118_v22, %v11689_v40 }
 0x804   :  { %v11737_v35 = vpop.permute.xlu0 %4690  ;;  %v4620_v52 = vsel %vm477_vm6, %v13075_v13, %v4601_v43  ;;  %v4621_v7 = vsel %vm477_vm6, %v4601_v43, %v13086_v27  ;;  %v13108_v27 = vpack.c.bf16 %v11542_v37, %v11534_v54  ;;  %v13113_v54 = vld [vmem:[#allocation114_spill] sm:$0xff]  ;;  %v13119_v43 = vld [vmem:[#allocation72_spill] sm:$0xff]  ;;  %v4575_v18 = vmul.f32 %v4542_v6, %v13107_v44  ;;  %v13123_v44 = vld [vmem:[#allocation47_spill] sm:$0xff] }
 0x805   :  { %v4653_v8 = vmul.f32 %v4620_v52, %v13103_v63  ;;  %v4654_v13 = vmul.f32 %v4621_v7, %v13104_v25  ;;  %v13115_v25 = vld [vmem:[#allocation148_spill] sm:$0xff] }
 0x806   :  { %5308 = vmatpush.bf16.msrb.mxu3 %v13106_v39  ;;  %v13116_v4 = vpack.c.bf16 %v13114_v24, %v13115_v25  ;;  %v5123_v39 = vsel %vm66_vm0, %v13119_v43, %v5027_v28  ;;  %v5107_v21 = vsel %vm66_vm0, %v4575_v18, %v4979_v16  ;;  %v13133_v16 = vld [vmem:[#allocation111_spill] sm:$0xff] }
 0x807   :  { %v4976_v49 = vrot.slane %v4653_v8, 4  ;;  %v4977_v38 = vrot.slane %v4654_v13, 4  ;;  %v5171_v52 = vpack.c.bf16 %v5139_v26, %v5123_v39  ;;  %v13121_v13 = vld [vmem:[#allocation97_spill] sm:$0xff] }
 0x80a   :  { %5358 = vmatpush.bf16.msra.mxu3 %v5226_v1 }
 0x80b   :  { %v4519_v20 = vpop.permute.xlu1 %4518 }
 0x80c   :  { %v11772_v42 = vpop.permute.xlu0 %4448  ;;  %v4539_v37 = vsel %vm592_vm7, %v13113_v54, %v4519_v20  ;;  %v4540_v14 = vsel %vm592_vm7, %v4519_v20, %v11611_v0  ;;  %v5238_v0 = vsel %vm1305_vm9, %v5187_v45, 0  ;;  %v13122_v45 = vld [vmem:[#allocation124_spill] sm:$0xff] }
 0x80d   :  { %v4572_v60 = vmul.f32 %v4539_v37, %v13094_v51  ;;  %v4573_v63 = vmul.f32 %v4540_v14, %v13079_v10  ;;  %6454 = vmatmul.msk.bf16.vlgmr.msrb.gmra.mxu3 %vm62_vm1, %v11402_v29  ;;  %v5088_v51 = vsel %vm66_vm0, %v4491_v59, %v4928_v31  ;;  %v13124_v59 = vld [vmem:[#allocation12_spill] sm:$0xff] }
 0x80e   :  { %5359 = vmatpush.bf16.msra.mxu3 %v13108_v27 }
 0x80f   :  { %v5104_v10 = vsel %vm66_vm0, %v4572_v60, %v4976_v49  ;;  %v5105_v23 = vsel %vm66_vm0, %v4573_v63, %v4977_v38  ;;  %v13125_v38 = vld [vmem:[#allocation133_spill] sm:$0xff] }
 0x810   :  { %v5152_v1 = vpack.c.bf16 %v5104_v10, %v5088_v51  ;;  %v5153_v41 = vpack.c.bf16 %v5105_v23, %v5089_v50  ;;  %v4724_v60 = vsel %vm592_vm7, %v11737_v35, %v13125_v38  ;;  %v13127_v51 = vld [vmem:[#allocation145_spill] sm:$0xff]  ;;  %v13128_v23 = vld [vmem:[#allocation46_spill] sm:$0xff] }
 0x811   :  { %v5060_v10 = vrot.slane %v13127_v51, 4  ;;  %v13136_v51 = vld [vmem:[#allocation107_spill] sm:$0xff] }
 0x812   :  { %5360 = vmatpush.bf16.msra.mxu3 %v13116_v4  ;;  %v11800_v7 = vpop.f32.mrf.mxu1  ;;  %5373 = vmatpush.bf16.msrb.mxu0 %v5152_v1 }
 0x813   :  { %5386 = vmatpush.bf16.msrb.mxu1 %v5153_v41  ;;  %v11804_v57 = vpop.permute.xlu1 %4444 }
 0x814   :  { %v4869_v8 = vpop.permute.xlu0 %4868  ;;  %v4461_v27 = vsel %vm477_vm6, %v13121_v13, %v11804_v57 }
 0x815   :  { %v4884_v3 = vsel %vm592_vm7, %v4867_v17, %v4869_v8  ;;  %v4902_v31 = vsel %vm592_vm7, %v4869_v8, %v13122_v45  ;;  %v4494_v33 = vmul.f32 %v4461_v27, %v13109_v11  ;;  %6459 = vmatmul.msk.bf16.vlgmr.msrb.gmra.mxu0 %vm62_vm1, %v11402_v29  ;;  %v13132_v8 = vld [vmem:[#allocation102_spill] sm:$0xff]  ;;  %v4626_v27 = vsel %vm477_vm6, %v11726_v53, %v13098_v5  ;;  %v4609_v5 = vpop.permute.xlu2 %4608 }
 0x816   :  { %5410 = vmatpush.bf16.msrb.mxu3 %v5238_v0  ;;  %5423 = vmatpush.bf16.msra.mxu0 %v5241_v19  ;;  %v4917_v62 = vmul.f32 %v4884_v3, %v13123_v44  ;;  %v4918_v58 = vmul.f32 %v4902_v31, %v13124_v59  ;;  %v4740_v0 = vmul.f32 %v4724_v60, %v13124_v59  ;;  %v13130_v19 = vld [vmem:[#allocation137_spill] sm:$0xff] }
 0x817   :  { %6460 = vmatmul.msk.bf16.vlgmr.msrb.gmra.mxu1 %vm62_vm1, %v11402_v29  ;;  %v5091_v20 = vsel %vm66_vm0, %v4494_v33, %v4931_v30  ;;  %v5062_v18 = vrot.slane %v13130_v19, 4  ;;  %v13134_v31 = vld [vmem:[#allocation113_spill] sm:$0xff]  ;;  %v4625_v60 = vsel %vm477_vm6, %v4609_v5, %v11726_v53 }
 0x818   :  { %v5189_v17 = vpack.c.bf16 %v4917_v62, %v4917_v62  ;;  %v5190_v36 = vpack.c.bf16 %v4918_v58, %v4918_v58  ;;  %v5155_v28 = vpack.c.bf16 %v5107_v21, %v5091_v20  ;;  %v5030_v22 = vrot.slane %v4740_v0, 4  ;;  %v6757_v19 = vld [vmem:[#allocation5 + $0xf8] sm:$0xff] }
 0x819   :  { %v11822_v54 = vpop.f32.mrf.mxu2  ;;  %v4464_v62 = vsel %vm477_vm6, %v11772_v42, %v11571_v56  ;;  %v4659_v21 = vmul.f32 %v4626_v27, %v13132_v8  ;;  %v4624_v56 = vsel %vm477_vm6, %v11655_v12, %v4609_v5  ;;  %v6753_v27 = vld [vmem:[#allocation5 + $0xd8] sm:$0xff] }
 0x81a   :  { %5411 = vmatpush.bf16.msrb.mxu3 %v5171_v52  ;;  %v5244_v11 = vsel %vm1305_vm9, %v5189_v17, 0  ;;  %v5247_v37 = vsel %vm1305_vm9, %v5190_v36, 0  ;;  %v5286_v14 = vpop.f32.mrf.mxu1  ;;  %v5061_v52 = vrot.slane %v13129_v61, 4  ;;  %v4497_v17 = vmul.f32 %v4464_v62, %v13132_v8  ;;  %v6742_v62 = vld [vmem:[#allocation5 + $0x80] sm:$0xff]  ;;  %v6741_v5 = vld [vmem:[#allocation5 + $0x78] sm:$0xff] }
 0x81b   :  { %5436 = vmatpush.bf16.msra.mxu1 %v5244_v11  ;;  %5449 = vmatpush.bf16.msra.mxu2 %v5247_v37  ;;  %v4787_v49 = vpop.permute.xlu1 %4786  ;;  %v13135_v11 = vld [vmem:[#allocation136_spill] sm:$0xff]  ;;  %v4982_v14 = vrot.slane %v4659_v21, 4  ;;  %v4657_v12 = vmul.f32 %v4624_v56, %v13126_v32 }
 0x81c   :  { %v4689_v63 = vpop.permute.xlu0 %4688  ;;  %v4802_v24 = vsel %vm477_vm6, %v11623_v34, %v4787_v49  ;;  %v4934_v37 = vrot.slane %v13135_v11, 4  ;;  %v6748_v56 = vld [vmem:[#allocation5 + $0xb0] sm:$0xff] }
 0x81d   :  { %v4705_v25 = vsel %vm592_vm7, %v11604_v48, %v4689_v63  ;;  %v4706_v4 = vsel %vm592_vm7, %v4689_v63, %v11737_v35  ;;  %v4835_v46 = vmul.f32 %v4802_v24, %v13126_v32  ;;  %6458 = vmatmul.msk.bf16.vlgmr.msra.gmra.mxu3 %vm62_vm1, %v11402_v29 }
 0x81e   :  { %5412 = vmatpush.bf16.msrb.mxu3 %v5155_v28  ;;  %v4738_v9 = vmul.f32 %v4705_v25, %v13110_v2  ;;  %v4739_v26 = vmul.f32 %v4706_v4, %v13123_v44  ;;  %v5094_v63 = vsel %vm66_vm0, %v4497_v17, %v4934_v37  ;;  %v6749_v17 = vld [vmem:[#allocation5 + $0xb8] sm:$0xff] }
 0x81f   :  { %v5140_v35 = vsel %vm66_vm0, %v4835_v46, %v5060_v10  ;;  %v4932_v10 = vrot.slane %v13136_v51, 4  ;;  %v6769_v51 = vld [vmem:[#allocation5 + $0x158] sm:$0xff] }
 0x820   :  { %v5028_v34 = vrot.slane %v4738_v9, 4  ;;  %v5029_v6 = vrot.slane %v4739_v26, 4  ;;  %v4658_v9 = vmul.f32 %v4625_v60, %v13131_v55  ;;  %v6760_v26 = vld [vmem:[#allocation5 + $0x110] sm:$0xff] }
 0x821   :  { %v5299_v50 = vpop.f32.mrf.mxu2 }
 0x822   :  { %v5124_v48 = vsel %vm66_vm0, %v13128_v23, %v5028_v34  ;;  %v5125_v3 = vsel %vm66_vm0, %v13133_v16, %v5029_v6  ;;  %v13137_v34 = vld [vmem:[#allocation15_spill] sm:$0xff]  ;;  %v4980_v23 = vrot.slane %v4657_v12, 4  ;;  %v6737_v16 = vld [vmem:[#allocation5 + $0x58] sm:$0xff] }
 0x823   :  { %v4789_v43 = vpop.permute.xlu1 %4788  ;;  %v5172_v39 = vpack.c.bf16 %v5140_v35, %v5124_v48  ;;  %v4981_v48 = vrot.slane %v4658_v9, 4  ;;  %6027 = vmatpush.bf16.msra.mxu3 %v6737_v16  ;;  %v6731_v12 = vld [vmem:[#allocation5 + $0x28] sm:$0xff] }
 0x824   :  { %v4803_v1 = vsel %vm477_vm6, %v4787_v49, %v4789_v43  ;;  %v4804_v41 = vsel %vm477_vm6, %v4789_v43, %v11660_v47  ;;  %v5126_v47 = vsel %vm66_vm0, %v13134_v31, %v5030_v22  ;;  %v4447_v49 = vpop.permute.xlu0 %4446  ;;  %v6743_v31 = vld [vmem:[#allocation5 + $0x88] sm:$0xff] }
 0x825   :  { %v4836_v30 = vmul.f32 %v4803_v1, %v13131_v55  ;;  %v4837_v13 = vmul.f32 %v4804_v41, %v13132_v8  ;;  %5424 = vmatpush.bf16.msra.mxu0 %v5172_v39  ;;  %v4462_v25 = vsel %vm477_vm6, %v11804_v57, %v4447_v49  ;;  %v4933_v57 = vrot.slane %v13137_v34, 4  ;;  %v6754_v8 = vld [vmem:[#allocation5 + $0xe0] sm:$0xff] }
 0x826   :  { %v4495_v53 = vmul.f32 %v4462_v25, %v13126_v32  ;;  %v6739_v25 = vld [vmem:[#allocation5 + $0x68] sm:$0xff] }
 0x827   :  { %v5141_v45 = vsel %vm66_vm0, %v4836_v30, %v5061_v52  ;;  %v5142_v33 = vsel %vm66_vm0, %v4837_v13, %v5062_v18  ;;  %v6756_v18 = vld [vmem:[#allocation5 + $0xf0] sm:$0xff]  ;;  %v6755_v30 = vld [vmem:[#allocation5 + $0xe8] sm:$0xff]  ;;  %v6745_v13 = vld [vmem:[#allocation5 + $0x98] sm:$0xff] }
 0x828   :  { %v5173_v58 = vpack.c.bf16 %v5141_v45, %v5125_v3  ;;  %v5174_v20 = vpack.c.bf16 %v5142_v33, %v5126_v47  ;;  %v5092_v22 = vsel %vm66_vm0, %v4495_v53, %v4932_v10  ;;  %v6752_v3 = vld [vmem:[#allocation5 + $0xd0] sm:$0xff]  ;;  %v6751_v47 = vld [vmem:[#allocation5 + $0xc8] sm:$0xff] }
 0x829   :  { %v6736_v45 = vld [vmem:[#allocation5 + $0x50] sm:$0xff]  ;;  %v6735_v33 = vld [vmem:[#allocation5 + $0x48] sm:$0xff] }
 0x82a   :  { %5437 = vmatpush.bf16.msra.mxu1 %v5173_v58  ;;  %5450 = vmatpush.bf16.msra.mxu2 %v5174_v20  ;;  %v6750_v58 = vld [vmem:[#allocation5 + $0xc0] sm:$0xff]  ;;  %v6768_v10 = vld [vmem:[#allocation5 + $0x150] sm:$0xff] }
 0x82b   :  { %v4529_v36 = vpop.permute.xlu1 %4528  ;;  %6028 = vmatpush.bf16.msra.mxu3 %v6736_v45  ;;  %v6734_v20 = vld [vmem:[#allocation5 + $0x40] sm:$0xff]  ;;  %v6789_v45 = vld [vmem:[#allocation5 + $0x1f8] sm:$0xff] }
 0x82c   :  { %v4562_v28 = vsel %vm592_vm7, %v4529_v36, %v11697_v15  ;;  %v6761_v15 = vld [vmem:[#allocation5 + $0x118] sm:$0xff] }
 0x82d   :  { %v4578_v38 = vmul.f32 %v4562_v28, %v13124_v59  ;;  %6462 = vmatmul.msk.bf16.vlgmr.msrb.gmra.mxu3 %vm62_vm1, %v11402_v29  ;;  %v4463_v59 = vsel %vm477_vm6, %v4447_v49, %v11772_v42  ;;  %v11909_v28 = vpop.permute.xlu2 %5195 }
 0x82e   :  { %v4496_v46 = vmul.f32 %v4463_v59, %v13131_v55  ;;  %v5298_v37 = vadd.f32 %v11822_v54, %v11909_v28  ;;  %v6747_v59 = vld [vmem:[#allocation5 + $0xa8] sm:$0xff] }
 0x82f   :  { %v5110_v24 = vsel %vm66_vm0, %v4578_v38, %v4982_v14  ;;  %6029 = vmatpush.bf16.msra.mxu3 %v6735_v33  ;;  %v6740_v38 = vld [vmem:[#allocation5 + $0x70] sm:$0xff]  ;;  %v6773_v33 = vld [vmem:[#allocation5 + $0x178] sm:$0xff] }
 0x830   :  { %v5158_v4 = vpack.c.bf16 %v5110_v24, %v5094_v63  ;;  %v5093_v43 = vsel %vm66_vm0, %v4496_v46, %v4933_v57  ;;  %v6732_v63 = vld [vmem:[#allocation5 + $0x30] sm:$0xff]  ;;  %v5460_v24 = vmax.f32 %v5298_v37, 0.0  ;;  %v6738_v46 = vld [vmem:[#allocation5 + $0x60] sm:$0xff] }
 0x832   :  { %5451 = vmatpush.bf16.msra.mxu2 %v5158_v4 }
 0x833   :  { %v4527_v0 = vpop.permute.xlu1 %4526  ;;  %6030 = vmatpush.bf16.msra.mxu3 %v6734_v20 }
 0x834   :  { %v4543_v42 = vsel %vm592_vm7, %v11689_v40, %v4527_v0  ;;  %v4544_v50 = vsel %vm592_vm7, %v4527_v0, %v4529_v36  ;;  %v6759_v40 = vld [vmem:[#allocation5 + $0x108] sm:$0xff]  ;;  %v6733_v36 = vld [vmem:[#allocation5 + $0x38] sm:$0xff]  ;;  %v6746_v0 = vld [vmem:[#allocation5 + $0xa0] sm:$0xff] }
 0x835   :  { %v4576_v35 = vmul.f32 %v4543_v42, %v13110_v2  ;;  %v4577_v32 = vmul.f32 %v4544_v50, %v13123_v44  ;;  %6465 = vmatmul.msk.bf16.vlgmr.msra.gmra.mxu2 %vm62_vm1, %v11402_v29  ;;  %v6758_v2 = vld [vmem:[#allocation5 + $0x100] sm:$0xff]  ;;  %v6767_v42 = vld [vmem:[#allocation5 + $0x148] sm:$0xff]  ;;  %v6793_v50 = vld [vmem:[#allocation5 + $0x218] sm:$0xff] }
 0x836   :  { %6066 = vmatpush.bf16.msrb.mxu2 %v6761_v15 }
 0x837   :  { %v5108_v6 = vsel %vm66_vm0, %v4576_v35, %v4980_v23  ;;  %v5109_v39 = vsel %vm66_vm0, %v4577_v32, %v4981_v48  ;;  %6031 = vmatpush.bf16.msra.mxu3 %v6733_v36  ;;  %v6777_v23 = vld [vmem:[#allocation5 + $0x198] sm:$0xff]  ;;  %v6766_v32 = vld [vmem:[#allocation5 + $0x140] sm:$0xff]  ;;  %vm6205_vm0 = vcmask 523264  }
 0x838   :  { %v5156_v1 = vpack.c.bf16 %v5108_v6, %v5092_v22  ;;  %v5157_v41 = vpack.c.bf16 %v5109_v39, %v5093_v43  ;;  %v6785_v48 = vld [vmem:[#allocation5 + $0x1d8] sm:$0xff]  ;;  %v6792_v22 = vld [vmem:[#allocation5 + $0x210] sm:$0xff] }
 0x839   :  { %v6776_v6 = vld [vmem:[#allocation5 + $0x190] sm:$0xff]  ;;  %v6765_v39 = vld [vmem:[#allocation5 + $0x138] sm:$0xff] }
 0x83a   :  { %6067 = vmatpush.bf16.msrb.mxu2 %v6760_v26  ;;  %5425 = vmatpush.bf16.msra.mxu0 %v5156_v1  ;;  %v6730_v26 = vld [vmem:[#allocation5 + $0x20] sm:$0xff]  ;;  %v6784_v43 = vld [vmem:[#allocation5 + $0x1d0] sm:$0xff]  ;;  %v6775_v1 = vld [vmem:[#allocation5 + $0x188] sm:$0xff] }
 0x83b   :  { %5438 = vmatpush.bf16.msra.mxu1 %v5157_v41  ;;  %6032 = vmatpush.bf16.msra.mxu3 %v6732_v63  ;;  %v6783_v41 = vld [vmem:[#allocation5 + $0x1c8] sm:$0xff]  ;;  %v6780_v63 = vld [vmem:[#allocation5 + $0x1b0] sm:$0xff] }
 0x83d   :  { %6463 = vmatmul.msk.bf16.vlgmr.msra.gmra.mxu0 %vm62_vm1, %v11402_v29 }
 0x83e   :  { %6068 = vmatpush.bf16.msrb.mxu2 %v6759_v40  ;;  %6464 = vmatmul.msk.bf16.vlgmr.msra.gmra.mxu1 %vm62_vm1, %v11402_v29  ;;  %v6744_v29 = vld [vmem:[#allocation5 + $0x90] sm:$0xff]  ;;  %v6791_v40 = vld [vmem:[#allocation5 + $0x208] sm:$0xff]  ;;  %vm6371_vm1 = vcmask 9216  }
 0x83f   :  { %6040 = vmatpush.bf16.msrb.mxu0 %v6745_v13  ;;  %6053 = vmatpush.bf16.msrb.mxu1 %v6753_v27  ;;  %v5285_v13 = vadd.f32 %v11800_v7, %v11909_v28 }
 0x840   :  { %6033 = vmatpush.bf16.msra.mxu3 %v6731_v12 }
 0x842   :  { %6069 = vmatpush.bf16.msrb.mxu2 %v6758_v2  ;;  %v11903_v44 = vpop.f32.mrf.mxu1  ;;  %v6764_v2 = vld [vmem:[#allocation5 + $0x130] sm:$0xff] }
 0x843   :  { %6041 = vmatpush.bf16.msrb.mxu0 %v6744_v29  ;;  %6054 = vmatpush.bf16.msrb.mxu1 %v6752_v3  ;;  %v6763_v3 = vld [vmem:[#allocation5 + $0x128] sm:$0xff] }
 0x844   :  { %6034 = vmatpush.bf16.msra.mxu3 %v6730_v26 }
 0x846   :  { %6070 = vmatpush.bf16.msrb.mxu2 %v6757_v19 }
 0x847   :  { %6042 = vmatpush.bf16.msrb.mxu0 %v6743_v31  ;;  %6055 = vmatpush.bf16.msrb.mxu1 %v6751_v47 }
 0x848   :  { %v11905_v61 = vpop.f32.mrf.mxu2  ;;  %6079 = vmatpush.bf16.msrb.mxu3 %v6769_v51 }
 0x84a   :  { %v5338_v52 = vpop.f32.mrf.mxu1  ;;  %6071 = vmatpush.bf16.msrb.mxu2 %v6756_v18 }
 0x84b   :  { %6043 = vmatpush.bf16.msrb.mxu0 %v6742_v62  ;;  %6056 = vmatpush.bf16.msrb.mxu1 %v6750_v58  ;;  %v6790_v52 = vld [vmem:[#allocation5 + $0x200] sm:$0xff]  ;;  %v6781_v62 = vld [vmem:[#allocation5 + $0x1b8] sm:$0xff]  ;;  %v5459_v58 = vmax.f32 %v5285_v13, 0.0 }
 0x84c   :  { %6080 = vmatpush.bf16.msrb.mxu3 %v6768_v10 }
 0x84e   :  { %6072 = vmatpush.bf16.msrb.mxu2 %v6755_v30  ;;  %v6774_v30 = vld [vmem:[#allocation5 + $0x180] sm:$0xff] }
 0x84f   :  { %6044 = vmatpush.bf16.msrb.mxu0 %v6741_v5  ;;  %6057 = vmatpush.bf16.msrb.mxu1 %v6749_v17  ;;  %v6788_v17 = vld [vmem:[#allocation5 + $0x1f0] sm:$0xff] }
 0x850   :  { %v5351_v55 = vpop.f32.mrf.mxu2  ;;  %6081 = vmatpush.bf16.msrb.mxu3 %v6767_v42 }
 0x852   :  { %6073 = vmatpush.bf16.msrb.mxu2 %v6754_v8  ;;  %v6782_v8 = vld [vmem:[#allocation5 + $0x1c0] sm:$0xff] }
 0x853   :  { %6045 = vmatpush.bf16.msrb.mxu0 %v6740_v38  ;;  %6058 = vmatpush.bf16.msrb.mxu1 %v6748_v56 }
 0x854   :  { %6082 = vmatpush.bf16.msrb.mxu3 %v6766_v32 }
 0x856   :  { %6118 = vmatpush.bf16.msra.mxu2 %v6793_v50 }
 0x857   :  { %6046 = vmatpush.bf16.msrb.mxu0 %v6739_v25  ;;  %6059 = vmatpush.bf16.msrb.mxu1 %v6747_v59  ;;  %v6779_v25 = vld [vmem:[#allocation5 + $0x1a8] sm:$0xff]  ;;  %v6786_v59 = vld [vmem:[#allocation5 + $0x1e0] sm:$0xff] }
 0x858   :  { %6083 = vmatpush.bf16.msrb.mxu3 %v6765_v39 }
 0x85a   :  { %6119 = vmatpush.bf16.msra.mxu2 %v6792_v22 }
 0x85b   :  { %6047 = vmatpush.bf16.msrb.mxu0 %v6738_v46  ;;  %6060 = vmatpush.bf16.msrb.mxu1 %v6746_v0  ;;  %v6778_v46 = vld [vmem:[#allocation5 + $0x1a0] sm:$0xff] }
 0x85c   :  { %6084 = vmatpush.bf16.msrb.mxu3 %v6764_v2 }
 0x85e   :  { %6120 = vmatpush.bf16.msra.mxu2 %v6791_v40 }
 0x85f   :  { %6092 = vmatpush.bf16.msra.mxu0 %v6777_v23  ;;  %6105 = vmatpush.bf16.msra.mxu1 %v6785_v48 }
 0x860   :  { %6085 = vmatpush.bf16.msrb.mxu3 %v6763_v3 }
 0x862   :  { %6121 = vmatpush.bf16.msra.mxu2 %v6790_v52 }
 0x863   :  { %6093 = vmatpush.bf16.msra.mxu0 %v6776_v6  ;;  %6106 = vmatpush.bf16.msra.mxu1 %v6784_v43  ;;  %v5350_v43 = vadd.f32 %v11905_v61, %v11909_v28 }
 0x866   :  { %6122 = vmatpush.bf16.msra.mxu2 %v6789_v45 }
 0x867   :  { %6094 = vmatpush.bf16.msra.mxu0 %v6775_v1  ;;  %6107 = vmatpush.bf16.msra.mxu1 %v6783_v41  ;;  %v5337_v41 = vadd.f32 %v11903_v44, %v11909_v28 }
 0x86a   :  { %v11907_v21 = vpop.f32.mrf.mxu0  ;;  %6123 = vmatpush.bf16.msra.mxu2 %v6788_v17 }
 0x86b   :  { %v5272_v27 = vadd.f32 %v11907_v21, %v11909_v28  ;;  %6095 = vmatpush.bf16.msra.mxu0 %v6774_v30  ;;  %6108 = vmatpush.bf16.msra.mxu1 %v6782_v8  ;;  %v6762_v21 = vld [vmem:[#allocation5 + $0x120] sm:$0xff]  ;;  %v5464_v8 = vmax.f32 %v5350_v43, 0.0  ;;  %v6200_v43 = vld [vmem:[#allocation2 + $0x120] sm:$0xff] }
 0x86c   :  { %6086 = vmatpush.bf16.msrb.mxu3 %v6762_v21 }
 0x86d   :  { %v5458_v20 = vmax.f32 %v5272_v27, 0.0 }
 0x86f   :  { %6096 = vmatpush.bf16.msra.mxu0 %v6773_v33  ;;  %6109 = vmatpush.bf16.msra.mxu1 %v6781_v62 }
 0x870   :  { %v5401_v11 = vpop.f32.mrf.mxu2 }
 0x871   :  { %v5402_v14 = vadd.f32 %v5401_v11, %v11909_v28 }
 0x872   :  { %v5273_v49 = vpop.f32.mrf.mxu0 }
 0x873   :  { %v5468_v60 = vmax.f32 %v5402_v14, 0.0  ;;  %6110 = vmatpush.bf16.msra.mxu1 %v6780_v63 }
 0x875   :  { %v5484_v15 = vrot.slane %v5468_v60, 7  ;;  %v6772_v60 = vld [vmem:[#allocation5 + $0x170] sm:$0xff] }
 0x876   :  { %6097 = vmatpush.bf16.msra.mxu0 %v6772_v60 }
 0x877   :  { %v5500_v4 = vsel %vm1288_vm8, %v5460_v24, %v5484_v15  ;;  %v6787_v24 = vld [vmem:[#allocation5 + $0x1e8] sm:$0xff]  ;;  %6111 = vmatpush.bf16.msra.mxu1 %v6779_v25 }
 0x878   :  { %v5508_v9 = vpack.c.bf16 %v5500_v4, %v5500_v4  ;;  %v5403_v54 = vpop.f32.mrf.mxu2  ;;  %6124 = vmatpush.bf16.msra.mxu2 %v6787_v24  ;;  %v6771_v15 = vld [vmem:[#allocation5 + $0x168] sm:$0xff] }
 0x879   :  { %v6770_v54 = vld [vmem:[#allocation5 + $0x160] sm:$0xff] }
 0x87a   :  { %v11915_v53 = vpop.f32.mrf.mxu0  ;;  %6074 = vmatmul.bf16.vlgmr.msrb.gmra.mxu2 %v5508_v9  ;;  %6098 = vmatpush.bf16.msra.mxu0 %v6771_v15 }
 0x87b   :  { %6112 = vmatpush.bf16.msra.mxu1 %v6778_v46 }
 0x87c   :  { %6125 = vmatpush.bf16.msra.mxu2 %v6786_v59 }
 0x87e   :  { %6099 = vmatpush.bf16.msra.mxu0 %v6770_v54 }
 0x880   :  { %v11917_v34 = vpop.f32.mrf.mxu3 }
 0x881   :  { %v5259_v12 = vadd.f32 %v11917_v34, %v11909_v28 }
 0x882   :  { %v5325_v57 = vpop.f32.mrf.mxu0 }
 0x883   :  { %v5457_v26 = vmax.f32 %v5259_v12, 0.0 }
 0x888   :  { %v5260_v35 = vpop.f32.mrf.mxu3 }
 0x890   :  { %v11919_v19 = vpop.f32.mrf.mxu3 }
 0x891   :  { %v5311_v23 = vadd.f32 %v11919_v19, %v11909_v28  ;;  %v5324_v19 = vadd.f32 %v11915_v53, %v11909_v28 }
 0x892   :  { %v5375_v18 = vpop.f32.mrf.mxu0 }
 0x893   :  { %v5376_v16 = vadd.f32 %v5375_v18, %v11909_v28  ;;  %v5461_v35 = vmax.f32 %v5311_v23, 0.0  ;;  %v6161_v23 = vld [vmem:[#allocation2 + $0xe0] sm:$0xff] }
 0x894   :  { %v5388_v55 = vpop.f32.mrf.mxu1 }
 0x895   :  { %v5389_v29 = vadd.f32 %v5388_v55, %v11909_v28  ;;  %v5466_v31 = vmax.f32 %v5376_v16, 0.0  ;;  %v5463_v16 = vmax.f32 %v5337_v41, 0.0  ;;  %v6196_v41 = vld [vmem:[#allocation2 + $0x100] sm:$0xff] }
 0x897   :  { %v5467_v47 = vmax.f32 %v5389_v29, 0.0  ;;  %v5482_v7 = vrot.slane %v5466_v31, 7  ;;  %v5462_v29 = vmax.f32 %v5324_v19, 0.0 }
 0x898   :  { %v5312_v37 = vpop.f32.mrf.mxu3 }
 0x899   :  { %v5483_v5 = vrot.slane %v5467_v47, 7  ;;  %v5498_v36 = vsel %vm1288_vm8, %v5458_v20, %v5482_v7  ;;  %v6133_v37 = vld [vmem:[#allocation2 + $0xd0] sm:$0xff] }
 0x89a   :  { %v5506_v14 = vpack.c.bf16 %v5498_v36, %v5498_v36  ;;  %v5377_v38 = vpop.f32.mrf.mxu0 }
 0x89b   :  { %v5499_v11 = vsel %vm1288_vm8, %v5459_v58, %v5483_v5 }
 0x89c   :  { %v5507_v49 = vpack.c.bf16 %v5499_v11, %v5499_v11  ;;  %v5390_v56 = vpop.f32.mrf.mxu1  ;;  %6048 = vmatmul.bf16.vlgmr.msrb.gmra.mxu0 %v5506_v14  ;;  %v6132_v14 = vld [vmem:[#allocation2 + $0xc8] sm:$0xff] }
 0x89e   :  { %6061 = vmatmul.bf16.vlgmr.msrb.gmra.mxu1 %v5507_v49  ;;  %v6813_v49 = vld [vmem:[#allocation2 + $0xc0] ss:$0 sm:$0xff] }
 0x8a0   :  { %v5362_v4 = vpop.f32.mrf.mxu3 }
 0x8a1   :  { %v5363_v9 = vadd.f32 %v5362_v4, %v11909_v28 }
 0x8a3   :  { %v5465_v0 = vmax.f32 %v5363_v9, 0.0 }
 0x8a5   :  { %v5481_v51 = vrot.slane %v5465_v0, 7 }
 0x8a7   :  { %v5497_v10 = vsel %vm1288_vm8, %v5457_v26, %v5481_v51 }
 0x8a8   :  { %v5505_v57 = vpack.c.bf16 %v5497_v10, %v5497_v10  ;;  %v5364_v42 = vpop.f32.mrf.mxu3 }
 0x8aa   :  { %6035 = vmatmul.bf16.vlgmr.msra.gmra.mxu3 %v5505_v57 }
 0x8ab   :  { %6154 = vmatpush.msra.mxu3 %v6133_v37 }
 0x8ad   :  { %6155 = vmatpush.msra.mxu3 %v6132_v14 }
 0x8b0   :  { %v5414_v50 = vpop.f32.mrf.mxu3 }
 0x8b1   :  { %v5415_v34 = vadd.f32 %v5414_v50, %v11909_v28  ;;  %v6162_v50 = vld [vmem:[#allocation2 + $0xe8] sm:$0xff] }
 0x8b3   :  { %v5469_v48 = vmax.f32 %v5415_v34, 0.0  ;;  %v6814_v34 = vld [vmem:[#allocation2 + $0xd8] ss:$0 sm:$0xff] }
 0x8b5   :  { %v5485_v32 = vrot.slane %v5469_v48, 7 }
 0x8b7   :  { %v5501_v22 = vsel %vm1288_vm8, %v5461_v35, %v5485_v32 }
 0x8b8   :  { %v5453_v6 = vpop.f32.mrf.mxu2  ;;  %v5509_v39 = vpack.c.bf16 %v5501_v22, %v5501_v22  ;;  %v5416_v1 = vpop.f32.mrf.mxu3  ;;  %v6202_v22 = vld [vmem:[#allocation2 + $0x130] sm:$0xff] }
 0x8b9   :  { %v5454_v40 = vadd.f32 %v5453_v6, %v11909_v28  ;;  %v6201_v6 = vld [vmem:[#allocation2 + $0x128] sm:$0xff]  ;;  %6217 = vmatpush.msrb.mxu0 %v6202_v22 }
 0x8ba   :  { %v5427_v2 = vpop.f32.mrf.mxu0  ;;  %6087 = vmatmul.bf16.vlgmr.msrb.gmra.mxu3 %v5509_v39  ;;  %v6199_v39 = vld [vmem:[#allocation2 + $0x118] sm:$0xff]  ;;  %v6197_v1 = vld [vmem:[#allocation2 + $0x108] sm:$0xff] }
 0x8bb   :  { %v5440_v52 = vpop.f32.mrf.mxu1  ;;  %v5472_v18 = vmax.f32 %v5454_v40, 0.0  ;;  %v5428_v55 = vadd.f32 %v5427_v2, %v11909_v28  ;;  %6182 = vmatpush.msrb.mxu3 %v6162_v50  ;;  %6218 = vmatpush.msrb.mxu0 %v6201_v6  ;;  %v6198_v40 = vld [vmem:[#allocation2 + $0x110] sm:$0xff] }
 0x8bc   :  { %v5441_v30 = vadd.f32 %v5440_v52, %v11909_v28  ;;  %v6815_v2 = vld [vmem:[#allocation2 + $0xf0] ss:$0 sm:$0xff] }
 0x8bd   :  { %v5488_v61 = vrot.slane %v5472_v18, 7  ;;  %v5470_v13 = vmax.f32 %v5428_v55, 0.0  ;;  %6183 = vmatpush.msrb.mxu3 %v6161_v23  ;;  %6219 = vmatpush.msrb.mxu0 %v6200_v43 }
 0x8be   :  { %v5471_v27 = vmax.f32 %v5441_v30, 0.0  ;;  %v6195_v30 = vld [vmem:[#allocation2 + $0xf8] sm:$0xff] }
 0x8bf   :  { %v5504_v3 = vsel %vm1288_vm8, %v5464_v8, %v5488_v61  ;;  %v5486_v44 = vrot.slane %v5470_v13, 7  ;;  %6220 = vmatpush.msrb.mxu0 %v6199_v39  ;;  %v6812_v8 = vld [vmem:[#allocation2 + $0x98] ss:$0 sm:$0xff]  ;;  %v13138_v61 = vld [vmem:[#allocation56_spill] sm:$0xff] }
 0x8c0   :  { %v5487_v45 = vrot.slane %v5471_v27, 7  ;;  %v5512_v31 = vpack.c.bf16 %v5504_v3, %v5504_v3  ;;  %v5455_v47 = vpop.f32.mrf.mxu2  ;;  %v157_v13 = vadd.f32 %v6812_v8, %v13138_v61  ;;  %v13139_v27 = vld [vmem:[#allocation29_spill] sm:$0xff] }
 0x8c1   :  { %v5502_v53 = vsel %vm1288_vm8, %v5462_v29, %v5486_v44  ;;  %6221 = vmatpush.msrb.mxu0 %v6198_v40  ;;  %v6816_v47 = vld [vmem:[#allocation2 + $0x138] ss:$0 sm:$0xff] }
 0x8c2   :  { %v5503_v33 = vsel %vm1288_vm8, %v5463_v16, %v5487_v45  ;;  %v5510_v62 = vpack.c.bf16 %v5502_v53, %v5502_v53  ;;  %6126 = vmatmul.bf16.vlgmr.msra.gmra.mxu2 %v5512_v31  ;;  %v5429_v28 = vpop.f32.mrf.mxu0  ;;  %v159_v16 = vadd.f32 %v157_v13, %v13139_v27  ;;  %v6231_v45 = vld [vmem:[#allocation2 + $0x148] sm:$0xff]  ;;  %v6230_v31 = vld [vmem:[#allocation2 + $0x140] sm:$0xff] }
 0x8c3   :  { %v5511_v58 = vpack.c.bf16 %v5503_v33, %v5503_v33  ;;  %v5442_v20 = vpop.f32.mrf.mxu1  ;;  %6222 = vmatpush.msrb.mxu0 %v6197_v1  ;;  %6251 = vmatpush.msrb.mxu1 %v6231_v45  ;;  %v6258_v28 = vld [vmem:[#allocation2 + $0x158] sm:$0xff] }
 0x8c4   :  { %6100 = vmatmul.bf16.vlgmr.msra.gmra.mxu0 %v5510_v62  ;;  %v160_v29 = vmax.f32 %v159_v16, 0.0  ;;  %v6817_v20 = vld [vmem:[#allocation2 + $0x150] ss:$0 sm:$0xff] }
 0x8c5   :  { %6113 = vmatmul.bf16.vlgmr.msra.gmra.mxu1 %v5511_v58  ;;  %6223 = vmatpush.msrb.mxu0 %v6196_v41  ;;  %v6259_v58 = vld [vmem:[#allocation2 + $0x160] sm:$0xff] }
 0x8c6   :  { %6252 = vmatpush.msrb.mxu1 %v6230_v31  ;;  %6279 = vmatpush.msrb.mxu2 %v6259_v58 }
 0x8c7   :  { %6224 = vmatpush.msrb.mxu0 %v6195_v30 }
 0x8c8   :  { %6280 = vmatpush.msrb.mxu2 %v6258_v28 }
 0x8fd   :  { %v6075_v7 = vpop.f32.mrf.mxu2 }
 0x905   :  { %v6077_v5 = vpop.f32.mrf.mxu2 }
 0x919   :  { %v6049_v21 = vpop.f32.mrf.mxu0 }
 0x91b   :  { %v6062_v17 = vpop.f32.mrf.mxu1 }
 0x921   :  { %v6051_v36 = vpop.f32.mrf.mxu0 }
 0x922   :  { %v6287_v36 = vld [vmem:[#allocation2 + $0x170] sm:$0xff] }
 0x923   :  { %v6064_v11 = vpop.f32.mrf.mxu1 }
 0x924   :  { %v6818_v11 = vld [vmem:[#allocation2 + $0x168] ss:$0 sm:$0xff] }
 0x92d   :  { %v6036_v38 = vpop.f32.mrf.mxu3 }
 0x92e   :  { %v6037_v56 = vadd.f32 %v6813_v49, %v6036_v38 }
 0x930   :  { %v6050_v60 = vadd.f32 %v6049_v21, %v6037_v56  ;;  %v6316_v56 = vld [vmem:[#allocation2 + $0x190] sm:$0xff] }
 0x931   :  { %6336 = vmatpush.msra.mxu0 %v6316_v56 }
 0x932   :  { %v6063_v24 = vadd.f32 %v6062_v17, %v6050_v60  ;;  %v6288_v17 = vld [vmem:[#allocation2 + $0x178] sm:$0xff]  ;;  %v6315_v60 = vld [vmem:[#allocation2 + $0x188] sm:$0xff] }
 0x933   :  { %6337 = vmatpush.msra.mxu0 %v6315_v60 }
 0x934   :  { %v6076_v15 = vadd.f32 %v6075_v7, %v6063_v24 }
 0x935   :  { %v6038_v63 = vpop.f32.mrf.mxu3 }
 0x936   :  { %v6819_v63 = vld [vmem:[#allocation2 + $0x180] ss:$0 sm:$0xff] }
 0x93d   :  { %v6088_v25 = vpop.f32.mrf.mxu3 }
 0x93e   :  { %v6089_v59 = vadd.f32 %v6088_v25, %v6076_v15 }
 0x941   :  { %v6101_v4 = vpop.f32.mrf.mxu0 }
 0x942   :  { %v6114_v12 = vpop.f32.mrf.mxu1  ;;  %v6102_v9 = vadd.f32 %v6101_v4, %v6089_v59  ;;  %v6345_v59 = vld [vmem:[#allocation2 + $0x1a8] sm:$0xff]  ;;  %v6344_v4 = vld [vmem:[#allocation2 + $0x1a0] sm:$0xff] }
 0x943   :  { %6365 = vmatpush.msra.mxu1 %v6345_v59 }
 0x944   :  { %v6115_v54 = vadd.f32 %v6114_v12, %v6102_v9  ;;  %v6820_v12 = vld [vmem:[#allocation2 + $0x198] ss:$0 sm:$0xff] }
 0x945   :  { %v6127_v46 = vpop.f32.mrf.mxu2  ;;  %v6090_v0 = vpop.f32.mrf.mxu3  ;;  %6366 = vmatpush.msra.mxu1 %v6344_v4 }
 0x946   :  { %v6128_v26 = vadd.f32 %v6127_v46, %v6115_v54 }
 0x948   :  { %v6131_v51 = vmax.f32 %v6128_v26, 0.0  ;;  %v6821_v26 = vld [vmem:[#allocation2 + $0x1b0] ss:$0 sm:$0xff] }
 0x949   :  { %v6103_v10 = vpop.f32.mrf.mxu0 }
 0x94a   :  { %v6116_v57 = vpop.f32.mrf.mxu1  ;;  %6722 = vmatmul.msk.f32.vlgmr.msra.gmra.mxu3 %vm6136_vm15, %v6131_v51 }
 0x94b   :  { %6308 = vmatpush.msra.mxu3 %v6288_v17 }
 0x94d   :  { %v6129_v42 = vpop.f32.mrf.mxu2  ;;  %6309 = vmatpush.msra.mxu3 %v6287_v36 }
 0x9cd   :  { %v6157_v48 = vpop.f32.mrf.mxu3 }
 0x9ce   :  { %v6158_v35 = vadd.f32 %v6814_v34, %v6157_v48 }
 0x9d0   :  { %v6160_v32 = vmax.f32 %v6158_v35, 0.0 }
 0x9d2   :  { %6723 = vmatmul.msk.f32.vlgmr.msrb.gmra.mxu3 %vm6136_vm15, %v6160_v32 }
 0xa55   :  { %v6185_v52 = vpop.f32.mrf.mxu3 }
 0xa56   :  { %v6186_v19 = vadd.f32 %v6815_v2, %v6185_v52 }
 0xa58   :  { %v6188_v18 = vadd.f32 %v6186_v19, %v6131_v51 }
 0xa5a   :  { %v6189_v55 = vmax.f32 %v6188_v18, 0.0 }
 0xa5c   :  { %6191 = vrot.lane.b32.xlu0 %v6189_v55, %s6912_s2 }
 0xace   :  { %v6192_v3 = vpop.permute.xlu0 %6191 }
 0xacf   :  { %v6194_v44 = vsel %vm103_vm5, %v160_v29, %v6192_v3 }
 0xad0   :  { %6724 = vmatmul.msk.f32.vlgmr.msrb.gmra.mxu0 %vm6205_vm0, %v6194_v44 }
 0xb4d   :  { %v6226_v53 = vpop.f32.mrf.mxu0 }
 0xb4e   :  { %v6227_v33 = vadd.f32 %v6816_v47, %v6226_v53 }
 0xb50   :  { %v6229_v62 = vmax.f32 %v6227_v33, 0.0 }
 0xb52   :  { %6725 = vmatmul.msk.f32.vlgmr.msrb.gmra.mxu1 %vm6136_vm15, %v6229_v62 }
 0xbcf   :  { %v6254_v7 = vpop.f32.mrf.mxu1 }
 0xbd0   :  { %v6255_v5 = vadd.f32 %v6817_v20, %v6254_v7 }
 0xbd2   :  { %v6257_v21 = vmax.f32 %v6255_v5, 0.0 }
 0xbd4   :  { %6726 = vmatmul.msk.f32.vlgmr.msrb.gmra.mxu2 %vm6136_vm15, %v6257_v21 }
 0xc57   :  { %v6282_v37 = vpop.f32.mrf.mxu2 }
 0xc58   :  { %v6283_v14 = vadd.f32 %v6818_v11, %v6282_v37 }
 0xc5a   :  { %v6285_v49 = vadd.f32 %v6283_v14, %v6229_v62 }
 0xc5c   :  { %v6286_v38 = vmax.f32 %v6285_v49, 0.0 }
 0xc5e   :  { %6727 = vmatmul.msk.f32.vlgmr.msra.gmra.mxu3 %vm6136_vm15, %v6286_v38 }
 0xce1   :  { %v6311_v24 = vpop.f32.mrf.mxu3 }
 0xce2   :  { %v6312_v15 = vadd.f32 %v6819_v63, %v6311_v24 }
 0xce4   :  { %v6314_v25 = vmax.f32 %v6312_v15, 0.0 }
 0xce6   :  { %6728 = vmatmul.msk.f32.vlgmr.msra.gmra.mxu0 %vm6136_vm15, %v6314_v25 }
 0xd63   :  { %v6339_v9 = vpop.f32.mrf.mxu0 }
 0xd64   :  { %v6340_v54 = vadd.f32 %v6820_v12, %v6339_v9 }
 0xd66   :  { %v6342_v46 = vadd.f32 %v6340_v54, %v6286_v38 }
 0xd68   :  { %v6343_v0 = vmax.f32 %v6342_v46, 0.0 }
 0xd6a   :  { %6729 = vmatmul.msk.f32.vlgmr.msra.gmra.mxu1 %vm6136_vm15, %v6343_v0 }
 0xde7   :  { %v6368_v51 = vpop.f32.mrf.mxu1 }
 0xde8   :  { %v6369_v10 = vadd.f32 %v6821_v26, %v6368_v51 }
 0xdea   :  { %6372 = vst.msk [vmem:[#allocation7] sm:$0x3] %vm6371_vm1, %v6369_v10 }
 0xdeb   :  { %6383 = dma.vmem_to_hbm [thread:$0]  %s6379_s30, 32, %s6381_s7, [#allocation4]  }
 0xdec   :  { %6898 = dma.done.wait [#allocation4], 32  }
 0xded   :  { %6899 = vsyncadd [#allocation4], 4294967264 }
 0xdee   :  { %6388 = vsyncpa [#allocation3], 1 }
 0xdef   :  { %6389 = vsyncpa [#allocation6], 1 }
 0xdf0   :  { %6390 = vsyncpa [#allocation4], 1 }

</bundles_post_ra>
